<compile_context>
chip_gen: v7x
topology: tpu7x:2x2x1
jax: 0.10.0
libtpu: 0.0.40
codegen_flags: <defaults>
</compile_context>

<pallas_src>
import jax
import jax.numpy as jnp
from jax.experimental import pallas as pl
from jax.experimental.pallas import tpu as pltpu

OUT_FEATURES = 128 * 14 * 14          # 25088
ROWS, LANES = 196, 128                # 196 * 128 == 25088 (lane-dense slab)


# ---------------------------------------------------------------------------
# One-time parameter preparation: fuse W and b into a single (2, 196, 128)
# slab so the kernel has a single (resident) input DMA and the per-call path
# does no cast/reshape work.  Use dtype=jnp.bfloat16 to halve the param read.
# ---------------------------------------------------------------------------
def prepare_params(weight, bias, dtype=jnp.float32):
    """weight: (25088, 1), bias: (25088,) -> fused (2, 196, 128) slab."""
    w2d = jnp.reshape(weight.astype(jnp.float32), (ROWS, LANES))
    b2d = jnp.reshape(bias.astype(jnp.float32), (ROWS, LANES))
    return jnp.stack([w2d, b2d], axis=0).astype(dtype)     # (2, 196, 128)


# ---------------------------------------------------------------------------
# Kernel: one grid step computes TB slabs (TB = o_ref.shape[0], static).
#   xs_ref : (B_pad,) f32 in SMEM (full array, scalar-indexed)
#   wb_ref : (2, 196, 128) params in VMEM (resident across grid steps)
#   o_ref  : (TB, 196, 128) output block
# ---------------------------------------------------------------------------
def _upscale_block_kernel(xs_ref, wb_ref, o_ref):
    tb = o_ref.shape[0]                      # static block size
    base = pl.program_id(0) * tb             # first batch index of this block
    # Widen params once per step (no-op for f32 params, widen-on-load for bf16).
    w = wb_ref[0].astype(jnp.float32)        # (196, 128)
    b = wb_ref[1].astype(jnp.float32)        # (196, 128)
    # Static unroll over the block: each iteration is a cheap SMEM-scalar
    # broadcast + 25-vreg VPU FMA + 25 unmasked 128-lane stores.
    for t in range(tb):
        xv = xs_ref[base + t]
        o_ref[t] = (xv * w + b).astype(o_ref.dtype)


# ---------------------------------------------------------------------------
# Wrappers
# ---------------------------------------------------------------------------
def upscale_batched_slabs(xs, wb, *, out_dtype=jnp.float32,
                          block_b=16, no_grid_max_b=16):
    """xs: (B,) scalars; wb: fused (2,196,128) params.
    Returns (B, 196, 128) slabs (row-major flatten of each == y_flat).

    B <= no_grid_max_b : single block, no pipelining overhead at all.
    B >  no_grid_max_b : grid over batch blocks of `block_b` slabs; parallel
                         axis -> both v7x TensorCores get work."""
    xs_f32 = jnp.reshape(xs, (-1,)).astype(jnp.float32)
    B = xs_f32.shape[0]

    tb = B if B <= no_grid_max_b else block_b
    num_blocks = pl.cdiv(B, tb)
    B_pad = num_blocks * tb
    if B_pad != B:
        xs_f32 = jnp.pad(xs_f32, (0, B_pad - B))

    out = pl.pallas_call(
        _upscale_block_kernel,
        out_shape=jax.ShapeDtypeStruct((B_pad, ROWS, LANES), out_dtype),
        grid=(num_blocks,),
        in_specs=[
            pl.BlockSpec(memory_space=pltpu.SMEM),                # xs (B_pad,)
            pl.BlockSpec((2, ROWS, LANES), lambda i: (0, 0, 0)),  # fused W|b
        ],
        out_specs=pl.BlockSpec((tb, ROWS, LANES), lambda i: (i, 0, 0)),
        compiler_params=pltpu.CompilerParams(
            dimension_semantics=("parallel",)),
    )(xs_f32, wb)

    return out if B_pad == B else out[:B]


def upscale_slab(x, wb, *, out_dtype=jnp.float32):
    """Single-scalar path: returns the lane-dense (196, 128) slab."""
    return upscale_batched_slabs(jnp.reshape(x, (1,)), wb,
                                 out_dtype=out_dtype)[0]


def upscale_forward(x, wb):
    """Full PyTorch-equivalent forward: returns (1, 128, 14, 14).
    NOTE: the NCHW view (last dim 14 << 128 lanes) forces a padded relayout
    on TPU; downstream consumers should take `upscale_slab` / the batched
    slabs directly whenever possible."""
    slab = upscale_slab(x, wb)
    # row-major reshape == x.view(-1, 128, 14, 14)
    return slab.reshape(1, 128, 14, 14)


if __name__ == "__main__":
    key = jax.random.PRNGKey(0)
    kx, kw, kb, kxs = jax.random.split(key, 4)

    # Deterministic synthetic parameters (shapes from nn.Linear(1, 25088)).
    weight = jax.random.normal(kw, (OUT_FEATURES, 1), dtype=jnp.float32) * 0.02
    bias = jax.random.normal(kb, (OUT_FEATURES,), dtype=jnp.float32) * 0.02

    # Module input: a single scalar element (forward does x.view(1, 1)).
    x = jax.random.normal(kx, (1, 1), dtype=jnp.float32)

    # One-time parameter fusion (outside the per-call path).
    wb = jax.block_until_ready(prepare_params(weight, bias))

    # --- single-call forward (module semantics) ---
    out = jax.block_until_ready(jax.jit(upscale_forward)(x, wb))
    ref = (jnp.reshape(x, (1, 1)) @ weight.T + bias).reshape(-1, 128, 14, 14)
    assert out.shape == (1, 128, 14, 14)
    assert jnp.allclose(out, ref, atol=1e-5, rtol=1e-5)

    # --- batched path, small B: single block (no grid overhead) ---
    B = 4
    xs = jax.random.normal(kxs, (B,), dtype=jnp.float32)
    slabs = jax.block_until_ready(jax.jit(upscale_batched_slabs)(xs, wb))
    ref_b = xs[:, None] * weight[:, 0][None, :] + bias[None, :]
    assert slabs.shape == (B, ROWS, LANES)
    assert jnp.allclose(slabs.reshape(B, -1), ref_b, atol=1e-5, rtol=1e-5)

    # --- batched path, blocked grid (exercises TB blocking + batch padding) ---
    B2 = 20
    xs2 = jax.random.normal(jax.random.fold_in(kxs, 1), (B2,), dtype=jnp.float32)
    blocked_fn = jax.jit(
        lambda a: upscale_batched_slabs(a, wb, block_b=8, no_grid_max_b=8))
    slabs2 = jax.block_until_ready(blocked_fn(xs2))
    ref_b2 = xs2[:, None] * weight[:, 0][None, :] + bias[None, :]
    assert slabs2.shape == (B2, ROWS, LANES)
    assert jnp.allclose(slabs2.reshape(B2, -1), ref_b2, atol=1e-5, rtol=1e-5)

    # --- bf16 params + bf16 output (halves HBM traffic; compute stays f32) ---
    wb_bf16 = jax.block_until_ready(prepare_params(weight, bias,
                                                   dtype=jnp.bfloat16))
    bf16_fn = jax.jit(
        lambda a: upscale_batched_slabs(a, wb_bf16, out_dtype=jnp.bfloat16))
    slabs_bf = jax.block_until_ready(bf16_fn(xs))
    assert slabs_bf.dtype == jnp.bfloat16
    assert jnp.allclose(slabs_bf.astype(jnp.float32).reshape(B, -1), ref_b,
                        atol=2e-2, rtol=2e-2)

    print("KERNEL_OK")
</pallas_src>

<mosaic_0001>
module attributes {stable_mosaic.version = 11 : i64} {
  func.func @_upscale_block_kernel(%arg0: i32, %arg1: memref<1xf32, #tpu.memory_space<smem>>, %arg2: memref<2x196x128xf32, #tpu.memory_space<vmem>>, %arg3: memref<1x196x128xf32, #tpu.memory_space<vmem>>) attributes {dimension_semantics = [#tpu.dimension_semantics<parallel>], iteration_bounds = array<i64: 1>, scalar_prefetch = 0 : i64, scratch_operands = 0 : i64, tpu.core_type = #tpu.core_type<tc>, window_params = [{transform_indices = @transform_0, window_bounds = array<i64: 1>}, {pipeline_mode = #tpu.pipeline_mode<synchronous>, transform_indices = @transform_1, window_bounds = array<i64: 2, 196, 128>}, {transform_indices = @transform_2, window_bounds = array<i64: 1, 196, 128>}]} {
    %c1_i32 = arith.constant 1 : i32
    %0 = arith.muli %arg0, %c1_i32 : i32
    %c0 = arith.constant 0 : index
    %c0_0 = arith.constant 0 : index
    %c0_1 = arith.constant 0 : index
    %1 = vector.load %arg2[%c0, %c0_0, %c0_1] : memref<2x196x128xf32, #tpu.memory_space<vmem>>, vector<1x196x128xf32>
    %2 = vector.shape_cast %1 : vector<1x196x128xf32> to vector<196x128xf32>
    %c1 = arith.constant 1 : index
    %c0_2 = arith.constant 0 : index
    %c0_3 = arith.constant 0 : index
    %3 = vector.load %arg2[%c1, %c0_2, %c0_3] : memref<2x196x128xf32, #tpu.memory_space<vmem>>, vector<1x196x128xf32>
    %4 = vector.shape_cast %3 : vector<1x196x128xf32> to vector<196x128xf32>
    %c0_i32 = arith.constant 0 : i32
    %5 = arith.addi %0, %c0_i32 : i32
    %6 = arith.index_cast %5 : i32 to index
    %7 = memref.load %arg1[%6] : memref<1xf32, #tpu.memory_space<smem>>
    %8 = vector.broadcast %7 : f32 to vector<196x128xf32>
    %9 = arith.mulf %8, %2 : vector<196x128xf32>
    %10 = arith.addf %9, %4 : vector<196x128xf32>
    %c0_4 = arith.constant 0 : index
    %c0_5 = arith.constant 0 : index
    %c0_6 = arith.constant 0 : index
    %11 = vector.load %arg3[%c0_4, %c0_5, %c0_6] : memref<1x196x128xf32, #tpu.memory_space<vmem>>, vector<1x196x128xf32>
    %12 = vector.shape_cast %11 : vector<1x196x128xf32> to vector<196x128xf32>
    %13 = vector.shape_cast %10 : vector<196x128xf32> to vector<1x196x128xf32>
    tpu.vector_store %arg3[%c0_4, %c0_5, %c0_6], %13 {strides = array<i32>} : memref<1x196x128xf32, #tpu.memory_space<vmem>>, vector<1x196x128xf32>,
    return
  }
  func.func @transform_0(%arg0: i32) -> i32 {
    %c0_i32 = arith.constant 0 : i32
    %c0_i32_0 = arith.constant 0 : i32
    return %c0_i32 : i32
  }
  func.func @transform_1(%arg0: i32) -> (i32, i32, i32) {
    %c0_i32 = arith.constant 0 : i32
    %c0_i32_0 = arith.constant 0 : i32
    %c0_i32_1 = arith.constant 0 : i32
    %c0_i32_2 = arith.constant 0 : i32
    return %c0_i32, %c0_i32_0, %c0_i32_1 : i32, i32, i32
  }
  func.func @transform_2(%arg0: i32) -> (i32, i32, i32) {
    %c0_i32 = arith.constant 0 : i32
    %c0_i32_0 = arith.constant 0 : i32
    %c0_i32_1 = arith.constant 0 : i32
    return %arg0, %c0_i32, %c0_i32_0 : i32, i32, i32
  }
}

</mosaic_0001>

<bundles_post_ra>
// kernel: squeeze.1
= control target key start
LH: loop header
LB: loop body
LE: loop exit
PB: predicated region body
PF: predicated region fallthrough
CT: control target
= control target key end

     0   :  { %vm46_vm0 = vcmask 1043458   ;;  %s124_s6 = smov 3  ;;  %vm50_vm1 = vcmask 1046532   ;;  %vm54_vm2 = vcmask 1047559   ;;  %vm105_vm3 = vcmask 1045508   ;;  %s127_s9 = smov 12  ;;  %s17206_s0 = inlined_call_operand.vmem [shape: f32[1,196,128], index: 0, kind: input, shape index: {}]   ;;  %s17207_s1 = inlined_call_operand.vmem [shape: f32[1,128,14,14], index: 1, kind: output, shape index: {}]  }
   0x1   :  { %v6821_v0 = vld [vmem:[%s17206_s0 + $0xa7] ss:$28 sm:%s124_s6]   ;;  %s41_s10 = smov 3  ;;  %s44_s17 = smov 12  ;;  %vm110_vm4 = vcmask 1047558   ;;  %vm143_vm5 = vcmask 1044482  }
   0x2   :  { %v6800_v1 = vld [vmem:[%s17206_s0 + $0x4c] sm:$0x80]   ;;  %v6822_v2 = vld [vmem:[%s17206_s0 + $0xd8] ss:$-21 sm:%s127_s9]   ;;  %s95_s18 = smov 3  ;;  %s98_s23 = smov 12 }
   0x3   :  { %v6797_v3 = vld [vmem:[%s17206_s0 + $0x22] ss:$-21 sm:%s41_s10]   ;;  %v130_v4 = vsel %vm46_vm0, %v6822_v2, %v6821_v0  ;;  %v6798_v5 = vld [vmem:[%s17206_s0 + $0x53] ss:$-21 sm:%s44_s17]   ;;  %s8761_s24 = smov 126   ;;  %s103_s27 = smov 48 }
   0x4   :  { %v6799_v6 = vld [vmem:[%s17206_s0 + $0x84] ss:$-21 sm:$0x70]   ;;  %131 = vrot.lane.b32.xlu1 %v130_v4, %s8761_s24  ;;  %v47_v7 = vsel %vm46_vm0, %v6798_v5, %v6797_v3  ;;  %s108_s28 = smov 192  ;;  %v6815_v11 = vld [vmem:[%s17206_s0 + $0xd1] ss:$-21 sm:%s103_s27]  }
   0x5   :  { %v6813_v8 = vld [vmem:[%s17206_s0 + $0x6f] ss:$28 sm:%s95_s18]   ;;  %v51_v9 = vsel %vm50_vm1, %v6799_v6, %v47_v7  ;;  %v6814_v10 = vld [vmem:[%s17206_s0 + $0x3e] ss:$28 sm:%s98_s23]   ;;  %s68_s4 = smov 3  ;;  %s71_s5 = smov 12 }
   0x6   :  { %v55_v12 = vsel %vm54_vm2, %v6800_v1, %v51_v9  ;;  %v101_v13 = vsel %vm46_vm0, %v6814_v10, %v6813_v8  ;;  %v6816_v14 = vld [vmem:[%s17206_s0 - $0x8] ss:$28 sm:%s108_s28]   ;;  %vm148_vm6 = vcmask 1046533   ;;  %s166_s14 = smov 3  ;;  %v6808_v21 = vld [vmem:[%s17206_s0 + $0xae] sm:$0x80]  }
   0x7   :  { %v6805_v15 = vld [vmem:[%s17206_s0 + $0x84] ss:$-70 sm:%s68_s4]   ;;  %56 = vrot.lane.b32.xlu0 %v55_v12, %s8761_s24  ;;  %v106_v16 = vsel %vm105_vm3, %v6815_v11, %v101_v13  ;;  %s173_s19 = smov 96  ;;  %s139_s20 = smov 3  ;;  %v6836_v28 = vld [vmem:[%s17206_s0 + $0xb4] sm:$0x80]  }
   0x8   :  { %v6806_v17 = vld [vmem:[%s17206_s0 + $0x84] ss:$-21 sm:%s71_s5]   ;;  %v6807_v18 = vld [vmem:[%s17206_s0 + $0xb5] ss:$-21 sm:$0x70]   ;;  %v111_v19 = vsel %vm110_vm4, %v6816_v14, %v106_v16  ;;  %s146_s26 = smov 96 }
   0x9   :  { %v74_v20 = vsel %vm46_vm0, %v6806_v17, %v6805_v15  ;;  %v6833_v22 = vld [vmem:[%s17206_s0 + $0x8a] ss:$-70 sm:%s166_s14]   ;;  %112 = vrot.lane.b32.xlu1 %v111_v19, %s8761_s24  ;;  %v6828_v30 = vld [vmem:[%s17206_s0 + $0x52] sm:$0x80]   ;;  %s222_s7 = smov 3  ;;  %s225_s10 = smov 12 }
   0xa   :  { %v78_v23 = vsel %vm50_vm1, %v6807_v18, %v74_v20  ;;  %v6834_v24 = vld [vmem:[%s17206_s0 + $0x8a] ss:$-21 sm:$0x1c]   ;;  %v6835_v25 = vld [vmem:[%s17206_s0 + $0xbb] ss:$-21 sm:%s173_s19]   ;;  %s193_s11 = smov 3 }
   0xb   :  { %v82_v26 = vsel %vm54_vm2, %v6808_v21, %v78_v23  ;;  %v171_v27 = vsel %vm143_vm5, %v6834_v24, %v6833_v22  ;;  %v6825_v29 = vld [vmem:[%s17206_s0 + $0x28] ss:$-21 sm:%s139_s20]   ;;  %v6826_v32 = vld [vmem:[%s17206_s0 + $0x59] ss:$-21 sm:$0x1c]   ;;  %s8762_s12 = smov 124  }
   0xc   :  { %83 = vrot.lane.b32.xlu0 %v82_v26, %s8761_s24  ;;  %v176_v31 = vsel %vm148_vm6, %v6835_v25, %v171_v27  ;;  %v6827_v33 = vld [vmem:[%s17206_s0 + $0x8a] ss:$-21 sm:%s146_s26]   ;;  %v144_v35 = vsel %vm143_vm5, %v6826_v32, %v6825_v29  ;;  %s196_s15 = smov 12  ;;  %s201_s16 = smov 48  ;;  %vm241_vm7 = vcmask 1044483   ;;  %vm1164_vm8 = vcmask 1045507  }
   0xd   :  { %v180_v34 = vsel %vm54_vm2, %v6836_v28, %v176_v31  ;;  %v6849_v36 = vld [vmem:[%s17206_s0 + $0xad] ss:$-21 sm:%s222_s7]   ;;  %v149_v37 = vsel %vm148_vm6, %v6827_v33, %v144_v35  ;;  %v6850_v38 = vld [vmem:[%s17206_s0 + $0xde] ss:$-21 sm:%s225_s10]   ;;  %s206_s21 = smov 192  ;;  %s264_s25 = smov 3 }
   0xe   :  { %181 = vrot.lane.b32.xlu1 %v180_v34, %s8762_s12  ;;  %v153_v39 = vsel %vm54_vm2, %v6828_v30, %v149_v37  ;;  %v228_v40 = vsel %vm46_vm0, %v6850_v38, %v6849_v36  ;;  %v6841_v41 = vld [vmem:[%s17206_s0 + $0x75] ss:$28 sm:%s193_s11]   ;;  %s267_s26 = smov 12  ;;  %s272_s2 = smov 48  ;;  %v6856_v56 = vld [vmem:[%s17206_s0 + $0x58] sm:$0x80]  }
   0xf   :  { %v6842_v42 = vld [vmem:[%s17206_s0 + $0xa6] ss:$-21 sm:%s196_s15]   ;;  %v6843_v44 = vld [vmem:[%s17206_s0 + $0xd7] ss:$-21 sm:%s201_s16]   ;;  %s277_s3 = smov 192  ;;  %s239_s7 = smov 24 }
  0x10   :  { %154 = vrot.lane.b32.xlu0 %v153_v39, %s8762_s12  ;;  %v199_v43 = vsel %vm46_vm0, %v6842_v42, %v6841_v41  ;;  %v6844_v46 = vld [vmem:[%s17206_s0 - $0x2] ss:$28 sm:%s206_s21]   ;;  %s244_s13 = smov 96  ;;  %s322_s14 = smov 3  ;;  %v6920_v28 = vld [vmem:[%s17206_s0 + $0xb1] sm:$0x80]  }
  0x11   :  { %v204_v45 = vsel %vm105_vm3, %v6843_v44, %v199_v43  ;;  %v6861_v47 = vld [vmem:[%s17206_s0 + $0x90] ss:$-70 sm:%s264_s25]   ;;  %v6862_v49 = vld [vmem:[%s17206_s0 - $0x3] ss:$28 sm:%s267_s26]   ;;  %s325_s18 = smov 12  ;;  %s293_s19 = smov 3 }
  0x12   :  { %229 = vrot.lane.b32.xlu1 %v228_v40, %s8762_s12  ;;  %v209_v48 = vsel %vm110_vm4, %v6844_v46, %v204_v45  ;;  %v6853_v50 = vld [vmem:[%s17206_s0 + $0x2e] ss:$-21 sm:$0x7]   ;;  %v270_v51 = vsel %vm46_vm0, %v6862_v49, %v6861_v47  ;;  %v6864_v53 = vld [vmem:[%s17206_s0 - $0x2b1] ss:$126 sm:%s277_s3]   ;;  %s296_s25 = smov 12 }
  0x13   :  { %v6863_v52 = vld [vmem:[%s17206_s0 - $0x34] ss:$28 sm:%s272_s2]   ;;  %s301_s26 = smov 48  ;;  %s8763_s27 = smov 122   ;;  %v6892_v3 = vld [vmem:[%s17206_s0 + $0x8f] sm:$0x80]  }
  0x14   :  { %210 = vrot.lane.b32.xlu0 %v209_v48, %s8762_s12  ;;  %v275_v54 = vsel %vm105_vm3, %v6863_v52, %v270_v51  ;;  %v6854_v55 = vld [vmem:[%s17206_s0 + $0x5f] ss:$-21 sm:%s239_s7]   ;;  %s306_s30 = smov 192  ;;  %s368_s5 = smov 24  ;;  %vm1213_vm9 = vcmask 1043459   ;;  %vm3_vm10 = vcmask 113664  }
  0x15   :  { %v280_v57 = vsel %vm110_vm4, %v6864_v53, %v275_v54  ;;  %v242_v58 = vsel %vm241_vm7, %v6854_v55, %v6853_v50  ;;  %v6855_v59 = vld [vmem:[%s17206_s0 + $0x90] ss:$-21 sm:%s244_s13]   ;;  %v6877_v60 = vld [vmem:[%s17206_s0 + $0xb3] ss:$-21 sm:%s322_s14]   ;;  %s373_s6 = smov 96  ;;  %s337_s14 = smov 3 }
  0x16   :  { %281 = vrot.lane.b32.xlu1 %v280_v57, %s8763_s27  ;;  %v247_v61 = vsel %vm148_vm6, %v6855_v59, %v242_v58  ;;  %v6878_v62 = vld [vmem:[%s17206_s0 + $0xe4] ss:$-21 sm:%s325_s18]   ;;  %s340_s18 = smov 12  ;;  %s350_s22 = smov 192  ;;  %v6912_v38 = vld [vmem:[%s17206_s0 + $0x4f] sm:$0x80]  }
  0x17   :  { %v251_v63 = vsel %vm54_vm2, %v6856_v56, %v247_v61  ;;  %v328_v0 = vsel %vm46_vm0, %v6878_v62, %v6877_v60  ;;  %v6869_v1 = vld [vmem:[%s17206_s0 + $0x7b] ss:$-21 sm:%s293_s19]   ;;  %v6870_v2 = vld [vmem:[%s17206_s0 + $0xac] ss:$-21 sm:%s296_s25]   ;;  %s345_s19 = smov 48  ;;  %s422_s23 = smov 3 }
  0x18   :  { %252 = vrot.lane.b32.xlu0 %v251_v63, %s8763_s27  ;;  %v299_v4 = vsel %vm46_vm0, %v6870_v2, %v6869_v1  ;;  %v6871_v5 = vld [vmem:[%s17206_s0 + $0xdd] ss:$-21 sm:%s301_s26]   ;;  %v6889_v6 = vld [vmem:[%s17206_s0 + $0x65] ss:$-21 sm:$0x7]   ;;  %s393_s3 = smov 3 }
  0x19   :  { %v304_v7 = vsel %vm105_vm3, %v6871_v5, %v299_v4  ;;  %v6872_v8 = vld [vmem:[%s17206_s0 + $0x12a] ss:$-21 sm:%s306_s30]   ;;  %v6891_v12 = vld [vmem:[%s17206_s0 + $0xc7] ss:$-21 sm:%s373_s6]   ;;  %s425_s30 = smov 12  ;;  %s396_s24 = smov 12 }
  0x1a   :  { %v6890_v9 = vld [vmem:[%s17206_s0 + $0x96] ss:$-21 sm:%s368_s5]   ;;  %329 = vrot.lane.b32.xlu1 %v328_v0, %s8763_s27  ;;  %v309_v10 = vsel %vm110_vm4, %v6872_v8, %v304_v7  ;;  %s401_s8 = smov 48  ;;  %s406_s9 = smov 192  ;;  %v6940_v62 = vld [vmem:[%s17206_s0 + $0x55] sm:$0x80]  }
  0x1b   :  { %v371_v11 = vsel %vm241_vm7, %v6890_v9, %v6889_v6  ;;  %v6881_v14 = vld [vmem:[%s17206_s0 + $0x3] ss:$28 sm:%s337_s14]   ;;  %v6882_v15 = vld [vmem:[%s17206_s0 - $0x2e] ss:$28 sm:%s340_s18]   ;;  %s8764_s10 = smov 120   ;;  %s464_s14 = smov 3 }
  0x1c   :  { %v376_v13 = vsel %vm148_vm6, %v6891_v12, %v371_v11  ;;  %310 = vrot.lane.b32.xlu0 %v309_v10, %s8763_s27  ;;  %v343_v17 = vsel %vm46_vm0, %v6882_v15, %v6881_v14  ;;  %v6883_v18 = vld [vmem:[%s17206_s0 - $0x5f] ss:$28 sm:%s345_s19]   ;;  %s471_s20 = smov 96  ;;  %v6910_v31 = vld [vmem:[%s17206_s0 + $0x56] ss:$-21 sm:$0x1c]  }
  0x1d   :  { %v380_v16 = vsel %vm54_vm2, %v6892_v3, %v376_v13  ;;  %v348_v19 = vsel %vm105_vm3, %v6883_v18, %v343_v17  ;;  %v6884_v20 = vld [vmem:[%s17206_s0 - $0x90] ss:$28 sm:%s350_s22]   ;;  %v6917_v34 = vld [vmem:[%s17206_s0 + $0x87] ss:$-70 sm:%s464_s14]   ;;  %s520_s4 = smov 3  ;;  %s491_s11 = smov 3 }
  0x1e   :  { %v6905_v21 = vld [vmem:[%s17206_s0 + $0xb9] ss:$-21 sm:%s422_s23]   ;;  %381 = vrot.lane.b32.xlu1 %v380_v16, %s8764_s10  ;;  %v353_v22 = vsel %vm110_vm4, %v6884_v20, %v348_v19  ;;  %v6918_v24 = vld [vmem:[%s17206_s0 + $0x87] ss:$-21 sm:$0x1c]   ;;  %s437_s23 = smov 3 }
  0x1f   :  { %v6906_v23 = vld [vmem:[%s17206_s0 + $0xea] ss:$-21 sm:%s425_s30]   ;;  %v6898_v27 = vld [vmem:[%s17206_s0 + $0xb2] ss:$-21 sm:%s396_s24]   ;;  %s444_s30 = smov 96  ;;  %v469_v36 = vsel %vm143_vm5, %v6918_v24, %v6917_v34  ;;  %s494_s16 = smov 12 }
  0x20   :  { %v428_v25 = vsel %vm46_vm0, %v6906_v23, %v6905_v21  ;;  %v6897_v26 = vld [vmem:[%s17206_s0 + $0x81] ss:$-21 sm:%s393_s3]   ;;  %354 = vrot.lane.b32.xlu0 %v353_v22, %s8764_s10  ;;  %s499_s18 = smov 48  ;;  %s504_s19 = smov 192  ;;  %v6975_v17 = vld [vmem:[%s17206_s0 + $0x8c] sm:$0x80]  }
  0x21   :  { %v399_v29 = vsel %vm46_vm0, %v6898_v27, %v6897_v26  ;;  %v6899_v30 = vld [vmem:[%s17206_s0 + $0xe3] ss:$-21 sm:%s401_s8]   ;;  %v6911_v41 = vld [vmem:[%s17206_s0 + $0x87] ss:$-21 sm:%s444_s30]   ;;  %s562_s25 = smov 3  ;;  %s8765_s26 = smov 118  }
  0x22   :  { %v404_v32 = vsel %vm105_vm3, %v6899_v30, %v399_v29  ;;  %v6900_v33 = vld [vmem:[%s17206_s0 + $0x130] ss:$-21 sm:%s406_s9]   ;;  %429 = vrot.lane.b32.xlu1 %v428_v25, %s8764_s10  ;;  %s523_s9 = smov 12  ;;  %s565_s30 = smov 12  ;;  %vm5629_vm11 = vcmask 949248   ;;  %vm5825_vm12 = vcmask 965632  }
  0x23   :  { %v409_v35 = vsel %vm110_vm4, %v6900_v33, %v404_v32  ;;  %v6919_v37 = vld [vmem:[%s17206_s0 + $0xb8] ss:$-21 sm:%s471_s20]   ;;  %v6933_v44 = vld [vmem:[%s17206_s0 + $0xaa] ss:$-21 sm:%s520_s4]   ;;  %s570_s27 = smov 48  ;;  %s575_s5 = smov 192 }
  0x24   :  { %v474_v39 = vsel %vm148_vm6, %v6919_v37, %v469_v36  ;;  %v6909_v40 = vld [vmem:[%s17206_s0 + $0x25] ss:$-21 sm:%s437_s23]   ;;  %410 = vrot.lane.b32.xlu0 %v409_v35, %s8764_s10  ;;  %v6937_v54 = vld [vmem:[%s17206_s0 + $0x2b] ss:$-21 sm:$0x7]   ;;  %s542_s13 = smov 96 }
  0x25   :  { %v478_v42 = vsel %vm54_vm2, %v6920_v28, %v474_v39  ;;  %v442_v43 = vsel %vm143_vm5, %v6910_v31, %v6909_v40  ;;  %v6934_v46 = vld [vmem:[%s17206_s0 + $0xdb] ss:$-21 sm:%s523_s9]   ;;  %v6926_v49 = vld [vmem:[%s17206_s0 + $0xa3] ss:$-21 sm:%s494_s16]   ;;  %s620_s10 = smov 3  ;;  %s623_s21 = smov 12 }
  0x26   :  { %v447_v45 = vsel %vm148_vm6, %v6911_v41, %v442_v43  ;;  %v6925_v47 = vld [vmem:[%s17206_s0 + $0x72] ss:$28 sm:%s491_s11]   ;;  %479 = vrot.lane.b32.xlu1 %v478_v42, %s8765_s26  ;;  %v526_v50 = vsel %vm46_vm0, %v6934_v46, %v6933_v44  ;;  %s537_s11 = smov 24  ;;  %s591_s22 = smov 3  ;;  %v7003_v41 = vld [vmem:[%s17206_s0 + $0x92] sm:$0x80]  }
  0x27   :  { %v451_v48 = vsel %vm54_vm2, %v6912_v38, %v447_v45  ;;  %v497_v51 = vsel %vm46_vm0, %v6926_v49, %v6925_v47  ;;  %v6927_v52 = vld [vmem:[%s17206_s0 + $0xd4] ss:$-21 sm:%s499_s18]   ;;  %v6938_v0 = vld [vmem:[%s17206_s0 + $0x5c] ss:$-21 sm:%s537_s11]   ;;  %s604_s3 = smov 192  ;;  %s665_s9 = smov 24 }
  0x28   :  { %v6928_v53 = vld [vmem:[%s17206_s0 - $0x5] ss:$28 sm:%s504_s19]   ;;  %452 = vrot.lane.b32.xlu0 %v451_v48, %s8765_s26  ;;  %v502_v55 = vsel %vm105_vm3, %v6927_v52, %v497_v51  ;;  %v540_v3 = vsel %vm241_vm7, %v6938_v0, %v6937_v54  ;;  %v6972_v5 = vld [vmem:[%s17206_s0 + $0x62] ss:$-21 sm:$0x7]   ;;  %s8766_s11 = smov 116  }
  0x29   :  { %v6945_v56 = vld [vmem:[%s17206_s0 + $0x8d] ss:$-70 sm:%s562_s25]   ;;  %v507_v57 = vsel %vm110_vm4, %v6928_v53, %v502_v55  ;;  %v6946_v58 = vld [vmem:[%s17206_s0 - $0x6] ss:$28 sm:%s565_s30]   ;;  %s594_s30 = smov 12  ;;  %s670_s12 = smov 96 }
  0x2a   :  { %v6947_v59 = vld [vmem:[%s17206_s0 - $0x37] ss:$28 sm:%s570_s27]   ;;  %527 = vrot.lane.b32.xlu1 %v526_v50, %s8765_s26  ;;  %v568_v60 = vsel %vm46_vm0, %v6946_v58, %v6945_v56  ;;  %s599_s27 = smov 48  ;;  %s634_s15 = smov 3  ;;  %vm6021_vm13 = vcmask 982016   ;;  %vm6221_vm14 = vcmask 998400  }
  0x2b   :  { %v6948_v61 = vld [vmem:[%s17206_s0 - $0x2b4] ss:$126 sm:%s575_s5]   ;;  %v573_v63 = vsel %vm105_vm3, %v6947_v59, %v568_v60  ;;  %s637_s19 = smov 12  ;;  %s642_s25 = smov 48  ;;  %vm6417_vm15 = vcmask 1014784  }
  0x2c   :  { %v6939_v1 = vld [vmem:[%s17206_s0 + $0x8d] ss:$-21 sm:%s542_s13]   ;;  %508 = vrot.lane.b32.xlu0 %v507_v57, %s8765_s26  ;;  %v578_v2 = vsel %vm110_vm4, %v6948_v61, %v573_v63  ;;  %s647_s28 = smov 192  ;;  %s719_s2 = smov 3 }
  0x2d   :  { %v6961_v4 = vld [vmem:[%s17206_s0 + $0xb0] ss:$-21 sm:%s620_s10]   ;;  %v545_v6 = vsel %vm148_vm6, %v6939_v1, %v540_v3  ;;  %v6962_v7 = vld [vmem:[%s17206_s0 + $0xe1] ss:$-21 sm:%s623_s21]   ;;  %s722_s4 = smov 12  ;;  %s690_s5 = smov 3 }
  0x2e   :  { %v6953_v8 = vld [vmem:[%s17206_s0 + $0x78] ss:$-21 sm:%s591_s22]   ;;  %579 = vrot.lane.b32.xlu1 %v578_v2, %s8766_s11  ;;  %v549_v9 = vsel %vm54_vm2, %v6940_v62, %v545_v6  ;;  %v626_v11 = vsel %vm46_vm0, %v6962_v7, %v6961_v4  ;;  %s693_s13 = smov 12  ;;  %s698_s14 = smov 48  ;;  %v7031_v2 = vld [vmem:[%s17206_s0 + $0xb4] sm:$0x80]  }
  0x2f   :  { %v6954_v10 = vld [vmem:[%s17206_s0 + $0xa9] ss:$-21 sm:%s594_s30]   ;;  %v6955_v13 = vld [vmem:[%s17206_s0 + $0xda] ss:$-21 sm:%s599_s27]   ;;  %s765_s21 = smov 24  ;;  %s8767_s22 = smov 114  }
  0x30   :  { %v597_v12 = vsel %vm46_vm0, %v6954_v10, %v6953_v8  ;;  %v6956_v14 = vld [vmem:[%s17206_s0 + $0x127] ss:$-21 sm:%s604_s3]   ;;  %550 = vrot.lane.b32.xlu0 %v549_v9, %s8766_s11  ;;  %s734_s29 = smov 3  ;;  %s737_s3 = smov 12  ;;  %v7023_v10 = vld [vmem:[%s17206_s0 + $0x52] sm:$0x80]  }
  0x31   :  { %v602_v15 = vsel %vm105_vm3, %v6955_v13, %v597_v12  ;;  %v6973_v16 = vld [vmem:[%s17206_s0 + $0x93] ss:$-21 sm:%s665_s9]   ;;  %v6974_v20 = vld [vmem:[%s17206_s0 + $0xc4] ss:$-21 sm:%s670_s12]   ;;  %s742_s7 = smov 48  ;;  %s747_s8 = smov 192 }
  0x32   :  { %v607_v18 = vsel %vm110_vm4, %v6956_v14, %v602_v15  ;;  %v668_v19 = vsel %vm241_vm7, %v6973_v16, %v6972_v5  ;;  %v635_v21 = vld [vmem:[%s17206_s0] ss:$28 sm:%s634_s15]   ;;  %627 = vrot.lane.b32.xlu1 %v626_v11, %s8766_s11  ;;  %s703_s15 = smov 192  ;;  %s819_s12 = smov 3 }
  0x33   :  { %v673_v22 = vsel %vm148_vm6, %v6974_v20, %v668_v19  ;;  %v6965_v23 = vld [vmem:[%s17206_s0 - $0x31] ss:$28 sm:%s637_s19]   ;;  %v6966_v26 = vld [vmem:[%s17206_s0 - $0x62] ss:$28 sm:%s642_s25]   ;;  %s822_s10 = smov 12  ;;  %s790_s17 = smov 3 }
  0x34   :  { %v677_v24 = vsel %vm54_vm2, %v6975_v17, %v673_v22  ;;  %v640_v25 = vsel %vm46_vm0, %v6965_v23, %v635_v21  ;;  %v6967_v27 = vld [vmem:[%s17206_s0 - $0x93] ss:$28 sm:%s647_s28]   ;;  %608 = vrot.lane.b32.xlu0 %v607_v18, %s8766_s11  ;;  %v7000_v30 = vld [vmem:[%s17206_s0 + $0x68] ss:$-21 sm:$0x7]   ;;  %s770_s28 = smov 96 }
  0x35   :  { %v645_v28 = vsel %vm105_vm3, %v6966_v26, %v640_v25  ;;  %v6988_v29 = vld [vmem:[%s17206_s0 + $0xb6] ss:$-21 sm:%s719_s2]   ;;  %v6989_v32 = vld [vmem:[%s17206_s0 + $0xe7] ss:$-21 sm:%s722_s4]   ;;  %s793_s23 = smov 12  ;;  %s798_s25 = smov 48 }
  0x36   :  { %v650_v31 = vsel %vm110_vm4, %v6967_v27, %v645_v28  ;;  %v6980_v33 = vld [vmem:[%s17206_s0 + $0x7e] ss:$-21 sm:%s690_s5]   ;;  %678 = vrot.lane.b32.xlu1 %v677_v24, %s8767_s22  ;;  %v725_v35 = vsel %vm46_vm0, %v6989_v32, %v6988_v29  ;;  %s861_s4 = smov 3  ;;  %s868_s5 = smov 96 }
  0x37   :  { %v6981_v34 = vld [vmem:[%s17206_s0 + $0xaf] ss:$-21 sm:%s693_s13]   ;;  %v6982_v37 = vld [vmem:[%s17206_s0 + $0xe0] ss:$-21 sm:%s698_s14]   ;;  %s8768_s6 = smov 112   ;;  %s834_s9 = smov 3 }
  0x38   :  { %v696_v36 = vsel %vm46_vm0, %v6981_v34, %v6980_v33  ;;  %v6983_v38 = vld [vmem:[%s17206_s0 + $0x12d] ss:$-21 sm:%s703_s15]   ;;  %651 = vrot.lane.b32.xlu0 %v650_v31, %s8767_s22  ;;  %v7029_v54 = vld [vmem:[%s17206_s0 + $0x8a] ss:$-21 sm:$0x1c]   ;;  %s888_s30 = smov 3 }
  0x39   :  { %v701_v39 = vsel %vm105_vm3, %v6982_v37, %v696_v36  ;;  %v7001_v40 = vld [vmem:[%s17206_s0 + $0x99] ss:$-21 sm:%s765_s21]   ;;  %v7002_v44 = vld [vmem:[%s17206_s0 + $0xca] ss:$-21 sm:%s770_s28]   ;;  %s917_s21 = smov 3  ;;  %s891_s24 = smov 12 }
  0x3a   :  { %v706_v42 = vsel %vm110_vm4, %v6983_v38, %v701_v39  ;;  %v768_v43 = vsel %vm241_vm7, %v7001_v40, %v7000_v30  ;;  %v6992_v45 = vld [vmem:[%s17206_s0 + $0x6] ss:$28 sm:%s734_s29]   ;;  %726 = vrot.lane.b32.xlu1 %v725_v35, %s8767_s22  ;;  %s803_s29 = smov 192  ;;  %s901_s13 = smov 192  ;;  %v7051_v34 = vld [vmem:[%s17206_s0 + $0x58] sm:$0x80]  }
  0x3b   :  { %v773_v46 = vsel %vm148_vm6, %v7002_v44, %v768_v43  ;;  %v6993_v47 = vld [vmem:[%s17206_s0 - $0x2b] ss:$28 sm:%s737_s3]   ;;  %v6994_v50 = vld [vmem:[%s17206_s0 - $0x5c] ss:$28 sm:%s742_s7]   ;;  %s959_s11 = smov 3  ;;  %s967_s18 = smov 48 }
  0x3c   :  { %v777_v48 = vsel %vm54_vm2, %v7003_v41, %v773_v46  ;;  %v740_v49 = vsel %vm46_vm0, %v6993_v47, %v6992_v45  ;;  %v6995_v51 = vld [vmem:[%s17206_s0 - $0x8d] ss:$28 sm:%s747_s8]   ;;  %707 = vrot.lane.b32.xlu0 %v706_v42, %s8767_s22  ;;  %s972_s19 = smov 192  ;;  %s8769_s20 = smov 110  }
  0x3d   :  { %v745_v52 = vsel %vm105_vm3, %v6994_v50, %v740_v49  ;;  %v7016_v53 = vld [vmem:[%s17206_s0 + $0xbc] ss:$-21 sm:%s819_s12]   ;;  %v7017_v56 = vld [vmem:[%s17206_s0 + $0xed] ss:$-21 sm:%s822_s10]   ;;  %s841_s10 = smov 96  ;;  %s962_s12 = smov 12 }
  0x3e   :  { %v750_v55 = vsel %vm110_vm4, %v6995_v51, %v745_v52  ;;  %v7008_v57 = vld [vmem:[%s17206_s0 + $0x84] ss:$-21 sm:%s790_s17]   ;;  %778 = vrot.lane.b32.xlu1 %v777_v48, %s8768_s6  ;;  %v825_v60 = vsel %vm46_vm0, %v7017_v56, %v7016_v53  ;;  %s934_s28 = smov 24  ;;  %s939_s2 = smov 96  ;;  %v7087_v51 = vld [vmem:[%s17206_s0 + $0x8f] sm:$0x80]  }
  0x3f   :  { %v7009_v58 = vld [vmem:[%s17206_s0 + $0xb5] ss:$-21 sm:%s793_s23]   ;;  %v7021_v59 = vld [vmem:[%s17206_s0 + $0x59] ss:$-21 sm:$0x1c]   ;;  %s920_s23 = smov 12 }
  0x40   :  { %v796_v61 = vsel %vm46_vm0, %v7009_v58, %v7008_v57  ;;  %v7010_v62 = vld [vmem:[%s17206_s0 + $0xe6] ss:$-21 sm:%s798_s25]   ;;  %751 = vrot.lane.b32.xlu0 %v750_v55, %s8768_s6  ;;  %v7048_v21 = vld [vmem:[%s17206_s0 + $0x2e] ss:$-21 sm:$0x7]   ;;  %s991_s16 = smov 12 }
  0x41   :  { %v7011_v63 = vld [vmem:[%s17206_s0 + $0x133] ss:$-21 sm:%s803_s29]   ;;  %v801_v0 = vsel %vm105_vm3, %v7010_v62, %v796_v61  ;;  %v7030_v5 = vld [vmem:[%s17206_s0 + $0xbb] ss:$-21 sm:%s868_s5]   ;;  %s1020_s5 = smov 12  ;;  %s1063_s25 = smov 24 }
  0x42   :  { %v7028_v1 = vld [vmem:[%s17206_s0 + $0x8a] ss:$-70 sm:%s861_s4]   ;;  %v806_v3 = vsel %vm110_vm4, %v7011_v63, %v801_v0  ;;  %826 = vrot.lane.b32.xlu1 %v825_v60, %s8768_s6  ;;  %s896_s4 = smov 48  ;;  %v7084_v40 = vld [vmem:[%s17206_s0 + $0x65] ss:$-21 sm:$0x7]  }
  0x43   :  { %v866_v4 = vsel %vm143_vm5, %v7029_v54, %v7028_v1  ;;  %v7020_v6 = vld [vmem:[%s17206_s0 + $0x28] ss:$-21 sm:%s834_s9]   ;;  %v7044_v13 = vld [vmem:[%s17206_s0 + $0xad] ss:$-21 sm:%s917_s21]   ;;  %s1035_s8 = smov 12  ;;  %s1040_s9 = smov 48 }
  0x44   :  { %v871_v7 = vsel %vm148_vm6, %v7030_v5, %v866_v4  ;;  %v839_v8 = vsel %vm143_vm5, %v7021_v59, %v7020_v6  ;;  %v7022_v9 = vld [vmem:[%s17206_s0 + $0x8a] ss:$-21 sm:%s841_s10]   ;;  %807 = vrot.lane.b32.xlu0 %v806_v3, %s8768_s6  ;;  %s988_s6 = smov 3  ;;  %s996_s10 = smov 48 }
  0x45   :  { %v875_v11 = vsel %vm54_vm2, %v7031_v2, %v871_v7  ;;  %v844_v12 = vsel %vm148_vm6, %v7022_v9, %v839_v8  ;;  %v7045_v14 = vld [vmem:[%s17206_s0 + $0xde] ss:$-21 sm:%s920_s23]   ;;  %v7037_v17 = vld [vmem:[%s17206_s0 + $0xa6] ss:$-21 sm:%s891_s24]   ;;  %s1001_s23 = smov 192  ;;  %s1032_s24 = smov 3 }
  0x46   :  { %v7036_v15 = vld [vmem:[%s17206_s0 + $0x75] ss:$28 sm:%s888_s30]   ;;  %v848_v16 = vsel %vm54_vm2, %v7023_v10, %v844_v12  ;;  %876 = vrot.lane.b32.xlu1 %v875_v11, %s8769_s20  ;;  %v923_v22 = vsel %vm46_vm0, %v7045_v14, %v7044_v13  ;;  %s1068_s30 = smov 96  ;;  %s1088_s22 = smov 3 }
  0x47   :  { %v7038_v18 = vld [vmem:[%s17206_s0 + $0xd7] ss:$-21 sm:%s896_s4]   ;;  %v894_v19 = vsel %vm46_vm0, %v7037_v17, %v7036_v15  ;;  %s1017_s4 = smov 3  ;;  %v7049_v31 = vld [vmem:[%s17206_s0 + $0x5f] ss:$-21 sm:%s934_s28]   ;;  %s1096_s27 = smov 48 }
  0x48   :  { %v7039_v20 = vld [vmem:[%s17206_s0 - $0x2] ss:$28 sm:%s901_s13]   ;;  %v899_v23 = vsel %vm105_vm3, %v7038_v18, %v894_v19  ;;  %v7057_v25 = vld [vmem:[%s17206_s0 - $0x3] ss:$28 sm:%s962_s12]   ;;  %v937_v32 = vsel %vm241_vm7, %v7049_v31, %v7048_v21  ;;  %s1045_s12 = smov 192  ;;  %s1135_s17 = smov 12 }
  0x49   :  { %v7056_v24 = vld [vmem:[%s17206_s0 + $0x90] ss:$-70 sm:%s959_s11]   ;;  %849 = vrot.lane.b32.xlu0 %v848_v16, %s8769_s20  ;;  %v904_v28 = vsel %vm110_vm4, %v7039_v20, %v899_v23  ;;  %v7112_v63 = vld [vmem:[%s17206_s0 + $0x6b] ss:$-21 sm:$0x7]   ;;  %s1132_s11 = smov 3 }
  0x4a   :  { %v965_v26 = vsel %vm46_vm0, %v7057_v25, %v7056_v24  ;;  %v7058_v27 = vld [vmem:[%s17206_s0 - $0x34] ss:$28 sm:%s967_s18]   ;;  %v7059_v30 = vld [vmem:[%s17206_s0 - $0x2b1] ss:$126 sm:%s972_s19]   ;;  %s1117_s18 = smov 3  ;;  %s1120_s19 = smov 12 }
  0x4b   :  { %v970_v29 = vsel %vm105_vm3, %v7058_v27, %v965_v26  ;;  %924 = vrot.lane.b32.xlu1 %v923_v22, %s8769_s20  ;;  %v7050_v33 = vld [vmem:[%s17206_s0 + $0x90] ss:$-21 sm:%s939_s2]   ;;  %v7120_v13 = vld [vmem:[%s17206_s0 + $0xb8] ss:$-21 sm:$0x1c]   ;;  %s1253_s13 = smov 12 }
  0x4c   :  { %v975_v35 = vsel %vm110_vm4, %v7059_v30, %v970_v29  ;;  %v942_v36 = vsel %vm148_vm6, %v7050_v33, %v937_v32  ;;  %v7072_v37 = vld [vmem:[%s17206_s0 + $0xb3] ss:$-21 sm:%s1017_s4]   ;;  %v7073_v38 = vld [vmem:[%s17206_s0 + $0xe4] ss:$-21 sm:%s1020_s5]   ;;  %s8770_s4 = smov 108   ;;  %s1101_s5 = smov 192 }
  0x4d   :  { %905 = vrot.lane.b32.xlu0 %v904_v28, %s8769_s20  ;;  %v7064_v39 = vld [vmem:[%s17206_s0 + $0x7b] ss:$-21 sm:%s988_s6]   ;;  %v946_v41 = vsel %vm54_vm2, %v7051_v34, %v942_v36  ;;  %v1023_v46 = vsel %vm46_vm0, %v7073_v38, %v7072_v37  ;;  %v7127_v19 = vld [vmem:[%s17206_s0 + $0xbf] ss:$-21 sm:$0x7]   ;;  %s1230_s29 = smov 96 }
  0x4e   :  { %v7065_v42 = vld [vmem:[%s17206_s0 + $0xac] ss:$-21 sm:%s991_s16]   ;;  %v7066_v43 = vld [vmem:[%s17206_s0 + $0xdd] ss:$-21 sm:%s996_s10]   ;;  %s1258_s10 = smov 48  ;;  %s1263_s26 = smov 192 }
  0x4f   :  { %976 = vrot.lane.b32.xlu1 %v975_v35, %s8770_s4  ;;  %v994_v44 = vsel %vm46_vm0, %v7065_v42, %v7064_v39  ;;  %v7067_v45 = vld [vmem:[%s17206_s0 + $0x12a] ss:$-21 sm:%s1001_s23]   ;;  %v7113_v1 = vld [vmem:[%s17206_s0 + $0x9c] ss:$-21 sm:$0x38]   ;;  %s1140_s23 = smov 48 }
  0x50   :  { %v999_v47 = vsel %vm105_vm3, %v7066_v43, %v994_v44  ;;  %v7085_v48 = vld [vmem:[%s17206_s0 + $0x96] ss:$-21 sm:%s1063_s25]   ;;  %v7086_v49 = vld [vmem:[%s17206_s0 + $0xc7] ss:$-21 sm:%s1068_s30]   ;;  %s1091_s30 = smov 12  ;;  %s1145_s25 = smov 192  ;;  %v1165_v11 = vsel %vm1164_vm8, %v7113_v1, %v7112_v63 }
  0x51   :  { %947 = vrot.lane.b32.xlu0 %v946_v41, %s8770_s4  ;;  %v1066_v50 = vsel %vm241_vm7, %v7085_v48, %v7084_v40  ;;  %v7076_v52 = vld [vmem:[%s17206_s0 + $0x3] ss:$28 sm:%s1032_s24]   ;;  %v1004_v53 = vsel %vm110_vm4, %v7067_v45, %v999_v47  ;;  %v7128_v20 = vld [vmem:[%s17206_s0 + $0xae] sm:$0x8]   ;;  %s1308_s2 = smov 3  ;;  %s8772_s3 = smov 104  }
  0x52   :  { %v1071_v54 = vsel %vm148_vm6, %v7086_v49, %v1066_v50  ;;  %v7077_v55 = vld [vmem:[%s17206_s0 - $0x2e] ss:$28 sm:%s1035_s8]   ;;  %v7078_v56 = vld [vmem:[%s17206_s0 - $0x5f] ss:$28 sm:%s1040_s9]   ;;  %s1167_s9 = smov 192  ;;  %v1214_v34 = vsel %vm1213_vm9, %v7128_v20, %v7127_v19  ;;  %s1311_s14 = smov 12 }
  0x53   :  { %1024 = vrot.lane.b32.xlu1 %v1023_v46, %s8770_s4  ;;  %v1038_v57 = vsel %vm46_vm0, %v7077_v55, %v7076_v52  ;;  %v7079_v58 = vld [vmem:[%s17206_s0 - $0x90] ss:$28 sm:%s1045_s12]   ;;  %v1075_v59 = vsel %vm54_vm2, %v7087_v51, %v1071_v54  ;;  %v7131_v27 = vld [vmem:[%s17206_s0 + $0x2b] ss:$-21 sm:$0x7]   ;;  %s1292_s7 = smov 192 }
  0x54   :  { %v1043_v60 = vsel %vm105_vm3, %v7078_v56, %v1038_v57  ;;  %v7100_v61 = vld [vmem:[%s17206_s0 + $0xb9] ss:$-21 sm:%s1117_s18]   ;;  %v7101_v62 = vld [vmem:[%s17206_s0 + $0xea] ss:$-21 sm:%s1120_s19]   ;;  %s8771_s18 = smov 106   ;;  %s1335_s15 = smov 192 }
  0x55   :  { %1005 = vrot.lane.b32.xlu0 %v1004_v53, %s8770_s4  ;;  %v7092_v0 = vld [vmem:[%s17206_s0 + $0x81] ss:$-21 sm:%s1088_s22]   ;;  %v1048_v2 = vsel %vm110_vm4, %v7079_v58, %v1043_v60  ;;  %v1123_v7 = vsel %vm46_vm0, %v7101_v62, %v7100_v61  ;;  %s1282_s4 = smov 12  ;;  %v7134_v44 = vld [vmem:[%s17206_s0 + $0x55] sm:$0x80]   ;;  %s1407_s16 = smov 3 }
  0x56   :  { %v7093_v3 = vld [vmem:[%s17206_s0 + $0xb2] ss:$-21 sm:%s1091_s30]   ;;  %v7094_v4 = vld [vmem:[%s17206_s0 + $0xe3] ss:$-21 sm:%s1096_s27]   ;;  %s1183_s30 = smov 3  ;;  %s1190_s27 = smov 96 }
  0x57   :  { %1076 = vrot.lane.b32.xlu1 %v1075_v59, %s8771_s18  ;;  %v1094_v5 = vsel %vm46_vm0, %v7093_v3, %v7092_v0  ;;  %v7095_v6 = vld [vmem:[%s17206_s0 + $0x130] ss:$-21 sm:%s1101_s5]   ;;  %s1250_s5 = smov 3  ;;  %v7122_v32 = vld [vmem:[%s17206_s0 + $0x9c] sm:$0x80]   ;;  %s1378_s21 = smov 3 }
  0x58   :  { %v1099_v8 = vsel %vm105_vm3, %v7094_v4, %v1094_v5  ;;  %v7114_v9 = vld [vmem:[%s17206_s0 - $0x17f] ss:$77 sm:%s1167_s9]   ;;  %s1279_s9 = smov 3  ;;  %v7169_v59 = vld [vmem:[%s17206_s0 + $0x8c] sm:$0x80]   ;;  %s1410_s28 = smov 12 }
  0x59   :  { %v7104_v10 = vld [vmem:[%s17206_s0 + $0x9] ss:$28 sm:%s1132_s11]   ;;  %1049 = vrot.lane.b32.xlu0 %v1048_v2, %s8771_s18  ;;  %v1104_v14 = vsel %vm110_vm4, %v7095_v6, %v1099_v8  ;;  %v1170_v22 = vsel %vm110_vm4, %v7114_v9, %v1165_v11  ;;  %s1287_s11 = smov 48  ;;  %v7194_v0 = vld [vmem:[%s17206_s0 + $0x68] ss:$-21 sm:$0x7]  }
  0x5a   :  { %v7105_v12 = vld [vmem:[%s17206_s0 - $0x28] ss:$28 sm:%s1135_s17]   ;;  %v7107_v17 = vld [vmem:[%s17206_s0 - $0x8a] ss:$28 sm:%s1145_s25]   ;;  %s1225_s25 = smov 24  ;;  %s1353_s17 = smov 24 }
  0x5b   :  { %v1138_v15 = vsel %vm46_vm0, %v7105_v12, %v7104_v10  ;;  %v7106_v16 = vld [vmem:[%s17206_s0 + $0x6b] ss:$-21 sm:%s1140_s23]   ;;  %1124 = vrot.lane.b32.xlu1 %v1123_v7, %s8771_s18  ;;  %s1381_s23 = smov 12  ;;  %s1453_s24 = smov 24 }
  0x5c   :  { %v1143_v18 = vsel %vm105_vm3, %v7106_v16, %v1138_v15  ;;  %v7119_v21 = vld [vmem:[%s17206_s0 + $0x87] ss:$-21 sm:%s1183_s30]   ;;  %v7133_v36 = vld [vmem:[%s17206_s0 + $0x8d] ss:$-21 sm:%s1230_s29]   ;;  %s1386_s29 = smov 48  ;;  %s1425_s12 = smov 12 }
  0x5d   :  { %v1188_v23 = vsel %vm143_vm5, %v7120_v13, %v7119_v21  ;;  %v7121_v24 = vld [vmem:[%s17206_s0 - $0x98] ss:$56 sm:%s1190_s27]   ;;  %v7139_v25 = vld [vmem:[%s17206_s0 + $0x8d] ss:$-70 sm:%s1250_s5]   ;;  %v1148_v28 = vsel %vm110_vm4, %v7107_v17, %v1143_v18  ;;  %s8774_s30 = smov 100   ;;  %s1507_s8 = smov 3 }
  0x5e   :  { %1105 = vrot.lane.b32.xlu0 %v1104_v14, %s8771_s18  ;;  %v7140_v26 = vld [vmem:[%s17206_s0 - $0x6] ss:$28 sm:%s1253_s13]   ;;  %v1193_v31 = vsel %vm148_vm6, %v7121_v24, %v1188_v23  ;;  %s1358_s18 = smov 96  ;;  %s1330_s13 = smov 48 }
  0x5f   :  { %v1256_v29 = vsel %vm46_vm0, %v7140_v26, %v7139_v25  ;;  %v7141_v30 = vld [vmem:[%s17206_s0 - $0x37] ss:$28 sm:%s1258_s10]   ;;  %1171 = vrot.lane.b32.xlu1 %v1170_v22, %s8772_s3  ;;  %v1197_v40 = vsel %vm54_vm2, %v7122_v32, %v1193_v31  ;;  %s8773_s10 = smov 102   ;;  %s1510_s6 = smov 12 }
  0x60   :  { %v7132_v33 = vld [vmem:[%s17206_s0 + $0x5c] ss:$-21 sm:%s1225_s25]   ;;  %v1261_v37 = vsel %vm105_vm3, %v7141_v30, %v1256_v29  ;;  %v7166_v39 = vld [vmem:[%s17206_s0 + $0x62] ss:$-21 sm:$0x7]   ;;  %s1430_s25 = smov 48 }
  0x61   :  { %v1228_v35 = vsel %vm241_vm7, %v7132_v33, %v7131_v27  ;;  %v7142_v38 = vld [vmem:[%s17206_s0 - $0x2b4] ss:$126 sm:%s1263_s26]   ;;  %s1322_s26 = smov 3  ;;  %v7161_v63 = vld [vmem:[%s17206_s0 - $0x93] ss:$28 sm:%s1335_s15]   ;;  %s1491_s22 = smov 192 }
  0x62   :  { %1149 = vrot.lane.b32.xlu0 %v1148_v28, %s8772_s3  ;;  %v7147_v41 = vld [vmem:[%s17206_s0 + $0x78] ss:$-21 sm:%s1279_s9]   ;;  %v1233_v43 = vsel %vm148_vm6, %v7133_v36, %v1228_v35  ;;  %v1266_v47 = vsel %vm110_vm4, %v7142_v38, %v1261_v37  ;;  %v7223_v36 = vld [vmem:[%s17206_s0 + $0x9f] ss:$-21 sm:$0x38]   ;;  %s1573_s9 = smov 3 }
  0x63   :  { %v7148_v42 = vld [vmem:[%s17206_s0 + $0xa9] ss:$-21 sm:%s1282_s4]   ;;  %1215 = vrot.lane.b32.xlu1 %v1214_v34, %s8772_s3  ;;  %v1237_v52 = vsel %vm54_vm2, %v7134_v44, %v1233_v43  ;;  %v7197_v22 = vld [vmem:[%s17206_s0 + $0x92] sm:$0x80]   ;;  %s1698_s15 = smov 3  ;;  %s1726_s20 = smov 192 }
  0x64   :  { %v7155_v45 = vld [vmem:[%s17206_s0 + $0xb0] ss:$-21 sm:%s1308_s2]   ;;  %v7156_v46 = vld [vmem:[%s17206_s0 + $0xe1] ss:$-21 sm:%s1311_s14]   ;;  %s1325_s2 = smov 12  ;;  %v1285_v48 = vsel %vm46_vm0, %v7148_v42, %v7147_v41  ;;  %s1486_s14 = smov 48 }
  0x65   :  { %v7149_v49 = vld [vmem:[%s17206_s0 + $0xda] ss:$-21 sm:%s1287_s11]   ;;  %v7167_v50 = vld [vmem:[%s17206_s0 + $0x93] ss:$-21 sm:%s1353_s17]   ;;  %v1314_v58 = vsel %vm46_vm0, %v7156_v46, %v7155_v45  ;;  %s1422_s11 = smov 3  ;;  %s1391_s17 = smov 192 }
  0x66   :  { %1198 = vrot.lane.b32.xlu0 %v1197_v40, %s8772_s3  ;;  %v7168_v51 = vld [vmem:[%s17206_s0 + $0xc4] ss:$-21 sm:%s1358_s18]   ;;  %v1356_v53 = vsel %vm241_vm7, %v7167_v50, %v7166_v39  ;;  %v1290_v56 = vsel %vm105_vm3, %v7149_v49, %v1285_v48  ;;  %s1458_s3 = smov 96  ;;  %s1798_s4 = smov 3 }
  0x67   :  { %v1323_v54 = vld [vmem:[%s17206_s0] ss:$28 sm:%s1322_s26]   ;;  %v7159_v55 = vld [vmem:[%s17206_s0 - $0x31] ss:$28 sm:%s1325_s2]   ;;  %v1361_v62 = vsel %vm148_vm6, %v7168_v51, %v1356_v53  ;;  %s1478_s2 = smov 3  ;;  %s1871_s19 = smov 96 }
  0x68   :  { %1267 = vrot.lane.b32.xlu1 %v1266_v47, %s8773_s10  ;;  %v7150_v57 = vld [vmem:[%s17206_s0 + $0x127] ss:$-21 sm:%s1292_s7]   ;;  %v1328_v60 = vsel %vm46_vm0, %v7159_v55, %v1323_v54  ;;  %v1365_v7 = vsel %vm54_vm2, %v7169_v59, %v1361_v62  ;;  %v7222_v33 = vld [vmem:[%s17206_s0 + $0x6e] ss:$-21 sm:$0x7]   ;;  %s1907_s26 = smov 12 }
  0x69   :  { %v7160_v61 = vld [vmem:[%s17206_s0 - $0x62] ss:$28 sm:%s1330_s13]   ;;  %v1295_v1 = vsel %vm110_vm4, %v7150_v57, %v1290_v56  ;;  %v7187_v15 = vld [vmem:[%s17206_s0 - $0x2b] ss:$28 sm:%s1425_s12]   ;;  %v1555_v45 = vsel %vm1164_vm8, %v7223_v36, %v7222_v33  ;;  %s8776_s13 = smov 96   ;;  %s1777_s12 = smov 48 }
  0x6a   :  { %1238 = vrot.lane.b32.xlu0 %v1237_v52, %s8773_s10  ;;  %v7174_v2 = vld [vmem:[%s17206_s0 + $0x7e] ss:$-21 sm:%s1378_s21]   ;;  %v1333_v4 = vsel %vm105_vm3, %v7160_v61, %v1328_v60  ;;  %v7230_v47 = vld [vmem:[%s17206_s0 + $0xbb] ss:$-21 sm:$0x1c]   ;;  %s1940_s18 = smov 192 }
  0x6b   :  { %v7175_v3 = vld [vmem:[%s17206_s0 + $0xaf] ss:$-21 sm:%s1381_s23]   ;;  %v7182_v5 = vld [vmem:[%s17206_s0 + $0xb6] ss:$-21 sm:%s1407_s16]   ;;  %v1338_v12 = vsel %vm110_vm4, %v7161_v63, %v1333_v4  ;;  %s1653_s23 = smov 192  ;;  %s1813_s16 = smov 3 }
  0x6c   :  { %1315 = vrot.lane.b32.xlu1 %v1314_v58, %s8773_s10  ;;  %v7183_v6 = vld [vmem:[%s17206_s0 + $0xe7] ss:$-21 sm:%s1410_s28]   ;;  %v1384_v8 = vsel %vm46_vm0, %v7175_v3, %v7174_v2  ;;  %s1557_s28 = smov 192  ;;  %v7237_v53 = vld [vmem:[%s17206_s0 + $0xc2] ss:$-21 sm:$0x7]  }
  0x6d   :  { %v7176_v9 = vld [vmem:[%s17206_s0 + $0xe0] ss:$-21 sm:%s1386_s29]   ;;  %v7195_v10 = vld [vmem:[%s17206_s0 + $0x99] ss:$-21 sm:%s1453_s24]   ;;  %s1435_s29 = smov 192  ;;  %s1481_s24 = smov 12  ;;  %v1413_v18 = vsel %vm46_vm0, %v7183_v6, %v7182_v5 }
  0x6e   :  { %1296 = vrot.lane.b32.xlu0 %v1295_v1, %s8773_s10  ;;  %v7196_v11 = vld [vmem:[%s17206_s0 + $0xca] ss:$-21 sm:%s1458_s3]   ;;  %v1456_v13 = vsel %vm241_vm7, %v7195_v10, %v7194_v0  ;;  %v1389_v16 = vsel %vm105_vm3, %v7176_v9, %v1384_v8  ;;  %s1525_s10 = smov 12  ;;  %s8775_s3 = smov 98   ;;  %v7238_v56 = vld [vmem:[%s17206_s0 + $0xb1] sm:$0x8]  }
  0x6f   :  { %v7186_v14 = vld [vmem:[%s17206_s0 + $0x6] ss:$28 sm:%s1422_s11]   ;;  %v7188_v20 = vld [vmem:[%s17206_s0 - $0x5c] ss:$28 sm:%s1430_s25]   ;;  %v1461_v21 = vsel %vm148_vm6, %v7196_v11, %v1456_v13  ;;  %s1620_s25 = smov 96  ;;  %v1604_v5 = vsel %vm1213_vm9, %v7238_v56, %v7237_v53  ;;  %s1769_s11 = smov 3 }
  0x70   :  { %1366 = vrot.lane.b32.xlu1 %v1365_v7, %s8774_s30  ;;  %v7177_v17 = vld [vmem:[%s17206_s0 + $0x12d] ss:$-21 sm:%s1391_s17]   ;;  %v1428_v19 = vsel %vm46_vm0, %v7187_v15, %v7186_v14  ;;  %s1522_s17 = smov 3  ;;  %v1465_v29 = vsel %vm54_vm2, %v7197_v22, %v1461_v21  ;;  %v7232_v3 = vld [vmem:[%s17206_s0 + $0x9f] sm:$0x80]   ;;  %s1995_s27 = smov 3 }
  0x71   :  { %v7189_v23 = vld [vmem:[%s17206_s0 - $0x8d] ss:$28 sm:%s1435_s29]   ;;  %v1394_v24 = vsel %vm110_vm4, %v7177_v17, %v1389_v16  ;;  %v1433_v27 = vsel %vm105_vm3, %v7188_v20, %v1428_v19  ;;  %v7214_v34 = vld [vmem:[%s17206_s0 + $0xc] ss:$28 sm:%s1522_s17]   ;;  %s1643_s17 = smov 12  ;;  %s1912_s29 = smov 48 }
  0x72   :  { %1339 = vrot.lane.b32.xlu0 %v1338_v12, %s8774_s30  ;;  %v7202_v25 = vld [vmem:[%s17206_s0 + $0x84] ss:$-21 sm:%s1478_s2]   ;;  %s1530_s2 = smov 48  ;;  %v1438_v35 = vsel %vm110_vm4, %v7189_v23, %v1433_v27  ;;  %v7244_v13 = vld [vmem:[%s17206_s0 + $0x58] sm:$0x80]   ;;  %s2322_s7 = smov 192 }
  0x73   :  { %v7203_v26 = vld [vmem:[%s17206_s0 + $0xb5] ss:$-21 sm:%s1481_s24]   ;;  %v7210_v28 = vld [vmem:[%s17206_s0 + $0xbc] ss:$-21 sm:%s1507_s8]   ;;  %s1713_s24 = smov 3  ;;  %s2083_s8 = smov 12 }
  0x74   :  { %1414 = vrot.lane.b32.xlu1 %v1413_v18, %s8774_s30  ;;  %v7211_v30 = vld [vmem:[%s17206_s0 + $0xed] ss:$-21 sm:%s1510_s6]   ;;  %v1484_v31 = vsel %vm46_vm0, %v7203_v26, %v7202_v25  ;;  %s1535_s6 = smov 192  ;;  %v7277_v18 = vld [vmem:[%s17206_s0 + $0x65] ss:$-21 sm:$0x7]  }
  0x75   :  { %v7204_v32 = vld [vmem:[%s17206_s0 + $0xe6] ss:$-21 sm:%s1486_s14]   ;;  %s1640_s14 = smov 3  ;;  %v1513_v41 = vsel %vm46_vm0, %v7211_v30, %v7210_v28  ;;  %v7216_v44 = vld [vmem:[%s17206_s0 + $0x6e] ss:$-21 sm:%s1530_s2]   ;;  %s1615_s2 = smov 24 }
  0x76   :  { %1395 = vrot.lane.b32.xlu0 %v1394_v24, %s8774_s30  ;;  %v7215_v37 = vld [vmem:[%s17206_s0 - $0x25] ss:$28 sm:%s1525_s10]   ;;  %v1489_v38 = vsel %vm105_vm3, %v7204_v32, %v1484_v31  ;;  %v132_v40 = vpop.permute.xlu1 %131   ;;  %v7241_v60 = vld [vmem:[%s17206_s0 + $0x2e] ss:$-21 sm:$0x7]   ;;  %s1772_s10 = smov 12 }
  0x77   :  { %v7205_v39 = vld [vmem:[%s17206_s0 + $0x133] ss:$-21 sm:%s1491_s22]   ;;  %v1528_v43 = vsel %vm46_vm0, %v7215_v37, %v7214_v34  ;;  %6823 = vst.msk [vmem:[%s17207_s1 + $0x6d1] ss:$292 sm:$0x3] %vm3_vm10, %v132_v40   ;;  %s1749_s22 = smov 96 }
  0x78   :  { %1466 = vrot.lane.b32.xlu1 %v1465_v29, %s8775_s3  ;;  %v7224_v42 = vld [vmem:[%s17206_s0 - $0x17c] ss:$77 sm:%s1557_s28]   ;;  %6824 = vst.msk [vmem:[%s17207_s1 + $0x8d1] ss:$-220 sm:$0xc] %vm3_vm10, %v132_v40   ;;  %s1580_s28 = smov 96  ;;  %v1494_v48 = vsel %vm110_vm4, %v7205_v39, %v1489_v38  ;;  %v1533_v52 = vsel %vm105_vm3, %v7216_v44, %v1528_v43 }
  0x79   :  { %v7229_v46 = vld [vmem:[%s17206_s0 + $0x8a] ss:$-21 sm:%s1573_s9]   ;;  %v57_v51 = vpop.permute.xlu0 %56   ;;  %s1648_s9 = smov 48  ;;  %v1560_v55 = vsel %vm110_vm4, %v7224_v42, %v1555_v45  ;;  %v7243_v7 = vld [vmem:[%s17206_s0 + $0x90] ss:$-21 sm:%s1620_s25]   ;;  %s1701_s25 = smov 12 }
  0x7a   :  { %1439 = vrot.lane.b32.xlu0 %v1438_v35, %s8775_s3  ;;  %v7217_v49 = vld [vmem:[%s17206_s0 - $0x87] ss:$28 sm:%s1535_s6]   ;;  %6801 = vst.msk [vmem:[%s17207_s1 + $0x163] ss:$-220 sm:$0x3] %vm3_vm10, %v57_v51   ;;  %v1578_v57 = vsel %vm143_vm5, %v7230_v47, %v7229_v46  ;;  %s1864_s30 = smov 3 }
  0x7b   :  { %v7249_v50 = vld [vmem:[%s17206_s0 + $0x90] ss:$-70 sm:%s1640_s14]   ;;  %v7250_v54 = vld [vmem:[%s17206_s0 - $0x3] ss:$28 sm:%s1643_s17]   ;;  %v113_v59 = vpop.permute.xlu1 %112   ;;  %v1538_v62 = vsel %vm110_vm4, %v7217_v49, %v1533_v52  ;;  %s1716_s17 = smov 12  ;;  %s1721_s14 = smov 48 }
  0x7c   :  { %1514 = vrot.lane.b32.xlu1 %v1513_v41, %s8775_s3  ;;  %6802 = vst.msk [vmem:[%s17207_s1 + $0x35f] ss:$-218 sm:$0xc] %vm3_vm10, %v57_v51   ;;  %6803 = vst.msk [vmem:[%s17207_s1 + $0x565] ss:$-220 sm:$0x70] %vm3_vm10, %v57_v51   ;;  %v1646_v63 = vsel %vm46_vm0, %v7250_v54, %v7249_v50 }
  0x7d   :  { %6804 = vst.msk [vmem:[%s17207_s1 + $0x35c] sm:$0x80] %vm3_vm10, %v57_v51   ;;  %v7231_v58 = vld [vmem:[%s17206_s0 - $0x95] ss:$56 sm:%s1580_s28]   ;;  %s1669_s28 = smov 3  ;;  %s1935_s6 = smov 48 }
  0x7e   :  { %1495 = vrot.lane.b32.xlu0 %v1494_v48, %s8775_s3  ;;  %v7242_v61 = vld [vmem:[%s17206_s0 + $0x5f] ss:$-21 sm:%s1615_s2]   ;;  %6817 = vst.msk [vmem:[%s17207_s1 + $0x487] ss:$292 sm:$0x3] %vm3_vm10, %v113_v59   ;;  %v84_v1 = vpop.permute.xlu0 %83   ;;  %v1583_v2 = vsel %vm148_vm6, %v7231_v58, %v1578_v57  ;;  %s1677_s2 = smov 48 }
  0x7f   :  { %6818 = vst.msk [vmem:[%s17207_s1 + $0x289] ss:$292 sm:$0xc] %vm3_vm10, %v113_v59   ;;  %6819 = vst.msk [vmem:[%s17207_s1 + $0x889] ss:$-220 sm:$0x30] %vm3_vm10, %v113_v59   ;;  %v1618_v6 = vsel %vm241_vm7, %v7242_v61, %v7241_v60  ;;  %v1587_v12 = vsel %vm54_vm2, %v7232_v3, %v1583_v2 }
  0x80   :  { %6820 = vst.msk [vmem:[%s17207_s1 - $0x51] ss:$292 sm:$0xc0] %vm3_vm10, %v113_v59   ;;  %v7251_v0 = vld [vmem:[%s17206_s0 - $0x34] ss:$28 sm:%s1648_s9]   ;;  %s1672_s9 = smov 12  ;;  %1561 = vrot.lane.b32.xlu1 %v1560_v55, %s8776_s13  ;;  %v182_v9 = vpop.permute.xlu1 %181   ;;  %v1623_v15 = vsel %vm148_vm6, %v7243_v7, %v1618_v6 }
  0x81   :  { %v7252_v4 = vld [vmem:[%s17206_s0 - $0x2b1] ss:$126 sm:%s1653_s23]   ;;  %6809 = vst.msk [vmem:[%s17207_s1 + $0x563] ss:$-732 sm:$0x3] %vm3_vm10, %v84_v1   ;;  %v1651_v10 = vsel %vm105_vm3, %v7251_v0, %v1646_v63  ;;  %v1627_v26 = vsel %vm54_vm2, %v7244_v13, %v1623_v15  ;;  %s8777_s23 = smov 94  }
  0x82   :  { %6810 = vst.msk [vmem:[%s17207_s1 + $0x55f] ss:$-218 sm:$0xc] %vm3_vm10, %v84_v1   ;;  %6811 = vst.msk [vmem:[%s17207_s1 + $0x765] ss:$-220 sm:$0x70] %vm3_vm10, %v84_v1   ;;  %1539 = vrot.lane.b32.xlu0 %v1538_v62, %s8776_s13  ;;  %v155_v14 = vpop.permute.xlu0 %154   ;;  %v1656_v20 = vsel %vm110_vm4, %v7252_v4, %v1651_v10 }
  0x83   :  { %6812 = vst.msk [vmem:[%s17207_s1 + $0x75c] sm:$0x80] %vm3_vm10, %v84_v1   ;;  %v7257_v8 = vld [vmem:[%s17206_s0 + $0x7b] ss:$-21 sm:%s1669_s28]   ;;  %s1744_s28 = smov 24  ;;  %s2080_s3 = smov 3 }
  0x84   :  { %v7258_v11 = vld [vmem:[%s17206_s0 + $0xac] ss:$-21 sm:%s1672_s9]   ;;  %6837 = vst.msk [vmem:[%s17207_s1 + $0x5a2] ss:$-732 sm:$0x3] %vm3_vm10, %v182_v9   ;;  %1605 = vrot.lane.b32.xlu1 %v1604_v5, %s8776_s13  ;;  %v230_v24 = vpop.permute.xlu1 %229   ;;  %s8779_s9 = smov 90  }
  0x85   :  { %6838 = vst.msk [vmem:[%s17207_s1 + $0x59e] ss:$-218 sm:$0xc] %vm3_vm10, %v182_v9   ;;  %6839 = vst.msk [vmem:[%s17207_s1 - $0x25c] ss:$292 sm:$0x30] %vm3_vm10, %v182_v9   ;;  %v1675_v21 = vsel %vm46_vm0, %v7258_v11, %v7257_v8 }
  0x86   :  { %6840 = vst.msk [vmem:[%s17207_s1 - $0x1c68] ss:$1318 sm:$0xc0] %vm3_vm10, %v182_v9   ;;  %v7265_v16 = vld [vmem:[%s17206_s0 + $0xb3] ss:$-21 sm:%s1698_s15]   ;;  %1588 = vrot.lane.b32.xlu0 %v1587_v12, %s8776_s13  ;;  %v211_v29 = vpop.permute.xlu0 %210   ;;  %s1981_s13 = smov 3 }
  0x87   :  { %v7266_v17 = vld [vmem:[%s17206_s0 + $0xe4] ss:$-21 sm:%s1701_s25]   ;;  %v7278_v19 = vld [vmem:[%s17206_s0 + $0x96] ss:$-21 sm:%s1744_s28]   ;;  %s8778_s28 = smov 92   ;;  %s2026_s25 = smov 24 }
  0x88   :  { %6829 = vst.msk [vmem:[%s17207_s1 + $0x1a2] ss:$-220 sm:$0x3] %vm3_vm10, %v155_v14   ;;  %6830 = vst.msk [vmem:[%s17207_s1 + $0x39e] ss:$-218 sm:$0xc] %vm3_vm10, %v155_v14   ;;  %v1747_v27 = vsel %vm241_vm7, %v7278_v19, %v7277_v18  ;;  %1657 = vrot.lane.b32.xlu1 %v1656_v20, %s8777_s23  ;;  %v1704_v32 = vsel %vm46_vm0, %v7266_v17, %v7265_v16  ;;  %v282_v36 = vpop.permute.xlu1 %281  }
  0x89   :  { %6831 = vst.msk [vmem:[%s17207_s1 - $0x45c] ss:$292 sm:$0x30] %vm3_vm10, %v155_v14   ;;  %6832 = vst.msk [vmem:[%s17207_s1 - $0x1268] ss:$806 sm:$0xc0] %vm3_vm10, %v155_v14  }
  0x8a   :  { %v7259_v22 = vld [vmem:[%s17206_s0 + $0xdd] ss:$-21 sm:%s1677_s2]   ;;  %s1682_s2 = smov 192  ;;  %6851 = vst.msk [vmem:[%s17207_s1 + $0x710] ss:$-220 sm:$0x3] %vm3_vm10, %v230_v24   ;;  %1628 = vrot.lane.b32.xlu0 %v1627_v26, %s8777_s23  ;;  %v253_v42 = vpop.permute.xlu0 %252  }
  0x8b   :  { %v7269_v23 = vld [vmem:[%s17206_s0 + $0x3] ss:$28 sm:%s1713_s24]   ;;  %v7270_v25 = vld [vmem:[%s17206_s0 - $0x2e] ss:$28 sm:%s1716_s17]   ;;  %v1680_v30 = vsel %vm105_vm3, %v7259_v22, %v1675_v21  ;;  %s1826_s17 = smov 192  ;;  %s2051_s24 = smov 3 }
  0x8c   :  { %6852 = vst.msk [vmem:[%s17207_s1 + $0x910] ss:$-220 sm:$0xc] %vm3_vm10, %v230_v24   ;;  %v7279_v28 = vld [vmem:[%s17206_s0 + $0xc7] ss:$-21 sm:%s1749_s22]   ;;  %v1719_v33 = vsel %vm46_vm0, %v7270_v25, %v7269_v23  ;;  %1705 = vrot.lane.b32.xlu1 %v1704_v32, %s8777_s23  ;;  %v330_v50 = vpop.permute.xlu1 %329   ;;  %s1984_s22 = smov 12 }
  0x8d   :  { %v7260_v31 = vld [vmem:[%s17206_s0 + $0x12a] ss:$-21 sm:%s1682_s2]   ;;  %6845 = vst.msk [vmem:[%s17207_s1 + $0x4c6] ss:$292 sm:$0x3] %vm3_vm10, %v211_v29   ;;  %s1801_s2 = smov 12  ;;  %v1752_v37 = vsel %vm148_vm6, %v7279_v28, %v1747_v27 }
  0x8e   :  { %6846 = vst.msk [vmem:[%s17207_s1 + $0x6c8] ss:$-220 sm:$0xc] %vm3_vm10, %v211_v29   ;;  %6847 = vst.msk [vmem:[%s17207_s1 + $0x8c8] ss:$-220 sm:$0x30] %vm3_vm10, %v211_v29   ;;  %v1685_v40 = vsel %vm110_vm4, %v7260_v31, %v1680_v30  ;;  %v311_v55 = vpop.permute.xlu0 %310  }
  0x8f   :  { %6848 = vst.msk [vmem:[%s17207_s1 - $0x12] ss:$292 sm:$0xc0] %vm3_vm10, %v211_v29   ;;  %v7271_v34 = vld [vmem:[%s17206_s0 - $0x5f] ss:$28 sm:%s1721_s14]   ;;  %1686 = vrot.lane.b32.xlu0 %v1685_v40, %s8777_s23  ;;  %s2289_s14 = smov 12 }
  0x90   :  { %v7285_v35 = vld [vmem:[%s17206_s0 + $0x81] ss:$-21 sm:%s1769_s11]   ;;  %v7280_v38 = vld [vmem:[%s17206_s0 + $0x8f] sm:$0x80]   ;;  %v1724_v43 = vsel %vm105_vm3, %v7271_v34, %v1719_v33  ;;  %6860 = vst.msk [vmem:[%s17207_s1 + $0x3da] sm:$0x80] %vm3_vm10, %v253_v42   ;;  %v382_v62 = vpop.permute.xlu1 %381  }
  0x91   :  { %v7286_v39 = vld [vmem:[%s17206_s0 + $0xb2] ss:$-21 sm:%s1772_s10]   ;;  %6865 = vst.msk [vmem:[%s17207_s1 + $0x5e1] ss:$-732 sm:$0x3] %vm3_vm10, %v282_v36   ;;  %v1756_v46 = vsel %vm54_vm2, %v7280_v38, %v1752_v37  ;;  %s1782_s11 = smov 192 }
  0x92   :  { %6866 = vst.msk [vmem:[%s17207_s1 - $0x1f] ss:$292 sm:$0xc] %vm3_vm10, %v282_v36   ;;  %6867 = vst.msk [vmem:[%s17207_s1 - $0x21d] ss:$292 sm:$0x30] %vm3_vm10, %v282_v36   ;;  %v1775_v47 = vsel %vm46_vm0, %v7286_v39, %v7285_v35  ;;  %1757 = vrot.lane.b32.xlu1 %v1756_v46, %s8778_s28  ;;  %v355_v3 = vpop.permute.xlu0 %354  }
  0x93   :  { %6868 = vst.msk [vmem:[%s17207_s1 - $0x1c29] ss:$1318 sm:$0xc0] %vm3_vm10, %v282_v36   ;;  %v7272_v41 = vld [vmem:[%s17206_s0 - $0x90] ss:$28 sm:%s1726_s20]   ;;  %s1816_s20 = smov 12 }
  0x94   :  { %v7293_v44 = vld [vmem:[%s17206_s0 + $0xb9] ss:$-21 sm:%s1798_s4]   ;;  %v7294_v45 = vld [vmem:[%s17206_s0 + $0xea] ss:$-21 sm:%s1801_s2]   ;;  %s1821_s10 = smov 48  ;;  %v1729_v53 = vsel %vm110_vm4, %v7272_v41, %v1724_v43  ;;  %v430_v12 = vpop.permute.xlu1 %429   ;;  %s1956_s2 = smov 24 }
  0x95   :  { %6857 = vst.msk [vmem:[%s17207_s1 + $0x1e1] ss:$-220 sm:$0x7] %vm3_vm10, %v253_v42   ;;  %6858 = vst.msk [vmem:[%s17207_s1 + $0x3db] ss:$-218 sm:$0x18] %vm3_vm10, %v253_v42   ;;  %v1804_v58 = vsel %vm46_vm0, %v7294_v45, %v7293_v44  ;;  %1730 = vrot.lane.b32.xlu0 %v1729_v53, %s8778_s28 }
  0x96   :  { %6859 = vst.msk [vmem:[%s17207_s1 + $0x5e3] ss:$-220 sm:$0x60] %vm3_vm10, %v253_v42   ;;  %v7287_v48 = vld [vmem:[%s17206_s0 + $0xe3] ss:$-21 sm:%s1777_s12]   ;;  %s1848_s12 = smov 192  ;;  %1805 = vrot.lane.b32.xlu1 %v1804_v58, %s8778_s28  ;;  %v411_v18 = vpop.permute.xlu0 %410  }
  0x97   :  { %v7297_v49 = vld [vmem:[%s17206_s0 + $0x9] ss:$28 sm:%s1813_s16]   ;;  %v7298_v52 = vld [vmem:[%s17206_s0 - $0x28] ss:$28 sm:%s1816_s20]   ;;  %v1780_v56 = vsel %vm105_vm3, %v7287_v48, %v1775_v47  ;;  %s8780_s16 = smov 88   ;;  %s2154_s20 = smov 12 }
  0x98   :  { %v7305_v51 = vld [vmem:[%s17206_s0 + $0x6b] ss:$-21 sm:$0x7]   ;;  %6879 = vst.msk [vmem:[%s17207_s1 + $0x74d] ss:$-218 sm:$0x3] %vm3_vm10, %v330_v50   ;;  %v1819_v60 = vsel %vm46_vm0, %v7298_v52, %v7297_v49  ;;  %v480_v25 = vpop.permute.xlu1 %479  }
  0x99   :  { %6880 = vst.msk [vmem:[%s17207_s1 + $0x94f] ss:$-220 sm:$0xc] %vm3_vm10, %v330_v50   ;;  %v7306_v54 = vld [vmem:[%s17206_s0 + $0x9c] ss:$-21 sm:$0x38]  }
  0x9a   :  { %v7288_v57 = vld [vmem:[%s17206_s0 + $0x130] ss:$-21 sm:%s1782_s11]   ;;  %6873 = vst.msk [vmem:[%s17207_s1 + $0x505] ss:$-220 sm:$0x3] %vm3_vm10, %v311_v55   ;;  %v1846_v63 = vsel %vm1164_vm8, %v7306_v54, %v7305_v51  ;;  %v453_v30 = vpop.permute.xlu0 %452   ;;  %s2059_s11 = smov 48 }
  0x9b   :  { %6874 = vst.msk [vmem:[%s17207_s1 + $0x701] ss:$-218 sm:$0xc] %vm3_vm10, %v311_v55   ;;  %6875 = vst.msk [vmem:[%s17207_s1 + $0x907] ss:$-220 sm:$0x30] %vm3_vm10, %v311_v55   ;;  %v1785_v2 = vsel %vm110_vm4, %v7288_v57, %v1780_v56 }
  0x9c   :  { %6876 = vst.msk [vmem:[%s17207_s1 + $0xc2d] ss:$-220 sm:$0xc0] %vm3_vm10, %v311_v55   ;;  %v7307_v59 = vld [vmem:[%s17206_s0 - $0x17f] ss:$77 sm:%s1848_s12]   ;;  %1786 = vrot.lane.b32.xlu0 %v1785_v2, %s8778_s28  ;;  %s2031_s28 = smov 96  ;;  %v528_v40 = vpop.permute.xlu1 %527  }
  0x9d   :  { %v7299_v61 = vld [vmem:[%s17206_s0 + $0x6b] ss:$-21 sm:%s1821_s10]   ;;  %v7312_v0 = vld [vmem:[%s17206_s0 + $0x87] ss:$-21 sm:%s1864_s30]   ;;  %s1904_s10 = smov 3  ;;  %v1851_v8 = vsel %vm110_vm4, %v7307_v59, %v1846_v63  ;;  %s1961_s30 = smov 96 }
  0x9e   :  { %v7313_v1 = vld [vmem:[%s17206_s0 + $0xb8] ss:$-21 sm:$0x1c]   ;;  %6893 = vst.msk [vmem:[%s17207_s1 + $0x420] ss:$-220 sm:$0x7] %vm3_vm10, %v382_v62   ;;  %v1824_v4 = vsel %vm105_vm3, %v7299_v61, %v1819_v60  ;;  %1852 = vrot.lane.b32.xlu1 %v1851_v8, %s8779_s9  ;;  %v509_v45 = vpop.permute.xlu0 %508  }
  0x9f   :  { %6894 = vst.msk [vmem:[%s17207_s1 + $0x61a] ss:$-218 sm:$0x18] %vm3_vm10, %v382_v62   ;;  %6895 = vst.msk [vmem:[%s17207_s1 + $0x822] ss:$-220 sm:$0x60] %vm3_vm10, %v382_v62   ;;  %v1869_v9 = vsel %vm143_vm5, %v7313_v1, %v7312_v0 }
  0xa0   :  { %6896 = vst.msk [vmem:[%s17207_s1 + $0x619] sm:$0x80] %vm3_vm10, %v382_v62   ;;  %v7300_v5 = vld [vmem:[%s17206_s0 - $0x8a] ss:$28 sm:%s1826_s17]   ;;  %v7321_v7 = vld [vmem:[%s17206_s0 + $0xae] sm:$0x8]   ;;  %v580_v52 = vpop.permute.xlu1 %579  }
  0xa1   :  { %v7320_v6 = vld [vmem:[%s17206_s0 + $0xbf] ss:$-21 sm:$0x7]   ;;  %6885 = vst.msk [vmem:[%s17207_s1 + $0x20] ss:$292 sm:$0x3] %vm3_vm10, %v355_v3   ;;  %v1829_v15 = vsel %vm110_vm4, %v7300_v5, %v1824_v4 }
  0xa2   :  { %6886 = vst.msk [vmem:[%s17207_s1 - $0x1e0] ss:$292 sm:$0xc] %vm3_vm10, %v355_v3   ;;  %6887 = vst.msk [vmem:[%s17207_s1 - $0x3de] ss:$292 sm:$0x30] %vm3_vm10, %v355_v3   ;;  %v1895_v21 = vsel %vm1213_vm9, %v7321_v7, %v7320_v6  ;;  %1830 = vrot.lane.b32.xlu0 %v1829_v15, %s8779_s9  ;;  %v551_v58 = vpop.permute.xlu0 %550  }
  0xa3   :  { %6888 = vst.msk [vmem:[%s17207_s1 - $0x5ea] ss:$294 sm:$0xc0] %vm3_vm10, %v355_v3   ;;  %v7314_v10 = vld [vmem:[%s17206_s0 - $0x98] ss:$56 sm:%s1871_s19]   ;;  %1896 = vrot.lane.b32.xlu1 %v1895_v21, %s8779_s9  ;;  %s2008_s19 = smov 192 }
  0xa4   :  { %v7324_v11 = vld [vmem:[%s17206_s0 + $0xf] ss:$28 sm:%s1904_s10]   ;;  %6907 = vst.msk [vmem:[%s17207_s1 + $0x78c] ss:$-218 sm:$0x3] %vm3_vm10, %v430_v12   ;;  %v1874_v19 = vsel %vm148_vm6, %v7314_v10, %v1869_v9  ;;  %s2095_s12 = smov 3  ;;  %v628_v4 = vpop.permute.xlu1 %627  }
  0xa5   :  { %v7315_v13 = vld [vmem:[%s17206_s0 + $0x9c] sm:$0x80]   ;;  %v7325_v14 = vld [vmem:[%s17206_s0 + $0x40] ss:$-21 sm:%s1907_s26]   ;;  %v7341_v47 = vld [vmem:[%s17206_s0 + $0xa2] sm:$0x80]  }
  0xa6   :  { %6908 = vst.msk [vmem:[%s17207_s1 + $0x98e] ss:$-220 sm:$0xc] %vm3_vm10, %v430_v12   ;;  %v7332_v16 = vld [vmem:[%s17206_s0 + $0x71] ss:$-21 sm:$0xf]   ;;  %v1910_v23 = vsel %vm46_vm0, %v7325_v14, %v7324_v11  ;;  %v1878_v28 = vsel %vm54_vm2, %v7315_v13, %v1874_v19  ;;  %v609_v9 = vpop.permute.xlu0 %608  }
  0xa7   :  { %v7333_v17 = vld [vmem:[%s17206_s0 + $0xa2] ss:$-21 sm:%s1935_s6]   ;;  %s1917_s6 = smov 192  ;;  %6901 = vst.msk [vmem:[%s17207_s1 + $0x544] ss:$-220 sm:$0x3] %vm3_vm10, %v411_v18   ;;  %1879 = vrot.lane.b32.xlu0 %v1878_v28, %s8779_s9 }
  0xa8   :  { %v7338_v20 = vld [vmem:[%s17206_s0 + $0x8d] ss:$-21 sm:$0x7]   ;;  %6902 = vst.msk [vmem:[%s17207_s1 + $0x740] ss:$-218 sm:$0xc] %vm3_vm10, %v411_v18   ;;  %v1938_v26 = vsel %vm105_vm3, %v7333_v17, %v7332_v16  ;;  %v679_v16 = vpop.permute.xlu1 %678  }
  0xa9   :  { %6903 = vst.msk [vmem:[%s17207_s1 + $0x946] ss:$-220 sm:$0x30] %vm3_vm10, %v411_v18   ;;  %6904 = vst.msk [vmem:[%s17207_s1 + $0xc6c] ss:$-220 sm:$0xc0] %vm3_vm10, %v411_v18  }
  0xaa   :  { %v7334_v22 = vld [vmem:[%s17206_s0 - $0x179] ss:$77 sm:%s1940_s18]   ;;  %6921 = vst.msk [vmem:[%s17207_s1 + $0x583] ss:$-732 sm:$0x3] %vm3_vm10, %v480_v25   ;;  %s2126_s9 = smov 24 }
  0xab   :  { %v7326_v24 = vld [vmem:[%s17206_s0 + $0x71] ss:$-21 sm:%s1912_s29]   ;;  %6922 = vst.msk [vmem:[%s17207_s1 + $0x57f] ss:$-218 sm:$0xc] %vm3_vm10, %v480_v25   ;;  %v1943_v36 = vsel %vm110_vm4, %v7334_v22, %v1938_v26  ;;  %s2151_s10 = smov 3  ;;  %v652_v22 = vpop.permute.xlu0 %651  }
  0xac   :  { %v7339_v27 = vld [vmem:[%s17206_s0 + $0xbe] ss:$-21 sm:%s1956_s2]   ;;  %6923 = vst.msk [vmem:[%s17207_s1 - $0x27b] ss:$292 sm:$0x30] %vm3_vm10, %v480_v25   ;;  %v1915_v31 = vsel %vm105_vm3, %v7326_v24, %v1910_v23  ;;  %s2003_s2 = smov 48  ;;  %1944 = vrot.lane.b32.xlu1 %v1943_v36, %s8780_s16 }
  0xad   :  { %6924 = vst.msk [vmem:[%s17207_s1 - $0x1c87] ss:$1318 sm:$0xc0] %vm3_vm10, %v480_v25   ;;  %v7327_v29 = vld [vmem:[%s17206_s0 - $0x84] ss:$28 sm:%s1917_s6]   ;;  %s1998_s6 = smov 12  ;;  %v1959_v37 = vsel %vm241_vm7, %v7339_v27, %v7338_v20 }
  0xae   :  { %v7346_v32 = vld [vmem:[%s17206_s0 + $0x94] ss:$28 sm:%s1981_s13]   ;;  %v7347_v33 = vld [vmem:[%s17206_s0 + $0x63] ss:$28 sm:%s1984_s22]   ;;  %v1920_v42 = vsel %vm110_vm4, %v7327_v29, %v1915_v31  ;;  %s2054_s13 = smov 12  ;;  %s8781_s26 = smov 86  }
  0xaf   :  { %v7357_v34 = vld [vmem:[%s17206_s0 + $0x62] ss:$-21 sm:$0x7]   ;;  %v7358_v35 = vld [vmem:[%s17206_s0 + $0x93] ss:$-21 sm:%s2026_s25]   ;;  %v1987_v48 = vsel %vm46_vm0, %v7347_v33, %v7346_v32  ;;  %1921 = vrot.lane.b32.xlu0 %v1920_v42, %s8780_s16  ;;  %s2159_s18 = smov 48 }
  0xb0   :  { %6913 = vst.msk [vmem:[%s17207_s1 + $0x183] ss:$-220 sm:$0x3] %vm3_vm10, %v453_v30   ;;  %6914 = vst.msk [vmem:[%s17207_s1 + $0x37f] ss:$-218 sm:$0xc] %vm3_vm10, %v453_v30   ;;  %v2029_v43 = vsel %vm241_vm7, %v7358_v35, %v7357_v34  ;;  %1988 = vrot.lane.b32.xlu1 %v1987_v48, %s8780_s16  ;;  %v708_v35 = vpop.permute.xlu0 %707  }
  0xb1   :  { %6915 = vst.msk [vmem:[%s17207_s1 - $0x47b] ss:$292 sm:$0x30] %vm3_vm10, %v453_v30   ;;  %6916 = vst.msk [vmem:[%s17207_s1 - $0x1287] ss:$806 sm:$0xc0] %vm3_vm10, %v453_v30   ;;  %v727_v30 = vpop.permute.xlu1 %726  }
  0xb2   :  { %v7340_v38 = vld [vmem:[%s17206_s0 - $0x92] ss:$56 sm:%s1961_s30]   ;;  %v1996_v39 = vld [vmem:[%s17206_s0] ss:$28 sm:%s1995_s27]   ;;  %s2131_s30 = smov 96  ;;  %s2195_s22 = smov 3 }
  0xb3   :  { %v7350_v41 = vld [vmem:[%s17206_s0 - $0x31] ss:$28 sm:%s1998_s6]   ;;  %6935 = vst.msk [vmem:[%s17207_s1 + $0x6f1] ss:$-220 sm:$0x3] %vm3_vm10, %v528_v40   ;;  %v1964_v46 = vsel %vm148_vm6, %v7340_v38, %v1959_v37  ;;  %s2246_s27 = smov 3 }
  0xb4   :  { %6936 = vst.msk [vmem:[%s17207_s1 + $0x8f1] ss:$-220 sm:$0xc] %vm3_vm10, %v528_v40   ;;  %v7359_v44 = vld [vmem:[%s17206_s0 + $0xc4] ss:$-21 sm:%s2031_s28]   ;;  %v2001_v49 = vsel %vm46_vm0, %v7350_v41, %v1996_v39  ;;  %v1968_v56 = vsel %vm54_vm2, %v7341_v47, %v1964_v46  ;;  %s2103_s28 = smov 48  ;;  %v752_v47 = vpop.permute.xlu0 %751  }
  0xb5   :  { %6929 = vst.msk [vmem:[%s17207_s1 + $0x4a7] ss:$292 sm:$0x3] %vm3_vm10, %v509_v45   ;;  %6930 = vst.msk [vmem:[%s17207_s1 + $0x6a9] ss:$-220 sm:$0xc] %vm3_vm10, %v509_v45   ;;  %v2034_v53 = vsel %vm148_vm6, %v7359_v44, %v2029_v43  ;;  %1969 = vrot.lane.b32.xlu0 %v1968_v56, %s8780_s16  ;;  %v779_v42 = vpop.permute.xlu1 %778  }
  0xb6   :  { %6931 = vst.msk [vmem:[%s17207_s1 + $0x8a9] ss:$-220 sm:$0x30] %vm3_vm10, %v509_v45   ;;  %6932 = vst.msk [vmem:[%s17207_s1 - $0x31] ss:$292 sm:$0xc0] %vm3_vm10, %v509_v45  }
  0xb7   :  { %v7351_v50 = vld [vmem:[%s17206_s0 - $0x62] ss:$28 sm:%s2003_s2]   ;;  %v7360_v54 = vld [vmem:[%s17206_s0 + $0x8c] sm:$0x80]   ;;  %6944 = vst.msk [vmem:[%s17207_s1 + $0x3bb] sm:$0x80] %vm3_vm10, %v551_v58  }
  0xb8   :  { %v7365_v51 = vld [vmem:[%s17206_s0 + $0x7e] ss:$-21 sm:%s2051_s24]   ;;  %v7366_v55 = vld [vmem:[%s17206_s0 + $0xaf] ss:$-21 sm:%s2054_s13]   ;;  %v2006_v59 = vsel %vm105_vm3, %v7351_v50, %v2001_v49  ;;  %v2038_v0 = vsel %vm54_vm2, %v7360_v54, %v2034_v53  ;;  %s2180_s13 = smov 3  ;;  %s8782_s2 = smov 84  }
  0xb9   :  { %6949 = vst.msk [vmem:[%s17207_s1 + $0x5c2] ss:$-732 sm:$0x3] %vm3_vm10, %v580_v52   ;;  %6950 = vst.msk [vmem:[%s17207_s1 - $0x42] ss:$294 sm:$0xc] %vm3_vm10, %v580_v52   ;;  %v2057_v1 = vsel %vm46_vm0, %v7366_v55, %v7365_v51  ;;  %2039 = vrot.lane.b32.xlu1 %v2038_v0, %s8781_s26  ;;  %v827_v56 = vpop.permute.xlu1 %826  }
  0xba   :  { %6951 = vst.msk [vmem:[%s17207_s1 - $0x23c] ss:$292 sm:$0x30] %vm3_vm10, %v580_v52   ;;  %6952 = vst.msk [vmem:[%s17207_s1 - $0x1c48] ss:$1318 sm:$0xc0] %vm3_vm10, %v580_v52  }
  0xbb   :  { %v7352_v57 = vld [vmem:[%s17206_s0 - $0x93] ss:$28 sm:%s2008_s19]   ;;  %s2098_s19 = smov 12  ;;  %v7385_v62 = vld [vmem:[%s17206_s0 + $0x68] ss:$-21 sm:$0x7]  }
  0xbc   :  { %v7373_v60 = vld [vmem:[%s17206_s0 + $0xb6] ss:$-21 sm:%s2080_s3]   ;;  %v7374_v61 = vld [vmem:[%s17206_s0 + $0xe7] ss:$-21 sm:%s2083_s8]   ;;  %v2011_v6 = vsel %vm110_vm4, %v7352_v57, %v2006_v59  ;;  %s2108_s8 = smov 192  ;;  %s2253_s25 = smov 96 }
  0xbd   :  { %v7386_v63 = vld [vmem:[%s17206_s0 + $0x99] ss:$-21 sm:%s2126_s9]   ;;  %6941 = vst.msk [vmem:[%s17207_s1 + $0x1c2] ss:$-220 sm:$0x7] %vm3_vm10, %v551_v58   ;;  %v2086_v12 = vsel %vm46_vm0, %v7374_v61, %v7373_v60  ;;  %2012 = vrot.lane.b32.xlu0 %v2011_v6, %s8781_s26  ;;  %s2317_s15 = smov 48 }
  0xbe   :  { %6942 = vst.msk [vmem:[%s17207_s1 + $0x3c4] ss:$-220 sm:$0x18] %vm3_vm10, %v551_v58   ;;  %6943 = vst.msk [vmem:[%s17207_s1 + $0x5c4] ss:$-220 sm:$0x60] %vm3_vm10, %v551_v58   ;;  %v2129_v7 = vsel %vm241_vm7, %v7386_v63, %v7385_v62  ;;  %2087 = vrot.lane.b32.xlu1 %v2086_v12, %s8781_s26  ;;  %v808_v62 = vpop.permute.xlu0 %807  }
  0xbf   :  { %v7367_v2 = vld [vmem:[%s17206_s0 + $0xe0] ss:$-21 sm:%s2059_s11]   ;;  %s2064_s11 = smov 192  ;;  %6963 = vst.msk [vmem:[%s17207_s1 + $0x730] ss:$-220 sm:$0x3] %vm3_vm10, %v628_v4  }
  0xc0   :  { %v7377_v3 = vld [vmem:[%s17206_s0 + $0x6] ss:$28 sm:%s2095_s12]   ;;  %v7378_v5 = vld [vmem:[%s17206_s0 - $0x2b] ss:$28 sm:%s2098_s19]   ;;  %v2062_v10 = vsel %vm105_vm3, %v7367_v2, %v2057_v1  ;;  %s2208_s19 = smov 192  ;;  %s2294_s9 = smov 48 }
  0xc1   :  { %6964 = vst.msk [vmem:[%s17207_s1 + $0x930] ss:$-220 sm:$0xc] %vm3_vm10, %v628_v4   ;;  %v7387_v8 = vld [vmem:[%s17206_s0 + $0xca] ss:$-21 sm:%s2131_s30]   ;;  %v2101_v13 = vsel %vm46_vm0, %v7378_v5, %v7377_v3  ;;  %s8783_s21 = smov 82   ;;  %v877_v5 = vpop.permute.xlu1 %876  }
  0xc2   :  { %v7368_v11 = vld [vmem:[%s17206_s0 + $0x12d] ss:$-21 sm:%s2064_s11]   ;;  %6957 = vst.msk [vmem:[%s17207_s1 + $0x4e6] ss:$-220 sm:$0x3] %vm3_vm10, %v609_v9   ;;  %s2183_s11 = smov 12  ;;  %v2134_v17 = vsel %vm148_vm6, %v7387_v8, %v2129_v7 }
  0xc3   :  { %6958 = vst.msk [vmem:[%s17207_s1 + $0x6e8] ss:$-220 sm:$0xc] %vm3_vm10, %v609_v9   ;;  %6959 = vst.msk [vmem:[%s17207_s1 + $0x8e8] ss:$-220 sm:$0x30] %vm3_vm10, %v609_v9   ;;  %v2067_v20 = vsel %vm110_vm4, %v7368_v11, %v2062_v10  ;;  %v850_v10 = vpop.permute.xlu0 %849  }
  0xc4   :  { %6960 = vst.msk [vmem:[%s17207_s1 + $0xc0e] ss:$-220 sm:$0xc0] %vm3_vm10, %v609_v9   ;;  %v7379_v14 = vld [vmem:[%s17206_s0 - $0x5c] ss:$28 sm:%s2103_s28]   ;;  %2068 = vrot.lane.b32.xlu0 %v2067_v20, %s8781_s26  ;;  %s2363_s16 = smov 3 }
  0xc5   :  { %v7393_v15 = vld [vmem:[%s17206_s0 + $0x84] ss:$-21 sm:%s2151_s10]   ;;  %v7388_v18 = vld [vmem:[%s17206_s0 + $0x92] sm:$0x80]   ;;  %6979 = vst.msk [vmem:[%s17207_s1 + $0x5fa] sm:$0x80] %vm3_vm10, %v679_v16   ;;  %v2106_v23 = vsel %vm105_vm3, %v7379_v14, %v2101_v13  ;;  %v925_v20 = vpop.permute.xlu1 %924  }
  0xc6   :  { %v7394_v19 = vld [vmem:[%s17206_s0 + $0xb5] ss:$-21 sm:%s2154_s20]   ;;  %6976 = vst.msk [vmem:[%s17207_s1 + $0x401] ss:$-220 sm:$0x7] %vm3_vm10, %v679_v16   ;;  %v2138_v26 = vsel %vm54_vm2, %v7388_v18, %v2134_v17  ;;  %s2164_s10 = smov 192 }
  0xc7   :  { %6977 = vst.msk [vmem:[%s17207_s1 + $0x5fb] ss:$-218 sm:$0x18] %vm3_vm10, %v679_v16   ;;  %6978 = vst.msk [vmem:[%s17207_s1 + $0x803] ss:$-220 sm:$0x60] %vm3_vm10, %v679_v16   ;;  %v2157_v27 = vsel %vm46_vm0, %v7394_v19, %v7393_v15  ;;  %2139 = vrot.lane.b32.xlu1 %v2138_v26, %s8782_s2 }
  0xc8   :  { %v7380_v21 = vld [vmem:[%s17206_s0 - $0x8d] ss:$28 sm:%s2108_s8]   ;;  %s2198_s8 = smov 12  ;;  %6968 = vst.msk [vmem:[%s17207_s1 + $0x1] ss:$292 sm:$0x3] %vm3_vm10, %v652_v22  }
  0xc9   :  { %v7401_v24 = vld [vmem:[%s17206_s0 + $0xbc] ss:$-21 sm:%s2180_s13]   ;;  %v7402_v25 = vld [vmem:[%s17206_s0 + $0xed] ss:$-21 sm:%s2183_s11]   ;;  %s2203_s20 = smov 48  ;;  %v2111_v33 = vsel %vm110_vm4, %v7380_v21, %v2106_v23  ;;  %s2338_s11 = smov 24 }
  0xca   :  { %6969 = vst.msk [vmem:[%s17207_s1 - $0x1ff] ss:$292 sm:$0xc] %vm3_vm10, %v652_v22   ;;  %6970 = vst.msk [vmem:[%s17207_s1 - $0x3fd] ss:$292 sm:$0x30] %vm3_vm10, %v652_v22   ;;  %v2186_v38 = vsel %vm46_vm0, %v7402_v25, %v7401_v24  ;;  %2112 = vrot.lane.b32.xlu0 %v2111_v33, %s8782_s2  ;;  %v906_v25 = vpop.permute.xlu0 %905  }
  0xcb   :  { %6971 = vst.msk [vmem:[%s17207_s1 - $0x609] ss:$294 sm:$0xc0] %vm3_vm10, %v652_v22   ;;  %v7395_v28 = vld [vmem:[%s17206_s0 + $0xe6] ss:$-21 sm:%s2159_s18]   ;;  %s2230_s18 = smov 192  ;;  %2187 = vrot.lane.b32.xlu1 %v2186_v38, %s8782_s2 }
  0xcc   :  { %v7405_v29 = vld [vmem:[%s17206_s0 + $0xc] ss:$28 sm:%s2195_s22]   ;;  %v7406_v32 = vld [vmem:[%s17206_s0 - $0x25] ss:$28 sm:%s2198_s8]   ;;  %v2162_v36 = vsel %vm105_vm3, %v7395_v28, %v2157_v27  ;;  %s2366_s30 = smov 12  ;;  %s2409_s4 = smov 24 }
  0xcd   :  { %v7413_v31 = vld [vmem:[%s17206_s0 + $0x6e] ss:$-21 sm:$0x7]   ;;  %6990 = vst.msk [vmem:[%s17207_s1 + $0x76d] ss:$-218 sm:$0x3] %vm3_vm10, %v727_v30   ;;  %v2201_v40 = vsel %vm46_vm0, %v7406_v32, %v7405_v29  ;;  %v977_v32 = vpop.permute.xlu1 %976  }
  0xce   :  { %6991 = vst.msk [vmem:[%s17207_s1 + $0x96f] ss:$-220 sm:$0xc] %vm3_vm10, %v727_v30   ;;  %v7414_v34 = vld [vmem:[%s17206_s0 + $0x9f] ss:$-21 sm:$0x38]   ;;  %v948_v38 = vpop.permute.xlu0 %947  }
  0xcf   :  { %v7396_v37 = vld [vmem:[%s17206_s0 + $0x133] ss:$-21 sm:%s2164_s10]   ;;  %6984 = vst.msk [vmem:[%s17207_s1 + $0x525] ss:$-220 sm:$0x3] %vm3_vm10, %v708_v35   ;;  %v2228_v43 = vsel %vm1164_vm8, %v7414_v34, %v7413_v31  ;;  %s2378_s24 = smov 3 }
  0xd0   :  { %6985 = vst.msk [vmem:[%s17207_s1 + $0x721] ss:$-218 sm:$0xc] %vm3_vm10, %v708_v35   ;;  %6986 = vst.msk [vmem:[%s17207_s1 + $0x927] ss:$-220 sm:$0x30] %vm3_vm10, %v708_v35   ;;  %v2167_v46 = vsel %vm110_vm4, %v7396_v37, %v2162_v36 }
  0xd1   :  { %6987 = vst.msk [vmem:[%s17207_s1 + $0xc4d] ss:$-220 sm:$0xc0] %vm3_vm10, %v708_v35   ;;  %v7415_v39 = vld [vmem:[%s17206_s0 - $0x17c] ss:$77 sm:%s2230_s18]   ;;  %2168 = vrot.lane.b32.xlu0 %v2167_v46, %s8782_s2  ;;  %s2414_s2 = smov 96  ;;  %v1025_v46 = vpop.permute.xlu1 %1024  }
  0xd2   :  { %v7407_v41 = vld [vmem:[%s17206_s0 + $0x6e] ss:$-21 sm:%s2203_s20]   ;;  %v7420_v44 = vld [vmem:[%s17206_s0 + $0x8a] ss:$-21 sm:%s2246_s27]   ;;  %s2286_s20 = smov 3  ;;  %v2233_v52 = vsel %vm110_vm4, %v7415_v39, %v2228_v43  ;;  %s2343_s27 = smov 96 }
  0xd3   :  { %v7421_v45 = vld [vmem:[%s17206_s0 + $0xbb] ss:$-21 sm:$0x1c]   ;;  %7004 = vst.msk [vmem:[%s17207_s1 + $0x440] ss:$-220 sm:$0x7] %vm3_vm10, %v779_v42   ;;  %v2206_v48 = vsel %vm105_vm3, %v7407_v41, %v2201_v40  ;;  %2234 = vrot.lane.b32.xlu1 %v2233_v52, %s8783_s21 }
  0xd4   :  { %7005 = vst.msk [vmem:[%s17207_s1 + $0x63a] ss:$-218 sm:$0x18] %vm3_vm10, %v779_v42   ;;  %7006 = vst.msk [vmem:[%s17207_s1 + $0x842] ss:$-220 sm:$0x60] %vm3_vm10, %v779_v42   ;;  %v2251_v53 = vsel %vm143_vm5, %v7421_v45, %v7420_v44 }
  0xd5   :  { %7007 = vst.msk [vmem:[%s17207_s1 + $0x639] sm:$0x80] %vm3_vm10, %v779_v42   ;;  %v7408_v49 = vld [vmem:[%s17206_s0 - $0x87] ss:$28 sm:%s2208_s19]   ;;  %v7429_v51 = vld [vmem:[%s17206_s0 + $0xb1] sm:$0x8]  }
  0xd6   :  { %v7428_v50 = vld [vmem:[%s17206_s0 + $0xc2] ss:$-21 sm:$0x7]   ;;  %6996 = vst.msk [vmem:[%s17207_s1 + $0x40] ss:$292 sm:$0x3] %vm3_vm10, %v752_v47   ;;  %v2211_v59 = vsel %vm110_vm4, %v7408_v49, %v2206_v48 }
  0xd7   :  { %6997 = vst.msk [vmem:[%s17207_s1 - $0x1c0] ss:$292 sm:$0xc] %vm3_vm10, %v752_v47   ;;  %6998 = vst.msk [vmem:[%s17207_s1 - $0x3be] ss:$292 sm:$0x30] %vm3_vm10, %v752_v47   ;;  %v2277_v1 = vsel %vm1213_vm9, %v7429_v51, %v7428_v50  ;;  %2212 = vrot.lane.b32.xlu0 %v2211_v59, %s8783_s21  ;;  %v1006_v51 = vpop.permute.xlu0 %1005  }
  0xd8   :  { %6999 = vst.msk [vmem:[%s17207_s1 - $0x5ca] ss:$294 sm:$0xc0] %vm3_vm10, %v752_v47   ;;  %v7422_v54 = vld [vmem:[%s17206_s0 - $0x95] ss:$56 sm:%s2253_s25]   ;;  %2278 = vrot.lane.b32.xlu1 %v2277_v1, %s8783_s21  ;;  %s2434_s12 = smov 3 }
  0xd9   :  { %v7432_v55 = vld [vmem:[%s17206_s0 + $0x12] ss:$28 sm:%s2286_s20]   ;;  %7018 = vst.msk [vmem:[%s17207_s1 + $0x7ac] ss:$-218 sm:$0x3] %vm3_vm10, %v827_v56   ;;  %v2256_v63 = vsel %vm148_vm6, %v7422_v54, %v2251_v53  ;;  %s8784_s22 = smov 80  }
  0xda   :  { %v7423_v57 = vld [vmem:[%s17206_s0 + $0x9f] sm:$0x80]   ;;  %v7433_v58 = vld [vmem:[%s17206_s0 + $0x43] ss:$-21 sm:%s2289_s14]   ;;  %v7449_v27 = vld [vmem:[%s17206_s0 + $0xa5] sm:$0x80]  }
  0xdb   :  { %7019 = vst.msk [vmem:[%s17207_s1 + $0x9ae] ss:$-220 sm:$0xc] %vm3_vm10, %v827_v56   ;;  %v7440_v60 = vld [vmem:[%s17206_s0 + $0x74] ss:$-21 sm:$0xf]   ;;  %v2292_v3 = vsel %vm46_vm0, %v7433_v58, %v7432_v55  ;;  %v2260_v8 = vsel %vm54_vm2, %v7423_v57, %v2256_v63  ;;  %v1077_v58 = vpop.permute.xlu1 %1076   ;;  %v1050_v63 = vpop.permute.xlu0 %1049  }
  0xdc   :  { %v7441_v61 = vld [vmem:[%s17206_s0 + $0xa5] ss:$-21 sm:%s2317_s15]   ;;  %s2299_s15 = smov 192  ;;  %7012 = vst.msk [vmem:[%s17207_s1 + $0x564] ss:$-220 sm:$0x3] %vm3_vm10, %v808_v62   ;;  %2261 = vrot.lane.b32.xlu0 %v2260_v8, %s8783_s21 }
  0xdd   :  { %v7446_v0 = vld [vmem:[%s17206_s0 + $0x90] ss:$-21 sm:$0x7]   ;;  %7013 = vst.msk [vmem:[%s17207_s1 + $0x760] ss:$-218 sm:$0xc] %vm3_vm10, %v808_v62   ;;  %v2320_v6 = vsel %vm105_vm3, %v7441_v61, %v7440_v60 }
  0xde   :  { %7014 = vst.msk [vmem:[%s17207_s1 + $0x966] ss:$-220 sm:$0x30] %vm3_vm10, %v808_v62   ;;  %7015 = vst.msk [vmem:[%s17207_s1 + $0xc8c] ss:$-220 sm:$0xc0] %vm3_vm10, %v808_v62  }
  0xdf   :  { %v7442_v2 = vld [vmem:[%s17206_s0 - $0x176] ss:$77 sm:%s2322_s7]   ;;  %7032 = vst.msk [vmem:[%s17207_s1 + $0x5a3] ss:$-732 sm:$0x3] %vm3_vm10, %v877_v5   ;;  %s2391_s25 = smov 192  ;;  %v1125_v8 = vpop.permute.xlu1 %1124  }
  0xe0   :  { %v7434_v4 = vld [vmem:[%s17206_s0 + $0x74] ss:$-21 sm:%s2294_s9]   ;;  %7033 = vst.msk [vmem:[%s17207_s1 + $0x59f] ss:$-218 sm:$0xc] %vm3_vm10, %v877_v5   ;;  %v2325_v16 = vsel %vm110_vm4, %v7442_v2, %v2320_v6  ;;  %s2463_s17 = smov 3 }
  0xe1   :  { %v7447_v7 = vld [vmem:[%s17206_s0 + $0xc1] ss:$-21 sm:%s2338_s11]   ;;  %7034 = vst.msk [vmem:[%s17207_s1 - $0x25b] ss:$292 sm:$0x30] %vm3_vm10, %v877_v5   ;;  %v2297_v11 = vsel %vm105_vm3, %v7434_v4, %v2292_v3  ;;  %s2386_s11 = smov 48  ;;  %2326 = vrot.lane.b32.xlu1 %v2325_v16, %s8784_s22 }
  0xe2   :  { %7035 = vst.msk [vmem:[%s17207_s1 - $0x1c67] ss:$1318 sm:$0xc0] %vm3_vm10, %v877_v5   ;;  %v7435_v9 = vld [vmem:[%s17206_s0 - $0x81] ss:$28 sm:%s2299_s15]   ;;  %s2381_s15 = smov 12  ;;  %v2341_v17 = vsel %vm241_vm7, %v7447_v7, %v7446_v0 }
  0xe3   :  { %v7454_v12 = vld [vmem:[%s17206_s0 + $0x97] ss:$28 sm:%s2363_s16]   ;;  %v7455_v13 = vld [vmem:[%s17206_s0 + $0x66] ss:$28 sm:%s2366_s30]   ;;  %v2302_v22 = vsel %vm110_vm4, %v7435_v9, %v2297_v11  ;;  %s2437_s16 = smov 12  ;;  %s2466_s23 = smov 12 }
  0xe4   :  { %v7466_v14 = vld [vmem:[%s17206_s0 + $0x65] ss:$-21 sm:$0x7]   ;;  %v7467_v15 = vld [vmem:[%s17206_s0 + $0x96] ss:$-21 sm:%s2409_s4]   ;;  %v2369_v28 = vsel %vm46_vm0, %v7455_v13, %v7454_v12  ;;  %2303 = vrot.lane.b32.xlu0 %v2302_v22, %s8784_s22  ;;  %s2442_s28 = smov 48 }
  0xe5   :  { %7024 = vst.msk [vmem:[%s17207_s1 + $0x1a3] ss:$-220 sm:$0x3] %vm3_vm10, %v850_v10   ;;  %7025 = vst.msk [vmem:[%s17207_s1 + $0x39f] ss:$-218 sm:$0xc] %vm3_vm10, %v850_v10   ;;  %v2412_v23 = vsel %vm241_vm7, %v7467_v15, %v7466_v14  ;;  %2370 = vrot.lane.b32.xlu1 %v2369_v28, %s8784_s22  ;;  %v1106_v14 = vpop.permute.xlu0 %1105  }
  0xe6   :  { %7026 = vst.msk [vmem:[%s17207_s1 - $0x45b] ss:$292 sm:$0x30] %vm3_vm10, %v850_v10   ;;  %7027 = vst.msk [vmem:[%s17207_s1 - $0x1267] ss:$806 sm:$0xc0] %vm3_vm10, %v850_v10  }
  0xe7   :  { %v7448_v18 = vld [vmem:[%s17206_s0 - $0x8f] ss:$56 sm:%s2343_s27]   ;;  %v7458_v19 = vld [vmem:[%s17206_s0 + $0x3] ss:$28 sm:%s2378_s24]   ;;  %s2478_s10 = smov 3  ;;  %s2527_s7 = smov 3 }
  0xe8   :  { %v7459_v21 = vld [vmem:[%s17206_s0 - $0x2e] ss:$28 sm:%s2381_s15]   ;;  %7046 = vst.msk [vmem:[%s17207_s1 + $0x711] ss:$-220 sm:$0x3] %vm3_vm10, %v925_v20   ;;  %v2346_v26 = vsel %vm148_vm6, %v7448_v18, %v2341_v17  ;;  %s8785_s30 = smov 78  }
  0xe9   :  { %7047 = vst.msk [vmem:[%s17207_s1 + $0x911] ss:$-220 sm:$0xc] %vm3_vm10, %v925_v20   ;;  %v7468_v24 = vld [vmem:[%s17206_s0 + $0xc7] ss:$-21 sm:%s2414_s2]   ;;  %v2384_v29 = vsel %vm46_vm0, %v7459_v21, %v7458_v19  ;;  %v2350_v36 = vsel %vm54_vm2, %v7449_v27, %v2346_v26  ;;  %s2491_s18 = smov 192  ;;  %v1172_v21 = vpop.permute.xlu1 %1171   ;;  %v1150_v27 = vpop.permute.xlu0 %1149  }
  0xea   :  { %7040 = vst.msk [vmem:[%s17207_s1 + $0x4c7] ss:$292 sm:$0x3] %vm3_vm10, %v906_v25   ;;  %7041 = vst.msk [vmem:[%s17207_s1 + $0x6c9] ss:$-220 sm:$0xc] %vm3_vm10, %v906_v25   ;;  %v2417_v33 = vsel %vm148_vm6, %v7468_v24, %v2412_v23  ;;  %2351 = vrot.lane.b32.xlu0 %v2350_v36, %s8784_s22 }
  0xeb   :  { %7042 = vst.msk [vmem:[%s17207_s1 + $0x8c9] ss:$-220 sm:$0x30] %vm3_vm10, %v906_v25   ;;  %7043 = vst.msk [vmem:[%s17207_s1 - $0x11] ss:$292 sm:$0xc0] %vm3_vm10, %v906_v25  }
  0xec   :  { %v7460_v30 = vld [vmem:[%s17206_s0 - $0x5f] ss:$28 sm:%s2386_s11]   ;;  %v7469_v34 = vld [vmem:[%s17206_s0 + $0x8f] sm:$0x80]   ;;  %7055 = vst.msk [vmem:[%s17207_s1 + $0x3db] sm:$0x80] %vm3_vm10, %v948_v38  }
  0xed   :  { %v7474_v31 = vld [vmem:[%s17206_s0 + $0x81] ss:$-21 sm:%s2434_s12]   ;;  %v7475_v35 = vld [vmem:[%s17206_s0 + $0xb2] ss:$-21 sm:%s2437_s16]   ;;  %v2389_v39 = vsel %vm105_vm3, %v7460_v30, %v2384_v29  ;;  %v2421_v42 = vsel %vm54_vm2, %v7469_v34, %v2417_v33  ;;  %s2447_s12 = smov 192  ;;  %s2486_s16 = smov 48  ;;  %v1216_v36 = vpop.permute.xlu1 %1215  }
  0xee   :  { %7060 = vst.msk [vmem:[%s17207_s1 + $0x5e2] ss:$-732 sm:$0x3] %vm3_vm10, %v977_v32   ;;  %7061 = vst.msk [vmem:[%s17207_s1 - $0x22] ss:$294 sm:$0xc] %vm3_vm10, %v977_v32   ;;  %v2440_v43 = vsel %vm46_vm0, %v7475_v35, %v7474_v31  ;;  %2422 = vrot.lane.b32.xlu1 %v2421_v42, %s8785_s30 }
  0xef   :  { %7062 = vst.msk [vmem:[%s17207_s1 - $0x21c] ss:$292 sm:$0x30] %vm3_vm10, %v977_v32   ;;  %7063 = vst.msk [vmem:[%s17207_s1 - $0x1c28] ss:$1318 sm:$0xc0] %vm3_vm10, %v977_v32  }
  0xf0   :  { %v7461_v37 = vld [vmem:[%s17206_s0 - $0x90] ss:$28 sm:%s2391_s25]   ;;  %s2481_s25 = smov 12  ;;  %7052 = vst.msk [vmem:[%s17207_s1 + $0x1e2] ss:$-220 sm:$0x7] %vm3_vm10, %v948_v38  }
  0xf1   :  { %v7482_v40 = vld [vmem:[%s17206_s0 + $0xb9] ss:$-21 sm:%s2463_s17]   ;;  %v7483_v41 = vld [vmem:[%s17206_s0 + $0xea] ss:$-21 sm:%s2466_s23]   ;;  %v2394_v49 = vsel %vm110_vm4, %v7461_v37, %v2389_v39  ;;  %s2534_s15 = smov 96  ;;  %s2570_s9 = smov 12 }
  0xf2   :  { %7053 = vst.msk [vmem:[%s17207_s1 + $0x3e4] ss:$-220 sm:$0x18] %vm3_vm10, %v948_v38   ;;  %7054 = vst.msk [vmem:[%s17207_s1 + $0x5e4] ss:$-220 sm:$0x60] %vm3_vm10, %v948_v38   ;;  %v2469_v54 = vsel %vm46_vm0, %v7483_v41, %v7482_v40  ;;  %2395 = vrot.lane.b32.xlu0 %v2394_v49, %s8785_s30  ;;  %v1199_v41 = vpop.permute.xlu0 %1198   ;;  %v1268_v49 = vpop.permute.xlu1 %1267  }
  0xf3   :  { %v7476_v44 = vld [vmem:[%s17206_s0 + $0xe3] ss:$-21 sm:%s2442_s28]   ;;  %s2513_s28 = smov 192  ;;  %v7494_v47 = vld [vmem:[%s17206_s0 + $0x6b] ss:$-21 sm:$0x7]   ;;  %2470 = vrot.lane.b32.xlu1 %v2469_v54, %s8785_s30 }
  0xf4   :  { %v7486_v45 = vld [vmem:[%s17206_s0 + $0x9] ss:$28 sm:%s2478_s10]   ;;  %v7487_v48 = vld [vmem:[%s17206_s0 - $0x28] ss:$28 sm:%s2481_s25]   ;;  %v2445_v52 = vsel %vm105_vm3, %v7476_v44, %v2440_v43  ;;  %s2598_s13 = smov 48  ;;  %s2575_s20 = smov 48 }
  0xf5   :  { %7074 = vst.msk [vmem:[%s17207_s1 + $0x750] ss:$-220 sm:$0x3] %vm3_vm10, %v1025_v46   ;;  %7075 = vst.msk [vmem:[%s17207_s1 + $0x950] ss:$-220 sm:$0xc] %vm3_vm10, %v1025_v46   ;;  %v2484_v56 = vsel %vm46_vm0, %v7487_v48, %v7486_v45 }
  0xf6   :  { %v7495_v50 = vld [vmem:[%s17206_s0 + $0x9c] ss:$-21 sm:$0x38]   ;;  %7068 = vst.msk [vmem:[%s17207_s1 + $0x506] ss:$-220 sm:$0x3] %vm3_vm10, %v1006_v51   ;;  %v1239_v54 = vpop.permute.xlu0 %1238  }
  0xf7   :  { %v7477_v53 = vld [vmem:[%s17206_s0 + $0x130] ss:$-21 sm:%s2447_s12]   ;;  %7069 = vst.msk [vmem:[%s17207_s1 + $0x708] ss:$-220 sm:$0xc] %vm3_vm10, %v1006_v51   ;;  %v2511_v59 = vsel %vm1164_vm8, %v7495_v50, %v7494_v47  ;;  %s10852_s25 = smov 192 }
  0xf8   :  { %7070 = vst.msk [vmem:[%s17207_s1 + $0x908] ss:$-220 sm:$0x30] %vm3_vm10, %v1006_v51   ;;  %7071 = vst.msk [vmem:[%s17207_s1 + $0xc2e] ss:$-220 sm:$0xc0] %vm3_vm10, %v1006_v51   ;;  %v2450_v62 = vsel %vm110_vm4, %v7477_v53, %v2445_v52 }
  0xf9   :  { %v7496_v55 = vld [vmem:[%s17206_s0 - $0x17f] ss:$77 sm:%s2513_s28]   ;;  %7088 = vst.msk [vmem:[%s17207_s1 + $0x421] ss:$-220 sm:$0x7] %vm3_vm10, %v1077_v58   ;;  %2451 = vrot.lane.b32.xlu0 %v2450_v62, %s8785_s30  ;;  %s2619_s27 = smov 24 }
  0xfa   :  { %v7488_v57 = vld [vmem:[%s17206_s0 + $0x6b] ss:$-21 sm:%s2486_s16]   ;;  %v7500_v60 = vld [vmem:[%s17206_s0 + $0x87] ss:$-21 sm:%s2527_s7]   ;;  %s2567_s16 = smov 3  ;;  %v2516_v4 = vsel %vm110_vm4, %v7496_v55, %v2511_v59  ;;  %s10871_s21 = smov 3 }
  0xfb   :  { %v7501_v61 = vld [vmem:[%s17206_s0 + $0xb8] ss:$-21 sm:$0x1c]   ;;  %7089 = vst.msk [vmem:[%s17207_s1 + $0x61b] ss:$-218 sm:$0x18] %vm3_vm10, %v1077_v58   ;;  %v2489_v0 = vsel %vm105_vm3, %v7488_v57, %v2484_v56 }
  0xfc   :  { %7090 = vst.msk [vmem:[%s17207_s1 + $0x823] ss:$-220 sm:$0x60] %vm3_vm10, %v1077_v58   ;;  %7091 = vst.msk [vmem:[%s17207_s1 + $0x61a] sm:$0x80] %vm3_vm10, %v1077_v58   ;;  %v2532_v5 = vsel %vm143_vm5, %v7501_v61, %v7500_v60  ;;  %s2688_s12 = smov 3 }
  0xfd   :  { %v7489_v1 = vld [vmem:[%s17206_s0 - $0x8a] ss:$28 sm:%s2491_s18]   ;;  %v7509_v3 = vld [vmem:[%s17206_s0 + $0xae] sm:$0x8]   ;;  %v7503_v9 = vld [vmem:[%s17206_s0 + $0x9c] sm:$0x80]  }
  0xfe   :  { %v7508_v2 = vld [vmem:[%s17206_s0 + $0xbf] ss:$-21 sm:$0x7]   ;;  %7080 = vst.msk [vmem:[%s17207_s1 + $0x21] ss:$292 sm:$0x3] %vm3_vm10, %v1050_v63   ;;  %v2494_v11 = vsel %vm110_vm4, %v7489_v1, %v2489_v0  ;;  %v1316_v0 = vpop.permute.xlu1 %1315  }
  0xff   :  { %7081 = vst.msk [vmem:[%s17207_s1 - $0x1df] ss:$292 sm:$0xc] %vm3_vm10, %v1050_v63   ;;  %7082 = vst.msk [vmem:[%s17207_s1 - $0x3dd] ss:$292 sm:$0x30] %vm3_vm10, %v1050_v63   ;;  %v2558_v17 = vsel %vm1213_vm9, %v7509_v3, %v7508_v2 }
 0x100   :  { %7083 = vst.msk [vmem:[%s17207_s1 - $0x5e9] ss:$294 sm:$0xc0] %vm3_vm10, %v1050_v63   ;;  %v7502_v6 = vld [vmem:[%s17206_s0 - $0x98] ss:$56 sm:%s2534_s15]   ;;  %s2603_s15 = smov 192 }
 0x101   :  { %v7512_v7 = vld [vmem:[%s17206_s0 + $0xf] ss:$28 sm:%s2567_s16]   ;;  %7102 = vst.msk [vmem:[%s17207_s1 + $0x78d] ss:$-218 sm:$0x3] %vm3_vm10, %v1125_v8   ;;  %v2537_v15 = vsel %vm148_vm6, %v7502_v6, %v2532_v5  ;;  %s2647_s2 = smov 12  ;;  %v1297_v5 = vpop.permute.xlu0 %1296  }
 0x102   :  { %v7513_v10 = vld [vmem:[%s17206_s0 + $0x40] ss:$-21 sm:%s2570_s9]   ;;  %7103 = vst.msk [vmem:[%s17207_s1 + $0x98f] ss:$-220 sm:$0xc] %vm3_vm10, %v1125_v8   ;;  %s2624_s9 = smov 96  ;;  %v2541_v24 = vsel %vm54_vm2, %v7503_v9, %v2537_v15 }
 0x103   :  { %v7520_v12 = vld [vmem:[%s17206_s0 + $0x71] ss:$-21 sm:$0xf]   ;;  %v7521_v13 = vld [vmem:[%s17206_s0 + $0xa2] ss:$-21 sm:%s2598_s13]   ;;  %s8786_s13 = smov 76   ;;  %v2573_v19 = vsel %vm46_vm0, %v7513_v10, %v7512_v7 }
 0x104   :  { %2517 = vrot.lane.b32.xlu1 %v2516_v4, %s8786_s13  ;;  %v7526_v16 = vld [vmem:[%s17206_s0 + $0x8d] ss:$-21 sm:$0x7]   ;;  %7096 = vst.msk [vmem:[%s17207_s1 + $0x545] ss:$-220 sm:$0x3] %vm3_vm10, %v1106_v14   ;;  %2495 = vrot.lane.b32.xlu0 %v2494_v11, %s8786_s13  ;;  %v2601_v22 = vsel %vm105_vm3, %v7521_v13, %v7520_v12  ;;  %v1367_v12 = vpop.permute.xlu1 %1366  }
 0x105   :  { %7097 = vst.msk [vmem:[%s17207_s1 + $0x741] ss:$-218 sm:$0xc] %vm3_vm10, %v1106_v14   ;;  %7098 = vst.msk [vmem:[%s17207_s1 + $0x947] ss:$-220 sm:$0x30] %vm3_vm10, %v1106_v14  }
 0x106   :  { %7099 = vst.msk [vmem:[%s17207_s1 + $0xc6d] ss:$-220 sm:$0xc0] %vm3_vm10, %v1106_v14   ;;  %v7522_v18 = vld [vmem:[%s17206_s0 - $0x179] ss:$77 sm:%s2603_s15]   ;;  %s2659_s8 = smov 3 }
 0x107   :  { %v7514_v20 = vld [vmem:[%s17206_s0 + $0x71] ss:$-21 sm:%s2575_s20]   ;;  %s2691_s20 = smov 12  ;;  %7115 = vst.msk [vmem:[%s17207_s1 + $0x460] ss:$-220 sm:$0x7] %vm3_vm10, %v1172_v21   ;;  %v2606_v32 = vsel %vm110_vm4, %v7522_v18, %v2601_v22  ;;  %v1340_v18 = vpop.permute.xlu0 %1339  }
 0x108   :  { %v7527_v23 = vld [vmem:[%s17206_s0 + $0xbe] ss:$-21 sm:%s2619_s27]   ;;  %7116 = vst.msk [vmem:[%s17207_s1 + $0x65a] ss:$-218 sm:$0x18] %vm3_vm10, %v1172_v21   ;;  %2559 = vrot.lane.b32.xlu1 %v2558_v17, %s8786_s13  ;;  %v2578_v28 = vsel %vm105_vm3, %v7514_v20, %v2573_v19  ;;  %s2696_s16 = smov 48 }
 0x109   :  { %7117 = vst.msk [vmem:[%s17207_s1 - $0x39e] ss:$292 sm:$0x60] %vm3_vm10, %v1172_v21   ;;  %7118 = vst.msk [vmem:[%s17207_s1 + $0x659] sm:$0x80] %vm3_vm10, %v1172_v21   ;;  %v2622_v33 = vsel %vm241_vm7, %v7527_v23, %v7526_v16  ;;  %2542 = vrot.lane.b32.xlu0 %v2541_v24, %s8786_s13  ;;  %s2667_s11 = smov 48 }
 0x10a   :  { %v7515_v25 = vld [vmem:[%s17206_s0 - $0x84] ss:$28 sm:%s10852_s25]   ;;  %v7546_v26 = vld [vmem:[%s17206_s0 + $0x77] ss:$-70 sm:%s2688_s12]   ;;  %s2662_s12 = smov 12  ;;  %s2717_s28 = smov 3 }
 0x10b   :  { %v7534_v29 = vld [vmem:[%s17206_s0 + $0x94] ss:$28 sm:%s10871_s21]   ;;  %v7535_v30 = vld [vmem:[%s17206_s0 + $0x63] ss:$28 sm:%s2647_s2]   ;;  %v2583_v38 = vsel %vm110_vm4, %v7515_v25, %v2578_v28  ;;  %s2720_s26 = smov 12  ;;  %s8787_s21 = smov 74  }
 0x10c   :  { %v7547_v31 = vld [vmem:[%s17206_s0 + $0x77] ss:$-21 sm:%s2691_s20]   ;;  %7108 = vst.msk [vmem:[%s17207_s1 + $0x60] ss:$292 sm:$0x3] %vm3_vm10, %v1150_v27   ;;  %2607 = vrot.lane.b32.xlu1 %v2606_v32, %s8787_s21  ;;  %s2672_s15 = smov 192  ;;  %v2650_v45 = vsel %vm46_vm0, %v7535_v30, %v7534_v29 }
 0x10d   :  { %7109 = vst.msk [vmem:[%s17207_s1 - $0x1a0] ss:$292 sm:$0xc] %vm3_vm10, %v1150_v27   ;;  %7110 = vst.msk [vmem:[%s17207_s1 + $0x462] ss:$-220 sm:$0x30] %vm3_vm10, %v1150_v27   ;;  %v2694_v39 = vsel %vm46_vm0, %v7547_v31, %v7546_v26  ;;  %2584 = vrot.lane.b32.xlu0 %v2583_v38, %s8787_s21  ;;  %v1396_v31 = vpop.permute.xlu0 %1395  }
 0x10e   :  { %7111 = vst.msk [vmem:[%s17207_s1 - $0x5aa] ss:$294 sm:$0xc0] %vm3_vm10, %v1150_v27   ;;  %v7528_v34 = vld [vmem:[%s17206_s0 - $0x92] ss:$56 sm:%s2624_s9]   ;;  %s2701_s9 = smov 192  ;;  %v1415_v27 = vpop.permute.xlu1 %1414  }
 0x10f   :  { %v7538_v35 = vld [vmem:[%s17206_s0 + $0x15] ss:$-21 sm:%s2659_s8]   ;;  %v7539_v37 = vld [vmem:[%s17206_s0 + $0x46] ss:$-21 sm:%s2662_s12]   ;;  %v2627_v42 = vsel %vm148_vm6, %v7528_v34, %v2622_v33  ;;  %s2745_s5 = smov 3  ;;  %s2748_s24 = smov 12 }
 0x110   :  { %7129 = vst.msk [vmem:[%s17207_s1 + $0x7cc] ss:$-218 sm:$0x3] %vm3_vm10, %v1216_v36   ;;  %7130 = vst.msk [vmem:[%s17207_s1 + $0x3ce] ss:$292 sm:$0xc] %vm3_vm10, %v1216_v36   ;;  %v2665_v46 = vsel %vm46_vm0, %v7539_v37, %v7538_v35  ;;  %2651 = vrot.lane.b32.xlu1 %v2650_v45, %s8787_s21 }
 0x111   :  { %v7548_v40 = vld [vmem:[%s17206_s0 + $0xa8] ss:$-21 sm:%s2696_s16]   ;;  %7123 = vst.msk [vmem:[%s17207_s1 + $0x584] ss:$-220 sm:$0x3] %vm3_vm10, %v1199_v41   ;;  %s2724_s22 = smov 48 }
 0x112   :  { %v7529_v43 = vld [vmem:[%s17206_s0 + $0xa2] sm:$0x80]   ;;  %v7549_v44 = vld [vmem:[%s17206_s0 - $0x173] ss:$77 sm:%s2701_s9]   ;;  %v2699_v50 = vsel %vm105_vm3, %v7548_v40, %v2694_v39  ;;  %s2760_s25 = smov 3  ;;  %s2796_s27 = smov 96  ;;  %v1467_v38 = vpop.permute.xlu1 %1466  }
 0x113   :  { %7124 = vst.msk [vmem:[%s17207_s1 + $0x780] ss:$-218 sm:$0xc] %vm3_vm10, %v1199_v41   ;;  %7125 = vst.msk [vmem:[%s17207_s1 - $0x7a] ss:$292 sm:$0x30] %vm3_vm10, %v1199_v41   ;;  %v2631_v52 = vsel %vm54_vm2, %v7529_v43, %v2627_v42  ;;  %v2704_v60 = vsel %vm110_vm4, %v7549_v44, %v2699_v50  ;;  %v1440_v43 = vpop.permute.xlu0 %1439  }
 0x114   :  { %7126 = vst.msk [vmem:[%s17207_s1 + $0xcac] ss:$-220 sm:$0xc0] %vm3_vm10, %v1199_v41   ;;  %v7540_v47 = vld [vmem:[%s17206_s0 + $0x77] ss:$-21 sm:%s2667_s11]   ;;  %s2791_s11 = smov 24  ;;  %2632 = vrot.lane.b32.xlu0 %v2631_v52, %s8787_s21 }
 0x115   :  { %v7554_v48 = vld [vmem:[%s17206_s0 + $0x62] ss:$28 sm:%s2717_s28]   ;;  %v7555_v51 = vld [vmem:[%s17206_s0 + $0x31] ss:$28 sm:%s2720_s26]   ;;  %v2670_v55 = vsel %vm105_vm3, %v7540_v47, %v2665_v46  ;;  %s2768_s30 = smov 48  ;;  %s2816_s16 = smov 3 }
 0x116   :  { %7143 = vst.msk [vmem:[%s17207_s1 + $0x5c3] ss:$-732 sm:$0x3] %vm3_vm10, %v1268_v49   ;;  %7144 = vst.msk [vmem:[%s17207_s1 - $0x41] ss:$294 sm:$0xc] %vm3_vm10, %v1268_v49   ;;  %v2723_v61 = vsel %vm46_vm0, %v7555_v51, %v7554_v48  ;;  %v1515_v52 = vpop.permute.xlu1 %1514  }
 0x117   :  { %7145 = vst.msk [vmem:[%s17207_s1 - $0x23b] ss:$292 sm:$0x30] %vm3_vm10, %v1268_v49   ;;  %7146 = vst.msk [vmem:[%s17207_s1 - $0x1c47] ss:$1318 sm:$0xc0] %vm3_vm10, %v1268_v49  }
 0x118   :  { %v7541_v53 = vld [vmem:[%s17206_s0 - $0x7e] ss:$28 sm:%s2672_s15]   ;;  %s2763_s15 = smov 12  ;;  %v7562_v57 = vld [vmem:[%s17206_s0 + $0x69] ss:$28 sm:%s2748_s24]   ;;  %s2819_s14 = smov 12 }
 0x119   :  { %v7561_v56 = vld [vmem:[%s17206_s0 + $0x9a] ss:$28 sm:%s2745_s5]   ;;  %7135 = vst.msk [vmem:[%s17207_s1 + $0x1c3] ss:$-220 sm:$0x7] %vm3_vm10, %v1239_v54   ;;  %v2675_v2 = vsel %vm110_vm4, %v7541_v53, %v2670_v55  ;;  %s8788_s6 = smov 72  }
 0x11a   :  { %v7573_v58 = vld [vmem:[%s17206_s0 + $0x68] ss:$-21 sm:$0x7]   ;;  %v7574_v59 = vld [vmem:[%s17206_s0 + $0x99] ss:$-21 sm:%s2791_s11]   ;;  %2705 = vrot.lane.b32.xlu1 %v2704_v60, %s8788_s6  ;;  %s2773_s9 = smov 192  ;;  %v2751_v8 = vsel %vm46_vm0, %v7562_v57, %v7561_v56 }
 0x11b   :  { %7136 = vst.msk [vmem:[%s17207_s1 + $0x3c5] ss:$-220 sm:$0x18] %vm3_vm10, %v1239_v54   ;;  %7137 = vst.msk [vmem:[%s17207_s1 + $0x5c5] ss:$-220 sm:$0x60] %vm3_vm10, %v1239_v54   ;;  %v2794_v3 = vsel %vm241_vm7, %v7574_v59, %v7573_v58  ;;  %2676 = vrot.lane.b32.xlu0 %v2675_v2, %s8788_s6  ;;  %v1496_v58 = vpop.permute.xlu0 %1495  }
 0x11c   :  { %7138 = vst.msk [vmem:[%s17207_s1 + $0x3bc] sm:$0x80] %vm3_vm10, %v1239_v54   ;;  %v2725_v62 = vld [vmem:[%s17206_s0] ss:$28 sm:%s2724_s22]   ;;  %s2729_s22 = smov 192  ;;  %s2845_s26 = smov 3 }
 0x11d   :  { %v7565_v63 = vld [vmem:[%s17206_s0 + $0x6] ss:$28 sm:%s2760_s25]   ;;  %v7566_v1 = vld [vmem:[%s17206_s0 - $0x2b] ss:$28 sm:%s2763_s15]   ;;  %v2727_v6 = vsel %vm105_vm3, %v2725_v62, %v2723_v61  ;;  %s2824_s2 = smov 48  ;;  %s2860_s20 = smov 3 }
 0x11e   :  { %7157 = vst.msk [vmem:[%s17207_s1 + $0x731] ss:$-220 sm:$0x3] %vm3_vm10, %v1316_v0   ;;  %7158 = vst.msk [vmem:[%s17207_s1 + $0x931] ss:$-220 sm:$0xc] %vm3_vm10, %v1316_v0   ;;  %v2766_v9 = vsel %vm46_vm0, %v7566_v1, %v7565_v63  ;;  %2752 = vrot.lane.b32.xlu1 %v2751_v8, %s8788_s6  ;;  %v1562_v1 = vpop.permute.xlu1 %1561  }
 0x11f   :  { %v7575_v4 = vld [vmem:[%s17206_s0 + $0xca] ss:$-21 sm:%s2796_s27]   ;;  %7151 = vst.msk [vmem:[%s17207_s1 + $0x4e7] ss:$-220 sm:$0x3] %vm3_vm10, %v1297_v5   ;;  %s2909_s8 = smov 3 }
 0x120   :  { %v7556_v7 = vld [vmem:[%s17206_s0 - $0x15] ss:$28 sm:%s2729_s22]   ;;  %7152 = vst.msk [vmem:[%s17207_s1 + $0x6e9] ss:$-220 sm:$0xc] %vm3_vm10, %v1297_v5   ;;  %s2848_s22 = smov 12  ;;  %v2799_v13 = vsel %vm148_vm6, %v7575_v4, %v2794_v3 }
 0x121   :  { %7153 = vst.msk [vmem:[%s17207_s1 + $0x8e9] ss:$-220 sm:$0x30] %vm3_vm10, %v1297_v5   ;;  %7154 = vst.msk [vmem:[%s17207_s1 + $0xc0f] ss:$-220 sm:$0xc0] %vm3_vm10, %v1297_v5   ;;  %v2732_v16 = vsel %vm110_vm4, %v7556_v7, %v2727_v6  ;;  %v1540_v7 = vpop.permute.xlu0 %1539  }
 0x122   :  { %v7567_v10 = vld [vmem:[%s17206_s0 - $0x5c] ss:$28 sm:%s2768_s30]   ;;  %v7576_v14 = vld [vmem:[%s17206_s0 + $0x92] sm:$0x80]   ;;  %7173 = vst.msk [vmem:[%s17207_s1 + $0x5fb] sm:$0x80] %vm3_vm10, %v1367_v12  }
 0x123   :  { %v7581_v11 = vld [vmem:[%s17206_s0 + $0x84] ss:$-21 sm:%s2816_s16]   ;;  %v7582_v15 = vld [vmem:[%s17206_s0 + $0xb5] ss:$-21 sm:%s2819_s14]   ;;  %v2771_v19 = vsel %vm105_vm3, %v7567_v10, %v2766_v9  ;;  %v2803_v22 = vsel %vm54_vm2, %v7576_v14, %v2799_v13  ;;  %s2829_s16 = smov 192  ;;  %s2868_s14 = smov 48 }
 0x124   :  { %7170 = vst.msk [vmem:[%s17207_s1 + $0x402] ss:$-220 sm:$0x7] %vm3_vm10, %v1367_v12   ;;  %7171 = vst.msk [vmem:[%s17207_s1 + $0x604] ss:$-220 sm:$0x18] %vm3_vm10, %v1367_v12   ;;  %v2822_v23 = vsel %vm46_vm0, %v7582_v15, %v7581_v11  ;;  %2733 = vrot.lane.b32.xlu0 %v2732_v16, %s8788_s6  ;;  %v1606_v16 = vpop.permute.xlu1 %1605  }
 0x125   :  { %7172 = vst.msk [vmem:[%s17207_s1 + $0x804] ss:$-220 sm:$0x60] %vm3_vm10, %v1367_v12   ;;  %v7568_v17 = vld [vmem:[%s17206_s0 - $0x8d] ss:$28 sm:%s2773_s9]   ;;  %s2863_s9 = smov 12 }
 0x126   :  { %v7589_v20 = vld [vmem:[%s17206_s0 + $0xbc] ss:$-21 sm:%s2845_s26]   ;;  %v7590_v21 = vld [vmem:[%s17206_s0 + $0xed] ss:$-21 sm:%s2848_s22]   ;;  %s2895_s6 = smov 192  ;;  %v2776_v29 = vsel %vm110_vm4, %v7568_v17, %v2771_v19  ;;  %s8789_s11 = smov 70  }
 0x127   :  { %7162 = vst.msk [vmem:[%s17207_s1 + $0x2] ss:$292 sm:$0x3] %vm3_vm10, %v1340_v18   ;;  %7163 = vst.msk [vmem:[%s17207_s1 - $0x202] ss:$294 sm:$0xc] %vm3_vm10, %v1340_v18   ;;  %2804 = vrot.lane.b32.xlu1 %v2803_v22, %s8789_s11  ;;  %v2851_v34 = vsel %vm46_vm0, %v7590_v21, %v7589_v20  ;;  %v1589_v21 = vpop.permute.xlu0 %1588  }
 0x128   :  { %7164 = vst.msk [vmem:[%s17207_s1 - $0x3fc] ss:$292 sm:$0x30] %vm3_vm10, %v1340_v18   ;;  %7165 = vst.msk [vmem:[%s17207_s1 - $0x608] ss:$294 sm:$0xc0] %vm3_vm10, %v1340_v18   ;;  %2777 = vrot.lane.b32.xlu0 %v2776_v29, %s8789_s11  ;;  %v1658_v29 = vpop.permute.xlu1 %1657  }
 0x129   :  { %v7583_v24 = vld [vmem:[%s17206_s0 + $0xe6] ss:$-21 sm:%s2824_s2]   ;;  %v7601_v25 = vld [vmem:[%s17206_s0 + $0x6e] ss:$-21 sm:$0x7]   ;;  %s2873_s15 = smov 192 }
 0x12a   :  { %v7593_v26 = vld [vmem:[%s17206_s0 + $0xc] ss:$28 sm:%s2860_s20]   ;;  %v7594_v28 = vld [vmem:[%s17206_s0 - $0x25] ss:$28 sm:%s2863_s9]   ;;  %v2827_v32 = vsel %vm105_vm3, %v7583_v24, %v2822_v23  ;;  %s2916_s7 = smov 96  ;;  %s2952_s18 = smov 12 }
 0x12b   :  { %7184 = vst.msk [vmem:[%s17207_s1 + $0x770] ss:$-220 sm:$0x3] %vm3_vm10, %v1415_v27   ;;  %7185 = vst.msk [vmem:[%s17207_s1 + $0x970] ss:$-220 sm:$0xc] %vm3_vm10, %v1415_v27   ;;  %v2866_v36 = vsel %vm46_vm0, %v7594_v28, %v7593_v26  ;;  %2852 = vrot.lane.b32.xlu1 %v2851_v34, %s8789_s11  ;;  %v1629_v34 = vpop.permute.xlu0 %1628  }
 0x12c   :  { %v7602_v30 = vld [vmem:[%s17206_s0 + $0x9f] ss:$-21 sm:$0x38]   ;;  %7178 = vst.msk [vmem:[%s17207_s1 + $0x526] ss:$-220 sm:$0x3] %vm3_vm10, %v1396_v31  }
 0x12d   :  { %v7584_v33 = vld [vmem:[%s17206_s0 + $0x133] ss:$-21 sm:%s2829_s16]   ;;  %7179 = vst.msk [vmem:[%s17207_s1 + $0x728] ss:$-220 sm:$0xc] %vm3_vm10, %v1396_v31   ;;  %v2893_v39 = vsel %vm1164_vm8, %v7602_v30, %v7601_v25  ;;  %s2980_s3 = smov 48 }
 0x12e   :  { %7180 = vst.msk [vmem:[%s17207_s1 + $0x928] ss:$-220 sm:$0x30] %vm3_vm10, %v1396_v31   ;;  %7181 = vst.msk [vmem:[%s17207_s1 + $0xc4e] ss:$-220 sm:$0xc0] %vm3_vm10, %v1396_v31   ;;  %v2832_v42 = vsel %vm110_vm4, %v7584_v33, %v2827_v32 }
 0x12f   :  { %v7603_v35 = vld [vmem:[%s17206_s0 - $0x17c] ss:$77 sm:%s2895_s6]   ;;  %7198 = vst.msk [vmem:[%s17207_s1 + $0x441] ss:$-220 sm:$0x7] %vm3_vm10, %v1467_v38   ;;  %2833 = vrot.lane.b32.xlu0 %v2832_v42, %s8789_s11  ;;  %s2957_s13 = smov 48 }
 0x130   :  { %v7595_v37 = vld [vmem:[%s17206_s0 + $0x6e] ss:$-21 sm:%s2868_s14]   ;;  %v7607_v40 = vld [vmem:[%s17206_s0 + $0x8a] ss:$-21 sm:%s2909_s8]   ;;  %s2949_s14 = smov 3  ;;  %v2898_v48 = vsel %vm110_vm4, %v7603_v35, %v2893_v39  ;;  %s11313_s22 = smov 192 }
 0x131   :  { %v7608_v41 = vld [vmem:[%s17206_s0 + $0xbb] ss:$-21 sm:$0x1c]   ;;  %7199 = vst.msk [vmem:[%s17207_s1 + $0x63b] ss:$-218 sm:$0x18] %vm3_vm10, %v1467_v38   ;;  %v2871_v44 = vsel %vm105_vm3, %v7595_v37, %v2866_v36 }
 0x132   :  { %7200 = vst.msk [vmem:[%s17207_s1 + $0x843] ss:$-220 sm:$0x60] %vm3_vm10, %v1467_v38   ;;  %7201 = vst.msk [vmem:[%s17207_s1 + $0x63a] sm:$0x80] %vm3_vm10, %v1467_v38   ;;  %v2914_v49 = vsel %vm143_vm5, %v7608_v41, %v7607_v40  ;;  %s3001_s29 = smov 24 }
 0x133   :  { %v7596_v45 = vld [vmem:[%s17206_s0 - $0x87] ss:$28 sm:%s2873_s15]   ;;  %v7616_v47 = vld [vmem:[%s17206_s0 + $0xb1] sm:$0x8]   ;;  %v7610_v56 = vld [vmem:[%s17206_s0 + $0x9f] sm:$0x80]  }
 0x134   :  { %v7615_v46 = vld [vmem:[%s17206_s0 + $0xc2] ss:$-21 sm:$0x7]   ;;  %7190 = vst.msk [vmem:[%s17207_s1 + $0x41] ss:$292 sm:$0x3] %vm3_vm10, %v1440_v43   ;;  %v2876_v55 = vsel %vm110_vm4, %v7596_v45, %v2871_v44 }
 0x135   :  { %7191 = vst.msk [vmem:[%s17207_s1 - $0x1bf] ss:$292 sm:$0xc] %vm3_vm10, %v1440_v43   ;;  %7192 = vst.msk [vmem:[%s17207_s1 - $0x3bd] ss:$292 sm:$0x30] %vm3_vm10, %v1440_v43   ;;  %v2940_v61 = vsel %vm1213_vm9, %v7616_v47, %v7615_v46  ;;  %v1687_v47 = vpop.permute.xlu0 %1686  }
 0x136   :  { %7193 = vst.msk [vmem:[%s17207_s1 - $0x5c9] ss:$294 sm:$0xc0] %vm3_vm10, %v1440_v43   ;;  %v7609_v50 = vld [vmem:[%s17206_s0 - $0x95] ss:$56 sm:%s2916_s7]   ;;  %s2985_s7 = smov 192  ;;  %v1706_v43 = vpop.permute.xlu1 %1705  }
 0x137   :  { %v7619_v51 = vld [vmem:[%s17206_s0 + $0x12] ss:$28 sm:%s2949_s14]   ;;  %7212 = vst.msk [vmem:[%s17207_s1 + $0x7ad] ss:$-218 sm:$0x3] %vm3_vm10, %v1515_v52   ;;  %v2919_v59 = vsel %vm148_vm6, %v7609_v50, %v2914_v49  ;;  %s11317_s21 = smov 3 }
 0x138   :  { %v7627_v53 = vld [vmem:[%s17206_s0 + $0x74] ss:$-21 sm:$0xf]   ;;  %v7620_v54 = vld [vmem:[%s17206_s0 + $0x43] ss:$-21 sm:%s2952_s18]   ;;  %s3070_s16 = smov 3  ;;  %v2923_v4 = vsel %vm54_vm2, %v7610_v56, %v2919_v59 }
 0x139   :  { %7213 = vst.msk [vmem:[%s17207_s1 + $0x9af] ss:$-220 sm:$0xc] %vm3_vm10, %v1515_v52   ;;  %v7628_v57 = vld [vmem:[%s17206_s0 + $0xa5] ss:$-21 sm:%s2980_s3]   ;;  %s8790_s3 = smov 68   ;;  %v2955_v63 = vsel %vm46_vm0, %v7620_v54, %v7619_v51  ;;  %v1731_v59 = vpop.permute.xlu0 %1730  }
 0x13a   :  { %2899 = vrot.lane.b32.xlu1 %v2898_v48, %s8790_s3  ;;  %v7633_v60 = vld [vmem:[%s17206_s0 + $0x90] ss:$-21 sm:$0x7]   ;;  %7206 = vst.msk [vmem:[%s17207_s1 + $0x565] ss:$-220 sm:$0x3] %vm3_vm10, %v1496_v58   ;;  %2877 = vrot.lane.b32.xlu0 %v2876_v55, %s8790_s3  ;;  %v2983_v2 = vsel %vm105_vm3, %v7628_v57, %v7627_v53  ;;  %v1758_v54 = vpop.permute.xlu1 %1757  }
 0x13b   :  { %7207 = vst.msk [vmem:[%s17207_s1 + $0x761] ss:$-218 sm:$0xc] %vm3_vm10, %v1496_v58   ;;  %7208 = vst.msk [vmem:[%s17207_s1 + $0x967] ss:$-220 sm:$0x30] %vm3_vm10, %v1496_v58  }
 0x13c   :  { %7209 = vst.msk [vmem:[%s17207_s1 + $0xc8d] ss:$-220 sm:$0xc0] %vm3_vm10, %v1496_v58   ;;  %v7629_v62 = vld [vmem:[%s17206_s0 - $0x176] ss:$77 sm:%s2985_s7]   ;;  %s3029_s24 = smov 12 }
 0x13d   :  { %v7621_v0 = vld [vmem:[%s17206_s0 + $0x74] ss:$-21 sm:%s2957_s13]   ;;  %s3073_s13 = smov 12  ;;  %s3006_s28 = smov 96  ;;  %7228 = vst.msk [vmem:[%s17207_s1 + $0x679] sm:$0x80] %vm3_vm10, %v1562_v1   ;;  %v2988_v12 = vsel %vm110_vm4, %v7629_v62, %v2983_v2 }
 0x13e   :  { %v7634_v3 = vld [vmem:[%s17206_s0 + $0xc1] ss:$-21 sm:%s3001_s29]   ;;  %s3041_s18 = smov 3  ;;  %7225 = vst.msk [vmem:[%s17207_s1 + $0x480] ss:$-220 sm:$0x7] %vm3_vm10, %v1562_v1   ;;  %2941 = vrot.lane.b32.xlu1 %v2940_v61, %s8790_s3  ;;  %v2960_v8 = vsel %vm105_vm3, %v7621_v0, %v2955_v63 }
 0x13f   :  { %7226 = vst.msk [vmem:[%s17207_s1 + $0x67a] ss:$-218 sm:$0x18] %vm3_vm10, %v1562_v1   ;;  %7227 = vst.msk [vmem:[%s17207_s1 - $0x37e] ss:$292 sm:$0x60] %vm3_vm10, %v1562_v1   ;;  %v3004_v13 = vsel %vm241_vm7, %v7634_v3, %v7633_v60  ;;  %2924 = vrot.lane.b32.xlu0 %v2923_v4, %s8790_s3  ;;  %v1806_v4 = vpop.permute.xlu1 %1805  }
 0x140   :  { %v7622_v5 = vld [vmem:[%s17206_s0 - $0x81] ss:$28 sm:%s11313_s22]   ;;  %v7653_v6 = vld [vmem:[%s17206_s0 + $0x7a] ss:$-70 sm:%s3070_s16]   ;;  %s3044_s16 = smov 12  ;;  %s3078_s14 = smov 48 }
 0x141   :  { %v7641_v9 = vld [vmem:[%s17206_s0 + $0x97] ss:$28 sm:%s11317_s21]   ;;  %v7642_v10 = vld [vmem:[%s17206_s0 + $0x66] ss:$28 sm:%s3029_s24]   ;;  %s3049_s30 = smov 48  ;;  %s3099_s2 = smov 3  ;;  %v2965_v18 = vsel %vm110_vm4, %v7622_v5, %v2960_v8 }
 0x142   :  { %v7654_v11 = vld [vmem:[%s17206_s0 + $0x7a] ss:$-21 sm:%s3073_s13]   ;;  %7218 = vst.msk [vmem:[%s17207_s1 + $0x80] ss:$292 sm:$0x3] %vm3_vm10, %v1540_v7   ;;  %s3102_s5 = smov 12  ;;  %v3032_v25 = vsel %vm46_vm0, %v7642_v10, %v7641_v9  ;;  %v1787_v10 = vpop.permute.xlu0 %1786  }
 0x143   :  { %7219 = vst.msk [vmem:[%s17207_s1 - $0x180] ss:$292 sm:$0xc] %vm3_vm10, %v1540_v7   ;;  %7220 = vst.msk [vmem:[%s17207_s1 + $0x482] ss:$-220 sm:$0x30] %vm3_vm10, %v1540_v7   ;;  %v3076_v19 = vsel %vm46_vm0, %v7654_v11, %v7653_v6 }
 0x144   :  { %7221 = vst.msk [vmem:[%s17207_s1 - $0x58a] ss:$294 sm:$0xc0] %vm3_vm10, %v1540_v7   ;;  %v7635_v14 = vld [vmem:[%s17206_s0 - $0x8f] ss:$56 sm:%s3006_s28]   ;;  %s3083_s28 = smov 192 }
 0x145   :  { %v7645_v15 = vld [vmem:[%s17206_s0 + $0x18] ss:$-21 sm:%s3041_s18]   ;;  %v7646_v17 = vld [vmem:[%s17206_s0 + $0x49] ss:$-21 sm:%s3044_s16]   ;;  %s8791_s21 = smov 66   ;;  %v3009_v22 = vsel %vm148_vm6, %v7635_v14, %v3004_v13  ;;  %s3054_s7 = smov 192 }
 0x146   :  { %7239 = vst.msk [vmem:[%s17207_s1 + $0x7ec] ss:$-218 sm:$0x3] %vm3_vm10, %v1606_v16   ;;  %7240 = vst.msk [vmem:[%s17207_s1 + $0x3ee] ss:$292 sm:$0xc] %vm3_vm10, %v1606_v16   ;;  %2989 = vrot.lane.b32.xlu1 %v2988_v12, %s8791_s21  ;;  %v3047_v26 = vsel %vm46_vm0, %v7646_v17, %v7645_v15  ;;  %2966 = vrot.lane.b32.xlu0 %v2965_v18, %s8791_s21  ;;  %v1853_v17 = vpop.permute.xlu1 %1852  }
 0x147   :  { %v7655_v20 = vld [vmem:[%s17206_s0 + $0xab] ss:$-21 sm:%s3078_s14]   ;;  %7233 = vst.msk [vmem:[%s17207_s1 + $0x5a4] ss:$-220 sm:$0x3] %vm3_vm10, %v1589_v21   ;;  %s3128_s29 = smov 3 }
 0x148   :  { %v7636_v23 = vld [vmem:[%s17206_s0 + $0xa5] sm:$0x80]   ;;  %v7656_v24 = vld [vmem:[%s17206_s0 - $0x170] ss:$77 sm:%s3083_s28]   ;;  %s3131_s25 = smov 12  ;;  %v3081_v30 = vsel %vm105_vm3, %v7655_v20, %v3076_v19  ;;  %s3107_s15 = smov 48 }
 0x149   :  { %7234 = vst.msk [vmem:[%s17207_s1 + $0x7a0] ss:$-218 sm:$0xc] %vm3_vm10, %v1589_v21   ;;  %7235 = vst.msk [vmem:[%s17207_s1 - $0x5a] ss:$292 sm:$0x30] %vm3_vm10, %v1589_v21   ;;  %v3013_v32 = vsel %vm54_vm2, %v7636_v23, %v3009_v22  ;;  %v3086_v38 = vsel %vm110_vm4, %v7656_v24, %v3081_v30  ;;  %v1831_v23 = vpop.permute.xlu0 %1830  }
 0x14a   :  { %7236 = vst.msk [vmem:[%s17207_s1 + $0xccc] ss:$-220 sm:$0xc0] %vm3_vm10, %v1589_v21   ;;  %v7647_v27 = vld [vmem:[%s17206_s0 + $0x7a] ss:$-21 sm:%s3049_s30]   ;;  %s3143_s4 = smov 3  ;;  %3033 = vrot.lane.b32.xlu1 %v3032_v25, %s8791_s21 }
 0x14b   :  { %v7661_v28 = vld [vmem:[%s17206_s0 + $0x65] ss:$28 sm:%s3099_s2]   ;;  %v7662_v31 = vld [vmem:[%s17206_s0 + $0x34] ss:$28 sm:%s3102_s5]   ;;  %v3052_v35 = vsel %vm105_vm3, %v7647_v27, %v3047_v26  ;;  %s3112_s2 = smov 192  ;;  %s3151_s5 = smov 48 }
 0x14c   :  { %7253 = vst.msk [vmem:[%s17207_s1 + $0x5e3] ss:$-732 sm:$0x3] %vm3_vm10, %v1658_v29   ;;  %7254 = vst.msk [vmem:[%s17207_s1 - $0x21] ss:$294 sm:$0xc] %vm3_vm10, %v1658_v29   ;;  %v3105_v39 = vsel %vm46_vm0, %v7662_v31, %v7661_v28  ;;  %3014 = vrot.lane.b32.xlu0 %v3013_v32, %s8791_s21  ;;  %v1897_v32 = vpop.permute.xlu1 %1896  }
 0x14d   :  { %7255 = vst.msk [vmem:[%s17207_s1 - $0x21b] ss:$292 sm:$0x30] %vm3_vm10, %v1658_v29   ;;  %7256 = vst.msk [vmem:[%s17207_s1 - $0x1c27] ss:$1318 sm:$0xc0] %vm3_vm10, %v1658_v29  }
 0x14e   :  { %v7648_v33 = vld [vmem:[%s17206_s0 - $0x7b] ss:$28 sm:%s3054_s7]   ;;  %s3146_s7 = smov 12  ;;  %v7670_v37 = vld [vmem:[%s17206_s0 + $0x6c] ss:$28 sm:%s3131_s25]   ;;  %s3178_s21 = smov 192 }
 0x14f   :  { %v7669_v36 = vld [vmem:[%s17206_s0 + $0x9d] ss:$28 sm:%s3128_s29]   ;;  %7245 = vst.msk [vmem:[%s17207_s1 + $0x1e3] ss:$-220 sm:$0x7] %vm3_vm10, %v1629_v34   ;;  %v3057_v45 = vsel %vm110_vm4, %v7648_v33, %v3052_v35  ;;  %s3192_s24 = smov 3 }
 0x150   :  { %7246 = vst.msk [vmem:[%s17207_s1 + $0x3e5] ss:$-220 sm:$0x18] %vm3_vm10, %v1629_v34   ;;  %7247 = vst.msk [vmem:[%s17207_s1 + $0x5e5] ss:$-220 sm:$0x60] %vm3_vm10, %v1629_v34   ;;  %v3134_v50 = vsel %vm46_vm0, %v7670_v37, %v7669_v36  ;;  %v1880_v37 = vpop.permute.xlu0 %1879  }
 0x151   :  { %7248 = vst.msk [vmem:[%s17207_s1 + $0x3dc] sm:$0x80] %vm3_vm10, %v1629_v34   ;;  %v7663_v40 = vld [vmem:[%s17206_s0 + $0x3] ss:$28 sm:%s3107_s15]   ;;  %s8792_s13 = smov 64   ;;  %s3156_s22 = smov 192 }
 0x152   :  { %v7681_v41 = vld [vmem:[%s17206_s0 + $0x6b] ss:$-21 sm:$0x7]   ;;  %v7674_v44 = vld [vmem:[%s17206_s0 - $0x28] ss:$28 sm:%s3146_s7]   ;;  %3087 = vrot.lane.b32.xlu1 %v3086_v38, %s8792_s13  ;;  %v3110_v48 = vsel %vm105_vm3, %v7663_v40, %v3105_v39  ;;  %s3199_s6 = smov 96 }
 0x153   :  { %v7673_v42 = vld [vmem:[%s17206_s0 + $0x9] ss:$28 sm:%s3143_s4]   ;;  %7267 = vst.msk [vmem:[%s17207_s1 + $0x751] ss:$-220 sm:$0x3] %vm3_vm10, %v1706_v43   ;;  %3058 = vrot.lane.b32.xlu0 %v3057_v45, %s8792_s13  ;;  %s3235_s8 = smov 12  ;;  %v1945_v45 = vpop.permute.xlu1 %1944  }
 0x154   :  { %7268 = vst.msk [vmem:[%s17207_s1 + $0x951] ss:$-220 sm:$0xc] %vm3_vm10, %v1706_v43   ;;  %v7682_v46 = vld [vmem:[%s17206_s0 + $0x9c] ss:$-21 sm:$0x38]   ;;  %v3149_v52 = vsel %vm46_vm0, %v7674_v44, %v7673_v42 }
 0x155   :  { %v7664_v49 = vld [vmem:[%s17206_s0 - $0x12] ss:$28 sm:%s3112_s2]   ;;  %7261 = vst.msk [vmem:[%s17207_s1 + $0x507] ss:$-220 sm:$0x3] %vm3_vm10, %v1687_v47   ;;  %v3176_v55 = vsel %vm1164_vm8, %v7682_v46, %v7681_v41  ;;  %s3263_s25 = smov 48 }
 0x156   :  { %7262 = vst.msk [vmem:[%s17207_s1 + $0x709] ss:$-220 sm:$0xc] %vm3_vm10, %v1687_v47   ;;  %7263 = vst.msk [vmem:[%s17207_s1 + $0x909] ss:$-220 sm:$0x30] %vm3_vm10, %v1687_v47   ;;  %v3115_v58 = vsel %vm110_vm4, %v7664_v49, %v3110_v48  ;;  %3135 = vrot.lane.b32.xlu1 %v3134_v50, %s8792_s13 }
 0x157   :  { %7264 = vst.msk [vmem:[%s17207_s1 + $0xc2f] ss:$-220 sm:$0xc0] %vm3_vm10, %v1687_v47   ;;  %v7683_v51 = vld [vmem:[%s17206_s0 - $0x17f] ss:$77 sm:%s3178_s21]   ;;  %3116 = vrot.lane.b32.xlu0 %v3115_v58, %s8792_s13  ;;  %s3240_s27 = smov 48 }
 0x158   :  { %v7675_v53 = vld [vmem:[%s17206_s0 + $0x6b] ss:$-21 sm:%s3151_s5]   ;;  %v7687_v56 = vld [vmem:[%s17206_s0 + $0x87] ss:$-21 sm:%s3192_s24]   ;;  %s3232_s5 = smov 3  ;;  %v3181_v0 = vsel %vm110_vm4, %v7683_v51, %v3176_v55  ;;  %s11647_s28 = smov 192  ;;  %v1922_v51 = vpop.permute.xlu0 %1921  }
 0x159   :  { %v7688_v57 = vld [vmem:[%s17206_s0 + $0xb8] ss:$-21 sm:$0x1c]   ;;  %7281 = vst.msk [vmem:[%s17207_s1 + $0x422] ss:$-220 sm:$0x7] %vm3_vm10, %v1758_v54   ;;  %v3154_v60 = vsel %vm105_vm3, %v7675_v53, %v3149_v52 }
 0x15a   :  { %7282 = vst.msk [vmem:[%s17207_s1 + $0x624] ss:$-220 sm:$0x18] %vm3_vm10, %v1758_v54   ;;  %7283 = vst.msk [vmem:[%s17207_s1 + $0x824] ss:$-220 sm:$0x60] %vm3_vm10, %v1758_v54   ;;  %v3197_v1 = vsel %vm143_vm5, %v7688_v57, %v7687_v56 }
 0x15b   :  { %7284 = vst.msk [vmem:[%s17207_s1 + $0x61b] sm:$0x80] %vm3_vm10, %v1758_v54   ;;  %v7676_v61 = vld [vmem:[%s17206_s0 - $0x8a] ss:$28 sm:%s3156_s22]   ;;  %v7696_v63 = vld [vmem:[%s17206_s0 + $0xae] sm:$0x8]  }
 0x15c   :  { %v7695_v62 = vld [vmem:[%s17206_s0 + $0xbf] ss:$-21 sm:$0x7]   ;;  %7273 = vst.msk [vmem:[%s17207_s1 + $0x22] ss:$292 sm:$0x3] %vm3_vm10, %v1731_v59   ;;  %v3159_v7 = vsel %vm110_vm4, %v7676_v61, %v3154_v60  ;;  %v1989_v60 = vpop.permute.xlu1 %1988  }
 0x15d   :  { %7274 = vst.msk [vmem:[%s17207_s1 - $0x1e2] ss:$294 sm:$0xc] %vm3_vm10, %v1731_v59   ;;  %7275 = vst.msk [vmem:[%s17207_s1 - $0x3dc] ss:$292 sm:$0x30] %vm3_vm10, %v1731_v59   ;;  %v3223_v13 = vsel %vm1213_vm9, %v7696_v63, %v7695_v62 }
 0x15e   :  { %7276 = vst.msk [vmem:[%s17207_s1 - $0x5e8] ss:$294 sm:$0xc0] %vm3_vm10, %v1731_v59   ;;  %v7689_v2 = vld [vmem:[%s17206_s0 - $0x98] ss:$56 sm:%s3199_s6]   ;;  %s3268_s6 = smov 192 }
 0x15f   :  { %v7699_v3 = vld [vmem:[%s17206_s0 + $0xf] ss:$28 sm:%s3232_s5]   ;;  %7295 = vst.msk [vmem:[%s17207_s1 + $0x790] ss:$-220 sm:$0x3] %vm3_vm10, %v1806_v4   ;;  %s3286_s29 = smov 24  ;;  %v3202_v11 = vsel %vm148_vm6, %v7689_v2, %v3197_v1  ;;  %v1970_v2 = vpop.permute.xlu0 %1969  }
 0x160   :  { %v7707_v5 = vld [vmem:[%s17206_s0 + $0x71] ss:$-21 sm:$0xf]   ;;  %v7700_v6 = vld [vmem:[%s17206_s0 + $0x40] ss:$-21 sm:%s3235_s8]   ;;  %s11651_s3 = smov 3 }
 0x161   :  { %7296 = vst.msk [vmem:[%s17207_s1 + $0x990] ss:$-220 sm:$0xc] %vm3_vm10, %v1806_v4   ;;  %v7690_v8 = vld [vmem:[%s17206_s0 + $0x9c] sm:$0x80]   ;;  %s3355_s2 = smov 3  ;;  %v3238_v15 = vsel %vm46_vm0, %v7700_v6, %v7699_v3 }
 0x162   :  { %v7708_v9 = vld [vmem:[%s17206_s0 + $0xa2] ss:$-21 sm:%s3263_s25]   ;;  %s8793_s25 = smov 62   ;;  %7289 = vst.msk [vmem:[%s17207_s1 + $0x546] ss:$-220 sm:$0x3] %vm3_vm10, %v1787_v10   ;;  %v3206_v20 = vsel %vm54_vm2, %v7690_v8, %v3202_v11 }
 0x163   :  { %3182 = vrot.lane.b32.xlu1 %v3181_v0, %s8793_s25  ;;  %v7714_v12 = vld [vmem:[%s17206_s0 + $0x8d] ss:$-21 sm:$0x7]   ;;  %7290 = vst.msk [vmem:[%s17207_s1 + $0x748] ss:$-220 sm:$0xc] %vm3_vm10, %v1787_v10   ;;  %3160 = vrot.lane.b32.xlu0 %v3159_v7, %s8793_s25  ;;  %v3266_v18 = vsel %vm105_vm3, %v7708_v9, %v7707_v5  ;;  %v2040_v9 = vpop.permute.xlu1 %2039  }
 0x164   :  { %7291 = vst.msk [vmem:[%s17207_s1 + $0x948] ss:$-220 sm:$0x30] %vm3_vm10, %v1787_v10   ;;  %7292 = vst.msk [vmem:[%s17207_s1 + $0xc6e] ss:$-220 sm:$0xc0] %vm3_vm10, %v1787_v10  }
 0x165   :  { %v7709_v14 = vld [vmem:[%s17206_s0 - $0x179] ss:$77 sm:%s3268_s6]   ;;  %s3314_s14 = smov 12  ;;  %s3291_s9 = smov 96  ;;  %7311 = vst.msk [vmem:[%s17207_s1 + $0x65a] sm:$0x80] %vm3_vm10, %v1853_v17  }
 0x166   :  { %v7701_v16 = vld [vmem:[%s17206_s0 + $0x71] ss:$-21 sm:%s3240_s27]   ;;  %s3358_s27 = smov 12  ;;  %s3326_s8 = smov 3  ;;  %v3271_v28 = vsel %vm110_vm4, %v7709_v14, %v3266_v18  ;;  %v7717_v39 = vld [vmem:[%s17206_s0 + $0xa2] sm:$0x80]   ;;  %v2013_v14 = vpop.permute.xlu0 %2012  }
 0x167   :  { %v7715_v19 = vld [vmem:[%s17206_s0 + $0xbe] ss:$-21 sm:%s3286_s29]   ;;  %7308 = vst.msk [vmem:[%s17207_s1 + $0x461] ss:$-220 sm:$0x7] %vm3_vm10, %v1853_v17   ;;  %3224 = vrot.lane.b32.xlu1 %v3223_v13, %s8793_s25  ;;  %v3243_v24 = vsel %vm105_vm3, %v7701_v16, %v3238_v15  ;;  %s3363_s5 = smov 48 }
 0x168   :  { %7309 = vst.msk [vmem:[%s17207_s1 + $0x65b] ss:$-218 sm:$0x18] %vm3_vm10, %v1853_v17   ;;  %7310 = vst.msk [vmem:[%s17207_s1 - $0x39d] ss:$292 sm:$0x60] %vm3_vm10, %v1853_v17   ;;  %v3289_v29 = vsel %vm241_vm7, %v7715_v19, %v7714_v12  ;;  %3207 = vrot.lane.b32.xlu0 %v3206_v20, %s8793_s25 }
 0x169   :  { %v7702_v21 = vld [vmem:[%s17206_s0 - $0x84] ss:$28 sm:%s11647_s28]   ;;  %v7734_v22 = vld [vmem:[%s17206_s0 + $0x77] ss:$-70 sm:%s3355_s2]   ;;  %s3329_s2 = smov 12  ;;  %s3334_s30 = smov 48 }
 0x16a   :  { %v7722_v25 = vld [vmem:[%s17206_s0 + $0x94] ss:$28 sm:%s11651_s3]   ;;  %v7723_v26 = vld [vmem:[%s17206_s0 + $0x63] ss:$28 sm:%s3314_s14]   ;;  %s3384_s15 = smov 3  ;;  %v3248_v34 = vsel %vm110_vm4, %v7702_v21, %v3243_v24  ;;  %s11762_s20 = smov 192 }
 0x16b   :  { %v7735_v27 = vld [vmem:[%s17206_s0 + $0x77] ss:$-21 sm:%s3358_s27]   ;;  %7301 = vst.msk [vmem:[%s17207_s1 + $0x61] ss:$292 sm:$0x3] %vm3_vm10, %v1831_v23   ;;  %s3387_s3 = smov 12  ;;  %v3317_v41 = vsel %vm46_vm0, %v7723_v26, %v7722_v25 }
 0x16c   :  { %7302 = vst.msk [vmem:[%s17207_s1 - $0x19f] ss:$292 sm:$0xc] %vm3_vm10, %v1831_v23   ;;  %7303 = vst.msk [vmem:[%s17207_s1 + $0x463] ss:$-220 sm:$0x30] %vm3_vm10, %v1831_v23   ;;  %v3361_v35 = vsel %vm46_vm0, %v7735_v27, %v7734_v22  ;;  %v2088_v22 = vpop.permute.xlu1 %2087   ;;  %v2069_v27 = vpop.permute.xlu0 %2068  }
 0x16d   :  { %7304 = vst.msk [vmem:[%s17207_s1 - $0x5a9] ss:$294 sm:$0xc0] %vm3_vm10, %v1831_v23   ;;  %v7716_v30 = vld [vmem:[%s17206_s0 - $0x92] ss:$56 sm:%s3291_s9]   ;;  %s3368_s9 = smov 192 }
 0x16e   :  { %v7726_v31 = vld [vmem:[%s17206_s0 + $0x15] ss:$-21 sm:%s3326_s8]   ;;  %v7727_v33 = vld [vmem:[%s17206_s0 + $0x46] ss:$-21 sm:%s3329_s2]   ;;  %s8794_s17 = smov 60   ;;  %v3294_v38 = vsel %vm148_vm6, %v7716_v30, %v3289_v29  ;;  %s3412_s11 = smov 3 }
 0x16f   :  { %7322 = vst.msk [vmem:[%s17207_s1 + $0x7cd] ss:$-218 sm:$0x3] %vm3_vm10, %v1897_v32   ;;  %7323 = vst.msk [vmem:[%s17207_s1 + $0x3cf] ss:$292 sm:$0xc] %vm3_vm10, %v1897_v32   ;;  %3272 = vrot.lane.b32.xlu1 %v3271_v28, %s8794_s17  ;;  %v3332_v42 = vsel %vm46_vm0, %v7727_v33, %v7726_v31  ;;  %3249 = vrot.lane.b32.xlu0 %v3248_v34, %s8794_s17  ;;  %v3298_v48 = vsel %vm54_vm2, %v7717_v39, %v3294_v38 }
 0x170   :  { %v7736_v36 = vld [vmem:[%s17206_s0 + $0xa8] ss:$-21 sm:%s3363_s5]   ;;  %s3456_s14 = smov 3  ;;  %7316 = vst.msk [vmem:[%s17207_s1 + $0x585] ss:$-220 sm:$0x3] %vm3_vm10, %v1880_v37   ;;  %v2140_v34 = vpop.permute.xlu1 %2139   ;;  %v2113_v39 = vpop.permute.xlu0 %2112  }
 0x171   :  { %v7737_v40 = vld [vmem:[%s17206_s0 - $0x173] ss:$77 sm:%s3368_s9]   ;;  %7317 = vst.msk [vmem:[%s17207_s1 + $0x781] ss:$-218 sm:$0xc] %vm3_vm10, %v1880_v37   ;;  %s3415_s25 = smov 12  ;;  %v3366_v46 = vsel %vm105_vm3, %v7736_v36, %v3361_v35 }
 0x172   :  { %7318 = vst.msk [vmem:[%s17207_s1 - $0x79] ss:$292 sm:$0x30] %vm3_vm10, %v1880_v37   ;;  %7319 = vst.msk [vmem:[%s17207_s1 + $0xcad] ss:$-220 sm:$0xc0] %vm3_vm10, %v1880_v37   ;;  %v3371_v56 = vsel %vm110_vm4, %v7737_v40, %v3366_v46 }
 0x173   :  { %v7728_v43 = vld [vmem:[%s17206_s0 + $0x77] ss:$-21 sm:%s3334_s30]   ;;  %s3391_s28 = smov 48  ;;  %s3427_s21 = smov 3  ;;  %3318 = vrot.lane.b32.xlu1 %v3317_v41, %s8794_s17  ;;  %3299 = vrot.lane.b32.xlu0 %v3298_v48, %s8794_s17 }
 0x174   :  { %v7742_v44 = vld [vmem:[%s17206_s0 + $0x62] ss:$28 sm:%s3384_s15]   ;;  %s3459_s15 = smov 12  ;;  %v7743_v47 = vld [vmem:[%s17206_s0 + $0x31] ss:$28 sm:%s3387_s3]   ;;  %v3337_v52 = vsel %vm105_vm3, %v7728_v43, %v3332_v42  ;;  %s3396_s19 = smov 192  ;;  %v2188_v48 = vpop.permute.xlu1 %2187  }
 0x175   :  { %7335 = vst.msk [vmem:[%s17207_s1 + $0x4a0] ss:$-220 sm:$0xf] %vm3_vm10, %v1945_v45   ;;  %7336 = vst.msk [vmem:[%s17207_s1 + $0x6a2] ss:$-220 sm:$0x30] %vm3_vm10, %v1945_v45   ;;  %v3390_v57 = vsel %vm46_vm0, %v7743_v47, %v7742_v44 }
 0x176   :  { %7337 = vst.msk [vmem:[%s17207_s1 - $0xf6a] ss:$806 sm:$0xc0] %vm3_vm10, %v1945_v45   ;;  %v7729_v49 = vld [vmem:[%s17206_s0 - $0x7e] ss:$28 sm:%s11762_s20]   ;;  %s3464_s29 = smov 48 }
 0x177   :  { %v7761_v50 = vld [vmem:[%s17206_s0 + $0x7d] ss:$-70 sm:%s3456_s14]   ;;  %s3430_s14 = smov 12  ;;  %v7749_v53 = vld [vmem:[%s17206_s0 + $0x9a] ss:$28 sm:%s3412_s11]   ;;  %s3435_s5 = smov 48  ;;  %v3342_v62 = vsel %vm110_vm4, %v7729_v49, %v3337_v52 }
 0x178   :  { %v7750_v54 = vld [vmem:[%s17206_s0 + $0x69] ss:$28 sm:%s3415_s25]   ;;  %7328 = vst.msk [vmem:[%s17207_s1 + $0xa0] ss:$292 sm:$0x3] %vm3_vm10, %v1922_v51   ;;  %s3485_s6 = smov 3 }
 0x179   :  { %v7762_v55 = vld [vmem:[%s17206_s0 + $0x7d] ss:$-21 sm:%s3459_s15]   ;;  %7329 = vst.msk [vmem:[%s17207_s1 + $0x2a0] ss:$-220 sm:$0xc] %vm3_vm10, %v1922_v51   ;;  %s8795_s26 = smov 58   ;;  %v3418_v5 = vsel %vm46_vm0, %v7750_v54, %v7749_v53  ;;  %v2169_v54 = vpop.permute.xlu0 %2168  }
 0x17a   :  { %7330 = vst.msk [vmem:[%s17207_s1 + $0x4a2] ss:$-220 sm:$0x30] %vm3_vm10, %v1922_v51   ;;  %7331 = vst.msk [vmem:[%s17207_s1 - $0x56a] ss:$294 sm:$0xc0] %vm3_vm10, %v1922_v51   ;;  %v3462_v0 = vsel %vm46_vm0, %v7762_v55, %v7761_v50  ;;  %3372 = vrot.lane.b32.xlu1 %v3371_v56, %s8795_s26  ;;  %3343 = vrot.lane.b32.xlu0 %v3342_v62, %s8795_s26 }
 0x17b   :  { %v3392_v58 = vld [vmem:[%s17206_s0] ss:$28 sm:%s3391_s28]   ;;  %s3469_s28 = smov 192  ;;  %7348 = vst.msk [vmem:[%s17207_s1 + $0x60c] ss:$294 sm:$0x3] %vm3_vm10, %v1989_v60  }
 0x17c   :  { %v7753_v59 = vld [vmem:[%s17206_s0 + $0x1b] ss:$-21 sm:%s3427_s21]   ;;  %v7754_v61 = vld [vmem:[%s17206_s0 + $0x4c] ss:$-21 sm:%s3430_s14]   ;;  %v3394_v3 = vsel %vm105_vm3, %v3392_v58, %v3390_v57  ;;  %s3440_s18 = smov 192  ;;  %s3514_s23 = smov 3 }
 0x17d   :  { %7349 = vst.msk [vmem:[%s17207_s1 + $0x40e] ss:$292 sm:$0xc] %vm3_vm10, %v1989_v60   ;;  %v7744_v63 = vld [vmem:[%s17206_s0 - $0x15] ss:$28 sm:%s3396_s19]   ;;  %s3488_s19 = smov 12  ;;  %v3433_v6 = vsel %vm46_vm0, %v7754_v61, %v7753_v59  ;;  %v2235_v61 = vpop.permute.xlu1 %2234  }
 0x17e   :  { %v7763_v1 = vld [vmem:[%s17206_s0 + $0xae] ss:$-21 sm:%s3464_s29]   ;;  %7342 = vst.msk [vmem:[%s17207_s1 + $0x5c4] ss:$-220 sm:$0x7] %vm3_vm10, %v1970_v2   ;;  %s3517_s13 = smov 12  ;;  %v3399_v12 = vsel %vm110_vm4, %v7744_v63, %v3394_v3  ;;  %3419 = vrot.lane.b32.xlu1 %v3418_v5, %s8795_s26  ;;  %v2213_v3 = vpop.permute.xlu0 %2212  }
 0x17f   :  { %v7764_v4 = vld [vmem:[%s17206_s0 - $0x16d] ss:$77 sm:%s3469_s28]   ;;  %7343 = vst.msk [vmem:[%s17207_s1 + $0x7c6] ss:$-220 sm:$0x18] %vm3_vm10, %v1970_v2   ;;  %v3467_v10 = vsel %vm105_vm3, %v7763_v1, %v3462_v0  ;;  %s3493_s27 = smov 48  ;;  %3400 = vrot.lane.b32.xlu0 %v3399_v12, %s8795_s26 }
 0x180   :  { %7344 = vst.msk [vmem:[%s17207_s1 - $0x5f8] ss:$586 sm:$0x60] %vm3_vm10, %v1970_v2   ;;  %7345 = vst.msk [vmem:[%s17207_s1 + $0x6e1] sm:$0x80] %vm3_vm10, %v1970_v2   ;;  %s3529_s20 = smov 3  ;;  %v3472_v18 = vsel %vm110_vm4, %v7764_v4, %v3467_v10 }
 0x181   :  { %v7755_v7 = vld [vmem:[%s17206_s0 + $0x7d] ss:$-21 sm:%s3435_s5]   ;;  %7361 = vst.msk [vmem:[%s17207_s1 + $0x403] ss:$-220 sm:$0x7] %vm3_vm10, %v2040_v9   ;;  %s3537_s11 = smov 48  ;;  %v2279_v12 = vpop.permute.xlu1 %2278  }
 0x182   :  { %v7769_v8 = vld [vmem:[%s17206_s0 + $0x68] ss:$28 sm:%s3485_s6]   ;;  %v7770_v11 = vld [vmem:[%s17206_s0 + $0x37] ss:$28 sm:%s3488_s19]   ;;  %v3438_v15 = vsel %vm105_vm3, %v7755_v7, %v3433_v6  ;;  %s3498_s6 = smov 192  ;;  %s3578_s8 = smov 3 }
 0x183   :  { %7362 = vst.msk [vmem:[%s17207_s1 + $0x605] ss:$-220 sm:$0x18] %vm3_vm10, %v2040_v9   ;;  %7363 = vst.msk [vmem:[%s17207_s1 + $0x805] ss:$-220 sm:$0x60] %vm3_vm10, %v2040_v9   ;;  %v3491_v19 = vsel %vm46_vm0, %v7770_v11, %v7769_v8 }
 0x184   :  { %7364 = vst.msk [vmem:[%s17207_s1 + $0x5fc] sm:$0x80] %vm3_vm10, %v2040_v9   ;;  %v7756_v13 = vld [vmem:[%s17206_s0 - $0x78] ss:$28 sm:%s3440_s18]   ;;  %s3532_s18 = smov 12  ;;  %s8796_s30 = smov 56  }
 0x185   :  { %v7777_v16 = vld [vmem:[%s17206_s0 + $0xa0] ss:$28 sm:%s3514_s23]   ;;  %v7778_v17 = vld [vmem:[%s17206_s0 + $0x6f] ss:$28 sm:%s3517_s13]   ;;  %v3443_v25 = vsel %vm110_vm4, %v7756_v13, %v3438_v15  ;;  %s3542_s7 = smov 192  ;;  %s3585_s14 = smov 96 }
 0x186   :  { %7353 = vst.msk [vmem:[%s17207_s1 + $0x3] ss:$292 sm:$0x3] %vm3_vm10, %v2013_v14   ;;  %7354 = vst.msk [vmem:[%s17207_s1 - $0x201] ss:$294 sm:$0xc] %vm3_vm10, %v2013_v14   ;;  %3473 = vrot.lane.b32.xlu1 %v3472_v18, %s8796_s30  ;;  %v3520_v30 = vsel %vm46_vm0, %v7778_v17, %v7777_v16  ;;  %3444 = vrot.lane.b32.xlu0 %v3443_v25, %s8796_s30  ;;  %v2262_v17 = vpop.permute.xlu0 %2261   ;;  %v2327_v25 = vpop.permute.xlu1 %2326  }
 0x187   :  { %7355 = vst.msk [vmem:[%s17207_s1 - $0x3fb] ss:$292 sm:$0x30] %vm3_vm10, %v2013_v14   ;;  %7356 = vst.msk [vmem:[%s17207_s1 - $0x607] ss:$294 sm:$0xc0] %vm3_vm10, %v2013_v14  }
 0x188   :  { %v7771_v20 = vld [vmem:[%s17206_s0 + $0x6] ss:$28 sm:%s3493_s27]   ;;  %s3564_s27 = smov 192  ;;  %v7781_v21 = vld [vmem:[%s17206_s0 + $0xc] ss:$28 sm:%s3529_s20]   ;;  %s3621_s22 = smov 12 }
 0x189   :  { %v7789_v23 = vld [vmem:[%s17206_s0 + $0x6e] ss:$-21 sm:$0x7]   ;;  %v7782_v24 = vld [vmem:[%s17206_s0 - $0x25] ss:$28 sm:%s3532_s18]   ;;  %v3496_v28 = vsel %vm105_vm3, %v7771_v20, %v3491_v19  ;;  %s3649_s13 = smov 48 }
 0x18a   :  { %7375 = vst.msk [vmem:[%s17207_s1 + $0x771] ss:$-220 sm:$0x3] %vm3_vm10, %v2088_v22   ;;  %7376 = vst.msk [vmem:[%s17207_s1 + $0x971] ss:$-220 sm:$0xc] %vm3_vm10, %v2088_v22   ;;  %v3535_v32 = vsel %vm46_vm0, %v7782_v24, %v7781_v21  ;;  %3521 = vrot.lane.b32.xlu1 %v3520_v30, %s8796_s30 }
 0x18b   :  { %v7790_v26 = vld [vmem:[%s17206_s0 + $0x9f] ss:$-21 sm:$0x38]   ;;  %v7772_v29 = vld [vmem:[%s17206_s0 - $0xf] ss:$28 sm:%s3498_s6]   ;;  %s3626_s25 = smov 48 }
 0x18c   :  { %7369 = vst.msk [vmem:[%s17207_s1 + $0x527] ss:$-220 sm:$0x3] %vm3_vm10, %v2069_v27   ;;  %7370 = vst.msk [vmem:[%s17207_s1 + $0x729] ss:$-220 sm:$0xc] %vm3_vm10, %v2069_v27   ;;  %v3562_v35 = vsel %vm1164_vm8, %v7790_v26, %v7789_v23  ;;  %v3501_v38 = vsel %vm110_vm4, %v7772_v29, %v3496_v28 }
 0x18d   :  { %7371 = vst.msk [vmem:[%s17207_s1 + $0x929] ss:$-220 sm:$0x30] %vm3_vm10, %v2069_v27   ;;  %7372 = vst.msk [vmem:[%s17207_s1 + $0xc4f] ss:$-220 sm:$0xc0] %vm3_vm10, %v2069_v27   ;;  %3502 = vrot.lane.b32.xlu0 %v3501_v38, %s8796_s30 }
 0x18e   :  { %v7791_v31 = vld [vmem:[%s17206_s0 - $0x17c] ss:$77 sm:%s3564_s27]   ;;  %7389 = vst.msk [vmem:[%s17207_s1 + $0x442] ss:$-220 sm:$0x7] %vm3_vm10, %v2140_v34   ;;  %s12092_s28 = smov 192 }
 0x18f   :  { %v7783_v33 = vld [vmem:[%s17206_s0 + $0x6e] ss:$-21 sm:%s3537_s11]   ;;  %v7795_v36 = vld [vmem:[%s17206_s0 + $0x8a] ss:$-21 sm:%s3578_s8]   ;;  %s3618_s11 = smov 3  ;;  %v3567_v44 = vsel %vm110_vm4, %v7791_v31, %v3562_v35  ;;  %s3672_s23 = smov 24  ;;  %v2304_v31 = vpop.permute.xlu0 %2303  }
 0x190   :  { %v7796_v37 = vld [vmem:[%s17206_s0 + $0xbb] ss:$-21 sm:$0x1c]   ;;  %7390 = vst.msk [vmem:[%s17207_s1 + $0x644] ss:$-220 sm:$0x18] %vm3_vm10, %v2140_v34   ;;  %v3540_v40 = vsel %vm105_vm3, %v7783_v33, %v3535_v32 }
 0x191   :  { %7391 = vst.msk [vmem:[%s17207_s1 + $0x844] ss:$-220 sm:$0x60] %vm3_vm10, %v2140_v34   ;;  %7392 = vst.msk [vmem:[%s17207_s1 + $0x63b] sm:$0x80] %vm3_vm10, %v2140_v34   ;;  %v3583_v45 = vsel %vm143_vm5, %v7796_v37, %v7795_v36  ;;  %s12096_s17 = smov 3 }
 0x192   :  { %v7784_v41 = vld [vmem:[%s17206_s0 - $0x87] ss:$28 sm:%s3542_s7]   ;;  %v7804_v43 = vld [vmem:[%s17206_s0 + $0xb1] sm:$0x8]   ;;  %v7798_v52 = vld [vmem:[%s17206_s0 + $0x9f] sm:$0x80]  }
 0x193   :  { %v7803_v42 = vld [vmem:[%s17206_s0 + $0xc2] ss:$-21 sm:$0x7]   ;;  %7381 = vst.msk [vmem:[%s17207_s1 + $0x42] ss:$292 sm:$0x3] %vm3_vm10, %v2113_v39   ;;  %v3545_v51 = vsel %vm110_vm4, %v7784_v41, %v3540_v40  ;;  %v2371_v40 = vpop.permute.xlu1 %2370  }
 0x194   :  { %7382 = vst.msk [vmem:[%s17207_s1 - $0x1c2] ss:$294 sm:$0xc] %vm3_vm10, %v2113_v39   ;;  %7383 = vst.msk [vmem:[%s17207_s1 - $0x3bc] ss:$292 sm:$0x30] %vm3_vm10, %v2113_v39   ;;  %v3609_v57 = vsel %vm1213_vm9, %v7804_v43, %v7803_v42 }
 0x195   :  { %7384 = vst.msk [vmem:[%s17207_s1 - $0x5c8] ss:$294 sm:$0xc0] %vm3_vm10, %v2113_v39   ;;  %v7797_v46 = vld [vmem:[%s17206_s0 - $0x95] ss:$56 sm:%s3585_s14]   ;;  %s3654_s14 = smov 192 }
 0x196   :  { %v7807_v47 = vld [vmem:[%s17206_s0 + $0x12] ss:$28 sm:%s3618_s11]   ;;  %7403 = vst.msk [vmem:[%s17207_s1 + $0x7b0] ss:$-220 sm:$0x3] %vm3_vm10, %v2188_v48   ;;  %v3588_v55 = vsel %vm148_vm6, %v7797_v46, %v3583_v45  ;;  %s3741_s6 = smov 3  ;;  %v2352_v45 = vpop.permute.xlu0 %2351  }
 0x197   :  { %v7815_v49 = vld [vmem:[%s17206_s0 + $0x74] ss:$-21 sm:$0xf]   ;;  %v7808_v50 = vld [vmem:[%s17206_s0 + $0x43] ss:$-21 sm:%s3621_s22]   ;;  %s3700_s29 = smov 12  ;;  %v3592_v0 = vsel %vm54_vm2, %v7798_v52, %v3588_v55  ;;  %v2423_v52 = vpop.permute.xlu1 %2422  }
 0x198   :  { %7404 = vst.msk [vmem:[%s17207_s1 + $0x9b0] ss:$-220 sm:$0xc] %vm3_vm10, %v2188_v48   ;;  %v7816_v53 = vld [vmem:[%s17206_s0 + $0xa5] ss:$-21 sm:%s3649_s13]   ;;  %s8797_s13 = smov 54   ;;  %v3624_v59 = vsel %vm46_vm0, %v7808_v50, %v7807_v47 }
 0x199   :  { %3568 = vrot.lane.b32.xlu1 %v3567_v44, %s8797_s13  ;;  %v7822_v56 = vld [vmem:[%s17206_s0 + $0x90] ss:$-21 sm:$0x7]   ;;  %7397 = vst.msk [vmem:[%s17207_s1 + $0x566] ss:$-220 sm:$0x3] %vm3_vm10, %v2169_v54   ;;  %3546 = vrot.lane.b32.xlu0 %v3545_v51, %s8797_s13  ;;  %v3652_v62 = vsel %vm105_vm3, %v7816_v53, %v7815_v49 }
 0x19a   :  { %7398 = vst.msk [vmem:[%s17207_s1 + $0x768] ss:$-220 sm:$0xc] %vm3_vm10, %v2169_v54   ;;  %7399 = vst.msk [vmem:[%s17207_s1 + $0x968] ss:$-220 sm:$0x30] %vm3_vm10, %v2169_v54  }
 0x19b   :  { %7400 = vst.msk [vmem:[%s17207_s1 + $0xc8e] ss:$-220 sm:$0xc0] %vm3_vm10, %v2169_v54   ;;  %v7817_v58 = vld [vmem:[%s17206_s0 - $0x176] ss:$77 sm:%s3654_s14]   ;;  %s3677_s15 = smov 96 }
 0x19c   :  { %v7809_v60 = vld [vmem:[%s17206_s0 + $0x74] ss:$-21 sm:%s3626_s25]   ;;  %s3744_s25 = smov 12  ;;  %s3712_s22 = smov 3  ;;  %7419 = vst.msk [vmem:[%s17207_s1 + $0x67a] sm:$0x80] %vm3_vm10, %v2235_v61   ;;  %v3657_v8 = vsel %vm110_vm4, %v7817_v58, %v3652_v62 }
 0x19d   :  { %v7823_v63 = vld [vmem:[%s17206_s0 + $0xc1] ss:$-21 sm:%s3672_s23]   ;;  %7416 = vst.msk [vmem:[%s17207_s1 + $0x481] ss:$-220 sm:$0x7] %vm3_vm10, %v2235_v61   ;;  %3610 = vrot.lane.b32.xlu1 %v3609_v57, %s8797_s13  ;;  %v3629_v4 = vsel %vm105_vm3, %v7809_v60, %v3624_v59  ;;  %s3749_s11 = smov 48  ;;  %v2396_v57 = vpop.permute.xlu0 %2395  }
 0x19e   :  { %7417 = vst.msk [vmem:[%s17207_s1 + $0x67b] ss:$-218 sm:$0x18] %vm3_vm10, %v2235_v61   ;;  %7418 = vst.msk [vmem:[%s17207_s1 - $0x37d] ss:$292 sm:$0x60] %vm3_vm10, %v2235_v61   ;;  %v3675_v9 = vsel %vm241_vm7, %v7823_v63, %v7822_v56  ;;  %3593 = vrot.lane.b32.xlu0 %v3592_v0, %s8797_s13 }
 0x19f   :  { %v7810_v1 = vld [vmem:[%s17206_s0 - $0x81] ss:$28 sm:%s12092_s28]   ;;  %v7842_v2 = vld [vmem:[%s17206_s0 + $0x7a] ss:$-70 sm:%s3741_s6]   ;;  %s3715_s6 = smov 12  ;;  %s3720_s5 = smov 48 }
 0x1a0   :  { %v7830_v5 = vld [vmem:[%s17206_s0 + $0x97] ss:$28 sm:%s12096_s17]   ;;  %v7831_v6 = vld [vmem:[%s17206_s0 + $0x66] ss:$28 sm:%s3700_s29]   ;;  %s3770_s27 = smov 3  ;;  %v3634_v14 = vsel %vm110_vm4, %v7810_v1, %v3629_v4  ;;  %s12207_s10 = smov 192 }
 0x1a1   :  { %v7843_v7 = vld [vmem:[%s17206_s0 + $0x7a] ss:$-21 sm:%s3744_s25]   ;;  %7409 = vst.msk [vmem:[%s17207_s1 + $0x81] ss:$292 sm:$0x3] %vm3_vm10, %v2213_v3   ;;  %s3773_s17 = smov 12  ;;  %v3703_v21 = vsel %vm46_vm0, %v7831_v6, %v7830_v5 }
 0x1a2   :  { %7410 = vst.msk [vmem:[%s17207_s1 - $0x17f] ss:$292 sm:$0xc] %vm3_vm10, %v2213_v3   ;;  %7411 = vst.msk [vmem:[%s17207_s1 + $0x483] ss:$-220 sm:$0x30] %vm3_vm10, %v2213_v3   ;;  %v3747_v15 = vsel %vm46_vm0, %v7843_v7, %v7842_v2  ;;  %v2452_v7 = vpop.permute.xlu0 %2451  }
 0x1a3   :  { %7412 = vst.msk [vmem:[%s17207_s1 - $0x589] ss:$294 sm:$0xc0] %vm3_vm10, %v2213_v3   ;;  %v7824_v10 = vld [vmem:[%s17206_s0 - $0x8f] ss:$56 sm:%s3677_s15]   ;;  %s3754_s15 = smov 192  ;;  %v2471_v3 = vpop.permute.xlu1 %2470  }
 0x1a4   :  { %v7834_v11 = vld [vmem:[%s17206_s0 + $0x18] ss:$-21 sm:%s3712_s22]   ;;  %v7835_v13 = vld [vmem:[%s17206_s0 + $0x49] ss:$-21 sm:%s3715_s6]   ;;  %s8798_s12 = smov 52   ;;  %v3680_v18 = vsel %vm148_vm6, %v7824_v10, %v3675_v9  ;;  %s3799_s9 = smov 3 }
 0x1a5   :  { %7430 = vst.msk [vmem:[%s17207_s1 + $0x7ed] ss:$-218 sm:$0x3] %vm3_vm10, %v2279_v12   ;;  %7431 = vst.msk [vmem:[%s17207_s1 + $0x3ef] ss:$292 sm:$0xc] %vm3_vm10, %v2279_v12   ;;  %3658 = vrot.lane.b32.xlu1 %v3657_v8, %s8798_s12  ;;  %v3718_v22 = vsel %vm46_vm0, %v7835_v13, %v7834_v11  ;;  %3635 = vrot.lane.b32.xlu0 %v3634_v14, %s8798_s12 }
 0x1a6   :  { %v7844_v16 = vld [vmem:[%s17206_s0 + $0xab] ss:$-21 sm:%s3749_s11]   ;;  %s3841_s29 = smov 3  ;;  %7424 = vst.msk [vmem:[%s17207_s1 + $0x5a5] ss:$-220 sm:$0x3] %vm3_vm10, %v2262_v17  }
 0x1a7   :  { %v7825_v19 = vld [vmem:[%s17206_s0 + $0xa5] sm:$0x80]   ;;  %v7845_v20 = vld [vmem:[%s17206_s0 - $0x170] ss:$77 sm:%s3754_s15]   ;;  %s3802_s13 = smov 12  ;;  %v3752_v26 = vsel %vm105_vm3, %v7844_v16, %v3747_v15  ;;  %s3778_s28 = smov 48  ;;  %v2518_v15 = vpop.permute.xlu1 %2517  }
 0x1a8   :  { %7425 = vst.msk [vmem:[%s17207_s1 + $0x7a1] ss:$-218 sm:$0xc] %vm3_vm10, %v2262_v17   ;;  %7426 = vst.msk [vmem:[%s17207_s1 - $0x59] ss:$292 sm:$0x30] %vm3_vm10, %v2262_v17   ;;  %v3684_v28 = vsel %vm54_vm2, %v7825_v19, %v3680_v18  ;;  %v3757_v36 = vsel %vm110_vm4, %v7845_v20, %v3752_v26 }
 0x1a9   :  { %7427 = vst.msk [vmem:[%s17207_s1 + $0xccd] ss:$-220 sm:$0xc0] %vm3_vm10, %v2262_v17   ;;  %v7836_v23 = vld [vmem:[%s17206_s0 + $0x7a] ss:$-21 sm:%s3720_s5]   ;;  %s3814_s20 = smov 3  ;;  %3704 = vrot.lane.b32.xlu1 %v3703_v21, %s8798_s12  ;;  %v2496_v21 = vpop.permute.xlu0 %2495  }
 0x1aa   :  { %v7850_v24 = vld [vmem:[%s17206_s0 + $0x65] ss:$28 sm:%s3770_s27]   ;;  %s3844_s27 = smov 12  ;;  %v7851_v27 = vld [vmem:[%s17206_s0 + $0x34] ss:$28 sm:%s3773_s17]   ;;  %v3723_v32 = vsel %vm105_vm3, %v7836_v23, %v3718_v22  ;;  %s3868_s19 = smov 3 }
 0x1ab   :  { %7443 = vst.msk [vmem:[%s17207_s1 + $0x4c0] ss:$-220 sm:$0xf] %vm3_vm10, %v2327_v25   ;;  %7444 = vst.msk [vmem:[%s17207_s1 + $0x6c2] ss:$-220 sm:$0x30] %vm3_vm10, %v2327_v25   ;;  %v3776_v37 = vsel %vm46_vm0, %v7851_v27, %v7850_v24  ;;  %3685 = vrot.lane.b32.xlu0 %v3684_v28, %s8798_s12 }
 0x1ac   :  { %7445 = vst.msk [vmem:[%s17207_s1 - $0xf4a] ss:$806 sm:$0xc0] %vm3_vm10, %v2327_v25   ;;  %v7837_v29 = vld [vmem:[%s17206_s0 - $0x7b] ss:$28 sm:%s12207_s10]   ;;  %s8799_s8 = smov 50  }
 0x1ad   :  { %v7870_v30 = vld [vmem:[%s17206_s0 + $0x80] ss:$-70 sm:%s3841_s29]   ;;  %s3817_s29 = smov 12  ;;  %v7858_v33 = vld [vmem:[%s17206_s0 + $0x9d] ss:$28 sm:%s3799_s9]   ;;  %v3728_v42 = vsel %vm110_vm4, %v7837_v29, %v3723_v32  ;;  %s3897_s7 = smov 3 }
 0x1ae   :  { %v7859_v34 = vld [vmem:[%s17206_s0 + $0x6c] ss:$28 sm:%s3802_s13]   ;;  %7436 = vst.msk [vmem:[%s17207_s1 + $0xc0] ss:$292 sm:$0x3] %vm3_vm10, %v2304_v31   ;;  %3758 = vrot.lane.b32.xlu1 %v3757_v36, %s8799_s8  ;;  %s3900_s26 = smov 12 }
 0x1af   :  { %v7871_v35 = vld [vmem:[%s17206_s0 + $0x80] ss:$-21 sm:%s3844_s27]   ;;  %7437 = vst.msk [vmem:[%s17207_s1 + $0x2c0] ss:$-220 sm:$0xc] %vm3_vm10, %v2304_v31   ;;  %v3805_v49 = vsel %vm46_vm0, %v7859_v34, %v7858_v33  ;;  %3729 = vrot.lane.b32.xlu0 %v3728_v42, %s8799_s8  ;;  %s3912_s30 = smov 3 }
 0x1b0   :  { %7438 = vst.msk [vmem:[%s17207_s1 + $0x4c2] ss:$-220 sm:$0x30] %vm3_vm10, %v2304_v31   ;;  %7439 = vst.msk [vmem:[%s17207_s1 - $0x54a] ss:$294 sm:$0xc0] %vm3_vm10, %v2304_v31   ;;  %v3847_v43 = vsel %vm46_vm0, %v7871_v35, %v7870_v30  ;;  %v2560_v30 = vpop.permute.xlu1 %2559   ;;  %v2543_v35 = vpop.permute.xlu0 %2542  }
 0x1b1   :  { %v7852_v38 = vld [vmem:[%s17206_s0 + $0x3] ss:$28 sm:%s3778_s28]   ;;  %s3783_s28 = smov 192  ;;  %7456 = vst.msk [vmem:[%s17207_s1 + $0x62c] ss:$294 sm:$0x3] %vm3_vm10, %v2371_v40  }
 0x1b2   :  { %v7862_v39 = vld [vmem:[%s17206_s0 + $0x1e] ss:$-21 sm:%s3814_s20]   ;;  %v7863_v41 = vld [vmem:[%s17206_s0 + $0x4f] ss:$-21 sm:%s3817_s29]   ;;  %s3871_s29 = smov 12  ;;  %v3781_v46 = vsel %vm105_vm3, %v7852_v38, %v3776_v37  ;;  %s3915_s2 = smov 12 }
 0x1b3   :  { %7457 = vst.msk [vmem:[%s17207_s1 + $0x42e] ss:$292 sm:$0xc] %vm3_vm10, %v2371_v40   ;;  %v7872_v44 = vld [vmem:[%s17206_s0 + $0xb1] ss:$-21 sm:$0x70]   ;;  %v3820_v50 = vsel %vm46_vm0, %v7863_v41, %v7862_v39  ;;  %3806 = vrot.lane.b32.xlu1 %v3805_v49, %s8799_s8 }
 0x1b4   :  { %v7853_v47 = vld [vmem:[%s17206_s0 - $0x12] ss:$28 sm:%s3783_s28]   ;;  %7450 = vst.msk [vmem:[%s17207_s1 + $0x5e4] ss:$-220 sm:$0x7] %vm3_vm10, %v2352_v45   ;;  %v3851_v53 = vsel %vm50_vm1, %v7872_v44, %v3847_v43  ;;  %s3943_s22 = smov 48  ;;  %v2608_v43 = vpop.permute.xlu1 %2607   ;;  %v2585_v49 = vpop.permute.xlu0 %2584  }
 0x1b5   :  { %v7864_v48 = vld [vmem:[%s17206_s0 + $0x80] ss:$-21 sm:$0x70]   ;;  %7451 = vst.msk [vmem:[%s17207_s1 + $0x7e6] ss:$-220 sm:$0x18] %vm3_vm10, %v2352_v45   ;;  %v3786_v56 = vsel %vm110_vm4, %v7853_v47, %v3781_v46 }
 0x1b6   :  { %7452 = vst.msk [vmem:[%s17207_s1 - $0x5d8] ss:$586 sm:$0x60] %vm3_vm10, %v2352_v45   ;;  %7453 = vst.msk [vmem:[%s17207_s1 + $0x701] sm:$0x80] %vm3_vm10, %v2352_v45   ;;  %v3824_v58 = vsel %vm50_vm1, %v7864_v48, %v3820_v50  ;;  %s3948_s25 = smov 192  ;;  %3787 = vrot.lane.b32.xlu0 %v3786_v56, %s8799_s8 }
 0x1b7   :  { %v7878_v51 = vld [vmem:[%s17206_s0 + $0x6b] ss:$28 sm:%s3868_s19]   ;;  %v7873_v54 = vld [vmem:[%s17206_s0 + $0xaa] sm:$0x80]   ;;  %s3876_s19 = smov 48  ;;  %s12414_s16 = smov 192 }
 0x1b8   :  { %v7879_v55 = vld [vmem:[%s17206_s0 + $0x3a] ss:$28 sm:%s3871_s29]   ;;  %7470 = vst.msk [vmem:[%s17207_s1 + $0x423] ss:$-220 sm:$0x7] %vm3_vm10, %v2423_v52   ;;  %v3855_v62 = vsel %vm54_vm2, %v7873_v54, %v3851_v53  ;;  %s3920_s29 = smov 48 }
 0x1b9   :  { %7471 = vst.msk [vmem:[%s17207_s1 + $0x625] ss:$-220 sm:$0x18] %vm3_vm10, %v2423_v52   ;;  %7472 = vst.msk [vmem:[%s17207_s1 + $0x825] ss:$-220 sm:$0x60] %vm3_vm10, %v2423_v52   ;;  %v3874_v63 = vsel %vm46_vm0, %v7879_v55, %v7878_v51 }
 0x1ba   :  { %7473 = vst.msk [vmem:[%s17207_s1 + $0x61c] sm:$0x80] %vm3_vm10, %v2423_v52   ;;  %v7865_v59 = vld [vmem:[%s17206_s0 + $0x48] sm:$0x80]   ;;  %v7887_v61 = vld [vmem:[%s17206_s0 + $0xd4] ss:$-21 sm:%s3900_s26]  }
 0x1bb   :  { %v7886_v60 = vld [vmem:[%s17206_s0 + $0xa3] ss:$28 sm:%s3897_s7]   ;;  %7462 = vst.msk [vmem:[%s17207_s1 + $0x23] ss:$292 sm:$0x3] %vm3_vm10, %v2396_v57   ;;  %v3828_v5 = vsel %vm54_vm2, %v7865_v59, %v3824_v58  ;;  %s12428_s21 = smov 3  ;;  %v2652_v58 = vpop.permute.xlu1 %2651  }
 0x1bc   :  { %7463 = vst.msk [vmem:[%s17207_s1 - $0x1e1] ss:$294 sm:$0xc] %vm3_vm10, %v2396_v57   ;;  %7464 = vst.msk [vmem:[%s17207_s1 - $0x3db] ss:$292 sm:$0x30] %vm3_vm10, %v2396_v57   ;;  %v3903_v11 = vsel %vm46_vm0, %v7887_v61, %v7886_v60 }
 0x1bd   :  { %7465 = vst.msk [vmem:[%s17207_s1 - $0x5e7] ss:$294 sm:$0xc0] %vm3_vm10, %v2396_v57   ;;  %v7880_v0 = vld [vmem:[%s17206_s0 + $0xcd] ss:$-21 sm:%s3876_s19]   ;;  %s3881_s19 = smov 192 }
 0x1be   :  { %v7898_v1 = vld [vmem:[%s17206_s0 + $0x71] ss:$-21 sm:$0xf]   ;;  %v7891_v4 = vld [vmem:[%s17206_s0 + $0x40] ss:$-21 sm:%s3915_s2]   ;;  %s3966_s13 = smov 24  ;;  %v3879_v8 = vsel %vm105_vm3, %v7880_v0, %v3874_v63  ;;  %v2633_v0 = vpop.permute.xlu0 %2632  }
 0x1bf   :  { %v7890_v2 = vld [vmem:[%s17206_s0 + $0xf] ss:$28 sm:%s3912_s30]   ;;  %7484 = vst.msk [vmem:[%s17207_s1 + $0x791] ss:$-220 sm:$0x3] %vm3_vm10, %v2471_v3   ;;  %s4035_s6 = smov 3 }
 0x1c0   :  { %7485 = vst.msk [vmem:[%s17207_s1 + $0x991] ss:$-220 sm:$0xc] %vm3_vm10, %v2471_v3   ;;  %v7899_v6 = vld [vmem:[%s17206_s0 + $0xa2] ss:$-21 sm:%s3943_s22]   ;;  %s8800_s22 = smov 48   ;;  %v3918_v13 = vsel %vm46_vm0, %v7891_v4, %v7890_v2 }
 0x1c1   :  { %3856 = vrot.lane.b32.xlu1 %v3855_v62, %s8800_s22  ;;  %v7881_v9 = vld [vmem:[%s17206_s0 - $0xc] ss:$28 sm:%s3881_s19]   ;;  %7478 = vst.msk [vmem:[%s17207_s1 + $0x547] ss:$-220 sm:$0x3] %vm3_vm10, %v2452_v7   ;;  %s3994_s30 = smov 12  ;;  %v3946_v16 = vsel %vm105_vm3, %v7899_v6, %v7898_v1 }
 0x1c2   :  { %v7905_v10 = vld [vmem:[%s17206_s0 + $0x8d] ss:$-21 sm:$0x7]   ;;  %7479 = vst.msk [vmem:[%s17207_s1 + $0x749] ss:$-220 sm:$0xc] %vm3_vm10, %v2452_v7   ;;  %3829 = vrot.lane.b32.xlu0 %v3828_v5, %s8800_s22  ;;  %v3884_v18 = vsel %vm110_vm4, %v7881_v9, %v3879_v8 }
 0x1c3   :  { %7480 = vst.msk [vmem:[%s17207_s1 + $0x949] ss:$-220 sm:$0x30] %vm3_vm10, %v2452_v7   ;;  %7481 = vst.msk [vmem:[%s17207_s1 + $0xc6f] ss:$-220 sm:$0xc0] %vm3_vm10, %v2452_v7   ;;  %v2706_v7 = vpop.permute.xlu1 %2705  }
 0x1c4   :  { %v7900_v12 = vld [vmem:[%s17206_s0 - $0x179] ss:$77 sm:%s3948_s25]   ;;  %s3971_s4 = smov 96  ;;  %s4006_s3 = smov 3  ;;  %v7925_v20 = vld [vmem:[%s17206_s0 + $0x77] ss:$-70 sm:%s4035_s6]  }
 0x1c5   :  { %v7892_v14 = vld [vmem:[%s17206_s0 + $0x71] ss:$-21 sm:%s3920_s29]   ;;  %s4038_s29 = smov 12  ;;  %7497 = vst.msk [vmem:[%s17207_s1 + $0x462] ss:$-220 sm:$0x7] %vm3_vm10, %v2518_v15   ;;  %3904 = vrot.lane.b32.xlu1 %v3903_v11, %s8800_s22  ;;  %v3951_v26 = vsel %vm110_vm4, %v7900_v12, %v3946_v16 }
 0x1c6   :  { %v7906_v17 = vld [vmem:[%s17206_s0 + $0xbe] ss:$-21 sm:%s3966_s13]   ;;  %7498 = vst.msk [vmem:[%s17207_s1 + $0x664] ss:$-220 sm:$0x38] %vm3_vm10, %v2518_v15   ;;  %s4009_s6 = smov 12  ;;  %v3923_v22 = vsel %vm105_vm3, %v7892_v14, %v3918_v13  ;;  %3885 = vrot.lane.b32.xlu0 %v3884_v18, %s8800_s22  ;;  %v2677_v13 = vpop.permute.xlu0 %2676  }
 0x1c7   :  { %7499 = vst.msk [vmem:[%s17207_s1 - $0xfa8] ss:$806 sm:$0xc0] %vm3_vm10, %v2518_v15   ;;  %v7893_v19 = vld [vmem:[%s17206_s0 - $0x84] ss:$28 sm:%s12414_s16]   ;;  %s4043_s14 = smov 48  ;;  %v3969_v27 = vsel %vm241_vm7, %v7906_v17, %v7905_v10 }
 0x1c8   :  { %v7913_v23 = vld [vmem:[%s17206_s0 + $0x94] ss:$28 sm:%s12428_s21]   ;;  %v7914_v24 = vld [vmem:[%s17206_s0 + $0x63] ss:$28 sm:%s3994_s30]   ;;  %s4014_s27 = smov 48  ;;  %s4064_s7 = smov 3  ;;  %v3928_v32 = vsel %vm110_vm4, %v7893_v19, %v3923_v22  ;;  %v2753_v22 = vpop.permute.xlu1 %2752  }
 0x1c9   :  { %v7926_v25 = vld [vmem:[%s17206_s0 + $0x77] ss:$-21 sm:%s4038_s29]   ;;  %7490 = vst.msk [vmem:[%s17207_s1 + $0x62] ss:$292 sm:$0x3] %vm3_vm10, %v2496_v21   ;;  %s12540_s12 = smov 192  ;;  %v3997_v39 = vsel %vm46_vm0, %v7914_v24, %v7913_v23 }
 0x1ca   :  { %7491 = vst.msk [vmem:[%s17207_s1 - $0x1a2] ss:$294 sm:$0xc] %vm3_vm10, %v2496_v21   ;;  %7492 = vst.msk [vmem:[%s17207_s1 + $0x464] ss:$-220 sm:$0x30] %vm3_vm10, %v2496_v21   ;;  %v4041_v33 = vsel %vm46_vm0, %v7926_v25, %v7925_v20 }
 0x1cb   :  { %7493 = vst.msk [vmem:[%s17207_s1 - $0x5a8] ss:$294 sm:$0xc0] %vm3_vm10, %v2496_v21   ;;  %v7907_v28 = vld [vmem:[%s17206_s0 - $0x92] ss:$56 sm:%s3971_s4]   ;;  %s4048_s4 = smov 192 }
 0x1cc   :  { %v7917_v29 = vld [vmem:[%s17206_s0 + $0x15] ss:$-21 sm:%s4006_s3]   ;;  %v7918_v31 = vld [vmem:[%s17206_s0 + $0x46] ss:$-21 sm:%s4009_s6]   ;;  %s4067_s21 = smov 12  ;;  %s8801_s20 = smov 46   ;;  %v3974_v36 = vsel %vm148_vm6, %v7907_v28, %v3969_v27  ;;  %v2734_v27 = vpop.permute.xlu0 %2733  }
 0x1cd   :  { %7510 = vst.msk [vmem:[%s17207_s1 + $0x7d0] ss:$-220 sm:$0x7] %vm3_vm10, %v2560_v30   ;;  %7511 = vst.msk [vmem:[%s17207_s1 + $0x739] sm:$0x8] %vm3_vm10, %v2560_v30   ;;  %3952 = vrot.lane.b32.xlu1 %v3951_v26, %s8801_s20  ;;  %s4092_s18 = smov 3  ;;  %v4012_v40 = vsel %vm46_vm0, %v7918_v31, %v7917_v29  ;;  %3929 = vrot.lane.b32.xlu0 %v3928_v32, %s8801_s20 }
 0x1ce   :  { %v7927_v34 = vld [vmem:[%s17206_s0 + $0xa8] ss:$-21 sm:%s4043_s14]   ;;  %s4136_s25 = smov 3  ;;  %7504 = vst.msk [vmem:[%s17207_s1 + $0x586] ss:$-220 sm:$0x3] %vm3_vm10, %v2543_v35  }
 0x1cf   :  { %v7908_v37 = vld [vmem:[%s17206_s0 + $0xa2] sm:$0x80]   ;;  %v7928_v38 = vld [vmem:[%s17206_s0 - $0x173] ss:$77 sm:%s4048_s4]   ;;  %7507 = vst.msk [vmem:[%s17207_s1 + $0x6a3] sm:$0x80] %vm3_vm10, %v2543_v35   ;;  %v4046_v44 = vsel %vm105_vm3, %v7927_v34, %v4041_v33  ;;  %v2805_v34 = vpop.permute.xlu1 %2804  }
 0x1d0   :  { %7505 = vst.msk [vmem:[%s17207_s1 + $0x788] ss:$-220 sm:$0x1c] %vm3_vm10, %v2543_v35   ;;  %7506 = vst.msk [vmem:[%s17207_s1 - $0x636] ss:$586 sm:$0x60] %vm3_vm10, %v2543_v35   ;;  %v3978_v46 = vsel %vm54_vm2, %v7908_v37, %v3974_v36  ;;  %v4051_v54 = vsel %vm110_vm4, %v7928_v38, %v4046_v44 }
 0x1d1   :  { %v7919_v41 = vld [vmem:[%s17206_s0 + $0x77] ss:$-21 sm:%s4014_s27]   ;;  %s4095_s22 = smov 12  ;;  %s4071_s16 = smov 48  ;;  %3998 = vrot.lane.b32.xlu1 %v3997_v39, %s8801_s20  ;;  %3979 = vrot.lane.b32.xlu0 %v3978_v46, %s8801_s20  ;;  %v2778_v39 = vpop.permute.xlu0 %2777   ;;  %vm6234_vm8 = vcmask 113712   ;;  %vm6421_vm9 = vcmask 31744  }
 0x1d2   :  { %v7933_v42 = vld [vmem:[%s17206_s0 + $0x62] ss:$28 sm:%s4064_s7]   ;;  %s4139_s7 = smov 12  ;;  %v7934_v45 = vld [vmem:[%s17206_s0 + $0x31] ss:$28 sm:%s4067_s21]   ;;  %s4107_s24 = smov 3  ;;  %v4017_v50 = vsel %vm105_vm3, %v7919_v41, %v4012_v40 }
 0x1d3   :  { %7523 = vst.msk [vmem:[%s17207_s1 + $0x4a1] ss:$-220 sm:$0xf] %vm3_vm10, %v2608_v43   ;;  %7524 = vst.msk [vmem:[%s17207_s1 + $0x6a3] ss:$-220 sm:$0x30] %vm3_vm10, %v2608_v43   ;;  %v4070_v55 = vsel %vm46_vm0, %v7934_v45, %v7933_v42 }
 0x1d4   :  { %7525 = vst.msk [vmem:[%s17207_s1 - $0xf69] ss:$806 sm:$0xc0] %vm3_vm10, %v2608_v43   ;;  %v7920_v47 = vld [vmem:[%s17206_s0 - $0x7e] ss:$28 sm:%s12540_s12]   ;;  %s4076_s15 = smov 192 }
 0x1d5   :  { %v7952_v48 = vld [vmem:[%s17206_s0 + $0x7d] ss:$-70 sm:%s4136_s25]   ;;  %s4110_s25 = smov 12  ;;  %v7940_v51 = vld [vmem:[%s17206_s0 + $0x9a] ss:$28 sm:%s4092_s18]   ;;  %s4144_s13 = smov 48  ;;  %v4022_v60 = vsel %vm110_vm4, %v7920_v47, %v4017_v50 }
 0x1d6   :  { %v7941_v52 = vld [vmem:[%s17206_s0 + $0x69] ss:$28 sm:%s4095_s22]   ;;  %7516 = vst.msk [vmem:[%s17207_s1 + $0xa1] ss:$292 sm:$0x3] %vm3_vm10, %v2585_v49   ;;  %s4115_s14 = smov 48 }
 0x1d7   :  { %v7953_v53 = vld [vmem:[%s17206_s0 + $0x7d] ss:$-21 sm:%s4139_s7]   ;;  %7517 = vst.msk [vmem:[%s17207_s1 + $0x2a1] ss:$-220 sm:$0xc] %vm3_vm10, %v2585_v49   ;;  %s4165_s10 = smov 3  ;;  %v4098_v3 = vsel %vm46_vm0, %v7941_v52, %v7940_v51 }
 0x1d8   :  { %7518 = vst.msk [vmem:[%s17207_s1 + $0x4a3] ss:$-220 sm:$0x30] %vm3_vm10, %v2585_v49   ;;  %7519 = vst.msk [vmem:[%s17207_s1 - $0x569] ss:$294 sm:$0xc0] %vm3_vm10, %v2585_v49   ;;  %v4142_v62 = vsel %vm46_vm0, %v7953_v53, %v7952_v48  ;;  %v2853_v49 = vpop.permute.xlu1 %2852   ;;  %v2834_v53 = vpop.permute.xlu0 %2833  }
 0x1d9   :  { %v4072_v56 = vld [vmem:[%s17206_s0] ss:$28 sm:%s4071_s16]   ;;  %s4149_s16 = smov 192  ;;  %7536 = vst.msk [vmem:[%s17207_s1 + $0x60d] ss:$294 sm:$0x3] %vm3_vm10, %v2652_v58  }
 0x1da   :  { %v7944_v57 = vld [vmem:[%s17206_s0 + $0x1b] ss:$-21 sm:%s4107_s24]   ;;  %v7945_v59 = vld [vmem:[%s17206_s0 + $0x4c] ss:$-21 sm:%s4110_s25]   ;;  %s4168_s23 = smov 12  ;;  %s8802_s4 = smov 44   ;;  %v4074_v1 = vsel %vm105_vm3, %v4072_v56, %v4070_v55 }
 0x1db   :  { %7537 = vst.msk [vmem:[%s17207_s1 + $0x40f] ss:$292 sm:$0xc] %vm3_vm10, %v2652_v58   ;;  %v7935_v61 = vld [vmem:[%s17206_s0 - $0x15] ss:$28 sm:%s4076_s15]   ;;  %s12654_s15 = smov 192  ;;  %4052 = vrot.lane.b32.xlu1 %v4051_v54, %s8802_s4  ;;  %v4113_v4 = vsel %vm46_vm0, %v7945_v59, %v7944_v57 }
 0x1dc   :  { %v7954_v63 = vld [vmem:[%s17206_s0 + $0xae] ss:$-21 sm:%s4144_s13]   ;;  %s12661_s22 = smov 3  ;;  %s4236_s3 = smov 3  ;;  %7533 = vst.msk [vmem:[%s17207_s1 + $0x6e2] sm:$0x80] %vm3_vm10, %v2633_v0   ;;  %4023 = vrot.lane.b32.xlu0 %v4022_v60, %s8802_s4  ;;  %v4079_v10 = vsel %vm110_vm4, %v7935_v61, %v4074_v1  ;;  %v2900_v61 = vpop.permute.xlu1 %2899  }
 0x1dd   :  { %v7955_v2 = vld [vmem:[%s17206_s0 - $0x16d] ss:$77 sm:%s4149_s16]   ;;  %7530 = vst.msk [vmem:[%s17207_s1 + $0x5c5] ss:$-220 sm:$0x7] %vm3_vm10, %v2633_v0   ;;  %s4197_s20 = smov 12  ;;  %v4147_v8 = vsel %vm105_vm3, %v7954_v63, %v4142_v62 }
 0x1de   :  { %7531 = vst.msk [vmem:[%s17207_s1 + $0x7c7] ss:$-220 sm:$0x18] %vm3_vm10, %v2633_v0   ;;  %7532 = vst.msk [vmem:[%s17207_s1 - $0x5f7] ss:$586 sm:$0x60] %vm3_vm10, %v2633_v0   ;;  %v4152_v18 = vsel %vm110_vm4, %v7955_v2, %v4147_v8 }
 0x1df   :  { %v7946_v5 = vld [vmem:[%s17206_s0 + $0x7d] ss:$-21 sm:%s4115_s14]   ;;  %s4173_s30 = smov 48  ;;  %s4209_s25 = smov 3  ;;  %4099 = vrot.lane.b32.xlu1 %v4098_v3, %s8802_s4  ;;  %7580 = vst.msk [vmem:[%s17207_s1 + $0x63c] sm:$0x80] %vm3_vm10, %v2805_v34   ;;  %v2878_v3 = vpop.permute.xlu0 %2877  }
 0x1e0   :  { %v7960_v6 = vld [vmem:[%s17206_s0 + $0x68] ss:$28 sm:%s4165_s10]   ;;  %s4239_s10 = smov 12  ;;  %v7961_v9 = vld [vmem:[%s17206_s0 + $0x37] ss:$28 sm:%s4168_s23]   ;;  %v4118_v14 = vsel %vm105_vm3, %v7946_v5, %v4113_v4  ;;  %s4263_s13 = smov 3 }
 0x1e1   :  { %7550 = vst.msk [vmem:[%s17207_s1 + $0x4e0] ss:$-732 sm:$0x3] %vm3_vm10, %v2706_v7   ;;  %7551 = vst.msk [vmem:[%s17207_s1 + $0x4e0] ss:$-220 sm:$0xc] %vm3_vm10, %v2706_v7   ;;  %v4171_v19 = vsel %vm46_vm0, %v7961_v9, %v7960_v6  ;;  %4080 = vrot.lane.b32.xlu0 %v4079_v10, %s8802_s4 }
 0x1e2   :  { %7552 = vst.msk [vmem:[%s17207_s1 + $0x6e2] ss:$-220 sm:$0x30] %vm3_vm10, %v2706_v7   ;;  %7553 = vst.msk [vmem:[%s17207_s1 - $0xf2a] ss:$806 sm:$0xc0] %vm3_vm10, %v2706_v7  }
 0x1e3   :  { %v7947_v11 = vld [vmem:[%s17206_s0 - $0x78] ss:$28 sm:%s12654_s15]   ;;  %v7980_v12 = vld [vmem:[%s17206_s0 + $0x83] ss:$-70 sm:%s4236_s3]   ;;  %s4212_s3 = smov 12  ;;  %s8803_s6 = smov 42  }
 0x1e4   :  { %v7968_v15 = vld [vmem:[%s17206_s0 + $0xa0] ss:$28 sm:%s12661_s22]   ;;  %v7969_v16 = vld [vmem:[%s17206_s0 + $0x6f] ss:$28 sm:%s4197_s20]   ;;  %v4123_v24 = vsel %vm110_vm4, %v7947_v11, %v4118_v14  ;;  %s4292_s29 = smov 3  ;;  %s4295_s9 = smov 12 }
 0x1e5   :  { %v7981_v17 = vld [vmem:[%s17206_s0 + $0x83] ss:$-21 sm:%s4239_s10]   ;;  %7542 = vst.msk [vmem:[%s17207_s1 + $0xe0] ss:$-220 sm:$0x3] %vm3_vm10, %v2677_v13   ;;  %4153 = vrot.lane.b32.xlu1 %v4152_v18, %s8803_s6  ;;  %v4200_v31 = vsel %vm46_vm0, %v7969_v16, %v7968_v15  ;;  %s4307_s5 = smov 3 }
 0x1e6   :  { %7543 = vst.msk [vmem:[%s17207_s1 + $0x2e0] ss:$-220 sm:$0xc] %vm3_vm10, %v2677_v13   ;;  %7544 = vst.msk [vmem:[%s17207_s1 + $0x4e2] ss:$-220 sm:$0x30] %vm3_vm10, %v2677_v13   ;;  %v4242_v25 = vsel %vm46_vm0, %v7981_v17, %v7980_v12  ;;  %4124 = vrot.lane.b32.xlu0 %v4123_v24, %s8803_s6  ;;  %v2942_v12 = vpop.permute.xlu1 %2941   ;;  %v2925_v17 = vpop.permute.xlu0 %2924  }
 0x1e7   :  { %7545 = vst.msk [vmem:[%s17207_s1 - $0x52a] ss:$294 sm:$0xc0] %vm3_vm10, %v2677_v13   ;;  %v7962_v20 = vld [vmem:[%s17206_s0 + $0x6] ss:$28 sm:%s4173_s30]   ;;  %s4178_s30 = smov 192 }
 0x1e8   :  { %v7972_v21 = vld [vmem:[%s17206_s0 + $0x21] ss:$-21 sm:%s4209_s25]   ;;  %v7973_v23 = vld [vmem:[%s17206_s0 + $0x52] ss:$-21 sm:%s4212_s3]   ;;  %s4266_s3 = smov 12  ;;  %v4176_v28 = vsel %vm105_vm3, %v7962_v20, %v4171_v19  ;;  %s4310_s21 = smov 12 }
 0x1e9   :  { %7563 = vst.msk [vmem:[%s17207_s1 + $0x64c] ss:$294 sm:$0x3] %vm3_vm10, %v2753_v22   ;;  %7564 = vst.msk [vmem:[%s17207_s1 + $0x44e] ss:$292 sm:$0xc] %vm3_vm10, %v2753_v22   ;;  %v4215_v32 = vsel %vm46_vm0, %v7973_v23, %v7972_v21  ;;  %4201 = vrot.lane.b32.xlu1 %v4200_v31, %s8803_s6 }
 0x1ea   :  { %v7982_v26 = vld [vmem:[%s17206_s0 + $0xb4] ss:$-21 sm:$0x70]   ;;  %v7963_v29 = vld [vmem:[%s17206_s0 - $0xf] ss:$28 sm:%s4178_s30]   ;;  %s4338_s10 = smov 48  ;;  %v2967_v31 = vpop.permute.xlu0 %2966  }
 0x1eb   :  { %v7974_v30 = vld [vmem:[%s17206_s0 + $0x83] ss:$-21 sm:$0x70]   ;;  %7557 = vst.msk [vmem:[%s17207_s1 + $0x404] ss:$292 sm:$0x3] %vm3_vm10, %v2734_v27   ;;  %v4246_v35 = vsel %vm50_vm1, %v7982_v26, %v4242_v25  ;;  %v4181_v38 = vsel %vm110_vm4, %v7963_v29, %v4176_v28  ;;  %v2990_v25 = vpop.permute.xlu1 %2989  }
 0x1ec   :  { %7558 = vst.msk [vmem:[%s17207_s1 + $0x200] ss:$294 sm:$0xc] %vm3_vm10, %v2734_v27   ;;  %7559 = vst.msk [vmem:[%s17207_s1 + $0x6] ss:$292 sm:$0x30] %vm3_vm10, %v2734_v27   ;;  %v4219_v40 = vsel %vm50_vm1, %v7974_v30, %v4215_v32  ;;  %4182 = vrot.lane.b32.xlu0 %v4181_v38, %s8803_s6 }
 0x1ed   :  { %7560 = vst.msk [vmem:[%s17207_s1 - $0xd4] ss:$292 sm:$0xc0] %vm3_vm10, %v2734_v27   ;;  %v7988_v33 = vld [vmem:[%s17206_s0 + $0x6e] ss:$28 sm:%s4263_s13]   ;;  %s4271_s13 = smov 48 }
 0x1ee   :  { %v7983_v36 = vld [vmem:[%s17206_s0 + $0xad] sm:$0x80]   ;;  %v7989_v37 = vld [vmem:[%s17206_s0 + $0x3d] ss:$28 sm:%s4266_s3]   ;;  %v7975_v41 = vld [vmem:[%s17206_s0 + $0x4b] sm:$0x80]  }
 0x1ef   :  { %7577 = vst.msk [vmem:[%s17207_s1 + $0x443] ss:$-220 sm:$0x7] %vm3_vm10, %v2805_v34   ;;  %7578 = vst.msk [vmem:[%s17207_s1 + $0x645] ss:$-220 sm:$0x18] %vm3_vm10, %v2805_v34   ;;  %v4250_v44 = vsel %vm54_vm2, %v7983_v36, %v4246_v35  ;;  %v4269_v45 = vsel %vm46_vm0, %v7989_v37, %v7988_v33  ;;  %v4223_v51 = vsel %vm54_vm2, %v7975_v41, %v4219_v40  ;;  %v3034_v41 = vpop.permute.xlu1 %3033  }
 0x1f0   :  { %7579 = vst.msk [vmem:[%s17207_s1 + $0x845] ss:$-220 sm:$0x60] %vm3_vm10, %v2805_v34   ;;  %v7996_v42 = vld [vmem:[%s17206_s0 + $0xa6] ss:$28 sm:%s4292_s29]   ;;  %s4343_s26 = smov 192 }
 0x1f1   :  { %v7997_v43 = vld [vmem:[%s17206_s0 + $0xd7] ss:$-21 sm:%s4295_s9]   ;;  %7569 = vst.msk [vmem:[%s17207_s1 + $0x43] ss:$292 sm:$0x3] %vm3_vm10, %v2778_v39   ;;  %s4315_s3 = smov 48 }
 0x1f2   :  { %7570 = vst.msk [vmem:[%s17207_s1 - $0x1c1] ss:$294 sm:$0xc] %vm3_vm10, %v2778_v39   ;;  %7571 = vst.msk [vmem:[%s17207_s1 - $0x3bb] ss:$292 sm:$0x30] %vm3_vm10, %v2778_v39   ;;  %v4298_v57 = vsel %vm46_vm0, %v7997_v43, %v7996_v42 }
 0x1f3   :  { %7572 = vst.msk [vmem:[%s17207_s1 - $0x5c7] ss:$294 sm:$0xc0] %vm3_vm10, %v2778_v39   ;;  %v7990_v46 = vld [vmem:[%s17206_s0 + $0xd0] ss:$-21 sm:%s4271_s13]   ;;  %s4276_s13 = smov 192 }
 0x1f4   :  { %v8008_v47 = vld [vmem:[%s17206_s0 + $0x74] ss:$-21 sm:$0xf]   ;;  %v8001_v50 = vld [vmem:[%s17206_s0 + $0x43] ss:$-21 sm:%s4310_s21]   ;;  %s12865_s17 = smov 192  ;;  %v4274_v54 = vsel %vm105_vm3, %v7990_v46, %v4269_v45  ;;  %v3015_v46 = vpop.permute.xlu0 %3014  }
 0x1f5   :  { %v8000_v48 = vld [vmem:[%s17206_s0 + $0x12] ss:$28 sm:%s4307_s5]   ;;  %7591 = vst.msk [vmem:[%s17207_s1 + $0x7b1] ss:$-220 sm:$0x3] %vm3_vm10, %v2853_v49   ;;  %s12879_s24 = smov 3 }
 0x1f6   :  { %7592 = vst.msk [vmem:[%s17207_s1 + $0x9b1] ss:$-220 sm:$0xc] %vm3_vm10, %v2853_v49   ;;  %v8009_v52 = vld [vmem:[%s17206_s0 + $0xa5] ss:$-21 sm:%s4338_s10]   ;;  %s4361_s14 = smov 24  ;;  %v4313_v59 = vsel %vm46_vm0, %v8001_v50, %v8000_v48 }
 0x1f7   :  { %s8804_s10 = smov 40   ;;  %v7991_v55 = vld [vmem:[%s17206_s0 - $0x9] ss:$28 sm:%s4276_s13]   ;;  %s4430_s18 = smov 3  ;;  %v4341_v62 = vsel %vm105_vm3, %v8009_v52, %v8008_v47  ;;  %7618 = vst.msk [vmem:[%s17207_s1 + $0x759] sm:$0x8] %vm3_vm10, %v2942_v12  }
 0x1f8   :  { %4251 = vrot.lane.b32.xlu1 %v4250_v44, %s8804_s10  ;;  %v8015_v56 = vld [vmem:[%s17206_s0 + $0x90] ss:$-21 sm:$0x7]   ;;  %7585 = vst.msk [vmem:[%s17207_s1 + $0x567] ss:$-220 sm:$0x3] %vm3_vm10, %v2834_v53   ;;  %4224 = vrot.lane.b32.xlu0 %v4223_v51, %s8804_s10  ;;  %v4279_v0 = vsel %vm110_vm4, %v7991_v55, %v4274_v54 }
 0x1f9   :  { %7586 = vst.msk [vmem:[%s17207_s1 + $0x769] ss:$-220 sm:$0xc] %vm3_vm10, %v2834_v53   ;;  %7587 = vst.msk [vmem:[%s17207_s1 + $0x969] ss:$-220 sm:$0x30] %vm3_vm10, %v2834_v53  }
 0x1fa   :  { %7588 = vst.msk [vmem:[%s17207_s1 + $0xc8f] ss:$-220 sm:$0xc0] %vm3_vm10, %v2834_v53   ;;  %v8010_v58 = vld [vmem:[%s17206_s0 - $0x176] ss:$77 sm:%s4343_s26]   ;;  %s4389_s5 = smov 12  ;;  %v3088_v53 = vpop.permute.xlu1 %3087  }
 0x1fb   :  { %v8002_v60 = vld [vmem:[%s17206_s0 + $0x74] ss:$-21 sm:%s4315_s3]   ;;  %s4433_s3 = smov 12  ;;  %s4366_s16 = smov 96  ;;  %v4346_v8 = vsel %vm110_vm4, %v8010_v58, %v4341_v62  ;;  %v8018_v19 = vld [vmem:[%s17206_s0 + $0xa5] sm:$0x80]  }
 0x1fc   :  { %v8016_v63 = vld [vmem:[%s17206_s0 + $0xc1] ss:$-21 sm:%s4361_s14]   ;;  %s4401_s19 = smov 3  ;;  %7604 = vst.msk [vmem:[%s17207_s1 + $0x482] ss:$-220 sm:$0x7] %vm3_vm10, %v2900_v61   ;;  %4299 = vrot.lane.b32.xlu1 %v4298_v57, %s8804_s10  ;;  %v4318_v4 = vsel %vm105_vm3, %v8002_v60, %v4313_v59  ;;  %v3059_v59 = vpop.permute.xlu0 %3058  }
 0x1fd   :  { %7605 = vst.msk [vmem:[%s17207_s1 + $0x684] ss:$-220 sm:$0x38] %vm3_vm10, %v2900_v61   ;;  %7606 = vst.msk [vmem:[%s17207_s1 - $0xf88] ss:$806 sm:$0xc0] %vm3_vm10, %v2900_v61   ;;  %v4364_v9 = vsel %vm241_vm7, %v8016_v63, %v8015_v56  ;;  %4280 = vrot.lane.b32.xlu0 %v4279_v0, %s8804_s10 }
 0x1fe   :  { %v8003_v1 = vld [vmem:[%s17206_s0 - $0x81] ss:$28 sm:%s12865_s17]   ;;  %v8035_v2 = vld [vmem:[%s17206_s0 + $0x7a] ss:$-70 sm:%s4430_s18]   ;;  %s4404_s18 = smov 12  ;;  %s4438_s7 = smov 48 }
 0x1ff   :  { %v8023_v5 = vld [vmem:[%s17206_s0 + $0x97] ss:$28 sm:%s12879_s24]   ;;  %v8024_v6 = vld [vmem:[%s17206_s0 + $0x66] ss:$28 sm:%s4389_s5]   ;;  %s4409_s12 = smov 48  ;;  %s4459_s29 = smov 3  ;;  %v4323_v14 = vsel %vm110_vm4, %v8003_v1, %v4318_v4  ;;  %v3136_v4 = vpop.permute.xlu1 %3135  }
 0x200   :  { %v8036_v7 = vld [vmem:[%s17206_s0 + $0x7a] ss:$-21 sm:%s4433_s3]   ;;  %7597 = vst.msk [vmem:[%s17207_s1 + $0x82] ss:$292 sm:$0x3] %vm3_vm10, %v2878_v3   ;;  %s12991_s4 = smov 192  ;;  %v4392_v21 = vsel %vm46_vm0, %v8024_v6, %v8023_v5 }
 0x201   :  { %7598 = vst.msk [vmem:[%s17207_s1 - $0x182] ss:$294 sm:$0xc] %vm3_vm10, %v2878_v3   ;;  %7599 = vst.msk [vmem:[%s17207_s1 + $0x484] ss:$-220 sm:$0x30] %vm3_vm10, %v2878_v3   ;;  %v4436_v15 = vsel %vm46_vm0, %v8036_v7, %v8035_v2 }
 0x202   :  { %7600 = vst.msk [vmem:[%s17207_s1 - $0x588] ss:$294 sm:$0xc0] %vm3_vm10, %v2878_v3   ;;  %v8017_v10 = vld [vmem:[%s17206_s0 - $0x8f] ss:$56 sm:%s4366_s16]   ;;  %s4443_s16 = smov 192 }
 0x203   :  { %v8027_v11 = vld [vmem:[%s17206_s0 + $0x18] ss:$-21 sm:%s4401_s19]   ;;  %v8028_v13 = vld [vmem:[%s17206_s0 + $0x49] ss:$-21 sm:%s4404_s18]   ;;  %s4462_s24 = smov 12  ;;  %s8805_s25 = smov 38   ;;  %v4369_v18 = vsel %vm148_vm6, %v8017_v10, %v4364_v9  ;;  %v3117_v9 = vpop.permute.xlu0 %3116  }
 0x204   :  { %7617 = vst.msk [vmem:[%s17207_s1 + $0x7f0] ss:$-220 sm:$0x7] %vm3_vm10, %v2942_v12   ;;  %v8037_v16 = vld [vmem:[%s17206_s0 + $0xab] ss:$-21 sm:%s4438_s7]   ;;  %4347 = vrot.lane.b32.xlu1 %v4346_v8, %s8805_s25  ;;  %s4488_s28 = smov 3  ;;  %v4407_v22 = vsel %vm46_vm0, %v8028_v13, %v8027_v11  ;;  %v4373_v28 = vsel %vm54_vm2, %v8018_v19, %v4369_v18 }
 0x205   :  { %v8038_v20 = vld [vmem:[%s17206_s0 - $0x170] ss:$77 sm:%s4443_s16]   ;;  %s4530_s26 = smov 3  ;;  %7611 = vst.msk [vmem:[%s17207_s1 + $0x5a6] ss:$-220 sm:$0x3] %vm3_vm10, %v2925_v17   ;;  %4324 = vrot.lane.b32.xlu0 %v4323_v14, %s8805_s25  ;;  %v4441_v26 = vsel %vm105_vm3, %v8037_v16, %v4436_v15  ;;  %v3183_v16 = vpop.permute.xlu1 %3182  }
 0x206   :  { %7612 = vst.msk [vmem:[%s17207_s1 + $0x7a8] ss:$-220 sm:$0x1c] %vm3_vm10, %v2925_v17   ;;  %7613 = vst.msk [vmem:[%s17207_s1 - $0x616] ss:$586 sm:$0x60] %vm3_vm10, %v2925_v17   ;;  %v4446_v36 = vsel %vm110_vm4, %v8038_v20, %v4441_v26 }
 0x207   :  { %7614 = vst.msk [vmem:[%s17207_s1 + $0x6c3] sm:$0x80] %vm3_vm10, %v2925_v17   ;;  %v8029_v23 = vld [vmem:[%s17206_s0 + $0x7a] ss:$-21 sm:%s4409_s12]   ;;  %s4491_s10 = smov 12  ;;  %s4467_s17 = smov 48 }
 0x208   :  { %v8043_v24 = vld [vmem:[%s17206_s0 + $0x65] ss:$28 sm:%s4459_s29]   ;;  %s4533_s29 = smov 12  ;;  %v8044_v27 = vld [vmem:[%s17206_s0 + $0x34] ss:$28 sm:%s4462_s24]   ;;  %s4503_s2 = smov 3  ;;  %v4412_v32 = vsel %vm105_vm3, %v8029_v23, %v4407_v22  ;;  %v3161_v22 = vpop.permute.xlu0 %3160  }
 0x209   :  { %7630 = vst.msk [vmem:[%s17207_s1 + $0x4c1] ss:$-220 sm:$0xf] %vm3_vm10, %v2990_v25   ;;  %7631 = vst.msk [vmem:[%s17207_s1 + $0x6c3] ss:$-220 sm:$0x30] %vm3_vm10, %v2990_v25   ;;  %4393 = vrot.lane.b32.xlu1 %v4392_v21, %s8805_s25  ;;  %v4465_v37 = vsel %vm46_vm0, %v8044_v27, %v8043_v24  ;;  %4374 = vrot.lane.b32.xlu0 %v4373_v28, %s8805_s25 }
 0x20a   :  { %7632 = vst.msk [vmem:[%s17207_s1 - $0xf49] ss:$806 sm:$0xc0] %vm3_vm10, %v2990_v25   ;;  %v8030_v29 = vld [vmem:[%s17206_s0 - $0x7b] ss:$28 sm:%s12991_s4]   ;;  %s4472_s11 = smov 192 }
 0x20b   :  { %v8063_v30 = vld [vmem:[%s17206_s0 + $0x80] ss:$-70 sm:%s4530_s26]   ;;  %s4506_s26 = smov 12  ;;  %v8051_v33 = vld [vmem:[%s17206_s0 + $0x9d] ss:$28 sm:%s4488_s28]   ;;  %s13094_s15 = smov 12  ;;  %v4417_v43 = vsel %vm110_vm4, %v8030_v29, %v4412_v32  ;;  %v3225_v32 = vpop.permute.xlu1 %3224  }
 0x20c   :  { %v8052_v34 = vld [vmem:[%s17206_s0 + $0x6c] ss:$28 sm:%s4491_s10]   ;;  %7623 = vst.msk [vmem:[%s17207_s1 + $0xc1] ss:$292 sm:$0x3] %vm3_vm10, %v2967_v31   ;;  %s4557_s6 = smov 3 }
 0x20d   :  { %v8064_v35 = vld [vmem:[%s17206_s0 + $0x80] ss:$-21 sm:%s4533_s29]   ;;  %7624 = vst.msk [vmem:[%s17207_s1 + $0x2c1] ss:$-220 sm:$0xc] %vm3_vm10, %v2967_v31   ;;  %s4560_s21 = smov 12  ;;  %v4494_v49 = vsel %vm46_vm0, %v8052_v34, %v8051_v33 }
 0x20e   :  { %7625 = vst.msk [vmem:[%s17207_s1 + $0x4c3] ss:$-220 sm:$0x30] %vm3_vm10, %v2967_v31   ;;  %7626 = vst.msk [vmem:[%s17207_s1 - $0x549] ss:$294 sm:$0xc0] %vm3_vm10, %v2967_v31   ;;  %v4536_v44 = vsel %vm46_vm0, %v8064_v35, %v8063_v30 }
 0x20f   :  { %v8045_v38 = vld [vmem:[%s17206_s0 + $0x3] ss:$28 sm:%s4467_s17]   ;;  %7643 = vst.msk [vmem:[%s17207_s1 + $0x62d] ss:$294 sm:$0x3] %vm3_vm10, %v3034_v41   ;;  %s13109_s20 = smov 48 }
 0x210   :  { %v8065_v39 = vld [vmem:[%s17206_s0 + $0xb1] ss:$-21 sm:$0x70]   ;;  %v8055_v40 = vld [vmem:[%s17206_s0 + $0x1e] ss:$-21 sm:%s4503_s2]   ;;  %s13088_s2 = smov 3  ;;  %v4470_v47 = vsel %vm105_vm3, %v8045_v38, %v4465_v37  ;;  %v3208_v38 = vpop.permute.xlu0 %3207  }
 0x211   :  { %v8056_v42 = vld [vmem:[%s17206_s0 + $0x4f] ss:$-21 sm:%s4506_s26]   ;;  %7644 = vst.msk [vmem:[%s17207_s1 + $0x42f] ss:$292 sm:$0xc] %vm3_vm10, %v3034_v41   ;;  %s8806_s16 = smov 36   ;;  %v4540_v54 = vsel %vm50_vm1, %v8065_v39, %v4536_v44 }
 0x212   :  { %v8057_v45 = vld [vmem:[%s17206_s0 + $0x80] ss:$-21 sm:$0x70]   ;;  %4447 = vrot.lane.b32.xlu1 %v4446_v36, %s8806_s16  ;;  %7637 = vst.msk [vmem:[%s17207_s1 + $0x5e5] ss:$-220 sm:$0x7] %vm3_vm10, %v3015_v46   ;;  %v4509_v51 = vsel %vm46_vm0, %v8056_v42, %v8055_v40  ;;  %4418 = vrot.lane.b32.xlu0 %v4417_v43, %s8806_s16 }
 0x213   :  { %v8046_v48 = vld [vmem:[%s17206_s0 - $0x12] ss:$28 sm:%s4472_s11]   ;;  %s13116_s11 = smov 192  ;;  %7638 = vst.msk [vmem:[%s17207_s1 + $0x7e7] ss:$-220 sm:$0x18] %vm3_vm10, %v3015_v46   ;;  %v4513_v60 = vsel %vm50_vm1, %v8057_v45, %v4509_v51  ;;  %v3273_v45 = vpop.permute.xlu1 %3272  }
 0x214   :  { %7639 = vst.msk [vmem:[%s17207_s1 - $0x5d7] ss:$586 sm:$0x60] %vm3_vm10, %v3015_v46   ;;  %7640 = vst.msk [vmem:[%s17207_s1 + $0x702] sm:$0x80] %vm3_vm10, %v3015_v46   ;;  %s4628_s25 = smov 3  ;;  %v4475_v57 = vsel %vm110_vm4, %v8046_v48, %v4470_v47  ;;  %v3250_v51 = vpop.permute.xlu0 %3249  }
 0x215   :  { %v8066_v50 = vld [vmem:[%s17206_s0 + $0xaa] sm:$0x80]   ;;  %v8071_v52 = vld [vmem:[%s17206_s0 + $0x6b] ss:$28 sm:%s4557_s6]   ;;  %s13142_s7 = smov 96  ;;  %s13152_s3 = smov 3 }
 0x216   :  { %v8058_v55 = vld [vmem:[%s17206_s0 + $0x48] sm:$0x80]   ;;  %v8072_v56 = vld [vmem:[%s17206_s0 + $0x3a] ss:$28 sm:%s4560_s21]   ;;  %s13154_s22 = smov 96  ;;  %s13176_s18 = smov 3  ;;  %4495 = vrot.lane.b32.xlu1 %v4494_v49, %s8806_s16  ;;  %v4544_v0 = vsel %vm54_vm2, %v8066_v50, %v4540_v54 }
 0x217   :  { %7657 = vst.msk [vmem:[%s17207_s1 + $0x500] ss:$-732 sm:$0x3] %vm3_vm10, %v3088_v53   ;;  %7658 = vst.msk [vmem:[%s17207_s1 + $0x500] ss:$-220 sm:$0xc] %vm3_vm10, %v3088_v53   ;;  %v4563_v2 = vsel %vm46_vm0, %v8072_v56, %v8071_v52  ;;  %4476 = vrot.lane.b32.xlu0 %v4475_v57, %s8806_s16  ;;  %v4517_v6 = vsel %vm54_vm2, %v8058_v55, %v4513_v60  ;;  %v3319_v60 = vpop.permute.xlu1 %3318  }
 0x218   :  { %7659 = vst.msk [vmem:[%s17207_s1 + $0x702] ss:$-220 sm:$0x30] %vm3_vm10, %v3088_v53   ;;  %7660 = vst.msk [vmem:[%s17207_s1 - $0xf0a] ss:$806 sm:$0xc0] %vm3_vm10, %v3088_v53  }
 0x219   :  { %v8092_v58 = vld [vmem:[%s17206_s0 + $0x86] ss:$-21 sm:$0x1c]   ;;  %s13178_s23 = smov 12  ;;  %s13192_s6 = smov 3 }
 0x21a   :  { %v8079_v61 = vld [vmem:[%s17206_s0 + $0xa3] ss:$28 sm:%s13088_s2]   ;;  %v8091_v62 = vld [vmem:[%s17206_s0 + $0x86] ss:$-70 sm:%s4628_s25]   ;;  %s13222_s9 = smov 48  ;;  %s13247_s4 = smov 12 }
 0x21b   :  { %v8084_v63 = vld [vmem:[%s17206_s0 + $0x55] ss:$-21 sm:$0x1c]   ;;  %7649 = vst.msk [vmem:[%s17207_s1 + $0x100] ss:$-220 sm:$0x3] %vm3_vm10, %v3059_v59   ;;  %v4633_v7 = vsel %vm143_vm5, %v8092_v58, %v8091_v62 }
 0x21c   :  { %7650 = vst.msk [vmem:[%s17207_s1 + $0x300] ss:$-220 sm:$0xc] %vm3_vm10, %v3059_v59   ;;  %7651 = vst.msk [vmem:[%s17207_s1 + $0x502] ss:$-220 sm:$0x30] %vm3_vm10, %v3059_v59  }
 0x21d   :  { %7652 = vst.msk [vmem:[%s17207_s1 - $0x50a] ss:$294 sm:$0xc0] %vm3_vm10, %v3059_v59   ;;  %v8080_v1 = vld [vmem:[%s17206_s0 + $0xd4] ss:$-21 sm:%s13094_s15]   ;;  %s8807_s5 = smov 34  }
 0x21e   :  { %v8073_v3 = vld [vmem:[%s17206_s0 + $0xcd] ss:$-21 sm:%s13109_s20]   ;;  %s13220_s20 = smov 12  ;;  %7671 = vst.msk [vmem:[%s17207_s1 + $0x66c] ss:$294 sm:$0x3] %vm3_vm10, %v3136_v4   ;;  %4545 = vrot.lane.b32.xlu1 %v4544_v0, %s8807_s5  ;;  %v4592_v12 = vsel %vm46_vm0, %v8080_v1, %v8079_v61 }
 0x21f   :  { %v8083_v5 = vld [vmem:[%s17206_s0 + $0x24] ss:$-21 sm:%s13152_s3]   ;;  %s13229_s3 = smov 192  ;;  %7672 = vst.msk [vmem:[%s17207_s1 + $0x46e] ss:$292 sm:$0xc] %vm3_vm10, %v3136_v4   ;;  %v4568_v10 = vsel %vm105_vm3, %v8073_v3, %v4563_v2  ;;  %4518 = vrot.lane.b32.xlu0 %v4517_v6, %s8807_s5  ;;  %v3300_v2 = vpop.permute.xlu0 %3299  }
 0x220   :  { %v8093_v8 = vld [vmem:[%s17206_s0 + $0xb7] ss:$-21 sm:%s13142_s7]   ;;  %s13245_s7 = smov 3  ;;  %s13257_s21 = smov 192  ;;  %v4606_v13 = vsel %vm143_vm5, %v8084_v63, %v8083_v5  ;;  %v8085_v14 = vld [vmem:[%s17206_s0 + $0x86] ss:$-21 sm:%s13154_s22]  }
 0x221   :  { %v8074_v11 = vld [vmem:[%s17206_s0 - $0xc] ss:$28 sm:%s13116_s11]   ;;  %s13255_s11 = smov 48  ;;  %7665 = vst.msk [vmem:[%s17207_s1 + $0x424] ss:$292 sm:$0x3] %vm3_vm10, %v3117_v9   ;;  %v4638_v17 = vsel %vm148_vm6, %v8093_v8, %v4633_v7  ;;  %v4611_v23 = vsel %vm148_vm6, %v8085_v14, %v4606_v13 }
 0x222   :  { %7666 = vst.msk [vmem:[%s17207_s1 + $0x220] ss:$294 sm:$0xc] %vm3_vm10, %v3117_v9   ;;  %7667 = vst.msk [vmem:[%s17207_s1 + $0x26] ss:$292 sm:$0x30] %vm3_vm10, %v3117_v9   ;;  %v4573_v20 = vsel %vm110_vm4, %v8074_v11, %v4568_v10  ;;  %4593 = vrot.lane.b32.xlu1 %v4592_v12, %s8807_s5 }
 0x223   :  { %7668 = vst.msk [vmem:[%s17207_s1 - $0xb4] ss:$292 sm:$0xc0] %vm3_vm10, %v3117_v9   ;;  %v8099_v15 = vld [vmem:[%s17206_s0 + $0x71] ss:$28 sm:%s13192_s6]   ;;  %s13285_s6 = smov 3  ;;  %4574 = vrot.lane.b32.xlu0 %v4573_v20, %s8807_s5  ;;  %v3373_v9 = vpop.permute.xlu1 %3372  }
 0x224   :  { %s13287_s2 = smov 12  ;;  %v8094_v18 = vld [vmem:[%s17206_s0 + $0xb0] sm:$0x80]   ;;  %v8100_v19 = vld [vmem:[%s17206_s0 + $0xa2] ss:$-21 sm:%s13220_s20]   ;;  %s13298_s20 = smov 48 }
 0x225   :  { %s13300_s28 = smov 192  ;;  %7684 = vst.msk [vmem:[%s17207_s1 + $0x463] ss:$-220 sm:$0x7] %vm3_vm10, %v3183_v16   ;;  %v8119_v21 = vld [vmem:[%s17206_s0 + $0x77] ss:$-70 sm:%s13245_s7]   ;;  %v4642_v28 = vsel %vm54_vm2, %v8094_v18, %v4638_v17  ;;  %v4661_v29 = vsel %vm46_vm0, %v8100_v19, %v8099_v15  ;;  %v3344_v15 = vpop.permute.xlu0 %3343  }
 0x226   :  { %7685 = vst.msk [vmem:[%s17207_s1 + $0x665] ss:$-220 sm:$0x38] %vm3_vm10, %v3183_v16   ;;  %7686 = vst.msk [vmem:[%s17207_s1 - $0xfa7] ss:$806 sm:$0xc0] %vm3_vm10, %v3183_v16  }
 0x227   :  { %s13319_s7 = smov 3  ;;  %s13321_s30 = smov 12  ;;  %v8086_v24 = vld [vmem:[%s17206_s0 + $0x4e] sm:$0x80]   ;;  %v8108_v26 = vld [vmem:[%s17206_s0 + $0xda] ss:$-21 sm:%s13178_s23]  }
 0x228   :  { %v8107_v25 = vld [vmem:[%s17206_s0 + $0xa9] ss:$-21 sm:%s13176_s18]   ;;  %v8120_v27 = vld [vmem:[%s17206_s0 + $0x77] ss:$-21 sm:%s13247_s4]   ;;  %s13340_s4 = smov 3  ;;  %s13342_s26 = smov 12  ;;  %v4615_v34 = vsel %vm54_vm2, %v8086_v24, %v4611_v23 }
 0x229   :  { %7677 = vst.msk [vmem:[%s17207_s1 + $0x63] ss:$292 sm:$0x3] %vm3_vm10, %v3161_v22   ;;  %7678 = vst.msk [vmem:[%s17207_s1 - $0x1a1] ss:$294 sm:$0xc] %vm3_vm10, %v3161_v22   ;;  %v4734_v36 = vsel %vm46_vm0, %v8120_v27, %v8119_v21  ;;  %v4690_v41 = vsel %vm46_vm0, %v8108_v26, %v8107_v25  ;;  %v3420_v25 = vpop.permute.xlu1 %3419  }
 0x22a   :  { %7679 = vst.msk [vmem:[%s17207_s1 + $0x465] ss:$-220 sm:$0x30] %vm3_vm10, %v3161_v22   ;;  %7680 = vst.msk [vmem:[%s17207_s1 - $0x5a7] ss:$294 sm:$0xc0] %vm3_vm10, %v3161_v22  }
 0x22b   :  { %v8101_v30 = vld [vmem:[%s17206_s0 + $0xd3] ss:$-21 sm:%s13222_s9]   ;;  %s13372_s13 = smov 192  ;;  %7697 = vst.msk [vmem:[%s17207_s1 + $0x7d1] ss:$-220 sm:$0x7] %vm3_vm10, %v3225_v32  }
 0x22c   :  { %v8111_v31 = vld [vmem:[%s17206_s0 + $0x15] ss:$-21 sm:%s13285_s6]   ;;  %s13370_s6 = smov 48  ;;  %v8112_v33 = vld [vmem:[%s17206_s0 + $0x46] ss:$-21 sm:%s13287_s2]   ;;  %s13379_s2 = smov 3  ;;  %v4666_v39 = vsel %vm105_vm3, %v8101_v30, %v4661_v29  ;;  %v3401_v30 = vpop.permute.xlu0 %3400  }
 0x22d   :  { %7698 = vst.msk [vmem:[%s17207_s1 + $0x73a] sm:$0x8] %vm3_vm10, %v3225_v32   ;;  %v8102_v35 = vld [vmem:[%s17206_s0 - $0x6] ss:$28 sm:%s13229_s3]   ;;  %s13401_s12 = smov 48  ;;  %s8808_s15 = smov 32   ;;  %v4705_v42 = vsel %vm46_vm0, %v8112_v33, %v8111_v31 }
 0x22e   :  { %v8121_v37 = vld [vmem:[%s17206_s0 + $0xa8] ss:$-21 sm:%s13255_s11]   ;;  %s13399_s11 = smov 12  ;;  %4643 = vrot.lane.b32.xlu1 %v4642_v28, %s8808_s15  ;;  %s13411_s17 = smov 3  ;;  %7694 = vst.msk [vmem:[%s17207_s1 + $0x6a4] sm:$0x80] %vm3_vm10, %v3208_v38   ;;  %v4671_v48 = vsel %vm110_vm4, %v8102_v35, %v4666_v39 }
 0x22f   :  { %v8122_v40 = vld [vmem:[%s17206_s0 - $0x173] ss:$77 sm:%s13257_s21]   ;;  %s13409_s21 = smov 192  ;;  %7691 = vst.msk [vmem:[%s17207_s1 + $0x587] ss:$-220 sm:$0x3] %vm3_vm10, %v3208_v38   ;;  %4616 = vrot.lane.b32.xlu0 %v4615_v34, %s8808_s15  ;;  %v4739_v46 = vsel %vm105_vm3, %v8121_v37, %v4734_v36  ;;  %v3474_v36 = vpop.permute.xlu1 %3473  }
 0x230   :  { %7692 = vst.msk [vmem:[%s17207_s1 + $0x789] ss:$-220 sm:$0x1c] %vm3_vm10, %v3208_v38   ;;  %7693 = vst.msk [vmem:[%s17207_s1 - $0x635] ss:$586 sm:$0x60] %vm3_vm10, %v3208_v38   ;;  %v4744_v56 = vsel %vm110_vm4, %v8122_v40, %v4739_v46 }
 0x231   :  { %v8113_v43 = vld [vmem:[%s17206_s0 + $0x77] ss:$-21 sm:%s13298_s20]   ;;  %s13441_s3 = smov 48  ;;  %s13451_s16 = smov 3  ;;  %7713 = vst.msk [vmem:[%s17207_s1 + $0x69b] sm:$0x80] %vm3_vm10, %v3273_v45  }
 0x232   :  { %v8127_v44 = vld [vmem:[%s17206_s0 + $0x62] ss:$28 sm:%s13340_s4]   ;;  %s13439_s4 = smov 12  ;;  %v8128_v47 = vld [vmem:[%s17206_s0 + $0x31] ss:$28 sm:%s13342_s26]   ;;  %s13449_s26 = smov 192  ;;  %v4710_v52 = vsel %vm105_vm3, %v8113_v43, %v4705_v42  ;;  %v3445_v42 = vpop.permute.xlu0 %3444  }
 0x233   :  { %7710 = vst.msk [vmem:[%s17207_s1 + $0x4a2] ss:$-220 sm:$0x7] %vm3_vm10, %v3273_v45   ;;  %7711 = vst.msk [vmem:[%s17207_s1 - $0x15c] ss:$292 sm:$0x18] %vm3_vm10, %v3273_v45   ;;  %4691 = vrot.lane.b32.xlu1 %v4690_v41, %s8808_s15  ;;  %v4763_v57 = vsel %vm46_vm0, %v8128_v47, %v8127_v44  ;;  %4672 = vrot.lane.b32.xlu0 %v4671_v48, %s8808_s15 }
 0x234   :  { %7712 = vst.msk [vmem:[%s17207_s1 - $0x35c] ss:$292 sm:$0x60] %vm3_vm10, %v3273_v45   ;;  %v8114_v49 = vld [vmem:[%s17206_s0 - $0x7e] ss:$28 sm:%s13300_s28]   ;;  %s13480_s10 = smov 3 }
 0x235   :  { %v8146_v50 = vld [vmem:[%s17206_s0 + $0x7d] ss:$-70 sm:%s13379_s2]   ;;  %s13478_s2 = smov 12  ;;  %v8134_v53 = vld [vmem:[%s17206_s0 + $0x9a] ss:$28 sm:%s13319_s7]   ;;  %s13498_s24 = smov 48  ;;  %v4715_v62 = vsel %vm110_vm4, %v8114_v49, %v4710_v52  ;;  %v3522_v52 = vpop.permute.xlu1 %3521  }
 0x236   :  { %v8135_v54 = vld [vmem:[%s17206_s0 + $0x69] ss:$28 sm:%s13321_s30]   ;;  %7703 = vst.msk [vmem:[%s17207_s1 + $0xa2] ss:$292 sm:$0x3] %vm3_vm10, %v3250_v51   ;;  %s13535_s22 = smov 12 }
 0x237   :  { %v8147_v55 = vld [vmem:[%s17206_s0 + $0x7d] ss:$-21 sm:%s13399_s11]   ;;  %s13496_s11 = smov 12  ;;  %7704 = vst.msk [vmem:[%s17207_s1 + $0x29e] ss:$-218 sm:$0xc] %vm3_vm10, %v3250_v51   ;;  %v4791_v5 = vsel %vm46_vm0, %v8135_v54, %v8134_v53 }
 0x238   :  { %7705 = vst.msk [vmem:[%s17207_s1 + $0x4a4] ss:$-220 sm:$0x30] %vm3_vm10, %v3250_v51   ;;  %7706 = vst.msk [vmem:[%s17207_s1 - $0x568] ss:$294 sm:$0xc0] %vm3_vm10, %v3250_v51   ;;  %v4835_v0 = vsel %vm46_vm0, %v8147_v55, %v8146_v50 }
 0x239   :  { %v4765_v58 = vld [vmem:[%s17206_s0] ss:$28 sm:%s13370_s6]   ;;  %7724 = vst.msk [vmem:[%s17207_s1 + $0x610] ss:$292 sm:$0x3] %vm3_vm10, %v3319_v60   ;;  %s13557_s14 = smov 12 }
 0x23a   :  { %v8138_v59 = vld [vmem:[%s17206_s0 + $0x1b] ss:$-21 sm:%s13411_s17]   ;;  %s13526_s17 = smov 192  ;;  %v8139_v61 = vld [vmem:[%s17206_s0 + $0x4c] ss:$-21 sm:%s13439_s4]   ;;  %s13533_s4 = smov 3  ;;  %v4767_v3 = vsel %vm105_vm3, %v4765_v58, %v4763_v57  ;;  %v3503_v57 = vpop.permute.xlu0 %3502  }
 0x23b   :  { %7725 = vst.msk [vmem:[%s17207_s1 + $0x410] ss:$292 sm:$0xc] %vm3_vm10, %v3319_v60   ;;  %v8129_v63 = vld [vmem:[%s17206_s0 - $0x15] ss:$28 sm:%s13372_s13]   ;;  %s8809_s8 = smov 30   ;;  %v4806_v6 = vsel %vm46_vm0, %v8139_v61, %v8138_v59 }
 0x23c   :  { %v8148_v1 = vld [vmem:[%s17206_s0 + $0xae] ss:$-21 sm:%s13401_s12]   ;;  %s13555_s12 = smov 3  ;;  %4745 = vrot.lane.b32.xlu1 %v4744_v56, %s8809_s8  ;;  %s13567_s19 = smov 12  ;;  %4716 = vrot.lane.b32.xlu0 %v4715_v62, %s8809_s8  ;;  %v4772_v12 = vsel %vm110_vm4, %v8129_v63, %v4767_v3 }
 0x23d   :  { %v8149_v4 = vld [vmem:[%s17206_s0 - $0x16d] ss:$77 sm:%s13409_s21]   ;;  %s13565_s21 = smov 3  ;;  %7718 = vst.msk [vmem:[%s17207_s1 + $0x5c6] ss:$-220 sm:$0x3] %vm3_vm10, %v3300_v2   ;;  %v4840_v10 = vsel %vm105_vm3, %v8148_v1, %v4835_v0  ;;  %v3569_v0 = vpop.permute.xlu1 %3568  }
 0x23e   :  { %7719 = vst.msk [vmem:[%s17207_s1 + $0x1c8] ss:$292 sm:$0xc] %vm3_vm10, %v3300_v2   ;;  %7720 = vst.msk [vmem:[%s17207_s1 - $0x38] ss:$292 sm:$0x30] %vm3_vm10, %v3300_v2   ;;  %v4845_v20 = vsel %vm110_vm4, %v8149_v4, %v4840_v10 }
 0x23f   :  { %7721 = vst.msk [vmem:[%s17207_s1 + $0xcee] ss:$-220 sm:$0xc0] %vm3_vm10, %v3300_v2   ;;  %v8140_v7 = vld [vmem:[%s17206_s0 + $0x7d] ss:$-21 sm:%s13441_s3]   ;;  %s13597_s25 = smov 12 }
 0x240   :  { %v8154_v8 = vld [vmem:[%s17206_s0 + $0x68] ss:$28 sm:%s13480_s10]   ;;  %s13595_s10 = smov 3  ;;  %v8155_v11 = vld [vmem:[%s17206_s0 + $0x37] ss:$28 sm:%s13496_s11]   ;;  %s13605_s11 = smov 48  ;;  %v4811_v16 = vsel %vm105_vm3, %v8140_v7, %v4806_v6  ;;  %v3547_v6 = vpop.permute.xlu0 %3546  }
 0x241   :  { %s13607_s6 = smov 192  ;;  %7738 = vst.msk [vmem:[%s17207_s1 + $0x4e1] ss:$-732 sm:$0x3] %vm3_vm10, %v3373_v9   ;;  %v8141_v13 = vld [vmem:[%s17206_s0 - $0x78] ss:$28 sm:%s13449_s26]   ;;  %4792 = vrot.lane.b32.xlu1 %v4791_v5, %s8809_s8  ;;  %v4864_v21 = vsel %vm46_vm0, %v8155_v11, %v8154_v8 }
 0x242   :  { %7739 = vst.msk [vmem:[%s17207_s1 + $0x4e1] ss:$-220 sm:$0xc] %vm3_vm10, %v3373_v9   ;;  %7740 = vst.msk [vmem:[%s17207_s1 + $0x6e3] ss:$-220 sm:$0x30] %vm3_vm10, %v3373_v9   ;;  %4773 = vrot.lane.b32.xlu0 %v4772_v12, %s8809_s8  ;;  %v4816_v27 = vsel %vm110_vm4, %v8141_v13, %v4811_v16  ;;  %v3611_v16 = vpop.permute.xlu1 %3610  }
 0x243   :  { %7741 = vst.msk [vmem:[%s17207_s1 - $0xf29] ss:$806 sm:$0xc0] %vm3_vm10, %v3373_v9   ;;  %v8174_v14 = vld [vmem:[%s17206_s0 + $0x83] ss:$-70 sm:%s13533_s4]   ;;  %s13634_s4 = smov 3 }
 0x244   :  { %v8162_v17 = vld [vmem:[%s17206_s0 + $0xa0] ss:$28 sm:%s13451_s16]   ;;  %v8163_v18 = vld [vmem:[%s17206_s0 + $0x6f] ss:$28 sm:%s13478_s2]   ;;  %s13652_s7 = smov 3  ;;  %s13685_s2 = smov 3 }
 0x245   :  { %v8175_v19 = vld [vmem:[%s17206_s0 + $0x83] ss:$-21 sm:%s13535_s22]   ;;  %s13650_s22 = smov 96  ;;  %7730 = vst.msk [vmem:[%s17207_s1 + $0xe1] ss:$-220 sm:$0x3] %vm3_vm10, %v3344_v15   ;;  %v4893_v33 = vsel %vm46_vm0, %v8163_v18, %v8162_v17 }
 0x246   :  { %7731 = vst.msk [vmem:[%s17207_s1 + $0x2e1] ss:$-220 sm:$0xc] %vm3_vm10, %v3344_v15   ;;  %7732 = vst.msk [vmem:[%s17207_s1 + $0x4e3] ss:$-220 sm:$0x30] %vm3_vm10, %v3344_v15   ;;  %v4935_v28 = vsel %vm46_vm0, %v8175_v19, %v8174_v14 }
 0x247   :  { %7733 = vst.msk [vmem:[%s17207_s1 - $0x529] ss:$294 sm:$0xc0] %vm3_vm10, %v3344_v15   ;;  %v8156_v22 = vld [vmem:[%s17206_s0 + $0x6] ss:$28 sm:%s13498_s24]   ;;  %s13694_s30 = smov 3 }
 0x248   :  { %v8176_v23 = vld [vmem:[%s17206_s0 + $0xb4] ss:$-21 sm:$0x70]   ;;  %v8166_v24 = vld [vmem:[%s17206_s0 + $0x21] ss:$-21 sm:%s13555_s12]   ;;  %s13683_s12 = smov 96  ;;  %v4869_v31 = vsel %vm105_vm3, %v8156_v22, %v4864_v21  ;;  %v3594_v22 = vpop.permute.xlu0 %3593  }
 0x249   :  { %v8167_v26 = vld [vmem:[%s17206_s0 + $0x52] ss:$-21 sm:%s13557_s14]   ;;  %s13692_s14 = smov 12  ;;  %7751 = vst.msk [vmem:[%s17207_s1 + $0x64d] ss:$294 sm:$0x3] %vm3_vm10, %v3420_v25   ;;  %v4939_v37 = vsel %vm50_vm1, %v8176_v23, %v4935_v28 }
 0x24a   :  { %7752 = vst.msk [vmem:[%s17207_s1 + $0x44f] ss:$292 sm:$0xc] %vm3_vm10, %v3420_v25   ;;  %v8168_v29 = vld [vmem:[%s17206_s0 + $0x83] ss:$-21 sm:$0x70]   ;;  %v4908_v34 = vsel %vm46_vm0, %v8167_v26, %v8166_v24 }
 0x24b   :  { %s13709_s26 = smov 12  ;;  %s13711_s13 = smov 48  ;;  %v8157_v32 = vld [vmem:[%s17206_s0 - $0xf] ss:$28 sm:%s13526_s17]   ;;  %v8182_v35 = vld [vmem:[%s17206_s0 + $0x6e] ss:$28 sm:%s13595_s10]   ;;  %v4912_v43 = vsel %vm50_vm1, %v8168_v29, %v4908_v34  ;;  %v3659_v29 = vpop.permute.xlu1 %3658  }
 0x24c   :  { %s8810_s28 = smov 28   ;;  %s13719_s17 = smov 192  ;;  %7745 = vst.msk [vmem:[%s17207_s1 + $0x405] ss:$292 sm:$0x3] %vm3_vm10, %v3401_v30   ;;  %v4874_v40 = vsel %vm110_vm4, %v8157_v32, %v4869_v31 }
 0x24d   :  { %4846 = vrot.lane.b32.xlu1 %v4845_v20, %s8810_s28  ;;  %7746 = vst.msk [vmem:[%s17207_s1 + $0x201] ss:$294 sm:$0xc] %vm3_vm10, %v3401_v30   ;;  %7747 = vst.msk [vmem:[%s17207_s1 + $0x7] ss:$292 sm:$0x30] %vm3_vm10, %v3401_v30   ;;  %4817 = vrot.lane.b32.xlu0 %v4816_v27, %s8810_s28 }
 0x24e   :  { %7748 = vst.msk [vmem:[%s17207_s1 - $0xd3] ss:$292 sm:$0xc0] %vm3_vm10, %v3401_v30   ;;  %s13743_s10 = smov 3  ;;  %s13745_s24 = smov 12 }
 0x24f   :  { %v8177_v38 = vld [vmem:[%s17206_s0 + $0xad] sm:$0x80]   ;;  %v8183_v39 = vld [vmem:[%s17206_s0 + $0x3d] ss:$28 sm:%s13597_s25]   ;;  %s13756_s25 = smov 48  ;;  %s13758_s15 = smov 192 }
 0x250   :  { %7765 = vst.msk [vmem:[%s17207_s1 + $0x520] ss:$-732 sm:$0x3] %vm3_vm10, %v3474_v36   ;;  %7766 = vst.msk [vmem:[%s17207_s1 + $0x520] ss:$-220 sm:$0xc] %vm3_vm10, %v3474_v36   ;;  %v4943_v48 = vsel %vm54_vm2, %v8177_v38, %v4939_v37  ;;  %v4962_v50 = vsel %vm46_vm0, %v8183_v39, %v8182_v35  ;;  %v3636_v35 = vpop.permute.xlu0 %3635  }
 0x251   :  { %7767 = vst.msk [vmem:[%s17207_s1 + $0x722] ss:$-220 sm:$0x30] %vm3_vm10, %v3474_v36   ;;  %7768 = vst.msk [vmem:[%s17207_s1 - $0xeea] ss:$806 sm:$0xc0] %vm3_vm10, %v3474_v36   ;;  %4894 = vrot.lane.b32.xlu1 %v4893_v33, %s8810_s28  ;;  %4875 = vrot.lane.b32.xlu0 %v4874_v40, %s8810_s28 }
 0x252   :  { %v8203_v41 = vld [vmem:[%s17206_s0 + $0x89] ss:$-21 sm:$0x1c]   ;;  %s13780_s9 = smov 3  ;;  %s13782_s5 = smov 12 }
 0x253   :  { %v8169_v44 = vld [vmem:[%s17206_s0 + $0x4b] sm:$0x80]   ;;  %v8202_v46 = vld [vmem:[%s17206_s0 + $0x89] ss:$-70 sm:%s13634_s4]   ;;  %s13800_s29 = smov 48  ;;  %s13802_s8 = smov 192 }
 0x254   :  { %v8190_v45 = vld [vmem:[%s17206_s0 + $0xa6] ss:$28 sm:%s13565_s21]   ;;  %7757 = vst.msk [vmem:[%s17207_s1 + $0x120] ss:$-220 sm:$0x3] %vm3_vm10, %v3445_v42   ;;  %s13832_s3 = smov 12  ;;  %v4916_v54 = vsel %vm54_vm2, %v8169_v44, %v4912_v43  ;;  %v5032_v55 = vsel %vm143_vm5, %v8203_v41, %v8202_v46 }
 0x255   :  { %v8195_v47 = vld [vmem:[%s17206_s0 + $0x58] ss:$-21 sm:$0x1c]   ;;  %7758 = vst.msk [vmem:[%s17207_s1 + $0x320] ss:$-220 sm:$0xc] %vm3_vm10, %v3445_v42  }
 0x256   :  { %7759 = vst.msk [vmem:[%s17207_s1 + $0x522] ss:$-220 sm:$0x30] %vm3_vm10, %v3445_v42   ;;  %7760 = vst.msk [vmem:[%s17207_s1 - $0x4ea] ss:$294 sm:$0xc0] %vm3_vm10, %v3445_v42  }
 0x257   :  { %v8191_v49 = vld [vmem:[%s17206_s0 + $0xd7] ss:$-21 sm:%s13567_s19]   ;;  %v8184_v51 = vld [vmem:[%s17206_s0 + $0xd0] ss:$-21 sm:%s13605_s11]   ;;  %s13830_s11 = smov 3  ;;  %s13841_s20 = smov 12 }
 0x258   :  { %v8194_v53 = vld [vmem:[%s17206_s0 + $0x27] ss:$-21 sm:%s13652_s7]   ;;  %s13839_s7 = smov 3  ;;  %7779 = vst.msk [vmem:[%s17207_s1 + $0x68c] ss:$294 sm:$0x3] %vm3_vm10, %v3522_v52   ;;  %v4967_v58 = vsel %vm105_vm3, %v8184_v51, %v4962_v50  ;;  %v4991_v60 = vsel %vm46_vm0, %v8191_v49, %v8190_v45  ;;  %v3705_v45 = vpop.permute.xlu1 %3704   ;;  %v3686_v50 = vpop.permute.xlu0 %3685  }
 0x259   :  { %7780 = vst.msk [vmem:[%s17207_s1 + $0x48e] ss:$292 sm:$0xc] %vm3_vm10, %v3522_v52   ;;  %v8204_v56 = vld [vmem:[%s17206_s0 + $0xba] ss:$-21 sm:%s13650_s22]   ;;  %s13857_s22 = smov 48  ;;  %v5005_v61 = vsel %vm143_vm5, %v8195_v47, %v8194_v53 }
 0x25a   :  { %s13859_s28 = smov 192  ;;  %s8811_s21 = smov 26   ;;  %v8185_v59 = vld [vmem:[%s17206_s0 - $0x9] ss:$28 sm:%s13607_s6]   ;;  %v8210_v63 = vld [vmem:[%s17206_s0 + $0x74] ss:$28 sm:%s13694_s30]   ;;  %v5037_v1 = vsel %vm148_vm6, %v8204_v56, %v5032_v55 }
 0x25b   :  { %4944 = vrot.lane.b32.xlu1 %v4943_v48, %s8811_s21  ;;  %s13867_s6 = smov 3  ;;  %7773 = vst.msk [vmem:[%s17207_s1 + $0x444] ss:$292 sm:$0x3] %vm3_vm10, %v3503_v57   ;;  %v8196_v62 = vld [vmem:[%s17206_s0 + $0x89] ss:$-21 sm:%s13683_s12]   ;;  %v4972_v4 = vsel %vm110_vm4, %v8185_v59, %v4967_v58 }
 0x25c   :  { %7774 = vst.msk [vmem:[%s17207_s1 + $0x240] ss:$294 sm:$0xc] %vm3_vm10, %v3503_v57   ;;  %7775 = vst.msk [vmem:[%s17207_s1 + $0x46] ss:$292 sm:$0x30] %vm3_vm10, %v3503_v57   ;;  %4917 = vrot.lane.b32.xlu0 %v4916_v54, %s8811_s21  ;;  %v5010_v7 = vsel %vm148_vm6, %v8196_v62, %v5005_v61  ;;  %v3759_v56 = vpop.permute.xlu1 %3758   ;;  %v3730_v62 = vpop.permute.xlu0 %3729  }
 0x25d   :  { %7776 = vst.msk [vmem:[%s17207_s1 - $0x94] ss:$292 sm:$0xc0] %vm3_vm10, %v3503_v57   ;;  %s13895_s30 = smov 12  ;;  %s13897_s16 = smov 3 }
 0x25e   :  { %v8205_v2 = vld [vmem:[%s17206_s0 + $0xb3] sm:$0x80]   ;;  %v8211_v3 = vld [vmem:[%s17206_s0 + $0xa5] ss:$-21 sm:%s13709_s26]   ;;  %s13908_s26 = smov 12  ;;  %s13910_s12 = smov 3 }
 0x25f   :  { %7792 = vst.msk [vmem:[%s17207_s1 + $0x483] ss:$-220 sm:$0x7] %vm3_vm10, %v3569_v0   ;;  %7793 = vst.msk [vmem:[%s17207_s1 + $0x685] ss:$-220 sm:$0x38] %vm3_vm10, %v3569_v0   ;;  %4992 = vrot.lane.b32.xlu1 %v4991_v60, %s8811_s21  ;;  %v5041_v12 = vsel %vm54_vm2, %v8205_v2, %v5037_v1  ;;  %v5060_v13 = vsel %vm46_vm0, %v8211_v3, %v8210_v63 }
 0x260   :  { %7794 = vst.msk [vmem:[%s17207_s1 - $0xf87] ss:$806 sm:$0xc0] %vm3_vm10, %v3569_v0   ;;  %v8230_v5 = vld [vmem:[%s17206_s0 + $0x7a] ss:$-70 sm:%s13743_s10]   ;;  %s13929_s10 = smov 12  ;;  %4973 = vrot.lane.b32.xlu0 %v4972_v4, %s8811_s21 }
 0x261   :  { %s13931_s19 = smov 3  ;;  %v8197_v8 = vld [vmem:[%s17206_s0 + $0x51] sm:$0x80]   ;;  %v8219_v10 = vld [vmem:[%s17206_s0 + $0xdd] ss:$-21 sm:%s13692_s14]   ;;  %s13952_s18 = smov 48 }
 0x262   :  { %v8218_v9 = vld [vmem:[%s17206_s0 + $0xac] ss:$-21 sm:%s13685_s2]   ;;  %v8231_v11 = vld [vmem:[%s17206_s0 + $0x7a] ss:$-21 sm:%s13745_s24]   ;;  %s13950_s24 = smov 12  ;;  %s13989_s23 = smov 96  ;;  %v5014_v18 = vsel %vm54_vm2, %v8197_v8, %v5010_v7  ;;  %v3807_v8 = vpop.permute.xlu1 %3806  }
 0x263   :  { %7785 = vst.msk [vmem:[%s17207_s1 + $0x83] ss:$292 sm:$0x3] %vm3_vm10, %v3547_v6   ;;  %7786 = vst.msk [vmem:[%s17207_s1 - $0x181] ss:$294 sm:$0xc] %vm3_vm10, %v3547_v6   ;;  %v5133_v20 = vsel %vm46_vm0, %v8231_v11, %v8230_v5  ;;  %v5089_v25 = vsel %vm46_vm0, %v8219_v10, %v8218_v9 }
 0x264   :  { %7787 = vst.msk [vmem:[%s17207_s1 + $0x485] ss:$-220 sm:$0x30] %vm3_vm10, %v3547_v6   ;;  %7788 = vst.msk [vmem:[%s17207_s1 - $0x587] ss:$294 sm:$0xc0] %vm3_vm10, %v3547_v6  }
 0x265   :  { %v8212_v14 = vld [vmem:[%s17206_s0 + $0xd6] ss:$-21 sm:%s13711_s13]   ;;  %7805 = vst.msk [vmem:[%s17207_s1 + $0x7f1] ss:$-220 sm:$0x7] %vm3_vm10, %v3611_v16   ;;  %s14011_s4 = smov 96 }
 0x266   :  { %v8222_v15 = vld [vmem:[%s17206_s0 + $0x18] ss:$-21 sm:%s13780_s9]   ;;  %s13980_s9 = smov 192  ;;  %v8223_v17 = vld [vmem:[%s17206_s0 + $0x49] ss:$-21 sm:%s13782_s5]   ;;  %s13987_s5 = smov 3  ;;  %v5065_v23 = vsel %vm105_vm3, %v8212_v14, %v5060_v13  ;;  %v3788_v14 = vpop.permute.xlu0 %3787  }
 0x267   :  { %7806 = vst.msk [vmem:[%s17207_s1 + $0x75a] sm:$0x8] %vm3_vm10, %v3611_v16   ;;  %v8213_v19 = vld [vmem:[%s17206_s0 - $0x3] ss:$28 sm:%s13719_s17]   ;;  %s8812_s13 = smov 24   ;;  %s14021_s2 = smov 12  ;;  %v5104_v26 = vsel %vm46_vm0, %v8223_v17, %v8222_v15 }
 0x268   :  { %v8232_v21 = vld [vmem:[%s17206_s0 + $0xab] ss:$-21 sm:%s13756_s25]   ;;  %s14009_s25 = smov 3  ;;  %5042 = vrot.lane.b32.xlu1 %v5041_v12, %s8812_s13  ;;  %7799 = vst.msk [vmem:[%s17207_s1 + $0x5a7] ss:$-220 sm:$0x3] %vm3_vm10, %v3594_v22   ;;  %v5070_v32 = vsel %vm110_vm4, %v8213_v19, %v5065_v23 }
 0x269   :  { %v8233_v24 = vld [vmem:[%s17206_s0 - $0x170] ss:$77 sm:%s13758_s15]   ;;  %s14019_s15 = smov 3  ;;  %7800 = vst.msk [vmem:[%s17207_s1 + $0x7a9] ss:$-220 sm:$0x1c] %vm3_vm10, %v3594_v22   ;;  %5015 = vrot.lane.b32.xlu0 %v5014_v18, %s8812_s13  ;;  %v5138_v30 = vsel %vm105_vm3, %v8232_v21, %v5133_v20  ;;  %v3857_v21 = vpop.permute.xlu1 %3856  }
 0x26a   :  { %7801 = vst.msk [vmem:[%s17207_s1 - $0x615] ss:$586 sm:$0x60] %vm3_vm10, %v3594_v22   ;;  %7802 = vst.msk [vmem:[%s17207_s1 + $0x6c4] sm:$0x80] %vm3_vm10, %v3594_v22   ;;  %s14051_s21 = smov 12  ;;  %v5143_v40 = vsel %vm110_vm4, %v8233_v24, %v5138_v30 }
 0x26b   :  { %v8224_v27 = vld [vmem:[%s17206_s0 + $0x7a] ss:$-21 sm:%s13800_s29]   ;;  %s14061_s29 = smov 192  ;;  %7818 = vst.msk [vmem:[%s17207_s1 + $0x4c2] ss:$-220 sm:$0x7] %vm3_vm10, %v3659_v29  }
 0x26c   :  { %v8238_v28 = vld [vmem:[%s17206_s0 + $0x65] ss:$28 sm:%s13839_s7]   ;;  %s14049_s7 = smov 3  ;;  %v8239_v31 = vld [vmem:[%s17206_s0 + $0x34] ss:$28 sm:%s13841_s20]   ;;  %s14059_s20 = smov 48  ;;  %v5109_v36 = vsel %vm105_vm3, %v8224_v27, %v5104_v26 }
 0x26d   :  { %7819 = vst.msk [vmem:[%s17207_s1 - $0x13c] ss:$292 sm:$0x18] %vm3_vm10, %v3659_v29   ;;  %7820 = vst.msk [vmem:[%s17207_s1 - $0x33c] ss:$292 sm:$0x60] %vm3_vm10, %v3659_v29   ;;  %5090 = vrot.lane.b32.xlu1 %v5089_v25, %s8812_s13  ;;  %v5162_v41 = vsel %vm46_vm0, %v8239_v31, %v8238_v28  ;;  %5071 = vrot.lane.b32.xlu0 %v5070_v32, %s8812_s13 }
 0x26e   :  { %7821 = vst.msk [vmem:[%s17207_s1 + $0x6bb] sm:$0x80] %vm3_vm10, %v3659_v29   ;;  %v8225_v33 = vld [vmem:[%s17206_s0 - $0x7b] ss:$28 sm:%s13802_s8]   ;;  %s14106_s14 = smov 48  ;;  %s14165_s8 = smov 3  ;;  %v3830_v29 = vpop.permute.xlu0 %3829  }
 0x26f   :  { %v8258_v34 = vld [vmem:[%s17206_s0 + $0x80] ss:$-70 sm:%s13867_s6]   ;;  %s14088_s6 = smov 3  ;;  %v8246_v37 = vld [vmem:[%s17206_s0 + $0x9d] ss:$28 sm:%s13830_s11]   ;;  %v5114_v47 = vsel %vm110_vm4, %v8225_v33, %v5109_v36  ;;  %s14163_s11 = smov 12 }
 0x270   :  { %v8247_v38 = vld [vmem:[%s17206_s0 + $0x6c] ss:$28 sm:%s13832_s3]   ;;  %7811 = vst.msk [vmem:[%s17207_s1 + $0xc2] ss:$292 sm:$0x3] %vm3_vm10, %v3636_v35   ;;  %s14139_s3 = smov 24 }
 0x271   :  { %v8259_v39 = vld [vmem:[%s17206_s0 + $0x80] ss:$-21 sm:%s13895_s30]   ;;  %s14104_s30 = smov 12  ;;  %7812 = vst.msk [vmem:[%s17207_s1 + $0x2be] ss:$-218 sm:$0xc] %vm3_vm10, %v3636_v35   ;;  %v5191_v53 = vsel %vm46_vm0, %v8247_v38, %v8246_v37 }
 0x272   :  { %7813 = vst.msk [vmem:[%s17207_s1 + $0x4c4] ss:$-220 sm:$0x30] %vm3_vm10, %v3636_v35   ;;  %7814 = vst.msk [vmem:[%s17207_s1 - $0x548] ss:$294 sm:$0xc0] %vm3_vm10, %v3636_v35   ;;  %v5233_v48 = vsel %vm46_vm0, %v8259_v39, %v8258_v34 }
 0x273   :  { %v8240_v42 = vld [vmem:[%s17206_s0 + $0x3] ss:$28 sm:%s13857_s22]   ;;  %s14148_s22 = smov 3  ;;  %7832 = vst.msk [vmem:[%s17207_s1 + $0x630] ss:$292 sm:$0x3] %vm3_vm10, %v3705_v45  }
 0x274   :  { %v8260_v43 = vld [vmem:[%s17206_s0 + $0xb1] ss:$-21 sm:$0x70]   ;;  %v8250_v44 = vld [vmem:[%s17206_s0 + $0x1e] ss:$-21 sm:%s13897_s16]   ;;  %s14137_s16 = smov 192  ;;  %v5167_v51 = vsel %vm105_vm3, %v8240_v42, %v5162_v41  ;;  %v3905_v41 = vpop.permute.xlu1 %3904  }
 0x275   :  { %v8251_v46 = vld [vmem:[%s17206_s0 + $0x4f] ss:$-21 sm:%s13908_s26]   ;;  %s14146_s26 = smov 96  ;;  %7833 = vst.msk [vmem:[%s17207_s1 + $0x430] ss:$292 sm:$0xc] %vm3_vm10, %v3705_v45   ;;  %v5237_v57 = vsel %vm50_vm1, %v8260_v43, %v5233_v48 }
 0x276   :  { %v8252_v49 = vld [vmem:[%s17206_s0 + $0x80] ss:$-21 sm:$0x70]   ;;  %s17208_s13 = smov 22   ;;  %v5206_v54 = vsel %vm46_vm0, %v8251_v46, %v8250_v44  ;;  %s14199_s17 = smov 12 }
 0x277   :  { %5144 = vrot.lane.b32.xlu1 %v5143_v40, %s17208_s13  ;;  %v8241_v52 = vld [vmem:[%s17206_s0 - $0x12] ss:$28 sm:%s13859_s28]   ;;  %s14173_s28 = smov 12  ;;  %7826 = vst.msk [vmem:[%s17207_s1 + $0x5e6] ss:$-220 sm:$0x3] %vm3_vm10, %v3686_v50   ;;  %v5210_v63 = vsel %vm50_vm1, %v8252_v49, %v5206_v54 }
 0x278   :  { %7827 = vst.msk [vmem:[%s17207_s1 + $0x1e8] ss:$292 sm:$0xc] %vm3_vm10, %v3686_v50   ;;  %7828 = vst.msk [vmem:[%s17207_s1 - $0x18] ss:$292 sm:$0x30] %vm3_vm10, %v3686_v50   ;;  %5115 = vrot.lane.b32.xlu0 %v5114_v47, %s17208_s13  ;;  %v5172_v60 = vsel %vm110_vm4, %v8241_v52, %v5167_v51  ;;  %v3886_v51 = vpop.permute.xlu0 %3885  }
 0x279   :  { %7829 = vst.msk [vmem:[%s17207_s1 + $0xd0e] ss:$-220 sm:$0xc0] %vm3_vm10, %v3686_v50   ;;  %v8266_v55 = vld [vmem:[%s17206_s0 + $0x6b] ss:$28 sm:%s13931_s19]   ;;  %s14197_s19 = smov 3 }
 0x27a   :  { %17212 = sst [smem:[#allocation0_spill]] %s14197_s19  ;;  %v8261_v58 = vld [vmem:[%s17206_s0 + $0xaa] sm:$0x80]   ;;  %v8267_v59 = vld [vmem:[%s17206_s0 + $0x3a] ss:$28 sm:%s13950_s24]   ;;  %s14210_s24 = smov 48 }
 0x27b   :  { %17213 = sst [smem:[#allocation1_spill]] %s14199_s17  ;;  %s14212_s13 = smov 192  ;;  %7846 = vst.msk [vmem:[%s17207_s1 + $0x501] ss:$-732 sm:$0x3] %vm3_vm10, %v3759_v56   ;;  %v5241_v4 = vsel %vm54_vm2, %v8261_v58, %v5237_v57  ;;  %v5260_v6 = vsel %vm46_vm0, %v8267_v59, %v8266_v55 }
 0x27c   :  { %17214 = sst [smem:[#allocation2_spill]] %s14210_s24  ;;  %7847 = vst.msk [vmem:[%s17207_s1 + $0x501] ss:$-220 sm:$0xc] %vm3_vm10, %v3759_v56   ;;  %s14236_s27 = smov 12 }
 0x27d   :  { %17215 = sst [smem:[#allocation3_spill]] %s14212_s13  ;;  %7848 = vst.msk [vmem:[%s17207_s1 + $0x703] ss:$-220 sm:$0x30] %vm3_vm10, %v3759_v56   ;;  %s14234_s13 = smov 3 }
 0x27e   :  { %7849 = vst.msk [vmem:[%s17207_s1 - $0xf09] ss:$806 sm:$0xc0] %vm3_vm10, %v3759_v56   ;;  %v8287_v61 = vld [vmem:[%s17206_s0 + $0x86] ss:$-21 sm:$0x1c]  }
 0x27f   :  { %s17216_s24 = smov 22   ;;  %v8253_v0 = vld [vmem:[%s17206_s0 + $0x48] sm:$0x80]   ;;  %v8286_v2 = vld [vmem:[%s17206_s0 + $0x86] ss:$-70 sm:%s13987_s5]   ;;  %s14256_s19 = smov 192 }
 0x280   :  { %5192 = vrot.lane.b32.xlu1 %v5191_v53, %s17216_s24  ;;  %v8274_v1 = vld [vmem:[%s17206_s0 + $0xa3] ss:$28 sm:%s13910_s12]   ;;  %s14254_s12 = smov 48  ;;  %7838 = vst.msk [vmem:[%s17207_s1 + $0x101] ss:$-220 sm:$0x3] %vm3_vm10, %v3730_v62   ;;  %v5214_v10 = vsel %vm54_vm2, %v8253_v0, %v5210_v63  ;;  %v5330_v12 = vsel %vm143_vm5, %v8287_v61, %v8286_v2  ;;  %v3953_v0 = vpop.permute.xlu1 %3952  }
 0x281   :  { %v8279_v3 = vld [vmem:[%s17206_s0 + $0x55] ss:$-21 sm:$0x1c]   ;;  %7839 = vst.msk [vmem:[%s17207_s1 + $0x301] ss:$-220 sm:$0xc] %vm3_vm10, %v3730_v62   ;;  %5173 = vrot.lane.b32.xlu0 %v5172_v60, %s17216_s24 }
 0x282   :  { %7840 = vst.msk [vmem:[%s17207_s1 + $0x503] ss:$-220 sm:$0x30] %vm3_vm10, %v3730_v62   ;;  %7841 = vst.msk [vmem:[%s17207_s1 - $0x509] ss:$294 sm:$0xc0] %vm3_vm10, %v3730_v62  }
 0x283   :  { %v8275_v5 = vld [vmem:[%s17206_s0 + $0xd4] ss:$-21 sm:%s13929_s10]   ;;  %v8268_v7 = vld [vmem:[%s17206_s0 + $0xcd] ss:$-21 sm:%s13952_s18]   ;;  %s14284_s18 = smov 3  ;;  %s14286_s17 = smov 12 }
 0x284   :  { %v8278_v9 = vld [vmem:[%s17206_s0 + $0x24] ss:$-21 sm:%s14009_s25]   ;;  %s14293_s25 = smov 48  ;;  %s14295_s5 = smov 192  ;;  %v5265_v15 = vsel %vm105_vm3, %v8268_v7, %v5260_v6  ;;  %v5289_v17 = vsel %vm46_vm0, %v8275_v5, %v8274_v1  ;;  %v8289_v23 = vld [vmem:[%s17206_s0 + $0xb0] sm:$0x80]  }
 0x285   :  { %17217 = sst [smem:[#allocation4_spill]] %s14295_s5  ;;  %7860 = vst.msk [vmem:[%s17207_s1 + $0x66d] ss:$294 sm:$0x3] %vm3_vm10, %v3807_v8   ;;  %v8269_v11 = vld [vmem:[%s17206_s0 - $0xc] ss:$28 sm:%s13980_s9]   ;;  %v5303_v18 = vsel %vm143_vm5, %v8279_v3, %v8278_v9 }
 0x286   :  { %7861 = vst.msk [vmem:[%s17207_s1 + $0x46f] ss:$292 sm:$0xc] %vm3_vm10, %v3807_v8   ;;  %v8288_v13 = vld [vmem:[%s17206_s0 + $0xb7] ss:$-21 sm:%s13989_s23]   ;;  %s14315_s23 = smov 3  ;;  %v5270_v25 = vsel %vm110_vm4, %v8269_v11, %v5265_v15 }
 0x287   :  { %s14317_s10 = smov 12  ;;  %s17210_s9 = smov 20   ;;  %v8280_v16 = vld [vmem:[%s17206_s0 + $0x86] ss:$-21 sm:%s14011_s4]   ;;  %v8295_v20 = vld [vmem:[%s17206_s0 + $0xa2] ss:$-21 sm:%s14051_s21]   ;;  %v5335_v22 = vsel %vm148_vm6, %v8288_v13, %v5330_v12 }
 0x288   :  { %5242 = vrot.lane.b32.xlu1 %v5241_v4, %s17210_s9  ;;  %s14325_s4 = smov 3  ;;  %s14327_s9 = smov 12  ;;  %7854 = vst.msk [vmem:[%s17207_s1 + $0x425] ss:$292 sm:$0x3] %vm3_vm10, %v3788_v14   ;;  %v5308_v30 = vsel %vm148_vm6, %v8280_v16, %v5303_v18  ;;  %v5339_v36 = vsel %vm54_vm2, %v8289_v23, %v5335_v22 }
 0x289   :  { %7855 = vst.msk [vmem:[%s17207_s1 + $0x221] ss:$294 sm:$0xc] %vm3_vm10, %v3788_v14   ;;  %7856 = vst.msk [vmem:[%s17207_s1 + $0x27] ss:$292 sm:$0x30] %vm3_vm10, %v3788_v14  }
 0x28a   :  { %7857 = vst.msk [vmem:[%s17207_s1 - $0xb3] ss:$292 sm:$0xc0] %vm3_vm10, %v3788_v14   ;;  %v8294_v19 = vld [vmem:[%s17206_s0 + $0x71] ss:$28 sm:%s14049_s7]   ;;  %s14355_s21 = smov 3  ;;  %v3930_v14 = vpop.permute.xlu0 %3929  }
 0x28b   :  { %s14357_s24 = smov 96  ;;  %s17219_s7 = smov 20   ;;  %v8314_v24 = vld [vmem:[%s17206_s0 + $0x8c] ss:$-70 sm:%s14088_s6]   ;;  %7877 = vst.msk [vmem:[%s17207_s1 + $0x739] sm:$0x80] %vm3_vm10, %v3857_v21   ;;  %v5358_v37 = vsel %vm46_vm0, %v8295_v20, %v8294_v19 }
 0x28c   :  { %17218 = sst [smem:[#allocation5_spill]] %s14357_s24  ;;  %5215 = vrot.lane.b32.xlu0 %v5214_v10, %s17219_s7  ;;  %s14368_s6 = smov 3  ;;  %7874 = vst.msk [vmem:[%s17207_s1 + $0x540] ss:$-732 sm:$0x3] %vm3_vm10, %v3857_v21   ;;  %5290 = vrot.lane.b32.xlu1 %v5289_v17, %s17219_s7 }
 0x28d   :  { %s14370_s24 = smov 96  ;;  %7875 = vst.msk [vmem:[%s17207_s1 + $0x540] ss:$-220 sm:$0xc] %vm3_vm10, %v3857_v21   ;;  %v8296_v26 = vld [vmem:[%s17206_s0 + $0xd3] ss:$-21 sm:%s14059_s20]  }
 0x28e   :  { %17220 = sst [smem:[#allocation6_spill]] %s14370_s24  ;;  %7876 = vst.msk [vmem:[%s17207_s1 + $0x742] ss:$-220 sm:$0x70] %vm3_vm10, %v3857_v21   ;;  %v8315_v27 = vld [vmem:[%s17206_s0 - $0x7] ss:$28 sm:%s14104_s30]   ;;  %v5363_v52 = vsel %vm105_vm3, %v8296_v26, %v5358_v37 }
 0x28f   :  { %v8362_v28 = vld [vmem:[%s17206_s0 + $0x21] ss:$-21 sm:%s14148_s22]   ;;  %s14401_s22 = smov 3  ;;  %v8281_v31 = vld [vmem:[%s17206_s0 + $0x4e] sm:$0x80]   ;;  %s14459_s24 = smov 3  ;;  %v5429_v47 = vsel %vm46_vm0, %v8315_v27, %v8314_v24  ;;  %v3999_v27 = vpop.permute.xlu1 %3998  }
 0x290   :  { %v8302_v32 = vld [vmem:[%s17206_s0 + $0xa9] ss:$-21 sm:%s14019_s15]   ;;  %v8303_v33 = vld [vmem:[%s17206_s0 + $0xda] ss:$-21 sm:%s14021_s2]   ;;  %s14425_s15 = smov 3  ;;  %s14476_s2 = smov 12  ;;  %v5312_v46 = vsel %vm54_vm2, %v8281_v31, %v5308_v30 }
 0x291   :  { %v8306_v34 = vld [vmem:[%s17206_s0 + $0x2a] ss:$-21 sm:$0x7]   ;;  %v8363_v35 = vld [vmem:[%s17206_s0 + $0x52] ss:$-21 sm:%s14163_s11]   ;;  %s14423_s11 = smov 12  ;;  %5271 = vrot.lane.b32.xlu0 %v5270_v25, %s17219_s7  ;;  %v5387_v59 = vsel %vm46_vm0, %v8303_v33, %v8302_v32 }
 0x292   :  { %7866 = vst.msk [vmem:[%s17207_s1 + $0x140] ss:$-220 sm:$0x3] %vm3_vm10, %v3830_v29   ;;  %7867 = vst.msk [vmem:[%s17207_s1 + $0x340] ss:$-220 sm:$0xc] %vm3_vm10, %v3830_v29   ;;  %v5604_v54 = vsel %vm46_vm0, %v8363_v35, %v8362_v28 }
 0x293   :  { %7868 = vst.msk [vmem:[%s17207_s1 + $0x542] ss:$-220 sm:$0x70] %vm3_vm10, %v3830_v29   ;;  %7869 = vst.msk [vmem:[%s17207_s1 + $0x339] sm:$0x80] %vm3_vm10, %v3830_v29   ;;  %s14478_s7 = smov 48 }
 0x294   :  { %v8316_v38 = vld [vmem:[%s17206_s0 - $0x38] ss:$28 sm:%s14106_s14]   ;;  %v8297_v42 = vld [vmem:[%s17206_s0 - $0x6] ss:$28 sm:%s14061_s29]   ;;  %s17221_s14 = sld [smem:[#allocation0_spill]]  ;;  %s17222_s20 = sld [smem:[#allocation1_spill]] }
 0x295   :  { %v8366_v39 = vld [vmem:[%s17206_s0 + $0x22] ss:$-21 sm:%s14165_s8]   ;;  %v8367_v40 = vld [vmem:[%s17206_s0 + $0x53] ss:$-21 sm:%s14173_s28]   ;;  %s14457_s28 = smov 12  ;;  %s8815_s8 = smov 18   ;;  %v5434_v1 = vsel %vm105_vm3, %v8316_v38, %v5429_v47  ;;  %v5368_v6 = vsel %vm110_vm4, %v8297_v42, %v5363_v52 }
 0x296   :  { %v8307_v43 = vld [vmem:[%s17206_s0 + $0x5b] ss:$-21 sm:%s14139_s3]   ;;  %v8364_v44 = vld [vmem:[%s17206_s0 + $0x83] ss:$-21 sm:$0x70]   ;;  %s14504_s3 = smov 3  ;;  %5340 = vrot.lane.b32.xlu1 %v5339_v36, %s8815_s8  ;;  %v5620_v55 = vsel %vm46_vm0, %v8367_v40, %v8366_v39  ;;  %v3980_v40 = vpop.permute.xlu0 %3979  }
 0x297   :  { %v8368_v45 = vld [vmem:[%s17206_s0 + $0x84] ss:$-21 sm:$0x70]   ;;  %7888 = vst.msk [vmem:[%s17207_s1 + $0x6ac] ss:$294 sm:$0x3] %vm3_vm10, %v3905_v41   ;;  %v5401_v60 = vsel %vm241_vm7, %v8307_v43, %v8306_v34  ;;  %5313 = vrot.lane.b32.xlu0 %v5312_v46, %s8815_s8  ;;  %v5608_v7 = vsel %vm50_vm1, %v8364_v44, %v5604_v54  ;;  %v4053_v54 = vpop.permute.xlu1 %4052  }
 0x298   :  { %7889 = vst.msk [vmem:[%s17207_s1 + $0x8ae] ss:$-220 sm:$0xc] %vm3_vm10, %v3905_v41   ;;  %v8308_v48 = vld [vmem:[%s17206_s0 + $0x8c] ss:$-21 sm:%s14146_s26]   ;;  %s14528_s30 = smov 48  ;;  %v5624_v8 = vsel %vm50_vm1, %v8368_v45, %v5620_v55 }
 0x299   :  { %v8394_v49 = vld [vmem:[%s17206_s0 + $0x6e] ss:$28 sm:%s14234_s13]   ;;  %v8395_v50 = vld [vmem:[%s17206_s0 + $0x3d] ss:$28 sm:%s14236_s27]   ;;  %s14502_s27 = smov 192  ;;  %s14561_s5 = smov 3  ;;  %v5406_v15 = vsel %vm148_vm6, %v8308_v48, %v5401_v60 }
 0x29a   :  { %v8317_v53 = vld [vmem:[%s17206_s0 - $0x2b5] ss:$126 sm:%s14137_s16]   ;;  %7882 = vst.msk [vmem:[%s17207_s1 + $0x464] ss:$292 sm:$0x3] %vm3_vm10, %v3886_v51   ;;  %s17223_s26 = sld [smem:[#allocation2_spill]]  ;;  %5388 = vrot.lane.b32.xlu1 %v5387_v59, %s8815_s8  ;;  %v5712_v16 = vsel %vm46_vm0, %v8395_v50, %v8394_v49 }
 0x29b   :  { %v8322_v56 = vld [vmem:[%s17206_s0 + $0x77] ss:$-21 sm:%s17221_s14]   ;;  %v8323_v57 = vld [vmem:[%s17206_s0 + $0xa8] ss:$-21 sm:%s17222_s20]   ;;  %s14581_s29 = smov 3  ;;  %s14620_s20 = smov 96  ;;  %v5439_v21 = vsel %vm110_vm4, %v8317_v53, %v5434_v1 }
 0x29c   :  { %v8398_v58 = vld [vmem:[%s17206_s0 + $0x6f] ss:$28 sm:%s14284_s18]   ;;  %s14526_s18 = smov 12  ;;  %7883 = vst.msk [vmem:[%s17207_s1 + $0x260] ss:$294 sm:$0xc] %vm3_vm10, %v3886_v51   ;;  %v5458_v22 = vsel %vm46_vm0, %v8323_v57, %v8322_v56  ;;  %5369 = vrot.lane.b32.xlu0 %v5368_v6, %s8815_s8 }
 0x29d   :  { %7884 = vst.msk [vmem:[%s17207_s1 + $0x866] ss:$-220 sm:$0x30] %vm3_vm10, %v3886_v51   ;;  %7885 = vst.msk [vmem:[%s17207_s1 - $0x74] ss:$292 sm:$0xc0] %vm3_vm10, %v3886_v51  }
 0x29e   :  { %v8365_v61 = vld [vmem:[%s17206_s0 + $0x4b] sm:$0x80]   ;;  %v8378_v63 = vld [vmem:[%s17206_s0 + $0x83] ss:$-70 sm:%s14315_s23]   ;;  %s14559_s23 = smov 192  ;;  %s17226_s16 = sld [smem:[#allocation5_spill]] }
 0x29f   :  { %v8399_v62 = vld [vmem:[%s17206_s0 + $0x3e] ss:$28 sm:%s14286_s17]   ;;  %v8309_v2 = vld [vmem:[%s17206_s0 + $0x54] sm:$0x80]   ;;  %v8369_v3 = vld [vmem:[%s17206_s0 + $0x4c] sm:$0x80]   ;;  %v5612_v28 = vsel %vm54_vm2, %v8365_v61, %v5608_v7  ;;  %v4024_v7 = vpop.permute.xlu0 %4023  }
 0x2a0   :  { %v8396_v4 = vld [vmem:[%s17206_s0 + $0xd0] ss:$-21 sm:%s14254_s12]   ;;  %7901 = vst.msk [vmem:[%s17207_s1 + $0x4a3] ss:$-220 sm:$0x7] %vm3_vm10, %v3953_v0   ;;  %s17224_s12 = sld [smem:[#allocation4_spill]]  ;;  %v5730_v17 = vsel %vm46_vm0, %v8399_v62, %v8398_v58  ;;  %v5628_v29 = vsel %vm54_vm2, %v8369_v3, %v5624_v8  ;;  %v5410_v34 = vsel %vm54_vm2, %v8309_v2, %v5406_v15 }
 0x2a1   :  { %v8379_v5 = vld [vmem:[%s17206_s0 + $0x83] ss:$-21 sm:%s14317_s10]   ;;  %s14579_s10 = smov 96  ;;  %7902 = vst.msk [vmem:[%s17207_s1 - $0x15b] ss:$292 sm:$0x18] %vm3_vm10, %v3953_v0   ;;  %v5717_v35 = vsel %vm105_vm3, %v8396_v4, %v5712_v16  ;;  %v5630_v46 = vsel %vm5629_vm11, %v5628_v29, %v5612_v28 }
 0x2a2   :  { %7903 = vst.msk [vmem:[%s17207_s1 - $0x35b] ss:$292 sm:$0x60] %vm3_vm10, %v3953_v0   ;;  %7904 = vst.msk [vmem:[%s17207_s1 + $0x69c] sm:$0x80] %vm3_vm10, %v3953_v0   ;;  %s14638_s17 = smov 96  ;;  %v5658_v31 = vsel %vm46_vm0, %v8379_v5, %v8378_v63 }
 0x2a3   :  { %v8324_v9 = vld [vmem:[%s17206_s0 + $0xd9] ss:$-21 sm:%s17223_s26]   ;;  %s14622_s26 = smov 24  ;;  %v8400_v18 = vld [vmem:[%s17206_s0 + $0xd1] ss:$-21 sm:%s14293_s25]   ;;  %s17227_s8 = sld [smem:[#allocation6_spill]] }
 0x2a4   :  { %v8382_v10 = vld [vmem:[%s17206_s0 + $0x84] ss:$-70 sm:%s14325_s4]   ;;  %s14640_s4 = smov 24  ;;  %7894 = vst.msk [vmem:[%s17207_s1 + $0xa3] ss:$292 sm:$0x3] %vm3_vm10, %v3930_v14   ;;  %v5735_v36 = vsel %vm105_vm3, %v8400_v18, %v5730_v17  ;;  %v5463_v41 = vsel %vm105_vm3, %v8324_v9, %v5458_v22 }
 0x2a5   :  { %v8383_v11 = vld [vmem:[%s17206_s0 + $0x84] ss:$-21 sm:%s14327_s9]   ;;  %v8380_v19 = vld [vmem:[%s17206_s0 + $0xb4] ss:$-21 sm:$0x70]   ;;  %s17225_s9 = sld [smem:[#allocation3_spill]] }
 0x2a6   :  { %v8419_v12 = vld [vmem:[%s17206_s0 + $0x58] ss:$-21 sm:$0x1c]   ;;  %v8423_v13 = vld [vmem:[%s17206_s0 + $0x59] ss:$-21 sm:$0x1c]   ;;  %v5674_v32 = vsel %vm46_vm0, %v8383_v11, %v8382_v10  ;;  %v5662_v47 = vsel %vm50_vm1, %v8380_v19, %v5658_v31  ;;  %v4100_v19 = vpop.permute.xlu1 %4099  }
 0x2a7   :  { %v8384_v20 = vld [vmem:[%s17206_s0 + $0xb5] ss:$-21 sm:$0x70]   ;;  %7895 = vst.msk [vmem:[%s17207_s1 + $0x29f] ss:$-218 sm:$0xc] %vm3_vm10, %v3930_v14  }
 0x2a8   :  { %7896 = vst.msk [vmem:[%s17207_s1 + $0x4a5] ss:$-220 sm:$0x30] %vm3_vm10, %v3930_v14   ;;  %7897 = vst.msk [vmem:[%s17207_s1 - $0x567] ss:$294 sm:$0xc0] %vm3_vm10, %v3930_v14   ;;  %v5678_v48 = vsel %vm50_vm1, %v8384_v20, %v5674_v32 }
 0x2a9   :  { %v8397_v23 = vld [vmem:[%s17206_s0 - $0x9] ss:$28 sm:%s14256_s19]   ;;  %v8401_v24 = vld [vmem:[%s17206_s0 - $0x8] ss:$28 sm:%s17224_s12]   ;;  %s14693_s25 = smov 12  ;;  %s14719_s13 = smov 12 }
 0x2aa   :  { %v8418_v25 = vld [vmem:[%s17206_s0 + $0x27] ss:$-21 sm:%s14355_s21]   ;;  %7915 = vst.msk [vmem:[%s17207_s1 + $0x611] ss:$292 sm:$0x3] %vm3_vm10, %v3999_v27   ;;  %s14734_s19 = smov 12  ;;  %v5722_v55 = vsel %vm110_vm4, %v8397_v23, %v5717_v35  ;;  %v5740_v56 = vsel %vm110_vm4, %v8401_v24, %v5735_v36 }
 0x2ab   :  { %v8422_v26 = vld [vmem:[%s17206_s0 + $0x28] ss:$-21 sm:%s14368_s6]   ;;  %s14676_s6 = smov 96  ;;  %7916 = vst.msk [vmem:[%s17207_s1 + $0x411] ss:$292 sm:$0xc] %vm3_vm10, %v3999_v27   ;;  %v5799_v43 = vsel %vm143_vm5, %v8419_v12, %v8418_v25  ;;  %v5742_v14 = vsel %vm5629_vm11, %v5740_v56, %v5722_v55 }
 0x2ac   :  { %v8325_v30 = vld [vmem:[%s17206_s0 + $0x126] ss:$-21 sm:%s17225_s9]   ;;  %v8420_v33 = vld [vmem:[%s17206_s0 + $0x89] ss:$-21 sm:%s17226_s16]   ;;  %s14691_s16 = smov 3  ;;  %s8816_s9 = smov 16   ;;  %v5815_v44 = vsel %vm143_vm5, %v8423_v13, %v8422_v26 }
 0x2ad   :  { %v8381_v37 = vld [vmem:[%s17206_s0 + $0xad] sm:$0x80]   ;;  %v8424_v38 = vld [vmem:[%s17206_s0 + $0x8a] ss:$-21 sm:%s17227_s8]   ;;  %5440 = vrot.lane.b32.xlu1 %v5439_v21, %s8816_s9  ;;  %s14774_s12 = smov 192  ;;  %s14792_s21 = smov 12  ;;  %v5468_v60 = vsel %vm110_vm4, %v8325_v30, %v5463_v41  ;;  %v5804_v61 = vsel %vm148_vm6, %v8420_v33, %v5799_v43  ;;  %v4081_v33 = vpop.permute.xlu0 %4080  }
 0x2ae   :  { %v8450_v39 = vld [vmem:[%s17206_s0 + $0x74] ss:$28 sm:%s14459_s24]   ;;  %s14717_s24 = smov 3  ;;  %v8385_v42 = vld [vmem:[%s17206_s0 + $0xae] sm:$0x80]   ;;  %5411 = vrot.lane.b32.xlu0 %v5410_v34, %s8816_s9  ;;  %v5820_v62 = vsel %vm148_vm6, %v8424_v38, %v5815_v44  ;;  %s14845_s14 = smov 192  ;;  %v5666_v8 = vsel %vm54_vm2, %v8381_v37, %v5662_v47  ;;  %v4154_v47 = vpop.permute.xlu1 %4153  }
 0x2af   :  { %v8451_v45 = vld [vmem:[%s17206_s0 + $0xa5] ss:$-21 sm:%s14476_s2]   ;;  %s14732_s2 = smov 3  ;;  %7909 = vst.msk [vmem:[%s17207_s1 + $0x5c7] ss:$-220 sm:$0x3] %vm3_vm10, %v3980_v40   ;;  %v5682_v9 = vsel %vm54_vm2, %v8385_v42, %v5678_v48 }
 0x2b0   :  { %7910 = vst.msk [vmem:[%s17207_s1 + $0x1c9] ss:$292 sm:$0xc] %vm3_vm10, %v3980_v40   ;;  %7911 = vst.msk [vmem:[%s17207_s1 - $0x37] ss:$292 sm:$0x30] %vm3_vm10, %v3980_v40   ;;  %v5908_v10 = vsel %vm46_vm0, %v8451_v45, %v8450_v39  ;;  %v5684_v26 = vsel %vm5629_vm11, %v5682_v9, %v5666_v8 }
 0x2b1   :  { %7912 = vst.msk [vmem:[%s17207_s1 + $0xcef] ss:$-220 sm:$0xc0] %vm3_vm10, %v3980_v40   ;;  %v8421_v49 = vld [vmem:[%s17206_s0 + $0x51] sm:$0x80]   ;;  %s8819_s8 = smov 8  }
 0x2b2   :  { %v8454_v50 = vld [vmem:[%s17206_s0 + $0x75] ss:$28 sm:%s14504_s3]   ;;  %v8439_v53 = vld [vmem:[%s17206_s0 + $0x8a] ss:$-21 sm:$0x1c]   ;;  %s14772_s3 = smov 48  ;;  %5469 = vrot.lane.b32.xlu0 %v5468_v60, %s8816_s9  ;;  %v5808_v20 = vsel %vm54_vm2, %v8421_v49, %v5804_v61 }
 0x2b3   :  { %v8455_v51 = vld [vmem:[%s17206_s0 + $0xa6] ss:$-21 sm:%s14526_s18]   ;;  %v8435_v52 = vld [vmem:[%s17206_s0 + $0x89] ss:$-21 sm:$0x1c]   ;;  %s15226_s18 = smov 3 }
 0x2b4   :  { %v8425_v57 = vld [vmem:[%s17206_s0 + $0x52] sm:$0x80]   ;;  %v8452_v58 = vld [vmem:[%s17206_s0 + $0xd6] ss:$-21 sm:%s14478_s7]   ;;  %v5926_v11 = vsel %vm46_vm0, %v8455_v51, %v8454_v50  ;;  %v8437_v29 = vld [vmem:[%s17206_s0 + $0xb3] sm:$0x80]  }
 0x2b5   :  { %v8456_v59 = vld [vmem:[%s17206_s0 + $0xd7] ss:$-21 sm:%s14528_s30]   ;;  %s14790_s30 = smov 3  ;;  %7929 = vst.msk [vmem:[%s17207_s1 + $0x4e2] ss:$-732 sm:$0x3] %vm3_vm10, %v4053_v54   ;;  %v5824_v21 = vsel %vm54_vm2, %v8425_v57, %v5820_v62  ;;  %v5913_v27 = vsel %vm105_vm3, %v8452_v58, %v5908_v10  ;;  %v4125_v62 = vpop.permute.xlu0 %4124   ;;  %v4202_v10 = vpop.permute.xlu1 %4201  }
 0x2b6   :  { %7930 = vst.msk [vmem:[%s17207_s1 + $0x4de] ss:$-218 sm:$0xc] %vm3_vm10, %v4053_v54   ;;  %7931 = vst.msk [vmem:[%s17207_s1 + $0x6e4] ss:$-220 sm:$0x30] %vm3_vm10, %v4053_v54   ;;  %v5931_v28 = vsel %vm105_vm3, %v8456_v59, %v5926_v11  ;;  %v5826_v40 = vsel %vm5825_vm12, %v5824_v21, %v5808_v20 }
 0x2b7   :  { %7932 = vst.msk [vmem:[%s17207_s1 - $0xf28] ss:$806 sm:$0xc0] %vm3_vm10, %v4053_v54   ;;  %v8410_v63 = vld [vmem:[%s17206_s0 + $0xa6] ss:$28 sm:%s14401_s22]   ;;  %s14899_s22 = smov 192 }
 0x2b8   :  { %v8411_v0 = vld [vmem:[%s17206_s0 + $0xd7] ss:$-21 sm:%s14423_s11]   ;;  %v8436_v12 = vld [vmem:[%s17206_s0 + $0xba] ss:$-21 sm:%s14579_s10]   ;;  %s14962_s11 = smov 12  ;;  %s8818_s10 = smov 10  }
 0x2b9   :  { %v8412_v1 = vld [vmem:[%s17206_s0 + $0xa7] ss:$28 sm:%s14425_s15]   ;;  %v8438_v4 = vld [vmem:[%s17206_s0 + $0x8a] ss:$-70 sm:%s14581_s29]   ;;  %s14843_s15 = smov 48  ;;  %s14862_s29 = smov 12  ;;  %v5770_v34 = vsel %vm46_vm0, %v8411_v0, %v8410_v63 }
 0x2ba   :  { %v8413_v2 = vld [vmem:[%s17206_s0 + $0xd8] ss:$-21 sm:%s14457_s28]   ;;  %s8817_s28 = smov 12   ;;  %v8440_v13 = vld [vmem:[%s17206_s0 + $0xbb] ss:$-21 sm:%s14620_s20]   ;;  %s14860_s20 = smov 3  ;;  %v5869_v23 = vsel %vm143_vm5, %v8439_v53, %v8438_v4 }
 0x2bb   :  { %v8434_v3 = vld [vmem:[%s17206_s0 + $0x89] ss:$-70 sm:%s14561_s5]   ;;  %v8478_v6 = vld [vmem:[%s17206_s0 + $0x2e] ss:$-21 sm:$0x7]   ;;  %5631 = vrot.lane.b32.xlu1 %v5630_v46, %s8817_s28  ;;  %v5778_v35 = vsel %vm46_vm0, %v8413_v2, %v8412_v1  ;;  %v5874_v42 = vsel %vm148_vm6, %v8440_v13, %v5869_v23  ;;  %s15063_s5 = smov 3 }
 0x2bc   :  { %v8474_v5 = vld [vmem:[%s17206_s0 + $0x2d] ss:$-21 sm:$0x7]   ;;  %7921 = vst.msk [vmem:[%s17207_s1 + $0xe2] ss:$-220 sm:$0x3] %vm3_vm10, %v4024_v7   ;;  %v5853_v22 = vsel %vm143_vm5, %v8435_v52, %v8434_v3  ;;  %5685 = vrot.lane.b32.xlu0 %v5684_v26, %s8817_s28  ;;  %v5780_v53 = vsel %vm5629_vm11, %v5778_v35, %v5770_v34 }
 0x2bd   :  { %7922 = vst.msk [vmem:[%s17207_s1 + $0x2de] ss:$-218 sm:$0xc] %vm3_vm10, %v4024_v7   ;;  %7923 = vst.msk [vmem:[%s17207_s1 + $0x4e4] ss:$-220 sm:$0x30] %vm3_vm10, %v4024_v7   ;;  %v5858_v41 = vsel %vm148_vm6, %v8436_v12, %v5853_v22 }
 0x2be   :  { %7924 = vst.msk [vmem:[%s17207_s1 - $0x528] ss:$294 sm:$0xc0] %vm3_vm10, %v4024_v7   ;;  %v8453_v15 = vld [vmem:[%s17206_s0 - $0x3] ss:$28 sm:%s14502_s27]   ;;  %s14916_s27 = smov 12  ;;  %v5862_v63 = vsel %vm54_vm2, %v8437_v29, %v5858_v41 }
 0x2bf   :  { %v8457_v16 = vld [vmem:[%s17206_s0 - $0x2] ss:$28 sm:%s14559_s23]   ;;  %7942 = vst.msk [vmem:[%s17207_s1 + $0x650] ss:$292 sm:$0x3] %vm3_vm10, %v4100_v19   ;;  %s14946_s23 = smov 192  ;;  %5743 = vrot.lane.b32.xlu1 %v5742_v14, %s8817_s28  ;;  %v5918_v48 = vsel %vm110_vm4, %v8453_v15, %v5913_v27 }
 0x2c0   :  { %v8475_v17 = vld [vmem:[%s17206_s0 + $0x5e] ss:$-21 sm:%s14622_s26]   ;;  %v8476_v24 = vld [vmem:[%s17206_s0 + $0x8f] ss:$-21 sm:%s14638_s17]   ;;  %s14999_s26 = smov 12  ;;  %v5936_v49 = vsel %vm110_vm4, %v8457_v16, %v5931_v28  ;;  %s15117_s17 = smov 3 }
 0x2c1   :  { %v8479_v18 = vld [vmem:[%s17206_s0 + $0x5f] ss:$-21 sm:%s14640_s4]   ;;  %s14897_s4 = smov 48  ;;  %v8480_v25 = vld [vmem:[%s17206_s0 + $0x90] ss:$-21 sm:%s14676_s6]   ;;  %s14914_s6 = smov 3  ;;  %v5995_v37 = vsel %vm241_vm7, %v8475_v17, %v8474_v5  ;;  %v5938_v5 = vsel %vm5825_vm12, %v5936_v49, %v5918_v48 }
 0x2c2   :  { %7943 = vst.msk [vmem:[%s17207_s1 + $0x450] ss:$292 sm:$0xc] %vm3_vm10, %v4100_v19   ;;  %v8506_v30 = vld [vmem:[%s17206_s0 + $0x7a] ss:$-21 sm:%s14732_s2]   ;;  %v6011_v38 = vsel %vm241_vm7, %v8479_v18, %v8478_v6  ;;  %v6000_v54 = vsel %vm148_vm6, %v8476_v24, %v5995_v37  ;;  %5781 = vrot.lane.b32.xlu0 %v5780_v53, %s8817_s28  ;;  %v4252_v37 = vpop.permute.xlu1 %4251   ;;  %s15422_s28 = smov 48 }
 0x2c3   :  { %v8507_v31 = vld [vmem:[%s17206_s0 + $0xab] ss:$-21 sm:%s14734_s19]   ;;  %v8510_v32 = vld [vmem:[%s17206_s0 + $0x7b] ss:$-21 sm:%s14790_s30]   ;;  %s14944_s30 = smov 48  ;;  %v6016_v55 = vsel %vm148_vm6, %v8480_v25, %v6011_v38  ;;  %s15136_s19 = smov 3  ;;  %v4183_v25 = vpop.permute.xlu0 %4182  }
 0x2c4   :  { %v8441_v36 = vld [vmem:[%s17206_s0 + $0xb4] sm:$0x80]   ;;  %v8511_v39 = vld [vmem:[%s17206_s0 + $0xac] ss:$-21 sm:%s14792_s21]   ;;  %s14960_s21 = smov 3  ;;  %5827 = vrot.lane.b32.xlu1 %v5826_v40, %s8818_s10  ;;  %v6108_v1 = vsel %vm46_vm0, %v8507_v31, %v8506_v30  ;;  %s15472_s2 = smov 96 }
 0x2c5   :  { %7936 = vst.msk [vmem:[%s17207_s1 + $0x406] ss:$292 sm:$0x3] %vm3_vm10, %v4081_v33   ;;  %7937 = vst.msk [vmem:[%s17207_s1 + $0x208] ss:$292 sm:$0xc] %vm3_vm10, %v4081_v33   ;;  %v5878_v0 = vsel %vm54_vm2, %v8441_v36, %v5874_v42  ;;  %v6126_v2 = vsel %vm46_vm0, %v8511_v39, %v8510_v32 }
 0x2c6   :  { %7938 = vst.msk [vmem:[%s17207_s1 + $0x8] ss:$292 sm:$0x30] %vm3_vm10, %v4081_v33   ;;  %7939 = vst.msk [vmem:[%s17207_s1 - $0xd2] ss:$292 sm:$0xc0] %vm3_vm10, %v4081_v33   ;;  %v5880_v18 = vsel %vm5825_vm12, %v5878_v0, %v5862_v63 }
 0x2c7   :  { %v8477_v43 = vld [vmem:[%s17206_s0 + $0x57] sm:$0x80]   ;;  %v8481_v44 = vld [vmem:[%s17206_s0 + $0x58] sm:$0x80]   ;;  %v8490_v45 = vld [vmem:[%s17206_s0 + $0x8f] ss:$-70 sm:%s14860_s20]   ;;  %v4225_v53 = vpop.permute.xlu0 %4224  }
 0x2c8   :  { %v8491_v46 = vld [vmem:[%s17206_s0 - $0x4] ss:$28 sm:%s14862_s29]   ;;  %s14997_s29 = smov 3  ;;  %7956 = vst.msk [vmem:[%s17207_s1 + $0x521] ss:$-732 sm:$0x3] %vm3_vm10, %v4154_v47   ;;  %v6004_v11 = vsel %vm54_vm2, %v8477_v43, %v6000_v54  ;;  %v6020_v12 = vsel %vm54_vm2, %v8481_v44, %v6016_v55  ;;  %5939 = vrot.lane.b32.xlu1 %v5938_v5, %s8818_s10 }
 0x2c9   :  { %v8508_v50 = vld [vmem:[%s17206_s0 + $0xdc] ss:$-21 sm:%s14772_s3]   ;;  %7957 = vst.msk [vmem:[%s17207_s1 + $0x521] ss:$-220 sm:$0xc] %vm3_vm10, %v4154_v47   ;;  %v6050_v13 = vsel %vm46_vm0, %v8491_v46, %v8490_v45  ;;  %v6022_v31 = vsel %vm6021_vm13, %v6020_v12, %v6004_v11  ;;  %5881 = vrot.lane.b32.xlu0 %v5880_v18, %s8818_s10  ;;  %s15338_s20 = smov 12 }
 0x2ca   :  { %v8512_v51 = vld [vmem:[%s17206_s0 + $0xdd] ss:$-21 sm:%s14843_s15]   ;;  %7958 = vst.msk [vmem:[%s17207_s1 + $0x723] ss:$-220 sm:$0x30] %vm3_vm10, %v4154_v47   ;;  %s15080_s15 = smov 12  ;;  %v6113_v19 = vsel %vm105_vm3, %v8508_v50, %v6108_v1  ;;  %v4300_v1 = vpop.permute.xlu1 %4299  }
 0x2cb   :  { %v8494_v52 = vld [vmem:[%s17206_s0 + $0x90] ss:$-70 sm:%s14914_s6]   ;;  %s15016_s6 = smov 3  ;;  %7959 = vst.msk [vmem:[%s17207_s1 - $0xee9] ss:$806 sm:$0xc0] %vm3_vm10, %v4154_v47   ;;  %v6131_v20 = vsel %vm105_vm3, %v8512_v51, %v6126_v2 }
 0x2cc   :  { %v8466_v56 = vld [vmem:[%s17206_s0 + $0xac] ss:$-21 sm:%s14691_s16]   ;;  %v8467_v57 = vld [vmem:[%s17206_s0 + $0xdd] ss:$-21 sm:%s14693_s25]   ;;  %s15325_s25 = smov 12  ;;  %s15424_s16 = smov 192 }
 0x2cd   :  { %v8468_v58 = vld [vmem:[%s17206_s0 + $0xad] ss:$-21 sm:%s14717_s24]   ;;  %v8469_v59 = vld [vmem:[%s17206_s0 + $0xde] ss:$-21 sm:%s14719_s13]   ;;  %s15134_s24 = smov 12  ;;  %v5966_v26 = vsel %vm46_vm0, %v8467_v57, %v8466_v56  ;;  %s15276_s13 = smov 96 }
 0x2ce   :  { %v8495_v60 = vld [vmem:[%s17206_s0 - $0x3] ss:$28 sm:%s14916_s27]   ;;  %v8492_v3 = vld [vmem:[%s17206_s0 - $0x35] ss:$28 sm:%s14897_s4]   ;;  %s6247_s4 = smov 12  ;;  %v5974_v27 = vsel %vm46_vm0, %v8469_v59, %v8468_v58  ;;  %s6560_s3 = smov 3 }
 0x2cf   :  { %v8530_v61 = vld [vmem:[%s17206_s0 + $0x1e] ss:$-21 sm:%s14960_s21]   ;;  %s15061_s21 = smov 12  ;;  %v8531_v4 = vld [vmem:[%s17206_s0 + $0x4f] ss:$-21 sm:%s14962_s11]   ;;  %s15078_s11 = smov 3  ;;  %v6068_v14 = vsel %vm46_vm0, %v8495_v60, %v8494_v52  ;;  %v6055_v32 = vsel %vm105_vm3, %v8492_v3, %v6050_v13  ;;  %v5976_v43 = vsel %vm5825_vm12, %v5974_v27, %v5966_v26  ;;  %v4281_v13 = vpop.permute.xlu0 %4280   ;;  %v4348_v27 = vpop.permute.xlu1 %4347  }
 0x2d0   :  { %7948 = vst.msk [vmem:[%s17207_s1 + $0x121] ss:$-220 sm:$0x3] %vm3_vm10, %v4125_v62   ;;  %7949 = vst.msk [vmem:[%s17207_s1 + $0x321] ss:$-220 sm:$0xc] %vm3_vm10, %v4125_v62   ;;  %v6196_v28 = vsel %vm46_vm0, %v8531_v4, %v8530_v61  ;;  %6023 = vrot.lane.b32.xlu1 %v6022_v31, %s8819_s8  ;;  %5977 = vrot.lane.b32.xlu0 %v5976_v43, %s8818_s10 }
 0x2d1   :  { %7950 = vst.msk [vmem:[%s17207_s1 + $0x523] ss:$-220 sm:$0x30] %vm3_vm10, %v4125_v62   ;;  %7951 = vst.msk [vmem:[%s17207_s1 - $0x4e9] ss:$294 sm:$0xc0] %vm3_vm10, %v4125_v62  }
 0x2d2   :  { %v8509_v6 = vld [vmem:[%s17206_s0 + $0x129] ss:$-21 sm:%s14774_s12]   ;;  %v8535_v9 = vld [vmem:[%s17206_s0 + $0x50] ss:$-21 sm:%s14999_s26]   ;;  %s15115_s26 = smov 12  ;;  %s6725_s12 = smov 192 }
 0x2d3   :  { %v8513_v7 = vld [vmem:[%s17206_s0 + $0x12a] ss:$-21 sm:%s14845_s14]   ;;  %v8536_v17 = vld [vmem:[%s17206_s0 + $0x81] ss:$-21 sm:$0x70]   ;;  %s15200_s14 = smov 192  ;;  %v6118_v38 = vsel %vm110_vm4, %v8509_v6, %v6113_v19 }
 0x2d4   :  { %v8534_v8 = vld [vmem:[%s17206_s0 + $0x1f] ss:$-21 sm:%s14997_s29]   ;;  %7970 = vst.msk [vmem:[%s17207_s1 + $0x68d] ss:$294 sm:$0x3] %vm3_vm10, %v4202_v10   ;;  %v6136_v39 = vsel %vm110_vm4, %v8513_v7, %v6131_v20  ;;  %s6763_s29 = smov 12 }
 0x2d5   :  { %v8496_v15 = vld [vmem:[%s17206_s0 - $0x34] ss:$28 sm:%s14944_s30]   ;;  %7971 = vst.msk [vmem:[%s17207_s1 + $0x48f] ss:$292 sm:$0xc] %vm3_vm10, %v4202_v10   ;;  %v6212_v29 = vsel %vm46_vm0, %v8535_v9, %v8534_v8  ;;  %s15176_s30 = smov 12  ;;  %v6138_v62 = vsel %vm6021_vm13, %v6136_v39, %v6118_v38 }
 0x2d6   :  { %v8532_v16 = vld [vmem:[%s17206_s0 + $0x80] ss:$-21 sm:$0x70]   ;;  %v8497_v22 = vld [vmem:[%s17206_s0 - $0x2b1] ss:$126 sm:%s14946_s23]   ;;  %v6073_v33 = vsel %vm105_vm3, %v8496_v15, %v6068_v14  ;;  %v6216_v45 = vsel %vm50_vm1, %v8536_v17, %v6212_v29  ;;  %6139 = vrot.lane.b32.xlu1 %v6138_v62, %s8819_s8  ;;  %s5528_s23 = smov 12 }
 0x2d7   :  { %v8493_v21 = vld [vmem:[%s17206_s0 - $0x2b2] ss:$126 sm:%s14899_s22]   ;;  %v8562_v23 = vld [vmem:[%s17206_s0 + $0x6b] ss:$28 sm:%s15078_s11]   ;;  %v6200_v44 = vsel %vm50_vm1, %v8532_v16, %v6196_v28  ;;  %v6078_v55 = vsel %vm110_vm4, %v8497_v22, %v6073_v33  ;;  %s15296_s11 = smov 96  ;;  %s5499_s10 = smov 12 }
 0x2d8   :  { %v8563_v24 = vld [vmem:[%s17206_s0 + $0x3a] ss:$28 sm:%s15080_s15]   ;;  %s6306_s15 = smov 48  ;;  %v8566_v30 = vld [vmem:[%s17206_s0 + $0x6c] ss:$28 sm:%s15117_s17]   ;;  %s15174_s17 = smov 3  ;;  %v6060_v54 = vsel %vm110_vm4, %v8493_v21, %v6055_v32 }
 0x2d9   :  { %7964 = vst.msk [vmem:[%s17207_s1 + $0x445] ss:$292 sm:$0x3] %vm3_vm10, %v4183_v25   ;;  %7965 = vst.msk [vmem:[%s17207_s1 + $0x241] ss:$294 sm:$0xc] %vm3_vm10, %v4183_v25   ;;  %v6304_v56 = vsel %vm46_vm0, %v8563_v24, %v8562_v23  ;;  %v6080_v7 = vsel %vm6021_vm13, %v6078_v55, %v6060_v54 }
 0x2da   :  { %7966 = vst.msk [vmem:[%s17207_s1 + $0x47] ss:$292 sm:$0x30] %vm3_vm10, %v4183_v25   ;;  %7967 = vst.msk [vmem:[%s17207_s1 - $0x93] ss:$292 sm:$0xc0] %vm3_vm10, %v4183_v25   ;;  %6081 = vrot.lane.b32.xlu0 %v6080_v7, %s8819_s8 }
 0x2db   :  { %v8533_v34 = vld [vmem:[%s17206_s0 + $0x48] sm:$0x80]   ;;  %v8546_v36 = vld [vmem:[%s17206_s0 + $0x80] ss:$-70 sm:%s15136_s19]   ;;  %v8537_v40 = vld [vmem:[%s17206_s0 + $0x49] sm:$0x80]  }
 0x2dc   :  { %v8567_v35 = vld [vmem:[%s17206_s0 + $0x3b] ss:$28 sm:%s15134_s24]   ;;  %s15206_s24 = smov 48  ;;  %7984 = vst.msk [vmem:[%s17207_s1 + $0x560] ss:$-732 sm:$0x3] %vm3_vm10, %v4252_v37   ;;  %v6204_v2 = vsel %vm54_vm2, %v8533_v34, %v6200_v44  ;;  %v6220_v3 = vsel %vm54_vm2, %v8537_v40, %v6216_v45  ;;  %v4325_v40 = vpop.permute.xlu0 %4324  }
 0x2dd   :  { %v8564_v41 = vld [vmem:[%s17206_s0 + $0xcd] ss:$-21 sm:%s6306_s15]   ;;  %7985 = vst.msk [vmem:[%s17207_s1 + $0x560] ss:$-220 sm:$0xc] %vm3_vm10, %v4252_v37   ;;  %v6322_v57 = vsel %vm46_vm0, %v8567_v35, %v8566_v30  ;;  %s15364_s19 = smov 12  ;;  %v6222_v20 = vsel %vm6221_vm14, %v6220_v3, %v6204_v2 }
 0x2de   :  { %v8547_v42 = vld [vmem:[%s17206_s0 + $0x80] ss:$-21 sm:%s6247_s4]   ;;  %s15224_s4 = smov 3  ;;  %7986 = vst.msk [vmem:[%s17207_s1 + $0x762] ss:$-220 sm:$0x70] %vm3_vm10, %v4252_v37   ;;  %v6309_v8 = vsel %vm105_vm3, %v8564_v41, %v6304_v56 }
 0x2df   :  { %7987 = vst.msk [vmem:[%s17207_s1 + $0x759] sm:$0x80] %vm3_vm10, %v4252_v37   ;;  %v8522_v46 = vld [vmem:[%s17206_s0 + $0xb2] ss:$-21 sm:%s15016_s6]   ;;  %7979 = vst.msk [vmem:[%s17207_s1 + $0x359] sm:$0x80] %vm3_vm10, %v4225_v53   ;;  %v6250_v5 = vsel %vm46_vm0, %v8547_v42, %v8546_v36 }
 0x2e0   :  { %v8523_v47 = vld [vmem:[%s17206_s0 + $0xe3] ss:$-21 sm:%s15061_s21]   ;;  %v8524_v48 = vld [vmem:[%s17206_s0 + $0xb3] ss:$-21 sm:%s15063_s5]   ;;  %s15417_s5 = smov 12  ;;  %s8820_s15 = smov 6  }
 0x2e1   :  { %v8525_v49 = vld [vmem:[%s17206_s0 + $0xe4] ss:$-21 sm:%s15115_s26]   ;;  %s15263_s26 = smov 192  ;;  %v8551_v51 = vld [vmem:[%s17206_s0 + $0x81] ss:$-21 sm:%s15176_s30]   ;;  %v6166_v14 = vsel %vm46_vm0, %v8523_v47, %v8522_v46  ;;  %s8821_s30 = smov 4  }
 0x2e2   :  { %v8550_v50 = vld [vmem:[%s17206_s0 + $0x81] ss:$-70 sm:%s15174_s17]   ;;  %7976 = vst.msk [vmem:[%s17207_s1 + $0x160] ss:$-220 sm:$0x3] %vm3_vm10, %v4225_v53   ;;  %v6174_v15 = vsel %vm46_vm0, %v8525_v49, %v8524_v48  ;;  %s15380_s17 = smov 3  ;;  %6223 = vrot.lane.b32.xlu1 %v6222_v20, %s8820_s15 }
 0x2e3   :  { %v8587_v52 = vld [vmem:[%s17206_s0 + $0x55] ss:$-21 sm:$0x1c]   ;;  %v8568_v58 = vld [vmem:[%s17206_s0 + $0xce] ss:$-21 sm:%s15206_s24]   ;;  %v6266_v6 = vsel %vm46_vm0, %v8551_v51, %v8550_v50  ;;  %v6176_v31 = vsel %vm6021_vm13, %v6174_v15, %v6166_v14  ;;  %v4394_v51 = vpop.permute.xlu1 %4393   ;;  %s6702_s24 = smov 48 }
 0x2e4   :  { %v8548_v59 = vld [vmem:[%s17206_s0 + $0xb1] ss:$-21 sm:$0x70]   ;;  %v8552_v60 = vld [vmem:[%s17206_s0 + $0xb2] ss:$-21 sm:$0x70]   ;;  %v6327_v9 = vsel %vm105_vm3, %v8568_v58, %v6322_v57  ;;  %6177 = vrot.lane.b32.xlu0 %v6176_v31, %s8819_s8 }
 0x2e5   :  { %v8591_v61 = vld [vmem:[%s17206_s0 + $0x56] ss:$-21 sm:$0x1c]   ;;  %7977 = vst.msk [vmem:[%s17207_s1 + $0x360] ss:$-220 sm:$0xc] %vm3_vm10, %v4225_v53   ;;  %v6254_v21 = vsel %vm50_vm1, %v8548_v59, %v6250_v5  ;;  %v6270_v22 = vsel %vm50_vm1, %v8552_v60, %v6266_v6 }
 0x2e6   :  { %7978 = vst.msk [vmem:[%s17207_s1 + $0x562] ss:$-220 sm:$0x70] %vm3_vm10, %v4225_v53   ;;  %v8586_v63 = vld [vmem:[%s17206_s0 + $0x24] ss:$-21 sm:%s15224_s4]   ;;  %vm6613_vm1 = vcmask 1031168  }
 0x2e7   :  { %v8590_v0 = vld [vmem:[%s17206_s0 + $0x25] ss:$-21 sm:%s15226_s18]   ;;  %s15323_s18 = smov 3  ;;  %7998 = vst.msk [vmem:[%s17207_s1 + $0x6cc] ss:$294 sm:$0x3] %vm3_vm10, %v4300_v1   ;;  %v6391_v17 = vsel %vm143_vm5, %v8587_v52, %v8586_v63 }
 0x2e8   :  { %v8565_v4 = vld [vmem:[%s17206_s0 - $0xc] ss:$28 sm:%s15200_s14]   ;;  %s15336_s14 = smov 3  ;;  %7999 = vst.msk [vmem:[%s17207_s1 + $0x8ce] ss:$-220 sm:$0xc] %vm3_vm10, %v4300_v1   ;;  %v6407_v18 = vsel %vm143_vm5, %v8591_v61, %v8590_v0  ;;  %v4375_v0 = vpop.permute.xlu0 %4374  }
 0x2e9   :  { %v8569_v10 = vld [vmem:[%s17206_s0 - $0xb] ss:$28 sm:%s15263_s26]   ;;  %v8553_v16 = vld [vmem:[%s17206_s0 + $0xab] sm:$0x80]   ;;  %v8593_v24 = vld [vmem:[%s17206_s0 + $0x4f] sm:$0x80]   ;;  %v6314_v28 = vsel %vm110_vm4, %v8565_v4, %v6309_v8 }
 0x2ea   :  { %v8549_v11 = vld [vmem:[%s17206_s0 + $0xaa] sm:$0x80]   ;;  %v8592_v19 = vld [vmem:[%s17206_s0 + $0x87] ss:$-21 sm:%s15296_s11]   ;;  %s15378_s11 = smov 48  ;;  %v6332_v29 = vsel %vm110_vm4, %v8569_v10, %v6327_v9  ;;  %v6274_v42 = vsel %vm54_vm2, %v8553_v16, %v6270_v22  ;;  %s15553_s26 = smov 96 }
 0x2eb   :  { %v8588_v12 = vld [vmem:[%s17206_s0 + $0x86] ss:$-21 sm:%s15276_s13]   ;;  %s15362_s13 = smov 3  ;;  %7992 = vst.msk [vmem:[%s17207_s1 + $0x484] ss:$292 sm:$0x3] %vm3_vm10, %v4281_v13   ;;  %v6412_v33 = vsel %vm148_vm6, %v8592_v19, %v6407_v18  ;;  %v6258_v41 = vsel %vm54_vm2, %v8549_v11, %v6254_v21  ;;  %v6334_v46 = vsel %vm6221_vm14, %v6332_v29, %v6314_v28 }
 0x2ec   :  { %7993 = vst.msk [vmem:[%s17207_s1 + $0x280] ss:$294 sm:$0xc] %vm3_vm10, %v4281_v13   ;;  %7994 = vst.msk [vmem:[%s17207_s1 + $0x886] ss:$-220 sm:$0x30] %vm3_vm10, %v4281_v13   ;;  %v6396_v32 = vsel %vm148_vm6, %v8588_v12, %v6391_v17  ;;  %v6416_v53 = vsel %vm54_vm2, %v8593_v24, %v6412_v33  ;;  %v6276_v56 = vsel %vm6221_vm14, %v6274_v42, %v6258_v41  ;;  %6335 = vrot.lane.b32.xlu1 %v6334_v46, %s8820_s15  ;;  %v4448_v12 = vpop.permute.xlu1 %4447  }
 0x2ed   :  { %7995 = vst.msk [vmem:[%s17207_s1 - $0x54] ss:$292 sm:$0xc0] %vm3_vm10, %v4281_v13   ;;  %v8589_v23 = vld [vmem:[%s17206_s0 + $0x4e] sm:$0x80]   ;;  %6277 = vrot.lane.b32.xlu0 %v6276_v56, %s8820_s15  ;;  %s6715_s8 = smov 12 }
 0x2ee   :  { %v8618_v25 = vld [vmem:[%s17206_s0 + $0x71] ss:$28 sm:%s15336_s14]   ;;  %v8603_v30 = vld [vmem:[%s17206_s0 + $0x86] ss:$-21 sm:$0x1c]   ;;  %v6400_v52 = vsel %vm54_vm2, %v8589_v23, %v6396_v32  ;;  %v4419_v23 = vpop.permute.xlu0 %4418   ;;  %s6649_s21 = smov 192 }
 0x2ef   :  { %v8619_v26 = vld [vmem:[%s17206_s0 + $0xa2] ss:$-21 sm:%s15338_s20]   ;;  %s15415_s20 = smov 192  ;;  %8011 = vst.msk [vmem:[%s17207_s1 + $0x4c3] ss:$-220 sm:$0x7] %vm3_vm10, %v4348_v27   ;;  %v6418_v6 = vsel %vm6417_vm15, %v6416_v53, %v6400_v52 }
 0x2f0   :  { %8012 = vst.msk [vmem:[%s17207_s1 - $0x13b] ss:$292 sm:$0x18] %vm3_vm10, %v4348_v27   ;;  %8013 = vst.msk [vmem:[%s17207_s1 - $0x33b] ss:$292 sm:$0x60] %vm3_vm10, %v4348_v27   ;;  %v6500_v43 = vsel %vm46_vm0, %v8619_v26, %v8618_v25  ;;  %6419 = vrot.lane.b32.xlu1 %v6418_v6, %s8821_s30  ;;  %v4496_v31 = vpop.permute.xlu1 %4495  }
 0x2f1   :  { %8014 = vst.msk [vmem:[%s17207_s1 + $0x6bc] sm:$0x80] %vm3_vm10, %v4348_v27   ;;  %v8578_v34 = vld [vmem:[%s17206_s0 + $0xa3] ss:$28 sm:%s15323_s18]   ;;  %v8609_v63 = vld [vmem:[%s17206_s0 + $0xb1] sm:$0x80]  }
 0x2f2   :  { %v8579_v35 = vld [vmem:[%s17206_s0 + $0xd4] ss:$-21 sm:%s15325_s25]   ;;  %v8623_v44 = vld [vmem:[%s17206_s0 + $0xa3] ss:$-21 sm:%s15417_s5]   ;;  %s6456_s5 = smov 3  ;;  %s6600_s18 = smov 24 }
 0x2f3   :  { %v8580_v36 = vld [vmem:[%s17206_s0 + $0xa4] ss:$28 sm:%s15362_s13]   ;;  %v8622_v39 = vld [vmem:[%s17206_s0 + $0x72] ss:$28 sm:%s15380_s17]   ;;  %s6440_s17 = smov 3  ;;  %v6362_v1 = vsel %vm46_vm0, %v8579_v35, %v8578_v34  ;;  %s15912_s27 = smov 12 }
 0x2f4   :  { %v8581_v37 = vld [vmem:[%s17206_s0 + $0xd5] ss:$-21 sm:%s15364_s19]   ;;  %v8607_v45 = vld [vmem:[%s17206_s0 + $0x87] ss:$-21 sm:$0x1c]   ;;  %v6518_v48 = vsel %vm46_vm0, %v8623_v44, %v8622_v39  ;;  %s15515_s19 = smov 24 }
 0x2f5   :  { %v8620_v38 = vld [vmem:[%s17206_s0 + $0xd3] ss:$-21 sm:%s15378_s11]   ;;  %8004 = vst.msk [vmem:[%s17207_s1 + $0xc3] ss:$292 sm:$0x3] %vm3_vm10, %v4325_v40   ;;  %v6370_v2 = vsel %vm46_vm0, %v8581_v37, %v8580_v36  ;;  %s6644_s11 = smov 48 }
 0x2f6   :  { %8005 = vst.msk [vmem:[%s17207_s1 + $0x2bf] ss:$-218 sm:$0xc] %vm3_vm10, %v4325_v40   ;;  %8006 = vst.msk [vmem:[%s17207_s1 + $0x4c5] ss:$-220 sm:$0x30] %vm3_vm10, %v4325_v40   ;;  %v6505_v57 = vsel %vm105_vm3, %v8620_v38, %v6500_v43  ;;  %v6372_v18 = vsel %vm6221_vm14, %v6370_v2, %v6362_v1  ;;  %v4477_v38 = vpop.permute.xlu0 %4476  }
 0x2f7   :  { %8007 = vst.msk [vmem:[%s17207_s1 - $0x547] ss:$294 sm:$0xc0] %vm3_vm10, %v4325_v40   ;;  %v8621_v47 = vld [vmem:[%s17206_s0 - $0x6] ss:$28 sm:%s15415_s20]   ;;  %6373 = vrot.lane.b32.xlu0 %v6372_v18, %s8820_s15  ;;  %s6657_s20 = smov 12 }
 0x2f8   :  { %v8624_v49 = vld [vmem:[%s17206_s0 + $0xd4] ss:$-21 sm:%s15422_s28]   ;;  %8025 = vst.msk [vmem:[%s17207_s1 + $0x631] ss:$292 sm:$0x3] %vm3_vm10, %v4394_v51   ;;  %s15565_s28 = smov 3  ;;  %v6510_v13 = vsel %vm110_vm4, %v8621_v47, %v6505_v57  ;;  %v4546_v47 = vpop.permute.xlu1 %4545  }
 0x2f9   :  { %v8625_v50 = vld [vmem:[%s17206_s0 - $0x5] ss:$28 sm:%s15424_s16]   ;;  %s6463_s16 = smov 96  ;;  %v8602_v54 = vld [vmem:[%s17206_s0 + $0x86] ss:$-70 sm:%s6440_s17]   ;;  %s15526_s17 = smov 96  ;;  %v6523_v58 = vsel %vm105_vm3, %v8624_v49, %v6518_v48 }
 0x2fa   :  { %v8642_v55 = vld [vmem:[%s17206_s0 + $0x2a] ss:$-21 sm:$0x7]   ;;  %8026 = vst.msk [vmem:[%s17207_s1 + $0x431] ss:$292 sm:$0xc] %vm3_vm10, %v4394_v51   ;;  %v6445_v59 = vsel %vm143_vm5, %v8603_v30, %v8602_v54  ;;  %v6528_v14 = vsel %vm110_vm4, %v8625_v50, %v6523_v58 }
 0x2fb   :  { %v8604_v60 = vld [vmem:[%s17206_s0 + $0xb7] ss:$-21 sm:%s15472_s2]   ;;  %v8646_v5 = vld [vmem:[%s17206_s0 + $0x2b] ss:$-21 sm:$0x7]   ;;  %s6555_s2 = smov 12  ;;  %v6530_v28 = vsel %vm6417_vm15, %v6528_v14, %v6510_v13 }
 0x2fc   :  { %v8605_v61 = vld [vmem:[%s17206_s0 + $0xb0] sm:$0x80]   ;;  %v8606_v62 = vld [vmem:[%s17206_s0 + $0x87] ss:$-70 sm:%s6456_s5]   ;;  %v6450_v7 = vsel %vm148_vm6, %v8604_v60, %v6445_v59  ;;  %v8649_v17 = vld [vmem:[%s17206_s0 + $0x55] sm:$0x80]  }
 0x2fd   :  { %v6461_v3 = vsel %vm143_vm5, %v8607_v45, %v8606_v62  ;;  %v8608_v4 = vld [vmem:[%s17206_s0 + $0xb8] ss:$-21 sm:%s6463_s16]   ;;  %8019 = vst.msk [vmem:[%s17207_s1 + $0x5e7] ss:$-220 sm:$0x3] %vm3_vm10, %v4375_v0   ;;  %v6454_v24 = vsel %vm54_vm2, %v8605_v61, %v6450_v7  ;;  %s6712_s16 = smov 3  ;;  %6531 = vrot.lane.b32.xlu1 %v6530_v28, %s8821_s30  ;;  %v4594_v62 = vpop.permute.xlu1 %4593  }
 0x2fe   :  { %8020 = vst.msk [vmem:[%s17207_s1 + $0x1e9] ss:$292 sm:$0xc] %vm3_vm10, %v4375_v0   ;;  %8021 = vst.msk [vmem:[%s17207_s1 - $0x17] ss:$292 sm:$0x30] %vm3_vm10, %v4375_v0   ;;  %v6466_v8 = vsel %vm148_vm6, %v8608_v4, %v6461_v3 }
 0x2ff   :  { %8022 = vst.msk [vmem:[%s17207_s1 + $0xd0f] ss:$-220 sm:$0xc0] %vm3_vm10, %v4375_v0   ;;  %v8643_v9 = vld [vmem:[%s17206_s0 + $0x5b] ss:$-21 sm:%s15515_s19]   ;;  %v6470_v25 = vsel %vm54_vm2, %v8609_v63, %v6466_v8  ;;  %s6697_s19 = smov 12 }
 0x300   :  { %v8644_v10 = vld [vmem:[%s17206_s0 + $0x8c] ss:$-21 sm:%s15526_s17]   ;;  %v8645_v11 = vld [vmem:[%s17206_s0 + $0x54] sm:$0x80]   ;;  %v6587_v15 = vsel %vm241_vm7, %v8643_v9, %v8642_v55  ;;  %v6472_v35 = vsel %vm6417_vm15, %v6470_v25, %v6454_v24  ;;  %8070 = vst.msk [vmem:[%s17207_s1 + $0x73a] sm:$0x80] %vm3_vm10, %v4546_v47   ;;  %v4519_v55 = vpop.permute.xlu0 %4518  }
 0x301   :  { %v8647_v16 = vld [vmem:[%s17206_s0 + $0x5c] ss:$-21 sm:%s6600_s18]   ;;  %s6563_s18 = smov 12  ;;  %8039 = vst.msk [vmem:[%s17207_s1 + $0x502] ss:$-732 sm:$0x3] %vm3_vm10, %v4448_v12   ;;  %v6592_v19 = vsel %vm148_vm6, %v8644_v10, %v6587_v15  ;;  %6473 = vrot.lane.b32.xlu0 %v6472_v35, %s8821_s30 }
 0x302   :  { %8040 = vst.msk [vmem:[%s17207_s1 + $0x4fe] ss:$-218 sm:$0xc] %vm3_vm10, %v4448_v12   ;;  %8041 = vst.msk [vmem:[%s17207_s1 + $0x704] ss:$-220 sm:$0x30] %vm3_vm10, %v4448_v12   ;;  %v6603_v20 = vsel %vm241_vm7, %v8647_v16, %v8646_v5  ;;  %v6596_v32 = vsel %vm54_vm2, %v8645_v11, %v6592_v19  ;;  %v4644_v11 = vpop.permute.xlu1 %4643  }
 0x303   :  { %8042 = vst.msk [vmem:[%s17207_s1 - $0xf08] ss:$806 sm:$0xc0] %vm3_vm10, %v4448_v12   ;;  %v8648_v21 = vld [vmem:[%s17206_s0 + $0x8d] ss:$-21 sm:%s15553_s26]   ;;  %s8822_s5 = smov 2  }
 0x304   :  { %v8634_v22 = vld [vmem:[%s17206_s0 + $0xa9] ss:$-21 sm:%s15565_s28]   ;;  %s6694_s28 = smov 3  ;;  %v6608_v26 = vsel %vm148_vm6, %v8648_v21, %v6603_v20  ;;  %v8635_v27 = vld [vmem:[%s17206_s0 + $0xda] ss:$-21 sm:%s6555_s2]   ;;  %s6636_s2 = smov 3  ;;  %v4575_v3 = vpop.permute.xlu0 %4574  }
 0x305   :  { %8031 = vst.msk [vmem:[%s17207_s1 + $0x102] ss:$-220 sm:$0x3] %vm3_vm10, %v4419_v23   ;;  %8032 = vst.msk [vmem:[%s17207_s1 + $0x2fe] ss:$-218 sm:$0xc] %vm3_vm10, %v4419_v23   ;;  %v6612_v33 = vsel %vm54_vm2, %v8649_v17, %v6608_v26  ;;  %v6558_v39 = vsel %vm46_vm0, %v8635_v27, %v8634_v22 }
 0x306   :  { %8033 = vst.msk [vmem:[%s17207_s1 + $0x504] ss:$-220 sm:$0x30] %vm3_vm10, %v4419_v23   ;;  %8034 = vst.msk [vmem:[%s17207_s1 - $0x508] ss:$294 sm:$0xc0] %vm3_vm10, %v4419_v23   ;;  %v6614_v43 = vsel %vm6613_vm1, %v6612_v33, %v6596_v32  ;;  %v4692_v25 = vpop.permute.xlu1 %4691  }
 0x307   :  { %v8636_v29 = vld [vmem:[%s17206_s0 + $0xaa] ss:$-21 sm:%s6560_s3]   ;;  %v8637_v30 = vld [vmem:[%s17206_s0 + $0xdb] ss:$-21 sm:%s6563_s18]   ;;  %s6707_s18 = smov 192  ;;  %s6662_s3 = smov 48 }
 0x308   :  { %v8674_v34 = vld [vmem:[%s17206_s0 + $0x77] ss:$-21 sm:%s6694_s28]   ;;  %8053 = vst.msk [vmem:[%s17207_s1 + $0x670] ss:$292 sm:$0x3] %vm3_vm10, %v4496_v31   ;;  %v6566_v40 = vsel %vm46_vm0, %v8637_v30, %v8636_v29  ;;  %6615 = vrot.lane.b32.xlu1 %v6614_v43, %s8822_s5  ;;  %s6760_s15 = smov 3  ;;  %v4617_v19 = vpop.permute.xlu0 %4616  }
 0x309   :  { %8054 = vst.msk [vmem:[%s17207_s1 + $0x470] ss:$292 sm:$0xc] %vm3_vm10, %v4496_v31   ;;  %v8675_v36 = vld [vmem:[%s17206_s0 + $0xa8] ss:$-21 sm:%s6697_s19]   ;;  %s6720_s19 = smov 48  ;;  %v6568_v51 = vsel %vm6417_vm15, %v6566_v40, %v6558_v39 }
 0x30a   :  { %v8676_v37 = vld [vmem:[%s17206_s0 + $0xd9] ss:$-21 sm:%s6702_s24]   ;;  %v6700_v41 = vsel %vm46_vm0, %v8675_v36, %v8674_v34  ;;  %8047 = vst.msk [vmem:[%s17207_s1 + $0x426] ss:$292 sm:$0x3] %vm3_vm10, %v4477_v38   ;;  %6569 = vrot.lane.b32.xlu0 %v6568_v51, %s8821_s30  ;;  %s5484_s24 = smov 12 }
 0x30b   :  { %v8677_v42 = vld [vmem:[%s17206_s0 + $0x126] ss:$-21 sm:%s6707_s18]   ;;  %8048 = vst.msk [vmem:[%s17207_s1 + $0x228] ss:$292 sm:$0xc] %vm3_vm10, %v4477_v38   ;;  %v6705_v44 = vsel %vm105_vm3, %v8676_v37, %v6700_v41  ;;  %s5496_s28 = smov 3  ;;  %v4746_v41 = vpop.permute.xlu1 %4745  }
 0x30c   :  { %8049 = vst.msk [vmem:[%s17207_s1 + $0x28] ss:$292 sm:$0x30] %vm3_vm10, %v4477_v38   ;;  %8050 = vst.msk [vmem:[%s17207_s1 - $0xb2] ss:$292 sm:$0xc0] %vm3_vm10, %v4477_v38   ;;  %v6710_v48 = vsel %vm110_vm4, %v8677_v42, %v6705_v44  ;;  %v4673_v32 = vpop.permute.xlu0 %4672  }
 0x30d   :  { %v8678_v45 = vld [vmem:[%s17206_s0 + $0x78] ss:$-21 sm:%s6712_s16]   ;;  %v8679_v46 = vld [vmem:[%s17206_s0 + $0xa9] ss:$-21 sm:%s6715_s8]   ;;  %s6639_s16 = smov 12  ;;  %s5583_s8 = smov 3 }
 0x30e   :  { %v6718_v49 = vsel %vm46_vm0, %v8679_v46, %v8678_v45  ;;  %v8680_v50 = vld [vmem:[%s17206_s0 + $0xda] ss:$-21 sm:%s6720_s19]   ;;  %8067 = vst.msk [vmem:[%s17207_s1 + $0x541] ss:$-732 sm:$0x3] %vm3_vm10, %v4546_v47   ;;  %s5481_s19 = smov 3 }
 0x30f   :  { %8068 = vst.msk [vmem:[%s17207_s1 + $0x541] ss:$-220 sm:$0xc] %vm3_vm10, %v4546_v47   ;;  %8069 = vst.msk [vmem:[%s17207_s1 + $0x743] ss:$-220 sm:$0x70] %vm3_vm10, %v4546_v47   ;;  %v6723_v52 = vsel %vm105_vm3, %v8680_v50, %v6718_v49 }
 0x310   :  { %v8681_v53 = vld [vmem:[%s17206_s0 + $0x127] ss:$-21 sm:%s6725_s12]   ;;  %8059 = vst.msk [vmem:[%s17207_s1 + $0x141] ss:$-220 sm:$0x3] %vm3_vm10, %v4519_v55   ;;  %v4717_v47 = vpop.permute.xlu0 %4716   ;;  %vm5642_vm2 = vcmask 113760  }
 0x311   :  { %v8658_v54 = vld [vmem:[%s17206_s0 + $0x8c] ss:$-70 sm:%s6636_s2]   ;;  %s6654_s2 = smov 3  ;;  %v6728_v56 = vsel %vm110_vm4, %v8681_v53, %v6723_v52  ;;  %v8659_v57 = vld [vmem:[%s17206_s0 - $0x7] ss:$28 sm:%s6639_s16]   ;;  %s5567_s16 = smov 192 }
 0x312   :  { %8060 = vst.msk [vmem:[%s17207_s1 + $0x341] ss:$-220 sm:$0xc] %vm3_vm10, %v4519_v55   ;;  %8061 = vst.msk [vmem:[%s17207_s1 + $0x543] ss:$-220 sm:$0x70] %vm3_vm10, %v4519_v55   ;;  %v6730_v58 = vsel %vm6613_vm1, %v6728_v56, %v6710_v48  ;;  %v6642_v59 = vsel %vm46_vm0, %v8659_v57, %v8658_v54  ;;  %v4793_v54 = vpop.permute.xlu1 %4792  }
 0x313   :  { %8062 = vst.msk [vmem:[%s17207_s1 + $0x33a] sm:$0x80] %vm3_vm10, %v4519_v55   ;;  %v8660_v60 = vld [vmem:[%s17206_s0 - $0x38] ss:$28 sm:%s6644_s11]   ;;  %6731 = vrot.lane.b32.xlu1 %v6730_v58, %s8822_s5  ;;  %vm6025_vm5 = vcmask 64512   ;;  %vm6034_vm6 = vcmask 113728  }
 0x314   :  { %v8661_v61 = vld [vmem:[%s17206_s0 - $0x2b5] ss:$126 sm:%s6649_s21]   ;;  %s6667_s21 = smov 192  ;;  %v6647_v63 = vsel %vm105_vm3, %v8660_v60, %v6642_v59  ;;  %8081 = vst.msk [vmem:[%s17207_s1 + $0x6ad] ss:$294 sm:$0x3] %vm3_vm10, %v4594_v62   ;;  %v4774_v55 = vpop.permute.xlu0 %4773  }
 0x315   :  { %v8662_v0 = vld [vmem:[%s17206_s0 + $0x8d] ss:$-70 sm:%s6654_s2]   ;;  %8082 = vst.msk [vmem:[%s17207_s1 + $0x8af] ss:$-220 sm:$0xc] %vm3_vm10, %v4594_v62   ;;  %v6652_v4 = vsel %vm110_vm4, %v8661_v61, %v6647_v63  ;;  %s5533_s2 = smov 48 }
 0x316   :  { %v8663_v1 = vld [vmem:[%s17206_s0 - $0x6] ss:$28 sm:%s6657_s20]   ;;  %v8664_v2 = vld [vmem:[%s17206_s0 - $0x37] ss:$28 sm:%s6662_s3]   ;;  %s6752_s20 = smov 3  ;;  %s6755_s3 = smov 12  ;;  %v4847_v56 = vpop.permute.xlu1 %4846  }
 0x317   :  { %v6660_v5 = vsel %vm46_vm0, %v8663_v1, %v8662_v0  ;;  %v8665_v6 = vld [vmem:[%s17206_s0 - $0x2b4] ss:$126 sm:%s6667_s21]   ;;  %8075 = vst.msk [vmem:[%s17207_s1 + $0x465] ss:$292 sm:$0x3] %vm3_vm10, %v4575_v3   ;;  %s5504_s21 = smov 48 }
 0x318   :  { %8076 = vst.msk [vmem:[%s17207_s1 + $0x261] ss:$294 sm:$0xc] %vm3_vm10, %v4575_v3   ;;  %8077 = vst.msk [vmem:[%s17207_s1 + $0x867] ss:$-220 sm:$0x30] %vm3_vm10, %v4575_v3   ;;  %v6665_v7 = vsel %vm105_vm3, %v8664_v2, %v6660_v5  ;;  %v4818_v57 = vpop.permute.xlu0 %4817  }
 0x319   :  { %8078 = vst.msk [vmem:[%s17207_s1 - $0x73] ss:$292 sm:$0xc0] %vm3_vm10, %v4575_v3   ;;  %v8330_v8 = vld [vmem:[%s17206_s0 + $0xaf] ss:$-21 sm:%s5481_s19]   ;;  %v6670_v10 = vsel %vm110_vm4, %v8665_v6, %v6665_v7  ;;  %s15914_s19 = smov 48 }
 0x31a   :  { %v8331_v9 = vld [vmem:[%s17206_s0 + $0xe0] ss:$-21 sm:%s5484_s24]   ;;  %s5525_s24 = smov 3  ;;  %v8690_v13 = vld [vmem:[%s17206_s0 + $0xaf] ss:$-21 sm:%s6752_s20]   ;;  %v6672_v15 = vsel %vm6613_vm1, %v6670_v10, %v6652_v4  ;;  %v4895_v58 = vpop.permute.xlu1 %4894   ;;  %vm6225_vm7 = vcmask 48128  }
 0x31b   :  { %v5487_v12 = vsel %vm46_vm0, %v8331_v9, %v8330_v8  ;;  %v8691_v14 = vld [vmem:[%s17206_s0 + $0xe0] ss:$-21 sm:%s6755_s3]   ;;  %8095 = vst.msk [vmem:[%s17207_s1 + $0x580] ss:$-732 sm:$0x3] %vm3_vm10, %v4644_v11   ;;  %6673 = vrot.lane.b32.xlu0 %v6672_v15, %s8822_s5  ;;  %s8823_s3 = smov 14  }
 0x31c   :  { %8096 = vst.msk [vmem:[%s17207_s1 + $0x580] ss:$-220 sm:$0xc] %vm3_vm10, %v4644_v11   ;;  %8097 = vst.msk [vmem:[%s17207_s1 - $0x27e] ss:$292 sm:$0x30] %vm3_vm10, %v4644_v11   ;;  %v6758_v16 = vsel %vm46_vm0, %v8691_v14, %v8690_v13  ;;  %5488 = vrot.lane.b32.xlu1 %v5487_v12, %s8816_s9  ;;  %v4876_v59 = vpop.permute.xlu0 %4875  }
 0x31d   :  { %8098 = vst.msk [vmem:[%s17207_s1 - $0x1c8a] ss:$1318 sm:$0xc0] %vm3_vm10, %v4644_v11   ;;  %v8692_v17 = vld [vmem:[%s17206_s0 + $0xb0] ss:$-21 sm:%s6760_s15]   ;;  %vm6430_vm11 = vcmask 113696  }
 0x31e   :  { %v8693_v18 = vld [vmem:[%s17206_s0 + $0xe1] ss:$-21 sm:%s6763_s29]   ;;  %s5538_s29 = smov 192  ;;  %8087 = vst.msk [vmem:[%s17207_s1 + $0x180] ss:$-220 sm:$0x3] %vm3_vm10, %v4617_v19   ;;  %v4945_v60 = vpop.permute.xlu1 %4944  }
 0x31f   :  { %v6766_v20 = vsel %vm46_vm0, %v8693_v18, %v8692_v17  ;;  %v8342_v21 = vld [vmem:[%s17206_s0 + $0x7d] ss:$-70 sm:%s5525_s24]   ;;  %8088 = vst.msk [vmem:[%s17207_s1 + $0x380] ss:$-220 sm:$0xc] %vm3_vm10, %v4617_v19   ;;  %vm6617_vm12 = vcmask 15360  }
 0x320   :  { %8089 = vst.msk [vmem:[%s17207_s1 - $0x47e] ss:$292 sm:$0x30] %vm3_vm10, %v4617_v19   ;;  %8090 = vst.msk [vmem:[%s17207_s1 - $0x128a] ss:$806 sm:$0xc0] %vm3_vm10, %v4617_v19   ;;  %v6768_v22 = vsel %vm6613_vm1, %v6766_v20, %v6758_v16  ;;  %v4918_v61 = vpop.permute.xlu0 %4917  }
 0x321   :  { %v8343_v23 = vld [vmem:[%s17206_s0 + $0x7d] ss:$-21 sm:%s5528_s23]   ;;  %v8344_v24 = vld [vmem:[%s17206_s0 + $0xae] ss:$-21 sm:%s5533_s2]   ;;  %s5509_s2 = smov 192  ;;  %vm6626_vm13 = vcmask 113680  }
 0x322   :  { %v5531_v26 = vsel %vm46_vm0, %v8343_v23, %v8342_v21  ;;  %v8345_v27 = vld [vmem:[%s17206_s0 - $0x16d] ss:$77 sm:%s5538_s29]   ;;  %8109 = vst.msk [vmem:[%s17207_s1 + $0x6ec] ss:$-218 sm:$0x3] %vm3_vm10, %v4692_v25   ;;  %6769 = vrot.lane.b32.xlu0 %v6768_v22, %s8822_s5  ;;  %v4993_v62 = vpop.permute.xlu1 %4992  }
 0x323   :  { %v8334_v28 = vld [vmem:[%s17206_s0 + $0x1b] ss:$-21 sm:%s5496_s28]   ;;  %8110 = vst.msk [vmem:[%s17207_s1 + $0x8ee] ss:$-220 sm:$0xc] %vm3_vm10, %v4692_v25   ;;  %v5536_v29 = vsel %vm105_vm3, %v8344_v24, %v5531_v26 }
 0x324   :  { %v8335_v30 = vld [vmem:[%s17206_s0 + $0x4c] ss:$-21 sm:%s5499_s10]   ;;  %v8336_v31 = vld [vmem:[%s17206_s0 + $0x7d] ss:$-21 sm:%s5504_s21]   ;;  %s5586_s10 = smov 12  ;;  %s5554_s21 = smov 3  ;;  %v5541_v33 = vsel %vm110_vm4, %v8345_v27, %v5536_v29  ;;  %v4974_v63 = vpop.permute.xlu0 %4973  }
 0x325   :  { %v5502_v34 = vsel %vm46_vm0, %v8335_v30, %v8334_v28  ;;  %v8337_v35 = vld [vmem:[%s17206_s0 - $0x78] ss:$28 sm:%s5509_s2]   ;;  %8103 = vst.msk [vmem:[%s17207_s1 + $0x4a4] ss:$292 sm:$0x3] %vm3_vm10, %v4673_v32   ;;  %5542 = vrot.lane.b32.xlu1 %v5541_v33, %s8823_s3 }
 0x326   :  { %v2_v36 = vld [vmem:[%s17206_s0] ss:$7 sm:$0xff]   ;;  %8104 = vst.msk [vmem:[%s17207_s1 + $0x6a0] ss:$-218 sm:$0xc] %vm3_vm10, %v4673_v32   ;;  %v5507_v37 = vsel %vm105_vm3, %v8336_v31, %v5502_v34  ;;  %v5043_v0 = vpop.permute.xlu1 %5042  }
 0x327   :  { %8105 = vst.msk [vmem:[%s17207_s1 + $0x8a6] ss:$-220 sm:$0x30] %vm3_vm10, %v4673_v32   ;;  %8106 = vst.msk [vmem:[%s17207_s1 - $0x34] ss:$292 sm:$0xc0] %vm3_vm10, %v4673_v32   ;;  %v5512_v40 = vsel %vm110_vm4, %v8337_v35, %v5507_v37 }
 0x328   :  { %v8358_v38 = vld [vmem:[%s17206_s0 + $0xa0] ss:$28 sm:%s5583_s8]   ;;  %4 = vst.msk [vmem:[%s17207_s1] ss:$72 sm:$0x3] %vm3_vm10, %v2_v36   ;;  %5513 = vrot.lane.b32.xlu0 %v5512_v40, %s8823_s3  ;;  %v5016_v1 = vpop.permute.xlu0 %5015  }
 0x329   :  { %6781 = vst.msk [vmem:[%s17207_s1 + $0x2] ss:$72 sm:$0xc] %vm3_vm10, %v2_v36   ;;  %6782 = vst.msk [vmem:[%s17207_s1 + $0x4] ss:$72 sm:$0x30] %vm3_vm10, %v2_v36  }
 0x32a   :  { %6783 = vst.msk [vmem:[%s17207_s1 - $0x6] ss:$74 sm:$0xc0] %vm3_vm10, %v2_v36   ;;  %v6784_v39 = vld [vmem:[%s17206_s0 + $0x38] ss:$7 sm:$0xff]   ;;  %v5091_v2 = vpop.permute.xlu1 %5090  }
 0x32b   :  { %v8359_v42 = vld [vmem:[%s17206_s0 + $0x6f] ss:$28 sm:%s5586_s10]   ;;  %v8350_v43 = vld [vmem:[%s17206_s0 + $0x68] ss:$28 sm:%s5554_s21]  }
 0x32c   :  { %6785 = vst.msk [vmem:[%s17207_s1 + $0x248] ss:$74 sm:$0x3] %vm3_vm10, %v6784_v39   ;;  %6786 = vst.msk [vmem:[%s17207_s1 + $0x246] ss:$74 sm:$0xc] %vm3_vm10, %v6784_v39   ;;  %v5589_v44 = vsel %vm46_vm0, %v8359_v42, %v8358_v38  ;;  %v5072_v3 = vpop.permute.xlu0 %5071  }
 0x32d   :  { %6787 = vst.msk [vmem:[%s17207_s1 + $0x244] ss:$74 sm:$0x70] %vm3_vm10, %v6784_v39   ;;  %6788 = vst.msk [vmem:[%s17207_s1 + $0x441] sm:$0x80] %vm3_vm10, %v6784_v39   ;;  %5590 = vrot.lane.b32.xlu1 %v5589_v44, %s8823_s3 }
 0x32e   :  { %8123 = vst.msk [vmem:[%s17207_s1 + $0x4e3] ss:$-732 sm:$0x3] %vm3_vm10, %v4746_v41   ;;  %8124 = vst.msk [vmem:[%s17207_s1 + $0x4df] ss:$-218 sm:$0xc] %vm3_vm10, %v4746_v41   ;;  %v5145_v4 = vpop.permute.xlu1 %5144  }
 0x32f   :  { %8125 = vst.msk [vmem:[%s17207_s1 + $0x6e5] ss:$-220 sm:$0x30] %vm3_vm10, %v4746_v41   ;;  %8126 = vst.msk [vmem:[%s17207_s1 - $0xf27] ss:$806 sm:$0xc0] %vm3_vm10, %v4746_v41  }
 0x330   :  { %v8351_v45 = vld [vmem:[%s17206_s0 + $0x37] ss:$28 sm:%s15912_s27]   ;;  %v8352_v46 = vld [vmem:[%s17206_s0 + $0x6] ss:$28 sm:%s15914_s19]   ;;  %v5116_v5 = vpop.permute.xlu0 %5115  }
 0x331   :  { %v5560_v48 = vsel %vm46_vm0, %v8351_v45, %v8350_v43  ;;  %v8353_v49 = vld [vmem:[%s17206_s0 - $0xf] ss:$28 sm:%s5567_s16]   ;;  %8115 = vst.msk [vmem:[%s17207_s1 + $0xe3] ss:$-220 sm:$0x3] %vm3_vm10, %v4717_v47   ;;  %vm5633_vm0 = vcmask 97280  }
 0x332   :  { %v6789_v50 = vld [vmem:[%s17206_s0 + $0x70] ss:$7 sm:$0xff]   ;;  %8116 = vst.msk [vmem:[%s17207_s1 + $0x2df] ss:$-218 sm:$0xc] %vm3_vm10, %v4717_v47   ;;  %v5565_v51 = vsel %vm105_vm3, %v8352_v46, %v5560_v48  ;;  %v5193_v6 = vpop.permute.xlu1 %5192   ;;  %vm5829_vm3 = vcmask 80896  }
 0x333   :  { %8117 = vst.msk [vmem:[%s17207_s1 + $0x4e5] ss:$-220 sm:$0x30] %vm3_vm10, %v4717_v47   ;;  %8118 = vst.msk [vmem:[%s17207_s1 - $0x527] ss:$294 sm:$0xc0] %vm3_vm10, %v4717_v47   ;;  %v5570_v53 = vsel %vm110_vm4, %v8353_v49, %v5565_v51 }
 0x334   :  { %6790 = vst.msk [vmem:[%s17207_s1 + $0x492] ss:$72 sm:$0x3] %vm3_vm10, %v6789_v50   ;;  %6791 = vst.msk [vmem:[%s17207_s1 + $0x494] ss:$72 sm:$0xc] %vm3_vm10, %v6789_v50   ;;  %5571 = vrot.lane.b32.xlu0 %v5570_v53, %s8823_s3  ;;  %v5174_v7 = vpop.permute.xlu0 %5173  }
 0x335   :  { %6792 = vst.msk [vmem:[%s17207_s1 + $0x48e] ss:$74 sm:$0x30] %vm3_vm10, %v6789_v50   ;;  %6793 = vst.msk [vmem:[%s17207_s1 + $0x48c] ss:$74 sm:$0xc0] %vm3_vm10, %v6789_v50  }
 0x336   :  { %v6794_v52 = vld [vmem:[%s17206_s0 + $0xa8] ss:$7 sm:$0xf]   ;;  %8136 = vst.msk [vmem:[%s17207_s1 + $0x651] ss:$292 sm:$0x3] %vm3_vm10, %v4793_v54   ;;  %v5243_v8 = vpop.permute.xlu1 %5242  }
 0x337   :  { %6795 = vst.msk [vmem:[%s17207_s1 + $0x6da] ss:$74 sm:$0x3] %vm3_vm10, %v6794_v52   ;;  %6796 = vst.msk [vmem:[%s17207_s1 + $0x6d8] ss:$74 sm:$0xc] %vm3_vm10, %v6794_v52  }
 0x338   :  { %8137 = vst.msk [vmem:[%s17207_s1 + $0x451] ss:$292 sm:$0xc] %vm3_vm10, %v4793_v54   ;;  %8130 = vst.msk [vmem:[%s17207_s1 + $0x407] ss:$292 sm:$0x3] %vm3_vm10, %v4774_v55   ;;  %v5216_v9 = vpop.permute.xlu0 %5215  }
 0x339   :  { %8131 = vst.msk [vmem:[%s17207_s1 + $0x209] ss:$292 sm:$0xc] %vm3_vm10, %v4774_v55   ;;  %8132 = vst.msk [vmem:[%s17207_s1 + $0x9] ss:$292 sm:$0x30] %vm3_vm10, %v4774_v55  }
 0x33a   :  { %8133 = vst.msk [vmem:[%s17207_s1 - $0xd1] ss:$292 sm:$0xc0] %vm3_vm10, %v4774_v55   ;;  %8150 = vst.msk [vmem:[%s17207_s1 + $0x522] ss:$-732 sm:$0x3] %vm3_vm10, %v4847_v56   ;;  %v5291_v10 = vpop.permute.xlu1 %5290  }
 0x33b   :  { %8151 = vst.msk [vmem:[%s17207_s1 + $0x51e] ss:$-218 sm:$0xc] %vm3_vm10, %v4847_v56   ;;  %8152 = vst.msk [vmem:[%s17207_s1 + $0x724] ss:$-220 sm:$0x30] %vm3_vm10, %v4847_v56  }
 0x33c   :  { %8153 = vst.msk [vmem:[%s17207_s1 - $0xee8] ss:$806 sm:$0xc0] %vm3_vm10, %v4847_v56   ;;  %8142 = vst.msk [vmem:[%s17207_s1 + $0x122] ss:$-220 sm:$0x3] %vm3_vm10, %v4818_v57   ;;  %v5272_v11 = vpop.permute.xlu0 %5271  }
 0x33d   :  { %8143 = vst.msk [vmem:[%s17207_s1 + $0x31e] ss:$-218 sm:$0xc] %vm3_vm10, %v4818_v57   ;;  %8144 = vst.msk [vmem:[%s17207_s1 + $0x524] ss:$-220 sm:$0x30] %vm3_vm10, %v4818_v57  }
 0x33e   :  { %8145 = vst.msk [vmem:[%s17207_s1 - $0x4e8] ss:$294 sm:$0xc0] %vm3_vm10, %v4818_v57   ;;  %8164 = vst.msk [vmem:[%s17207_s1 + $0x690] ss:$292 sm:$0x3] %vm3_vm10, %v4895_v58   ;;  %v5341_v12 = vpop.permute.xlu1 %5340  }
 0x33f   :  { %8165 = vst.msk [vmem:[%s17207_s1 + $0x490] ss:$292 sm:$0xc] %vm3_vm10, %v4895_v58   ;;  %8158 = vst.msk [vmem:[%s17207_s1 + $0x446] ss:$292 sm:$0x3] %vm3_vm10, %v4876_v59  }
 0x340   :  { %8159 = vst.msk [vmem:[%s17207_s1 + $0x248] ss:$292 sm:$0xc] %vm3_vm10, %v4876_v59   ;;  %8160 = vst.msk [vmem:[%s17207_s1 + $0x48] ss:$292 sm:$0x30] %vm3_vm10, %v4876_v59   ;;  %v5314_v13 = vpop.permute.xlu0 %5313  }
 0x341   :  { %8161 = vst.msk [vmem:[%s17207_s1 - $0x92] ss:$292 sm:$0xc0] %vm3_vm10, %v4876_v59   ;;  %8178 = vst.msk [vmem:[%s17207_s1 + $0x561] ss:$-732 sm:$0x3] %vm3_vm10, %v4945_v60  }
 0x342   :  { %8179 = vst.msk [vmem:[%s17207_s1 + $0x561] ss:$-220 sm:$0xc] %vm3_vm10, %v4945_v60   ;;  %8180 = vst.msk [vmem:[%s17207_s1 + $0x763] ss:$-220 sm:$0x70] %vm3_vm10, %v4945_v60   ;;  %v5389_v14 = vpop.permute.xlu1 %5388  }
 0x343   :  { %8181 = vst.msk [vmem:[%s17207_s1 + $0x75a] sm:$0x80] %vm3_vm10, %v4945_v60   ;;  %8170 = vst.msk [vmem:[%s17207_s1 + $0x161] ss:$-220 sm:$0x3] %vm3_vm10, %v4918_v61   ;;  %vm5838_vm4 = vcmask 113744  }
 0x344   :  { %8171 = vst.msk [vmem:[%s17207_s1 + $0x361] ss:$-220 sm:$0xc] %vm3_vm10, %v4918_v61   ;;  %8172 = vst.msk [vmem:[%s17207_s1 + $0x563] ss:$-220 sm:$0x70] %vm3_vm10, %v4918_v61   ;;  %v5370_v15 = vpop.permute.xlu0 %5369  }
 0x345   :  { %8173 = vst.msk [vmem:[%s17207_s1 + $0x35a] sm:$0x80] %vm3_vm10, %v4918_v61   ;;  %8192 = vst.msk [vmem:[%s17207_s1 + $0x6cd] ss:$294 sm:$0x3] %vm3_vm10, %v4993_v62  }
 0x346   :  { %8193 = vst.msk [vmem:[%s17207_s1 + $0x8cf] ss:$-220 sm:$0xc] %vm3_vm10, %v4993_v62   ;;  %8186 = vst.msk [vmem:[%s17207_s1 + $0x485] ss:$292 sm:$0x3] %vm3_vm10, %v4974_v63   ;;  %v5441_v16 = vpop.permute.xlu1 %5440  }
 0x347   :  { %8187 = vst.msk [vmem:[%s17207_s1 + $0x281] ss:$294 sm:$0xc] %vm3_vm10, %v4974_v63   ;;  %8188 = vst.msk [vmem:[%s17207_s1 + $0x887] ss:$-220 sm:$0x30] %vm3_vm10, %v4974_v63  }
 0x348   :  { %8189 = vst.msk [vmem:[%s17207_s1 - $0x53] ss:$292 sm:$0xc0] %vm3_vm10, %v4974_v63   ;;  %8206 = vst.msk [vmem:[%s17207_s1 + $0x5a0] ss:$-732 sm:$0x3] %vm3_vm10, %v5043_v0   ;;  %v5412_v17 = vpop.permute.xlu0 %5411  }
 0x349   :  { %8207 = vst.msk [vmem:[%s17207_s1 + $0x5a0] ss:$-220 sm:$0xc] %vm3_vm10, %v5043_v0   ;;  %8208 = vst.msk [vmem:[%s17207_s1 - $0x25e] ss:$292 sm:$0x30] %vm3_vm10, %v5043_v0  }
 0x34a   :  { %8209 = vst.msk [vmem:[%s17207_s1 - $0x1c6a] ss:$1318 sm:$0xc0] %vm3_vm10, %v5043_v0   ;;  %8198 = vst.msk [vmem:[%s17207_s1 + $0x1a0] ss:$-220 sm:$0x3] %vm3_vm10, %v5016_v1   ;;  %v5632_v18 = vpop.permute.xlu1 %5631  }
 0x34b   :  { %8199 = vst.msk [vmem:[%s17207_s1 + $0x3a0] ss:$-220 sm:$0xc] %vm3_vm10, %v5016_v1   ;;  %8200 = vst.msk [vmem:[%s17207_s1 - $0x45e] ss:$292 sm:$0x30] %vm3_vm10, %v5016_v1  }
 0x34c   :  { %8201 = vst.msk [vmem:[%s17207_s1 - $0x126a] ss:$806 sm:$0xc0] %vm3_vm10, %v5016_v1   ;;  %8220 = vst.msk [vmem:[%s17207_s1 + $0x70c] ss:$-218 sm:$0x3] %vm3_vm10, %v5091_v2   ;;  %v5470_v19 = vpop.permute.xlu0 %5469  }
 0x34d   :  { %8221 = vst.msk [vmem:[%s17207_s1 + $0x90e] ss:$-220 sm:$0xc] %vm3_vm10, %v5091_v2   ;;  %8214 = vst.msk [vmem:[%s17207_s1 + $0x4c4] ss:$292 sm:$0x3] %vm3_vm10, %v5072_v3  }
 0x34e   :  { %8215 = vst.msk [vmem:[%s17207_s1 + $0x6c0] ss:$-218 sm:$0xc] %vm3_vm10, %v5072_v3   ;;  %8216 = vst.msk [vmem:[%s17207_s1 + $0x8c6] ss:$-220 sm:$0x30] %vm3_vm10, %v5072_v3   ;;  %v5744_v20 = vpop.permute.xlu1 %5743  }
 0x34f   :  { %8217 = vst.msk [vmem:[%s17207_s1 - $0x14] ss:$292 sm:$0xc0] %vm3_vm10, %v5072_v3   ;;  %8234 = vst.msk [vmem:[%s17207_s1 + $0x503] ss:$-732 sm:$0x3] %vm3_vm10, %v5145_v4  }
 0x350   :  { %8235 = vst.msk [vmem:[%s17207_s1 + $0x4ff] ss:$-218 sm:$0xc] %vm3_vm10, %v5145_v4   ;;  %8236 = vst.msk [vmem:[%s17207_s1 + $0x705] ss:$-220 sm:$0x30] %vm3_vm10, %v5145_v4   ;;  %v5686_v21 = vpop.permute.xlu0 %5685  }
 0x351   :  { %8237 = vst.msk [vmem:[%s17207_s1 - $0xf07] ss:$806 sm:$0xc0] %vm3_vm10, %v5145_v4   ;;  %8226 = vst.msk [vmem:[%s17207_s1 + $0x103] ss:$-220 sm:$0x3] %vm3_vm10, %v5116_v5  }
 0x352   :  { %8227 = vst.msk [vmem:[%s17207_s1 + $0x2ff] ss:$-218 sm:$0xc] %vm3_vm10, %v5116_v5   ;;  %8228 = vst.msk [vmem:[%s17207_s1 + $0x505] ss:$-220 sm:$0x30] %vm3_vm10, %v5116_v5   ;;  %v5828_v22 = vpop.permute.xlu1 %5827  }
 0x353   :  { %8229 = vst.msk [vmem:[%s17207_s1 - $0x507] ss:$294 sm:$0xc0] %vm3_vm10, %v5116_v5   ;;  %8248 = vst.msk [vmem:[%s17207_s1 + $0x671] ss:$292 sm:$0x3] %vm3_vm10, %v5193_v6  }
 0x354   :  { %8249 = vst.msk [vmem:[%s17207_s1 + $0x471] ss:$292 sm:$0xc] %vm3_vm10, %v5193_v6   ;;  %8242 = vst.msk [vmem:[%s17207_s1 + $0x427] ss:$292 sm:$0x3] %vm3_vm10, %v5174_v7   ;;  %v5782_v23 = vpop.permute.xlu0 %5781  }
 0x355   :  { %8243 = vst.msk [vmem:[%s17207_s1 + $0x229] ss:$292 sm:$0xc] %vm3_vm10, %v5174_v7   ;;  %8244 = vst.msk [vmem:[%s17207_s1 + $0x29] ss:$292 sm:$0x30] %vm3_vm10, %v5174_v7  }
 0x356   :  { %8245 = vst.msk [vmem:[%s17207_s1 - $0xb1] ss:$292 sm:$0xc0] %vm3_vm10, %v5174_v7   ;;  %8262 = vst.msk [vmem:[%s17207_s1 + $0x542] ss:$-732 sm:$0x3] %vm3_vm10, %v5243_v8   ;;  %v5940_v24 = vpop.permute.xlu1 %5939  }
 0x357   :  { %8263 = vst.msk [vmem:[%s17207_s1 + $0x53e] ss:$-218 sm:$0xc] %vm3_vm10, %v5243_v8   ;;  %8264 = vst.msk [vmem:[%s17207_s1 + $0x744] ss:$-220 sm:$0x70] %vm3_vm10, %v5243_v8  }
 0x358   :  { %8265 = vst.msk [vmem:[%s17207_s1 + $0x73b] sm:$0x80] %vm3_vm10, %v5243_v8   ;;  %8254 = vst.msk [vmem:[%s17207_s1 + $0x142] ss:$-220 sm:$0x3] %vm3_vm10, %v5216_v9   ;;  %v5882_v25 = vpop.permute.xlu0 %5881  }
 0x359   :  { %8255 = vst.msk [vmem:[%s17207_s1 + $0x33e] ss:$-218 sm:$0xc] %vm3_vm10, %v5216_v9   ;;  %8256 = vst.msk [vmem:[%s17207_s1 + $0x544] ss:$-220 sm:$0x70] %vm3_vm10, %v5216_v9  }
 0x35a   :  { %8257 = vst.msk [vmem:[%s17207_s1 + $0x33b] sm:$0x80] %vm3_vm10, %v5216_v9   ;;  %8276 = vst.msk [vmem:[%s17207_s1 + $0x6b0] ss:$292 sm:$0x3] %vm3_vm10, %v5291_v10   ;;  %v6024_v26 = vpop.permute.xlu1 %6023  }
 0x35b   :  { %8277 = vst.msk [vmem:[%s17207_s1 + $0x8b0] ss:$-220 sm:$0xc] %vm3_vm10, %v5291_v10   ;;  %8270 = vst.msk [vmem:[%s17207_s1 + $0x466] ss:$292 sm:$0x3] %vm3_vm10, %v5272_v11  }
 0x35c   :  { %8271 = vst.msk [vmem:[%s17207_s1 + $0x268] ss:$292 sm:$0xc] %vm3_vm10, %v5272_v11   ;;  %8272 = vst.msk [vmem:[%s17207_s1 + $0x868] ss:$-220 sm:$0x30] %vm3_vm10, %v5272_v11   ;;  %v5978_v27 = vpop.permute.xlu0 %5977  }
 0x35d   :  { %8273 = vst.msk [vmem:[%s17207_s1 - $0x72] ss:$292 sm:$0xc0] %vm3_vm10, %v5272_v11   ;;  %8290 = vst.msk [vmem:[%s17207_s1 + $0x581] ss:$-732 sm:$0x3] %vm3_vm10, %v5341_v12  }
 0x35e   :  { %8291 = vst.msk [vmem:[%s17207_s1 + $0x581] ss:$-220 sm:$0xc] %vm3_vm10, %v5341_v12   ;;  %8292 = vst.msk [vmem:[%s17207_s1 - $0x27d] ss:$292 sm:$0x30] %vm3_vm10, %v5341_v12   ;;  %v6140_v28 = vpop.permute.xlu1 %6139  }
 0x35f   :  { %8293 = vst.msk [vmem:[%s17207_s1 - $0x1c89] ss:$1318 sm:$0xc0] %vm3_vm10, %v5341_v12   ;;  %8282 = vst.msk [vmem:[%s17207_s1 + $0x181] ss:$-220 sm:$0x3] %vm3_vm10, %v5314_v13  }
 0x360   :  { %8283 = vst.msk [vmem:[%s17207_s1 + $0x381] ss:$-220 sm:$0xc] %vm3_vm10, %v5314_v13   ;;  %8284 = vst.msk [vmem:[%s17207_s1 - $0x47d] ss:$292 sm:$0x30] %vm3_vm10, %v5314_v13   ;;  %v6082_v29 = vpop.permute.xlu0 %6081  }
 0x361   :  { %8285 = vst.msk [vmem:[%s17207_s1 - $0x1289] ss:$806 sm:$0xc0] %vm3_vm10, %v5314_v13   ;;  %8304 = vst.msk [vmem:[%s17207_s1 + $0x6ed] ss:$-218 sm:$0x3] %vm3_vm10, %v5389_v14  }
 0x362   :  { %8305 = vst.msk [vmem:[%s17207_s1 + $0x8ef] ss:$-220 sm:$0xc] %vm3_vm10, %v5389_v14   ;;  %8298 = vst.msk [vmem:[%s17207_s1 + $0x4a5] ss:$292 sm:$0x3] %vm3_vm10, %v5370_v15   ;;  %v6224_v30 = vpop.permute.xlu1 %6223  }
 0x363   :  { %8299 = vst.msk [vmem:[%s17207_s1 + $0x6a1] ss:$-218 sm:$0xc] %vm3_vm10, %v5370_v15   ;;  %8300 = vst.msk [vmem:[%s17207_s1 + $0x8a7] ss:$-220 sm:$0x30] %vm3_vm10, %v5370_v15  }
 0x364   :  { %8301 = vst.msk [vmem:[%s17207_s1 - $0x33] ss:$292 sm:$0xc0] %vm3_vm10, %v5370_v15   ;;  %8318 = vst.msk [vmem:[%s17207_s1 + $0x5c0] ss:$-732 sm:$0x3] %vm3_vm10, %v5441_v16   ;;  %v6178_v31 = vpop.permute.xlu0 %6177  }
 0x365   :  { %8319 = vst.msk [vmem:[%s17207_s1 - $0x40] ss:$292 sm:$0xc] %vm3_vm10, %v5441_v16   ;;  %8320 = vst.msk [vmem:[%s17207_s1 - $0x23e] ss:$292 sm:$0x30] %vm3_vm10, %v5441_v16  }
 0x366   :  { %8321 = vst.msk [vmem:[%s17207_s1 - $0x1c4a] ss:$1318 sm:$0xc0] %vm3_vm10, %v5441_v16   ;;  %8310 = vst.msk [vmem:[%s17207_s1 + $0x1c0] ss:$-220 sm:$0x7] %vm3_vm10, %v5412_v17   ;;  %v6336_v32 = vpop.permute.xlu1 %6335  }
 0x367   :  { %8311 = vst.msk [vmem:[%s17207_s1 + $0x3ba] ss:$-218 sm:$0x18] %vm3_vm10, %v5412_v17   ;;  %8312 = vst.msk [vmem:[%s17207_s1 + $0x5c2] ss:$-220 sm:$0x60] %vm3_vm10, %v5412_v17  }
 0x368   :  { %8313 = vst.msk [vmem:[%s17207_s1 + $0x3b9] sm:$0x80] %vm3_vm10, %v5412_v17   ;;  %8326 = vst.msk [vmem:[%s17207_s1 + $0x4e4] ss:$-220 sm:$0x3] %vm3_vm10, %v5470_v19   ;;  %v6278_v33 = vpop.permute.xlu0 %6277  }
 0x369   :  { %8370 = vst.msk [vmem:[%s17207_s1 + $0x162] ss:$-220 sm:$0x3] %vm5633_vm0, %v5632_v18   ;;  %8371 = vst.msk [vmem:[%s17207_s1 + $0x35e] ss:$-218 sm:$0xc] %vm5633_vm0, %v5632_v18  }
 0x36a   :  { %8372 = vst.msk [vmem:[%s17207_s1 + $0x564] ss:$-220 sm:$0x70] %vm5633_vm0, %v5632_v18   ;;  %8373 = vst.msk [vmem:[%s17207_s1 + $0x35b] sm:$0x80] %vm5633_vm0, %v5632_v18   ;;  %v6420_v34 = vpop.permute.xlu1 %6419  }
 0x36b   :  { %8374 = vst.msk [vmem:[%s17207_s1 + $0x162] ss:$-220 sm:$0x3] %vm5642_vm2, %v5632_v18   ;;  %8375 = vst.msk [vmem:[%s17207_s1 + $0x35e] ss:$-218 sm:$0xc] %vm5642_vm2, %v5632_v18  }
 0x36c   :  { %8376 = vst.msk [vmem:[%s17207_s1 + $0x564] ss:$-220 sm:$0x70] %vm5642_vm2, %v5632_v18   ;;  %8377 = vst.msk [vmem:[%s17207_s1 + $0x35b] sm:$0x80] %vm5642_vm2, %v5632_v18   ;;  %v6374_v35 = vpop.permute.xlu0 %6373  }
 0x36d   :  { %8327 = vst.msk [vmem:[%s17207_s1 + $0x6e0] ss:$-218 sm:$0xc] %vm3_vm10, %v5470_v19   ;;  %8328 = vst.msk [vmem:[%s17207_s1 + $0x8e6] ss:$-220 sm:$0x30] %vm3_vm10, %v5470_v19  }
 0x36e   :  { %8329 = vst.msk [vmem:[%s17207_s1 + $0xc0c] ss:$-220 sm:$0xc0] %vm3_vm10, %v5470_v19  }
 0x36f   :  { %8402 = vst.msk [vmem:[%s17207_s1 + $0x486] ss:$292 sm:$0x3] %vm5633_vm0, %v5744_v20   ;;  %8403 = vst.msk [vmem:[%s17207_s1 + $0x288] ss:$292 sm:$0xc] %vm5633_vm0, %v5744_v20   ;;  %v6532_v36 = vpop.permute.xlu1 %6531  }
 0x370   :  { %8404 = vst.msk [vmem:[%s17207_s1 + $0x888] ss:$-220 sm:$0x30] %vm5633_vm0, %v5744_v20   ;;  %8405 = vst.msk [vmem:[%s17207_s1 - $0x52] ss:$292 sm:$0xc0] %vm5633_vm0, %v5744_v20  }
 0x371   :  { %8406 = vst.msk [vmem:[%s17207_s1 + $0x486] ss:$292 sm:$0x3] %vm5642_vm2, %v5744_v20   ;;  %8407 = vst.msk [vmem:[%s17207_s1 + $0x288] ss:$292 sm:$0xc] %vm5642_vm2, %v5744_v20  }
 0x372   :  { %8408 = vst.msk [vmem:[%s17207_s1 + $0x888] ss:$-220 sm:$0x30] %vm5642_vm2, %v5744_v20   ;;  %8409 = vst.msk [vmem:[%s17207_s1 - $0x52] ss:$292 sm:$0xc0] %vm5642_vm2, %v5744_v20  }
 0x373   :  { %8386 = vst.msk [vmem:[%s17207_s1 + $0x562] ss:$-732 sm:$0x3] %vm5633_vm0, %v5686_v21   ;;  %8387 = vst.msk [vmem:[%s17207_s1 + $0x55e] ss:$-218 sm:$0xc] %vm5633_vm0, %v5686_v21   ;;  %v6474_v37 = vpop.permute.xlu0 %6473  }
 0x374   :  { %8388 = vst.msk [vmem:[%s17207_s1 + $0x764] ss:$-220 sm:$0x70] %vm5633_vm0, %v5686_v21   ;;  %8389 = vst.msk [vmem:[%s17207_s1 + $0x75b] sm:$0x80] %vm5633_vm0, %v5686_v21  }
 0x375   :  { %8390 = vst.msk [vmem:[%s17207_s1 + $0x562] ss:$-732 sm:$0x3] %vm5642_vm2, %v5686_v21   ;;  %8391 = vst.msk [vmem:[%s17207_s1 + $0x55e] ss:$-218 sm:$0xc] %vm5642_vm2, %v5686_v21  }
 0x376   :  { %8392 = vst.msk [vmem:[%s17207_s1 + $0x764] ss:$-220 sm:$0x70] %vm5642_vm2, %v5686_v21   ;;  %8393 = vst.msk [vmem:[%s17207_s1 + $0x75b] sm:$0x80] %vm5642_vm2, %v5686_v21  }
 0x377   :  { %8426 = vst.msk [vmem:[%s17207_s1 + $0x1a1] ss:$-220 sm:$0x3] %vm5829_vm3, %v5828_v22   ;;  %8427 = vst.msk [vmem:[%s17207_s1 + $0x3a1] ss:$-220 sm:$0xc] %vm5829_vm3, %v5828_v22  }
 0x378   :  { %8428 = vst.msk [vmem:[%s17207_s1 - $0x45d] ss:$292 sm:$0x30] %vm5829_vm3, %v5828_v22   ;;  %8429 = vst.msk [vmem:[%s17207_s1 - $0x1269] ss:$806 sm:$0xc0] %vm5829_vm3, %v5828_v22  }
 0x379   :  { %8430 = vst.msk [vmem:[%s17207_s1 + $0x1a1] ss:$-220 sm:$0x3] %vm5838_vm4, %v5828_v22   ;;  %8431 = vst.msk [vmem:[%s17207_s1 + $0x3a1] ss:$-220 sm:$0xc] %vm5838_vm4, %v5828_v22  }
 0x37a   :  { %8432 = vst.msk [vmem:[%s17207_s1 - $0x45d] ss:$292 sm:$0x30] %vm5838_vm4, %v5828_v22   ;;  %8433 = vst.msk [vmem:[%s17207_s1 - $0x1269] ss:$806 sm:$0xc0] %vm5838_vm4, %v5828_v22   ;;  %v6616_v38 = vpop.permute.xlu1 %6615  }
 0x37b   :  { %8414 = vst.msk [vmem:[%s17207_s1 + $0x6d0] ss:$292 sm:$0x3] %vm5633_vm0, %v5782_v23   ;;  %8415 = vst.msk [vmem:[%s17207_s1 + $0x8d0] ss:$-220 sm:$0xc] %vm5633_vm0, %v5782_v23  }
 0x37c   :  { %8416 = vst.msk [vmem:[%s17207_s1 + $0x6d0] ss:$292 sm:$0x3] %vm5642_vm2, %v5782_v23   ;;  %8417 = vst.msk [vmem:[%s17207_s1 + $0x8d0] ss:$-220 sm:$0xc] %vm5642_vm2, %v5782_v23   ;;  %v6570_v39 = vpop.permute.xlu0 %6569  }
 0x37d   :  { %8458 = vst.msk [vmem:[%s17207_s1 + $0x4c5] ss:$292 sm:$0x3] %vm5829_vm3, %v5940_v24   ;;  %8459 = vst.msk [vmem:[%s17207_s1 + $0x6c1] ss:$-218 sm:$0xc] %vm5829_vm3, %v5940_v24  }
 0x37e   :  { %8460 = vst.msk [vmem:[%s17207_s1 + $0x8c7] ss:$-220 sm:$0x30] %vm5829_vm3, %v5940_v24   ;;  %8461 = vst.msk [vmem:[%s17207_s1 - $0x13] ss:$292 sm:$0xc0] %vm5829_vm3, %v5940_v24  }
 0x37f   :  { %8462 = vst.msk [vmem:[%s17207_s1 + $0x4c5] ss:$292 sm:$0x3] %vm5838_vm4, %v5940_v24   ;;  %8463 = vst.msk [vmem:[%s17207_s1 + $0x6c1] ss:$-218 sm:$0xc] %vm5838_vm4, %v5940_v24  }
 0x380   :  { %8464 = vst.msk [vmem:[%s17207_s1 + $0x8c7] ss:$-220 sm:$0x30] %vm5838_vm4, %v5940_v24   ;;  %8465 = vst.msk [vmem:[%s17207_s1 - $0x13] ss:$292 sm:$0xc0] %vm5838_vm4, %v5940_v24  }
 0x381   :  { %8442 = vst.msk [vmem:[%s17207_s1 + $0x5a1] ss:$-732 sm:$0x3] %vm5829_vm3, %v5882_v25   ;;  %8443 = vst.msk [vmem:[%s17207_s1 + $0x5a1] ss:$-220 sm:$0xc] %vm5829_vm3, %v5882_v25  }
 0x382   :  { %8444 = vst.msk [vmem:[%s17207_s1 - $0x25d] ss:$292 sm:$0x30] %vm5829_vm3, %v5882_v25   ;;  %8445 = vst.msk [vmem:[%s17207_s1 - $0x1c69] ss:$1318 sm:$0xc0] %vm5829_vm3, %v5882_v25  }
 0x383   :  { %8446 = vst.msk [vmem:[%s17207_s1 + $0x5a1] ss:$-732 sm:$0x3] %vm5838_vm4, %v5882_v25   ;;  %8447 = vst.msk [vmem:[%s17207_s1 + $0x5a1] ss:$-220 sm:$0xc] %vm5838_vm4, %v5882_v25  }
 0x384   :  { %8448 = vst.msk [vmem:[%s17207_s1 - $0x25d] ss:$292 sm:$0x30] %vm5838_vm4, %v5882_v25   ;;  %8449 = vst.msk [vmem:[%s17207_s1 - $0x1c69] ss:$1318 sm:$0xc0] %vm5838_vm4, %v5882_v25  }
 0x385   :  { %8482 = vst.msk [vmem:[%s17207_s1 + $0x1e0] ss:$-220 sm:$0x7] %vm6025_vm5, %v6024_v26   ;;  %8483 = vst.msk [vmem:[%s17207_s1 + $0x3da] ss:$-218 sm:$0x18] %vm6025_vm5, %v6024_v26   ;;  %v6732_v40 = vpop.permute.xlu1 %6731  }
 0x386   :  { %8484 = vst.msk [vmem:[%s17207_s1 + $0x5e2] ss:$-220 sm:$0x60] %vm6025_vm5, %v6024_v26   ;;  %8485 = vst.msk [vmem:[%s17207_s1 + $0x3d9] sm:$0x80] %vm6025_vm5, %v6024_v26  }
 0x387   :  { %8486 = vst.msk [vmem:[%s17207_s1 + $0x1e0] ss:$-220 sm:$0x7] %vm6034_vm6, %v6024_v26   ;;  %8487 = vst.msk [vmem:[%s17207_s1 + $0x3da] ss:$-218 sm:$0x18] %vm6034_vm6, %v6024_v26  }
 0x388   :  { %8488 = vst.msk [vmem:[%s17207_s1 + $0x5e2] ss:$-220 sm:$0x60] %vm6034_vm6, %v6024_v26   ;;  %8489 = vst.msk [vmem:[%s17207_s1 + $0x3d9] sm:$0x80] %vm6034_vm6, %v6024_v26  }
 0x389   :  { %8470 = vst.msk [vmem:[%s17207_s1 + $0x70d] ss:$-218 sm:$0x3] %vm5829_vm3, %v5978_v27   ;;  %8471 = vst.msk [vmem:[%s17207_s1 + $0x90f] ss:$-220 sm:$0xc] %vm5829_vm3, %v5978_v27  }
 0x38a   :  { %8472 = vst.msk [vmem:[%s17207_s1 + $0x70d] ss:$-218 sm:$0x3] %vm5838_vm4, %v5978_v27   ;;  %8473 = vst.msk [vmem:[%s17207_s1 + $0x90f] ss:$-220 sm:$0xc] %vm5838_vm4, %v5978_v27  }
 0x38b   :  { %8514 = vst.msk [vmem:[%s17207_s1 + $0x504] ss:$-220 sm:$0x3] %vm6025_vm5, %v6140_v28   ;;  %8515 = vst.msk [vmem:[%s17207_s1 + $0x700] ss:$-218 sm:$0xc] %vm6025_vm5, %v6140_v28  }
 0x38c   :  { %8516 = vst.msk [vmem:[%s17207_s1 + $0x906] ss:$-220 sm:$0x30] %vm6025_vm5, %v6140_v28   ;;  %8517 = vst.msk [vmem:[%s17207_s1 + $0xc2c] ss:$-220 sm:$0xc0] %vm6025_vm5, %v6140_v28  }
 0x38d   :  { %8518 = vst.msk [vmem:[%s17207_s1 + $0x504] ss:$-220 sm:$0x3] %vm6034_vm6, %v6140_v28   ;;  %8519 = vst.msk [vmem:[%s17207_s1 + $0x700] ss:$-218 sm:$0xc] %vm6034_vm6, %v6140_v28   ;;  %v6674_v41 = vpop.permute.xlu0 %6673  }
 0x38e   :  { %8520 = vst.msk [vmem:[%s17207_s1 + $0x906] ss:$-220 sm:$0x30] %vm6034_vm6, %v6140_v28   ;;  %8521 = vst.msk [vmem:[%s17207_s1 + $0xc2c] ss:$-220 sm:$0xc0] %vm6034_vm6, %v6140_v28   ;;  %v5489_v42 = vpop.permute.xlu1 %5488  }
 0x38f   :  { %8498 = vst.msk [vmem:[%s17207_s1 + $0x5e0] ss:$-732 sm:$0x3] %vm6025_vm5, %v6082_v29   ;;  %8499 = vst.msk [vmem:[%s17207_s1 - $0x20] ss:$292 sm:$0xc] %vm6025_vm5, %v6082_v29  }
 0x390   :  { %8500 = vst.msk [vmem:[%s17207_s1 - $0x21e] ss:$292 sm:$0x30] %vm6025_vm5, %v6082_v29   ;;  %8501 = vst.msk [vmem:[%s17207_s1 - $0x1c2a] ss:$1318 sm:$0xc0] %vm6025_vm5, %v6082_v29  }
 0x391   :  { %8502 = vst.msk [vmem:[%s17207_s1 + $0x5e0] ss:$-732 sm:$0x3] %vm6034_vm6, %v6082_v29   ;;  %8503 = vst.msk [vmem:[%s17207_s1 - $0x20] ss:$292 sm:$0xc] %vm6034_vm6, %v6082_v29  }
 0x392   :  { %8504 = vst.msk [vmem:[%s17207_s1 - $0x21e] ss:$292 sm:$0x30] %vm6034_vm6, %v6082_v29   ;;  %8505 = vst.msk [vmem:[%s17207_s1 - $0x1c2a] ss:$1318 sm:$0xc0] %vm6034_vm6, %v6082_v29  }
 0x393   :  { %8538 = vst.msk [vmem:[%s17207_s1 + $0x143] ss:$-220 sm:$0x3] %vm6225_vm7, %v6224_v30   ;;  %8539 = vst.msk [vmem:[%s17207_s1 + $0x33f] ss:$-218 sm:$0xc] %vm6225_vm7, %v6224_v30  }
 0x394   :  { %8540 = vst.msk [vmem:[%s17207_s1 + $0x545] ss:$-220 sm:$0x70] %vm6225_vm7, %v6224_v30   ;;  %8541 = vst.msk [vmem:[%s17207_s1 + $0x33c] sm:$0x80] %vm6225_vm7, %v6224_v30   ;;  %v6770_v43 = vpop.permute.xlu0 %6769  }
 0x395   :  { %8542 = vst.msk [vmem:[%s17207_s1 + $0x143] ss:$-220 sm:$0x3] %vm6234_vm8, %v6224_v30   ;;  %8543 = vst.msk [vmem:[%s17207_s1 + $0x33f] ss:$-218 sm:$0xc] %vm6234_vm8, %v6224_v30  }
 0x396   :  { %8544 = vst.msk [vmem:[%s17207_s1 + $0x545] ss:$-220 sm:$0x70] %vm6234_vm8, %v6224_v30   ;;  %8545 = vst.msk [vmem:[%s17207_s1 + $0x33c] sm:$0x80] %vm6234_vm8, %v6224_v30  }
 0x397   :  { %8526 = vst.msk [vmem:[%s17207_s1 + $0x74c] ss:$-218 sm:$0x3] %vm6025_vm5, %v6178_v31   ;;  %8527 = vst.msk [vmem:[%s17207_s1 + $0x94e] ss:$-220 sm:$0xc] %vm6025_vm5, %v6178_v31   ;;  %v5543_v44 = vpop.permute.xlu1 %5542  }
 0x398   :  { %8528 = vst.msk [vmem:[%s17207_s1 + $0x74c] ss:$-218 sm:$0x3] %vm6034_vm6, %v6178_v31   ;;  %8529 = vst.msk [vmem:[%s17207_s1 + $0x94e] ss:$-220 sm:$0xc] %vm6034_vm6, %v6178_v31  }
 0x399   :  { %8570 = vst.msk [vmem:[%s17207_s1 + $0x467] ss:$292 sm:$0x3] %vm6225_vm7, %v6336_v32   ;;  %8571 = vst.msk [vmem:[%s17207_s1 + $0x269] ss:$292 sm:$0xc] %vm6225_vm7, %v6336_v32  }
 0x39a   :  { %8572 = vst.msk [vmem:[%s17207_s1 + $0x869] ss:$-220 sm:$0x30] %vm6225_vm7, %v6336_v32   ;;  %8573 = vst.msk [vmem:[%s17207_s1 - $0x71] ss:$292 sm:$0xc0] %vm6225_vm7, %v6336_v32   ;;  %v5514_v45 = vpop.permute.xlu0 %5513  }
 0x39b   :  { %8574 = vst.msk [vmem:[%s17207_s1 + $0x467] ss:$292 sm:$0x3] %vm6234_vm8, %v6336_v32   ;;  %8575 = vst.msk [vmem:[%s17207_s1 + $0x269] ss:$292 sm:$0xc] %vm6234_vm8, %v6336_v32  }
 0x39c   :  { %8576 = vst.msk [vmem:[%s17207_s1 + $0x869] ss:$-220 sm:$0x30] %vm6234_vm8, %v6336_v32   ;;  %8577 = vst.msk [vmem:[%s17207_s1 - $0x71] ss:$292 sm:$0xc0] %vm6234_vm8, %v6336_v32  }
 0x39d   :  { %8554 = vst.msk [vmem:[%s17207_s1 + $0x543] ss:$-732 sm:$0x3] %vm6225_vm7, %v6278_v33   ;;  %8555 = vst.msk [vmem:[%s17207_s1 + $0x53f] ss:$-218 sm:$0xc] %vm6225_vm7, %v6278_v33  }
 0x39e   :  { %8556 = vst.msk [vmem:[%s17207_s1 + $0x745] ss:$-220 sm:$0x70] %vm6225_vm7, %v6278_v33   ;;  %8557 = vst.msk [vmem:[%s17207_s1 + $0x73c] sm:$0x80] %vm6225_vm7, %v6278_v33  }
 0x39f   :  { %8558 = vst.msk [vmem:[%s17207_s1 + $0x543] ss:$-732 sm:$0x3] %vm6234_vm8, %v6278_v33   ;;  %8559 = vst.msk [vmem:[%s17207_s1 + $0x53f] ss:$-218 sm:$0xc] %vm6234_vm8, %v6278_v33   ;;  %v5591_v46 = vpop.permute.xlu1 %5590  }
 0x3a0   :  { %8560 = vst.msk [vmem:[%s17207_s1 + $0x745] ss:$-220 sm:$0x70] %vm6234_vm8, %v6278_v33   ;;  %8561 = vst.msk [vmem:[%s17207_s1 + $0x73c] sm:$0x80] %vm6234_vm8, %v6278_v33  }
 0x3a1   :  { %8594 = vst.msk [vmem:[%s17207_s1 + $0x182] ss:$-220 sm:$0x3] %vm6421_vm9, %v6420_v34   ;;  %8595 = vst.msk [vmem:[%s17207_s1 + $0x37e] ss:$-218 sm:$0xc] %vm6421_vm9, %v6420_v34  }
 0x3a2   :  { %8596 = vst.msk [vmem:[%s17207_s1 - $0x47c] ss:$292 sm:$0x30] %vm6421_vm9, %v6420_v34   ;;  %8597 = vst.msk [vmem:[%s17207_s1 - $0x1288] ss:$806 sm:$0xc0] %vm6421_vm9, %v6420_v34  }
 0x3a3   :  { %8598 = vst.msk [vmem:[%s17207_s1 + $0x182] ss:$-220 sm:$0x3] %vm6430_vm11, %v6420_v34   ;;  %8599 = vst.msk [vmem:[%s17207_s1 + $0x37e] ss:$-218 sm:$0xc] %vm6430_vm11, %v6420_v34  }
 0x3a4   :  { %8600 = vst.msk [vmem:[%s17207_s1 - $0x47c] ss:$292 sm:$0x30] %vm6430_vm11, %v6420_v34   ;;  %8601 = vst.msk [vmem:[%s17207_s1 - $0x1288] ss:$806 sm:$0xc0] %vm6430_vm11, %v6420_v34  }
 0x3a5   :  { %8582 = vst.msk [vmem:[%s17207_s1 + $0x6b1] ss:$292 sm:$0x3] %vm6225_vm7, %v6374_v35   ;;  %8583 = vst.msk [vmem:[%s17207_s1 + $0x8b1] ss:$-220 sm:$0xc] %vm6225_vm7, %v6374_v35  }
 0x3a6   :  { %8584 = vst.msk [vmem:[%s17207_s1 + $0x6b1] ss:$292 sm:$0x3] %vm6234_vm8, %v6374_v35   ;;  %8585 = vst.msk [vmem:[%s17207_s1 + $0x8b1] ss:$-220 sm:$0xc] %vm6234_vm8, %v6374_v35   ;;  %v5572_v47 = vpop.permute.xlu0 %5571  }
 0x3a7   :  { %8626 = vst.msk [vmem:[%s17207_s1 + $0x4a6] ss:$292 sm:$0x3] %vm6421_vm9, %v6532_v36   ;;  %8627 = vst.msk [vmem:[%s17207_s1 + $0x6a8] ss:$-220 sm:$0xc] %vm6421_vm9, %v6532_v36  }
 0x3a8   :  { %8628 = vst.msk [vmem:[%s17207_s1 + $0x8a8] ss:$-220 sm:$0x30] %vm6421_vm9, %v6532_v36   ;;  %8629 = vst.msk [vmem:[%s17207_s1 - $0x32] ss:$292 sm:$0xc0] %vm6421_vm9, %v6532_v36  }
 0x3a9   :  { %8630 = vst.msk [vmem:[%s17207_s1 + $0x4a6] ss:$292 sm:$0x3] %vm6430_vm11, %v6532_v36   ;;  %8631 = vst.msk [vmem:[%s17207_s1 + $0x6a8] ss:$-220 sm:$0xc] %vm6430_vm11, %v6532_v36  }
 0x3aa   :  { %8632 = vst.msk [vmem:[%s17207_s1 + $0x8a8] ss:$-220 sm:$0x30] %vm6430_vm11, %v6532_v36   ;;  %8633 = vst.msk [vmem:[%s17207_s1 - $0x32] ss:$292 sm:$0xc0] %vm6430_vm11, %v6532_v36  }
 0x3ab   :  { %8610 = vst.msk [vmem:[%s17207_s1 + $0x582] ss:$-732 sm:$0x3] %vm6421_vm9, %v6474_v37   ;;  %8611 = vst.msk [vmem:[%s17207_s1 + $0x57e] ss:$-218 sm:$0xc] %vm6421_vm9, %v6474_v37  }
 0x3ac   :  { %8612 = vst.msk [vmem:[%s17207_s1 - $0x27c] ss:$292 sm:$0x30] %vm6421_vm9, %v6474_v37   ;;  %8613 = vst.msk [vmem:[%s17207_s1 - $0x1c88] ss:$1318 sm:$0xc0] %vm6421_vm9, %v6474_v37  }
 0x3ad   :  { %8614 = vst.msk [vmem:[%s17207_s1 + $0x582] ss:$-732 sm:$0x3] %vm6430_vm11, %v6474_v37   ;;  %8615 = vst.msk [vmem:[%s17207_s1 + $0x57e] ss:$-218 sm:$0xc] %vm6430_vm11, %v6474_v37  }
 0x3ae   :  { %8616 = vst.msk [vmem:[%s17207_s1 - $0x27c] ss:$292 sm:$0x30] %vm6430_vm11, %v6474_v37   ;;  %8617 = vst.msk [vmem:[%s17207_s1 - $0x1c88] ss:$1318 sm:$0xc0] %vm6430_vm11, %v6474_v37  }
 0x3af   :  { %8650 = vst.msk [vmem:[%s17207_s1 + $0x1c1] ss:$-220 sm:$0x7] %vm6617_vm12, %v6616_v38   ;;  %8651 = vst.msk [vmem:[%s17207_s1 + $0x3bb] ss:$-218 sm:$0x18] %vm6617_vm12, %v6616_v38  }
 0x3b0   :  { %8652 = vst.msk [vmem:[%s17207_s1 + $0x5c3] ss:$-220 sm:$0x60] %vm6617_vm12, %v6616_v38   ;;  %8653 = vst.msk [vmem:[%s17207_s1 + $0x3ba] sm:$0x80] %vm6617_vm12, %v6616_v38  }
 0x3b1   :  { %8654 = vst.msk [vmem:[%s17207_s1 + $0x1c1] ss:$-220 sm:$0x7] %vm6626_vm13, %v6616_v38   ;;  %8655 = vst.msk [vmem:[%s17207_s1 + $0x3bb] ss:$-218 sm:$0x18] %vm6626_vm13, %v6616_v38  }
 0x3b2   :  { %8656 = vst.msk [vmem:[%s17207_s1 + $0x5c3] ss:$-220 sm:$0x60] %vm6626_vm13, %v6616_v38   ;;  %8657 = vst.msk [vmem:[%s17207_s1 + $0x3ba] sm:$0x80] %vm6626_vm13, %v6616_v38  }
 0x3b3   :  { %8638 = vst.msk [vmem:[%s17207_s1 + $0x6f0] ss:$-220 sm:$0x3] %vm6421_vm9, %v6570_v39   ;;  %8639 = vst.msk [vmem:[%s17207_s1 + $0x8f0] ss:$-220 sm:$0xc] %vm6421_vm9, %v6570_v39  }
 0x3b4   :  { %8640 = vst.msk [vmem:[%s17207_s1 + $0x6f0] ss:$-220 sm:$0x3] %vm6430_vm11, %v6570_v39   ;;  %8641 = vst.msk [vmem:[%s17207_s1 + $0x8f0] ss:$-220 sm:$0xc] %vm6430_vm11, %v6570_v39  }
 0x3b5   :  { %8682 = vst.msk [vmem:[%s17207_s1 + $0x4e5] ss:$-220 sm:$0x3] %vm6617_vm12, %v6732_v40   ;;  %8683 = vst.msk [vmem:[%s17207_s1 + $0x6e1] ss:$-218 sm:$0xc] %vm6617_vm12, %v6732_v40  }
 0x3b6   :  { %8684 = vst.msk [vmem:[%s17207_s1 + $0x8e7] ss:$-220 sm:$0x30] %vm6617_vm12, %v6732_v40   ;;  %8685 = vst.msk [vmem:[%s17207_s1 + $0xc0d] ss:$-220 sm:$0xc0] %vm6617_vm12, %v6732_v40  }
 0x3b7   :  { %8686 = vst.msk [vmem:[%s17207_s1 + $0x4e5] ss:$-220 sm:$0x3] %vm6626_vm13, %v6732_v40   ;;  %8687 = vst.msk [vmem:[%s17207_s1 + $0x6e1] ss:$-218 sm:$0xc] %vm6626_vm13, %v6732_v40  }
 0x3b8   :  { %8688 = vst.msk [vmem:[%s17207_s1 + $0x8e7] ss:$-220 sm:$0x30] %vm6626_vm13, %v6732_v40   ;;  %8689 = vst.msk [vmem:[%s17207_s1 + $0xc0d] ss:$-220 sm:$0xc0] %vm6626_vm13, %v6732_v40  }
 0x3b9   :  { %8666 = vst.msk [vmem:[%s17207_s1 + $0x5c1] ss:$-732 sm:$0x3] %vm6617_vm12, %v6674_v41   ;;  %8667 = vst.msk [vmem:[%s17207_s1 - $0x3f] ss:$292 sm:$0xc] %vm6617_vm12, %v6674_v41  }
 0x3ba   :  { %8668 = vst.msk [vmem:[%s17207_s1 - $0x23d] ss:$292 sm:$0x30] %vm6617_vm12, %v6674_v41   ;;  %8669 = vst.msk [vmem:[%s17207_s1 - $0x1c49] ss:$1318 sm:$0xc0] %vm6617_vm12, %v6674_v41  }
 0x3bb   :  { %8332 = vst.msk [vmem:[%s17207_s1 + $0x72c] ss:$-218 sm:$0x3] %vm3_vm10, %v5489_v42   ;;  %8333 = vst.msk [vmem:[%s17207_s1 + $0x92e] ss:$-220 sm:$0xc] %vm3_vm10, %v5489_v42  }
 0x3bc   :  { %8670 = vst.msk [vmem:[%s17207_s1 + $0x5c1] ss:$-732 sm:$0x3] %vm6626_vm13, %v6674_v41   ;;  %8671 = vst.msk [vmem:[%s17207_s1 - $0x3f] ss:$292 sm:$0xc] %vm6626_vm13, %v6674_v41  }
 0x3bd   :  { %8672 = vst.msk [vmem:[%s17207_s1 - $0x23d] ss:$292 sm:$0x30] %vm6626_vm13, %v6674_v41   ;;  %8673 = vst.msk [vmem:[%s17207_s1 - $0x1c49] ss:$1318 sm:$0xc0] %vm6626_vm13, %v6674_v41  }
 0x3be   :  { %8694 = vst.msk [vmem:[%s17207_s1 + $0x72d] ss:$-218 sm:$0x3] %vm6617_vm12, %v6770_v43   ;;  %8695 = vst.msk [vmem:[%s17207_s1 + $0x92f] ss:$-220 sm:$0xc] %vm6617_vm12, %v6770_v43  }
 0x3bf   :  { %8696 = vst.msk [vmem:[%s17207_s1 + $0x72d] ss:$-218 sm:$0x3] %vm6626_vm13, %v6770_v43   ;;  %8697 = vst.msk [vmem:[%s17207_s1 + $0x92f] ss:$-220 sm:$0xc] %vm6626_vm13, %v6770_v43  }
 0x3c0   :  { %8346 = vst.msk [vmem:[%s17207_s1 + $0x523] ss:$-732 sm:$0x3] %vm3_vm10, %v5543_v44   ;;  %8347 = vst.msk [vmem:[%s17207_s1 + $0x51f] ss:$-218 sm:$0xc] %vm3_vm10, %v5543_v44  }
 0x3c1   :  { %8348 = vst.msk [vmem:[%s17207_s1 + $0x725] ss:$-220 sm:$0x30] %vm3_vm10, %v5543_v44   ;;  %8349 = vst.msk [vmem:[%s17207_s1 - $0xee7] ss:$806 sm:$0xc0] %vm3_vm10, %v5543_v44  }
 0x3c2   :  { %8338 = vst.msk [vmem:[%s17207_s1 + $0x123] ss:$-220 sm:$0x3] %vm3_vm10, %v5514_v45   ;;  %8339 = vst.msk [vmem:[%s17207_s1 + $0x31f] ss:$-218 sm:$0xc] %vm3_vm10, %v5514_v45  }
 0x3c3   :  { %8340 = vst.msk [vmem:[%s17207_s1 + $0x525] ss:$-220 sm:$0x30] %vm3_vm10, %v5514_v45   ;;  %8341 = vst.msk [vmem:[%s17207_s1 - $0x4e7] ss:$294 sm:$0xc0] %vm3_vm10, %v5514_v45  }
 0x3c4   :  { %8360 = vst.msk [vmem:[%s17207_s1 + $0x691] ss:$292 sm:$0x3] %vm3_vm10, %v5591_v46   ;;  %8361 = vst.msk [vmem:[%s17207_s1 + $0x491] ss:$292 sm:$0xc] %vm3_vm10, %v5591_v46  }
 0x3c5   :  { %8354 = vst.msk [vmem:[%s17207_s1 + $0x447] ss:$292 sm:$0x3] %vm3_vm10, %v5572_v47   ;;  %8355 = vst.msk [vmem:[%s17207_s1 + $0x249] ss:$292 sm:$0xc] %vm3_vm10, %v5572_v47  }
 0x3c6   :  { %8356 = vst.msk [vmem:[%s17207_s1 + $0x49] ss:$292 sm:$0x30] %vm3_vm10, %v5572_v47   ;;  %8357 = vst.msk [vmem:[%s17207_s1 - $0x91] ss:$292 sm:$0xc0] %vm3_vm10, %v5572_v47  }

// kernel: upscale_forward.1
= control target key start
LH: loop header
LB: loop body
LE: loop exit
PB: predicated region body
PF: predicated region fallthrough
CT: control target
= control target key end

     0   :  { %s439_s0 = inlined_call_operand.<no memory space> [shape: f32[1], index: 0, kind: input, shape index: {}]   ;;  %s440_s1 = inlined_call_operand.vmem [shape: f32[2,196,128], index: 1, kind: input, shape index: {}]   ;;  %s441_s2 = inlined_call_operand.vmem [shape: f32[1,196,128], index: 2, kind: output, shape index: {}]  }
   0x1   :  { %v12_v0 = vld [vmem:[%s440_s1] sm:$0xff]  ;;  %v144_v1 = vld [vmem:[%s440_s1 + $0xc8] sm:$0xff]  ;;  %v193_v2 = vstv %s439_s0  ;;  %v145_v5 = vld [vmem:[%s440_s1 + $0xd0] sm:$0xff] }
   0x2   :  { %v13_v3 = vld [vmem:[%s440_s1 + $0x8] sm:$0xff]  ;;  %v65_v4 = vmul.f32 %v193_v2, %v12_v0  ;;  %v14_v7 = vld [vmem:[%s440_s1 + $0x10] sm:$0xff]  ;;  %v146_v8 = vld [vmem:[%s440_s1 + $0xd8] sm:$0xff] }
   0x3   :  { %v66_v6 = vmul.f32 %v193_v2, %v13_v3  ;;  %v67_v9 = vmul.f32 %v193_v2, %v14_v7  ;;  %v15_v10 = vld [vmem:[%s440_s1 + $0x18] sm:$0xff]  ;;  %v147_v11 = vld [vmem:[%s440_s1 + $0xe0] sm:$0xff]  ;;  %v148_v16 = vld [vmem:[%s440_s1 + $0xe8] sm:$0xff] }
   0x4   :  { %v16_v12 = vld [vmem:[%s440_s1 + $0x20] sm:$0xff]  ;;  %v90_v13 = vadd.f32 %v144_v1, %v65_v4  ;;  %v68_v15 = vmul.f32 %v193_v2, %v15_v10  ;;  %v17_v18 = vld [vmem:[%s440_s1 + $0x28] sm:$0xff]  ;;  %v149_v19 = vld [vmem:[%s440_s1 + $0xf0] sm:$0xff] }
   0x5   :  { %v91_v14 = vadd.f32 %v145_v5, %v66_v6  ;;  %v69_v17 = vmul.f32 %v193_v2, %v16_v12  ;;  %v92_v20 = vadd.f32 %v146_v8, %v67_v9  ;;  %v70_v21 = vmul.f32 %v193_v2, %v17_v18  ;;  %v18_v22 = vld [vmem:[%s440_s1 + $0x30] sm:$0xff]  ;;  %v150_v23 = vld [vmem:[%s440_s1 + $0xf8] sm:$0xff]  ;;  %v151_v28 = vld [vmem:[%s440_s1 + $0x100] sm:$0xff] }
   0x6   :  { %v19_v24 = vld [vmem:[%s440_s1 + $0x38] sm:$0xff]  ;;  %115 = vst [vmem:[%s441_s2] sm:$0xff] %v90_v13  ;;  %v93_v25 = vadd.f32 %v147_v11, %v68_v15  ;;  %v71_v27 = vmul.f32 %v193_v2, %v18_v22  ;;  %v20_v30 = vld [vmem:[%s440_s1 + $0x40] sm:$0xff]  ;;  %v152_v31 = vld [vmem:[%s440_s1 + $0x108] sm:$0xff] }
   0x7   :  { %116 = vst [vmem:[%s441_s2 + $0x8] sm:$0xff] %v91_v14  ;;  %v94_v26 = vadd.f32 %v148_v16, %v69_v17  ;;  %v72_v29 = vmul.f32 %v193_v2, %v19_v24  ;;  %117 = vst [vmem:[%s441_s2 + $0x10] sm:$0xff] %v92_v20  ;;  %v95_v32 = vadd.f32 %v149_v19, %v70_v21  ;;  %v21_v34 = vld [vmem:[%s440_s1 + $0x48] sm:$0xff]  ;;  %v153_v35 = vld [vmem:[%s440_s1 + $0x110] sm:$0xff] }
   0x8   :  { %v73_v33 = vmul.f32 %v193_v2, %v20_v30  ;;  %v22_v36 = vld [vmem:[%s440_s1 + $0x50] sm:$0xff]  ;;  %118 = vst [vmem:[%s441_s2 + $0x18] sm:$0xff] %v93_v25  ;;  %v96_v37 = vadd.f32 %v150_v23, %v71_v27  ;;  %v74_v39 = vmul.f32 %v193_v2, %v21_v34  ;;  %v154_v40 = vld [vmem:[%s440_s1 + $0x118] sm:$0xff]  ;;  %v155_v43 = vld [vmem:[%s440_s1 + $0x120] sm:$0xff] }
   0x9   :  { %119 = vst [vmem:[%s441_s2 + $0x20] sm:$0xff] %v94_v26  ;;  %v97_v38 = vadd.f32 %v151_v28, %v72_v29  ;;  %v75_v41 = vmul.f32 %v193_v2, %v22_v36  ;;  %v23_v42 = vld [vmem:[%s440_s1 + $0x58] sm:$0xff]  ;;  %120 = vst [vmem:[%s441_s2 + $0x28] sm:$0xff] %v95_v32  ;;  %v24_v46 = vld [vmem:[%s440_s1 + $0x60] sm:$0xff] }
   0xa   :  { %v98_v44 = vadd.f32 %v152_v31, %v73_v33  ;;  %v76_v45 = vmul.f32 %v193_v2, %v23_v42  ;;  %v156_v47 = vld [vmem:[%s440_s1 + $0x128] sm:$0xff]  ;;  %121 = vst [vmem:[%s441_s2 + $0x30] sm:$0xff] %v96_v37  ;;  %v99_v49 = vadd.f32 %v153_v35, %v74_v39  ;;  %v77_v51 = vmul.f32 %v193_v2, %v24_v46  ;;  %v157_v52 = vld [vmem:[%s440_s1 + $0x130] sm:$0xff]  ;;  %v158_v55 = vld [vmem:[%s440_s1 + $0x138] sm:$0xff] }
   0xb   :  { %v25_v48 = vld [vmem:[%s440_s1 + $0x68] sm:$0xff]  ;;  %122 = vst [vmem:[%s441_s2 + $0x38] sm:$0xff] %v97_v38  ;;  %v100_v50 = vadd.f32 %v154_v40, %v75_v41  ;;  %v26_v54 = vld [vmem:[%s440_s1 + $0x70] sm:$0xff]  ;;  %v27_v58 = vld [vmem:[%s440_s1 + $0x78] sm:$0xff] }
   0xc   :  { %v78_v53 = vmul.f32 %v193_v2, %v25_v48  ;;  %123 = vst [vmem:[%s441_s2 + $0x40] sm:$0xff] %v98_v44  ;;  %v101_v56 = vadd.f32 %v155_v43, %v76_v45  ;;  %v79_v57 = vmul.f32 %v193_v2, %v26_v54  ;;  %v159_v59 = vld [vmem:[%s440_s1 + $0x140] sm:$0xff]  ;;  %124 = vst [vmem:[%s441_s2 + $0x48] sm:$0xff] %v99_v49  ;;  %v160_v0 = vld [vmem:[%s440_s1 + $0x148] sm:$0xff] }
   0xd   :  { %v28_v60 = vld [vmem:[%s440_s1 + $0x80] sm:$0xff]  ;;  %125 = vst [vmem:[%s441_s2 + $0x50] sm:$0xff] %v100_v50  ;;  %v102_v61 = vadd.f32 %v156_v47, %v77_v51  ;;  %v80_v63 = vmul.f32 %v193_v2, %v27_v58  ;;  %v29_v3 = vld [vmem:[%s440_s1 + $0x88] sm:$0xff]  ;;  %v161_v4 = vld [vmem:[%s440_s1 + $0x150] sm:$0xff] }
   0xe   :  { %v103_v62 = vadd.f32 %v157_v52, %v78_v53  ;;  %v81_v1 = vmul.f32 %v193_v2, %v28_v60  ;;  %126 = vst [vmem:[%s441_s2 + $0x58] sm:$0xff] %v101_v56  ;;  %v104_v5 = vadd.f32 %v158_v55, %v79_v57  ;;  %v82_v6 = vmul.f32 %v193_v2, %v29_v3  ;;  %v30_v7 = vld [vmem:[%s440_s1 + $0x90] sm:$0xff]  ;;  %v162_v8 = vld [vmem:[%s440_s1 + $0x158] sm:$0xff]  ;;  %v163_v13 = vld [vmem:[%s440_s1 + $0x160] sm:$0xff] }
   0xf   :  { %v31_v9 = vld [vmem:[%s440_s1 + $0x98] sm:$0xff]  ;;  %127 = vst [vmem:[%s441_s2 + $0x60] sm:$0xff] %v102_v61  ;;  %v105_v10 = vadd.f32 %v159_v59, %v80_v63  ;;  %v83_v12 = vmul.f32 %v193_v2, %v30_v7  ;;  %v32_v15 = vld [vmem:[%s440_s1 + $0xa0] sm:$0xff]  ;;  %v164_v16 = vld [vmem:[%s440_s1 + $0x168] sm:$0xff] }
  0x10   :  { %128 = vst [vmem:[%s441_s2 + $0x68] sm:$0xff] %v103_v62  ;;  %v106_v11 = vadd.f32 %v160_v0, %v81_v1  ;;  %v84_v14 = vmul.f32 %v193_v2, %v31_v9  ;;  %129 = vst [vmem:[%s441_s2 + $0x70] sm:$0xff] %v104_v5  ;;  %v107_v17 = vadd.f32 %v161_v4, %v82_v6  ;;  %v33_v19 = vld [vmem:[%s440_s1 + $0xa8] sm:$0xff]  ;;  %v165_v20 = vld [vmem:[%s440_s1 + $0x170] sm:$0xff] }
  0x11   :  { %v85_v18 = vmul.f32 %v193_v2, %v32_v15  ;;  %v34_v21 = vld [vmem:[%s440_s1 + $0xb0] sm:$0xff]  ;;  %130 = vst [vmem:[%s441_s2 + $0x78] sm:$0xff] %v105_v10  ;;  %v108_v22 = vadd.f32 %v162_v8, %v83_v12  ;;  %v86_v24 = vmul.f32 %v193_v2, %v33_v19  ;;  %v166_v25 = vld [vmem:[%s440_s1 + $0x178] sm:$0xff]  ;;  %v167_v28 = vld [vmem:[%s440_s1 + $0x180] sm:$0xff] }
  0x12   :  { %131 = vst [vmem:[%s441_s2 + $0x80] sm:$0xff] %v106_v11  ;;  %v109_v23 = vadd.f32 %v163_v13, %v84_v14  ;;  %v87_v26 = vmul.f32 %v193_v2, %v34_v21  ;;  %v35_v27 = vld [vmem:[%s440_s1 + $0xb8] sm:$0xff]  ;;  %132 = vst [vmem:[%s441_s2 + $0x88] sm:$0xff] %v107_v17  ;;  %v36_v31 = vld [vmem:[%s440_s1 + $0xc0] sm:$0xf] }
  0x13   :  { %v110_v29 = vadd.f32 %v164_v16, %v85_v18  ;;  %v88_v30 = vmul.f32 %v193_v2, %v35_v27  ;;  %v168_v32 = vld [vmem:[%s440_s1 + $0x188] sm:$0xf]  ;;  %133 = vst [vmem:[%s441_s2 + $0x90] sm:$0xff] %v108_v22  ;;  %v111_v33 = vadd.f32 %v165_v20, %v86_v24  ;;  %v89_v35 = vmul.f32 %v193_v2, %v36_v31 }
  0x14   :  { %134 = vst [vmem:[%s441_s2 + $0x98] sm:$0xff] %v109_v23  ;;  %v112_v34 = vadd.f32 %v166_v25, %v87_v26 }
  0x15   :  { %135 = vst [vmem:[%s441_s2 + $0xa0] sm:$0xff] %v110_v29  ;;  %v113_v36 = vadd.f32 %v167_v28, %v88_v30  ;;  %136 = vst [vmem:[%s441_s2 + $0xa8] sm:$0xff] %v111_v33  ;;  %v114_v37 = vadd.f32 %v168_v32, %v89_v35 }
  0x16   :  { %137 = vst [vmem:[%s441_s2 + $0xb0] sm:$0xff] %v112_v34 }
  0x17   :  { %138 = vst [vmem:[%s441_s2 + $0xb8] sm:$0xff] %v113_v36  ;;  %139 = vst [vmem:[%s441_s2 + $0xc0] sm:$0xf] %v114_v37 }

</bundles_post_ra>
